<compile_context>
chip_gen: v7x
topology: tpu7x:2x2x1
jax: 0.10.0
libtpu: 0.0.40
codegen_flags: <defaults>
</compile_context>

<pallas_src>
import functools

import jax
import jax.numpy as jnp
from jax.experimental import pallas as pl
from jax.experimental.pallas import tpu as pltpu

NEG_SLOPE = 0.01  # PyTorch nn.LeakyReLU default negative slope
EPS = 1e-5        # PyTorch BatchNorm default eps


# ----------------------------------------------------------------------------
# Kernel 1: Linear + fused BN(eval) + LeakyReLU (whole batch, single step).
# Output is written in bf16 so the HBM round trip to the conv kernel is halved
# and the conv stack's first-layer LHS is already in matmul dtype.
# ----------------------------------------------------------------------------
def _linear_bn_lrelu_kernel(x_ref, w_ref, scale_ref, shift_ref, o_ref):
    # x: (B, S) f32   w: (S, F) bf16   scale/shift: (1, F) f32   o: (B, F) bf16
    y = jnp.dot(x_ref[...].astype(jnp.bfloat16), w_ref[...],
                preferred_element_type=jnp.float32)
    y = y * scale_ref[...] + shift_ref[...]
    y = jnp.where(y > 0, y, NEG_SLOPE * y)
    o_ref[...] = y.astype(jnp.bfloat16)


# ----------------------------------------------------------------------------
# Kernel 2: fused 5-layer ConvTranspose2d stack, batch folded into M.
#
# Activation layout: 2-D (N, C) where row r = b*P + i*stride + j holds pixel
# (i, j) of batch b's image (stride = dim2, P = dim1*dim2, constant through the
# stack).  ConvTranspose2d(k=2, s=1, p=1) == valid correlation with the flipped
# 2x2 kernel, so output row r reads input rows r, r+1, r+stride, r+stride+1.
# Rows outside the shrinking valid image (or crossing a batch block) carry
# garbage but are never read by valid outputs and never gathered.
# ----------------------------------------------------------------------------
def _convt_layer(h, w, scale, shift, stride):
    """One ConvTranspose2d(k=2,s=1,p=1) + BN(eval) + LeakyReLU on the strided image."""
    n, cin = h.shape
    m = n - stride - 1
    t00 = h[0:m, :]
    t01 = h[1:m + 1, :]
    t10 = h[stride:stride + m, :]
    t11 = h[stride + 1:stride + 1 + m, :]
    if cin % 128 == 0:
        # K-concatenated single MXU dot: (m, 4*Cin) @ (4*Cin, Cout) fills the
        # MXU depth and moves the 3 tap-adds into the systolic array.
        lhs = jnp.concatenate([t00, t01, t10, t11], axis=1)
        acc = jnp.dot(lhs, w, preferred_element_type=jnp.float32)
    else:
        # First layer (Cin=64, lane-unaligned): keep the 4-dot accumulate chain
        # (single `acc +=` chain so v7x's MRB accumulates in place).
        acc = jnp.dot(t00, w[0:cin, :], preferred_element_type=jnp.float32)
        acc += jnp.dot(t01, w[cin:2 * cin, :], preferred_element_type=jnp.float32)
        acc += jnp.dot(t10, w[2 * cin:3 * cin, :], preferred_element_type=jnp.float32)
        acc += jnp.dot(t11, w[3 * cin:4 * cin, :], preferred_element_type=jnp.float32)
    y = acc * scale + shift                      # f32 epilogue (v5e-safe)
    y = jnp.where(y > 0, y, NEG_SLOPE * y)
    return y.astype(jnp.bfloat16)                # bf16 carry: halves live bytes


def _conv_stack_kernel(h_ref, w0_ref, s0_ref, t0_ref, w1_ref, s1_ref, t1_ref,
                       w2_ref, s2_ref, t2_ref, w3_ref, s3_ref, t3_ref,
                       w4_ref, b4_ref, o_ref, *, stride, rows_per_batch, batch,
                       n_cns, n_vns):
    h = h_ref[...]                               # (B*P, C0) bf16 strided image

    for w_ref, sc_ref, sh_ref in ((w0_ref, s0_ref, t0_ref),
                                  (w1_ref, s1_ref, t1_ref),
                                  (w2_ref, s2_ref, t2_ref),
                                  (w3_ref, s3_ref, t3_ref)):
        h = _convt_layer(h, w_ref[...], sc_ref[...], sh_ref[...], stride)

    # Last ConvTranspose2d (Cout=1): VPU mul + lane reduce + sigmoid, in f32.
    n, cin = h.shape
    m = n - stride - 1
    hf = h.astype(jnp.float32)
    w4 = w4_ref[...]                             # (4, Cin) f32, scale folded in
    acc = (hf[0:m, :] * w4[0:1, :]
           + hf[1:m + 1, :] * w4[1:2, :]
           + hf[stride:stride + m, :] * w4[2:3, :]
           + hf[stride + 1:stride + 1 + m, :] * w4[3:4, :])
    y = jnp.sum(acc, axis=-1, keepdims=True) + b4_ref[...]      # (m, 1)
    y = 1.0 / (1.0 + jnp.exp(-y))

    # In-kernel valid-row gather: output row (b, i, j) lives at b*P + i*stride + j.
    out_row = 0
    for b in range(batch):
        for i in range(n_cns):
            src = b * rows_per_batch + i * stride
            o_ref[out_row:out_row + n_vns, :] = y[src:src + n_vns, :]
            out_row += n_vns


# ----------------------------------------------------------------------------
# Parameter preparation (one-time, plain JAX): permutation folding, tap packing,
# bf16 weight casts.
# ----------------------------------------------------------------------------
def prepare_params(params, hidden_c, dim1, dim2):
    S, F = params["w_lin"].shape
    # Fold the NCHW -> NHWC view/transpose into the linear weight columns.
    w_lin = (params["w_lin"].reshape(S, hidden_c, dim1, dim2)
             .transpose(0, 2, 3, 1).reshape(S, F)).astype(jnp.bfloat16)
    lin_scale = (params["lin_scale"].reshape(hidden_c, dim1, dim2)
                 .transpose(1, 2, 0).reshape(1, F))
    lin_shift = (params["lin_shift"].reshape(hidden_c, dim1, dim2)
                 .transpose(1, 2, 0).reshape(1, F))

    # Conv layers 0..3: flipped 2x2 taps stacked into one (4*Cin, Cout) bf16 weight.
    w_cat, conv_scale, conv_shift = [], [], []
    for l in range(4):
        wf = jnp.flip(params["conv_w"][l], axis=(2, 3))      # (Cin, Cout, 2, 2)
        w_cat.append(jnp.concatenate(
            [wf[:, :, 0, 0], wf[:, :, 0, 1], wf[:, :, 1, 0], wf[:, :, 1, 1]],
            axis=0).astype(jnp.bfloat16))                    # (4*Cin, Cout)
        conv_scale.append(params["conv_scale"][l])
        conv_shift.append(params["conv_shift"][l])

    # Last layer (Cout=1): (4, Cin) f32 taps for the VPU path; scale folded in.
    wf4 = jnp.flip(params["conv_w"][4], axis=(2, 3))         # (Cin, 1, 2, 2)
    w4 = jnp.stack([wf4[:, 0, 0, 0], wf4[:, 0, 0, 1],
                    wf4[:, 0, 1, 0], wf4[:, 0, 1, 1]], axis=0)   # (4, Cin)
    w4 = w4 * params["conv_scale"][4][0, 0]
    b4 = params["conv_shift"][4].reshape(1, 1)

    return dict(w_lin=w_lin, lin_scale=lin_scale, lin_shift=lin_shift,
                w_cat=w_cat, conv_scale=conv_scale, conv_shift=conv_shift,
                w4=w4, b4=b4)


# ----------------------------------------------------------------------------
# Full forward (Pallas) and a pure-jnp f32 reference for sanity checking.
# ----------------------------------------------------------------------------
def actor_cnn_forward(x, prep, B, hidden_c, dim1, dim2, n_cns, n_vns):
    F = hidden_c * dim1 * dim2
    P = dim1 * dim2
    stride = dim2

    # Launch 1: Linear + BN(eval) + LeakyReLU for the whole batch (bf16 matmul).
    h = pl.pallas_call(
        _linear_bn_lrelu_kernel,
        out_shape=jax.ShapeDtypeStruct((B, F), jnp.bfloat16),
    )(x, prep["w_lin"], prep["lin_scale"], prep["lin_shift"])

    # Columns are pre-permuted to (i, j, c) order -> this reshape is a free,
    # contiguous bitcast that also folds batch into the conv-stack M dimension.
    h = h.reshape(B * P, hidden_c)

    kernel = functools.partial(
        _conv_stack_kernel, stride=stride, rows_per_batch=P, batch=B,
        n_cns=n_cns, n_vns=n_vns)

    args = [h]
    for l in range(4):
        args += [prep["w_cat"][l], prep["conv_scale"][l], prep["conv_shift"][l]]
    args += [prep["w4"], prep["b4"]]

    # Launch 2: fused conv stack + sigmoid + valid-row gather, single grid step
    # (all weights resident in VMEM, ~1.7 MiB bf16 — fits every generation).
    res = pl.pallas_call(
        kernel,
        out_shape=jax.ShapeDtypeStruct((B * n_cns * n_vns, 1), jnp.float32),
        compiler_params=pltpu.CompilerParams(
            vmem_limit_bytes=32 * 1024 * 1024),
    )(*args)

    # Free contiguous reshape (no gather / transpose in XLA).
    return res.reshape(B, 1, n_cns, n_vns)


def actor_cnn_reference(x, params, B, hidden_c, dim1, dim2):
    hp = jax.lax.Precision.HIGHEST
    y = jnp.dot(x, params["w_lin"], precision=hp)
    y = y * params["lin_scale"] + params["lin_shift"]
    y = jnp.where(y > 0, y, NEG_SLOPE * y)
    h = y.reshape(B, hidden_c, dim1, dim2).transpose(0, 2, 3, 1)
    for l in range(5):
        wf = jnp.flip(params["conv_w"][l], axis=(2, 3))
        Hin, Win = h.shape[1], h.shape[2]
        acc = (jnp.einsum("bhwc,cd->bhwd", h[:, 0:Hin - 1, 0:Win - 1, :], wf[:, :, 0, 0], precision=hp)
               + jnp.einsum("bhwc,cd->bhwd", h[:, 0:Hin - 1, 1:Win, :], wf[:, :, 0, 1], precision=hp)
               + jnp.einsum("bhwc,cd->bhwd", h[:, 1:Hin, 0:Win - 1, :], wf[:, :, 1, 0], precision=hp)
               + jnp.einsum("bhwc,cd->bhwd", h[:, 1:Hin, 1:Win, :], wf[:, :, 1, 1], precision=hp))
        y = acc * params["conv_scale"][l] + params["conv_shift"][l]
        h = jnp.where(y > 0, y, NEG_SLOPE * y) if l < 4 else jax.nn.sigmoid(y)
    return h.transpose(0, 3, 1, 2)


if __name__ == "__main__":
    # Module hyper-parameters (small, consistent with actor_cnn)
    n_vns, n_cns, state_size = 3, 3, 128
    B = 2
    hidden_c = 64
    # cnn_dim(ts) = ts + 2*padding - filter + 1 = ts + 1, applied 5 times
    dim1 = n_cns + 5
    dim2 = n_vns + 5
    F = hidden_c * dim1 * dim2

    key = jax.random.PRNGKey(0)
    keys = jax.random.split(key, 20)

    # Input: (B, state_size)
    x = jax.random.normal(keys[0], (B, state_size), dtype=jnp.float32)

    # ---- parameter init (deterministic, synthetic) --------------------------
    w_lin = jax.random.normal(keys[1], (state_size, F), jnp.float32) / jnp.sqrt(state_size)
    b_lin = 0.01 * jax.random.normal(keys[2], (F,), jnp.float32)
    bn_scale = 1.0 / jnp.sqrt(1.0 + EPS)          # gamma=1, running_var=1
    lin_scale = (jnp.full((F,), bn_scale))[None, :]
    lin_shift = (bn_scale * b_lin)[None, :]       # beta=0, running_mean=0

    chans = [hidden_c, hidden_c * 8, hidden_c * 4, hidden_c * 2, hidden_c, 1]
    conv_w, conv_scale, conv_shift = [], [], []
    for l in range(5):
        cin, cout = chans[l], chans[l + 1]
        w = jax.random.normal(keys[3 + 2 * l], (cin, cout, 2, 2), jnp.float32) / jnp.sqrt(4.0 * cin)
        b = 0.01 * jax.random.normal(keys[4 + 2 * l], (cout,), jnp.float32)
        conv_w.append(w)
        if l < 4:  # BN(eval) fused with conv bias
            conv_scale.append(jnp.full((1, cout), bn_scale, jnp.float32))
            conv_shift.append((bn_scale * b)[None, :])
        else:      # last layer: no BN, just bias then sigmoid
            conv_scale.append(jnp.ones((1, cout), jnp.float32))
            conv_shift.append(b[None, :])

    params = dict(w_lin=w_lin, lin_scale=lin_scale, lin_shift=lin_shift,
                  conv_w=conv_w, conv_scale=conv_scale, conv_shift=conv_shift)

    # ---- one-time parameter prep (permutation / tap packing / bf16 cast) ----
    prep = prepare_params(params, hidden_c, dim1, dim2)

    # ---- run Pallas forward --------------------------------------------------
    fwd = jax.jit(lambda xx: actor_cnn_forward(xx, prep, B, hidden_c, dim1, dim2,
                                               n_cns, n_vns))
    out = jax.block_until_ready(fwd(x))
    assert out.shape == (B, 1, n_cns, n_vns), out.shape

    # Sanity check vs a pure-jnp f32 (highest-precision) reference of the same
    # math.  The Pallas path uses bf16 weights/activations with f32 accumulation,
    # so allow a slightly looser tolerance on the (0,1)-bounded sigmoid outputs.
    ref = jax.block_until_ready(actor_cnn_reference(x, params, B, hidden_c, dim1, dim2))
    assert bool(jnp.all(jnp.isfinite(out)))
    assert bool(jnp.allclose(out, ref, rtol=2e-2, atol=2e-2)), float(jnp.max(jnp.abs(out - ref)))

    print("KERNEL_OK")
</pallas_src>

<mosaic_0001>
module attributes {stable_mosaic.version = 11 : i64} {
  func.func @_linear_bn_lrelu_kernel(%arg0: memref<2x128xf32, #tpu.memory_space<vmem>>, %arg1: memref<128x4096xbf16, #tpu.memory_space<vmem>>, %arg2: memref<1x4096xf32, #tpu.memory_space<vmem>>, %arg3: memref<1x4096xf32, #tpu.memory_space<vmem>>, %arg4: memref<2x4096xbf16, #tpu.memory_space<vmem>>) attributes {dimension_semantics = [], scalar_prefetch = 0 : i64, scratch_operands = 0 : i64, tpu.core_type = #tpu.core_type<tc>} {
    %c0 = arith.constant 0 : index
    %c0_0 = arith.constant 0 : index
    %0 = vector.load %arg0[%c0, %c0_0] : memref<2x128xf32, #tpu.memory_space<vmem>>, vector<2x128xf32>
    %1 = arith.truncf %0 : vector<2x128xf32> to vector<2x128xbf16>
    %c0_1 = arith.constant 0 : index
    %c0_2 = arith.constant 0 : index
    %2 = vector.load %arg1[%c0_1, %c0_2] : memref<128x4096xbf16, #tpu.memory_space<vmem>>, vector<128x4096xbf16>
    %cst = arith.constant dense<0.000000e+00> : vector<2x4096xf32>
    %3 = tpu.matmul %1, %2, %cst {dimension_numbers = #tpu.dot_dimension_numbers<[1], [0], [0], [1], [0, 0, 1, 1], [], []>} : vector<2x128xbf16>, vector<128x4096xbf16>, vector<2x4096xf32> -> vector<2x4096xf32>
    %c0_3 = arith.constant 0 : index
    %c0_4 = arith.constant 0 : index
    %4 = vector.load %arg2[%c0_3, %c0_4] : memref<1x4096xf32, #tpu.memory_space<vmem>>, vector<1x4096xf32>
    %5 = vector.shape_cast %4 : vector<1x4096xf32> to vector<1x4096xf32>
    %6 = vector.broadcast %5 : vector<1x4096xf32> to vector<2x4096xf32>
    %7 = arith.mulf %3, %6 : vector<2x4096xf32>
    %c0_5 = arith.constant 0 : index
    %c0_6 = arith.constant 0 : index
    %8 = vector.load %arg3[%c0_5, %c0_6] : memref<1x4096xf32, #tpu.memory_space<vmem>>, vector<1x4096xf32>
    %9 = vector.broadcast %8 : vector<1x4096xf32> to vector<2x4096xf32>
    %10 = arith.addf %7, %9 : vector<2x4096xf32>
    %cst_7 = arith.constant 0.000000e+00 : f32
    %11 = vector.broadcast %cst_7 : f32 to vector<2x4096xf32>
    %12 = arith.cmpf ogt, %10, %11 : vector<2x4096xf32>
    %cst_8 = arith.constant 0.00999999977 : f32
    %13 = vector.broadcast %cst_8 : f32 to vector<2x4096xf32>
    %14 = arith.mulf %13, %10 : vector<2x4096xf32>
    %15 = arith.select %12, %10, %14 : vector<2x4096xi1>, vector<2x4096xf32>
    %16 = arith.truncf %15 : vector<2x4096xf32> to vector<2x4096xbf16>
    %c0_9 = arith.constant 0 : index
    %c0_10 = arith.constant 0 : index
    %17 = vector.load %arg4[%c0_9, %c0_10] : memref<2x4096xbf16, #tpu.memory_space<vmem>>, vector<2x4096xbf16>
    tpu.vector_store %arg4[%c0_9, %c0_10], %16 {strides = array<i32>} : memref<2x4096xbf16, #tpu.memory_space<vmem>>, vector<2x4096xbf16>,
    return
  }
}

module attributes {stable_mosaic.version = 11 : i64} {
  func.func @_conv_stack_kernel(%arg0: memref<128x64xbf16, #tpu.memory_space<vmem>>, %arg1: memref<256x512xbf16, #tpu.memory_space<vmem>>, %arg2: memref<1x512xf32, #tpu.memory_space<vmem>>, %arg3: memref<1x512xf32, #tpu.memory_space<vmem>>, %arg4: memref<2048x256xbf16, #tpu.memory_space<vmem>>, %arg5: memref<1x256xf32, #tpu.memory_space<vmem>>, %arg6: memref<1x256xf32, #tpu.memory_space<vmem>>, %arg7: memref<1024x128xbf16, #tpu.memory_space<vmem>>, %arg8: memref<1x128xf32, #tpu.memory_space<vmem>>, %arg9: memref<1x128xf32, #tpu.memory_space<vmem>>, %arg10: memref<512x64xbf16, #tpu.memory_space<vmem>>, %arg11: memref<1x64xf32, #tpu.memory_space<vmem>>, %arg12: memref<1x64xf32, #tpu.memory_space<vmem>>, %arg13: memref<4x64xf32, #tpu.memory_space<vmem>>, %arg14: memref<1x1xf32, #tpu.memory_space<vmem>>, %arg15: memref<18x1xf32, #tpu.memory_space<vmem>>) attributes {dimension_semantics = [], scalar_prefetch = 0 : i64, scratch_operands = 0 : i64, tpu.core_type = #tpu.core_type<tc>} {
    %c0 = arith.constant 0 : index
    %c0_0 = arith.constant 0 : index
    %0 = vector.load %arg0[%c0, %c0_0] : memref<128x64xbf16, #tpu.memory_space<vmem>>, vector<128x64xbf16>
    %c0_1 = arith.constant 0 : index
    %c0_2 = arith.constant 0 : index
    %1 = vector.load %arg1[%c0_1, %c0_2] : memref<256x512xbf16, #tpu.memory_space<vmem>>, vector<256x512xbf16>
    %c0_3 = arith.constant 0 : index
    %c0_4 = arith.constant 0 : index
    %2 = vector.load %arg2[%c0_3, %c0_4] : memref<1x512xf32, #tpu.memory_space<vmem>>, vector<1x512xf32>
    %c0_5 = arith.constant 0 : index
    %c0_6 = arith.constant 0 : index
    %3 = vector.load %arg3[%c0_5, %c0_6] : memref<1x512xf32, #tpu.memory_space<vmem>>, vector<1x512xf32>
    %4 = vector.extract_strided_slice %0 {offsets = [0, 0], sizes = [119, 64], strides = [1, 1]} : vector<128x64xbf16> to vector<119x64xbf16>
    %5 = vector.extract_strided_slice %0 {offsets = [1, 0], sizes = [119, 64], strides = [1, 1]} : vector<128x64xbf16> to vector<119x64xbf16>
    %6 = vector.extract_strided_slice %0 {offsets = [8, 0], sizes = [119, 64], strides = [1, 1]} : vector<128x64xbf16> to vector<119x64xbf16>
    %7 = vector.extract_strided_slice %0 {offsets = [9, 0], sizes = [119, 64], strides = [1, 1]} : vector<128x64xbf16> to vector<119x64xbf16>
    %8 = vector.extract_strided_slice %1 {offsets = [0, 0], sizes = [64, 512], strides = [1, 1]} : vector<256x512xbf16> to vector<64x512xbf16>
    %cst = arith.constant dense<0.000000e+00> : vector<119x512xf32>
    %9 = tpu.matmul %4, %8, %cst {dimension_numbers = #tpu.dot_dimension_numbers<[1], [0], [0], [1], [0, 0, 1, 1], [], []>} : vector<119x64xbf16>, vector<64x512xbf16>, vector<119x512xf32> -> vector<119x512xf32>
    %10 = vector.extract_strided_slice %1 {offsets = [64, 0], sizes = [64, 512], strides = [1, 1]} : vector<256x512xbf16> to vector<64x512xbf16>
    %cst_7 = arith.constant dense<0.000000e+00> : vector<119x512xf32>
    %11 = tpu.matmul %5, %10, %cst_7 {dimension_numbers = #tpu.dot_dimension_numbers<[1], [0], [0], [1], [0, 0, 1, 1], [], []>} : vector<119x64xbf16>, vector<64x512xbf16>, vector<119x512xf32> -> vector<119x512xf32>
    %12 = arith.addf %9, %11 : vector<119x512xf32>
    %13 = vector.extract_strided_slice %1 {offsets = [128, 0], sizes = [64, 512], strides = [1, 1]} : vector<256x512xbf16> to vector<64x512xbf16>
    %cst_8 = arith.constant dense<0.000000e+00> : vector<119x512xf32>
    %14 = tpu.matmul %6, %13, %cst_8 {dimension_numbers = #tpu.dot_dimension_numbers<[1], [0], [0], [1], [0, 0, 1, 1], [], []>} : vector<119x64xbf16>, vector<64x512xbf16>, vector<119x512xf32> -> vector<119x512xf32>
    %15 = arith.addf %12, %14 : vector<119x512xf32>
    %16 = vector.extract_strided_slice %1 {offsets = [192, 0], sizes = [64, 512], strides = [1, 1]} : vector<256x512xbf16> to vector<64x512xbf16>
    %cst_9 = arith.constant dense<0.000000e+00> : vector<119x512xf32>
    %17 = tpu.matmul %7, %16, %cst_9 {dimension_numbers = #tpu.dot_dimension_numbers<[1], [0], [0], [1], [0, 0, 1, 1], [], []>} : vector<119x64xbf16>, vector<64x512xbf16>, vector<119x512xf32> -> vector<119x512xf32>
    %18 = arith.addf %15, %17 : vector<119x512xf32>
    %19 = vector.broadcast %2 : vector<1x512xf32> to vector<119x512xf32>
    %20 = arith.mulf %18, %19 : vector<119x512xf32>
    %21 = vector.broadcast %3 : vector<1x512xf32> to vector<119x512xf32>
    %22 = arith.addf %20, %21 : vector<119x512xf32>
    %cst_10 = arith.constant 0.000000e+00 : f32
    %23 = vector.broadcast %cst_10 : f32 to vector<119x512xf32>
    %24 = arith.cmpf ogt, %22, %23 : vector<119x512xf32>
    %cst_11 = arith.constant 0.00999999977 : f32
    %25 = vector.broadcast %cst_11 : f32 to vector<119x512xf32>
    %26 = arith.mulf %25, %22 : vector<119x512xf32>
    %27 = arith.select %24, %22, %26 : vector<119x512xi1>, vector<119x512xf32>
    %28 = arith.truncf %27 : vector<119x512xf32> to vector<119x512xbf16>
    %c0_12 = arith.constant 0 : index
    %c0_13 = arith.constant 0 : index
    %29 = vector.load %arg4[%c0_12, %c0_13] : memref<2048x256xbf16, #tpu.memory_space<vmem>>, vector<2048x256xbf16>
    %c0_14 = arith.constant 0 : index
    %c0_15 = arith.constant 0 : index
    %30 = vector.load %arg5[%c0_14, %c0_15] : memref<1x256xf32, #tpu.memory_space<vmem>>, vector<1x256xf32>
    %c0_16 = arith.constant 0 : index
    %c0_17 = arith.constant 0 : index
    %31 = vector.load %arg6[%c0_16, %c0_17] : memref<1x256xf32, #tpu.memory_space<vmem>>, vector<1x256xf32>
    %32 = vector.extract_strided_slice %28 {offsets = [0, 0], sizes = [110, 512], strides = [1, 1]} : vector<119x512xbf16> to vector<110x512xbf16>
    %33 = vector.extract_strided_slice %28 {offsets = [1, 0], sizes = [110, 512], strides = [1, 1]} : vector<119x512xbf16> to vector<110x512xbf16>
    %34 = vector.extract_strided_slice %28 {offsets = [8, 0], sizes = [110, 512], strides = [1, 1]} : vector<119x512xbf16> to vector<110x512xbf16>
    %35 = vector.extract_strided_slice %28 {offsets = [9, 0], sizes = [110, 512], strides = [1, 1]} : vector<119x512xbf16> to vector<110x512xbf16>
    %36 = tpu.concatenate %32, %33, %34, %35 in 1 : vector<110x512xbf16>, vector<110x512xbf16>, vector<110x512xbf16>, vector<110x512xbf16> -> vector<110x2048xbf16>
    %cst_18 = arith.constant dense<0.000000e+00> : vector<110x256xf32>
    %37 = tpu.matmul %36, %29, %cst_18 {dimension_numbers = #tpu.dot_dimension_numbers<[1], [0], [0], [1], [0, 0, 1, 1], [], []>} : vector<110x2048xbf16>, vector<2048x256xbf16>, vector<110x256xf32> -> vector<110x256xf32>
    %38 = vector.broadcast %30 : vector<1x256xf32> to vector<110x256xf32>
    %39 = arith.mulf %37, %38 : vector<110x256xf32>
    %40 = vector.broadcast %31 : vector<1x256xf32> to vector<110x256xf32>
    %41 = arith.addf %39, %40 : vector<110x256xf32>
    %cst_19 = arith.constant 0.000000e+00 : f32
    %42 = vector.broadcast %cst_19 : f32 to vector<110x256xf32>
    %43 = arith.cmpf ogt, %41, %42 : vector<110x256xf32>
    %cst_20 = arith.constant 0.00999999977 : f32
    %44 = vector.broadcast %cst_20 : f32 to vector<110x256xf32>
    %45 = arith.mulf %44, %41 : vector<110x256xf32>
    %46 = arith.select %43, %41, %45 : vector<110x256xi1>, vector<110x256xf32>
    %47 = arith.truncf %46 : vector<110x256xf32> to vector<110x256xbf16>
    %c0_21 = arith.constant 0 : index
    %c0_22 = arith.constant 0 : index
    %48 = vector.load %arg7[%c0_21, %c0_22] : memref<1024x128xbf16, #tpu.memory_space<vmem>>, vector<1024x128xbf16>
    %c0_23 = arith.constant 0 : index
    %c0_24 = arith.constant 0 : index
    %49 = vector.load %arg8[%c0_23, %c0_24] : memref<1x128xf32, #tpu.memory_space<vmem>>, vector<1x128xf32>
    %c0_25 = arith.constant 0 : index
    %c0_26 = arith.constant 0 : index
    %50 = vector.load %arg9[%c0_25, %c0_26] : memref<1x128xf32, #tpu.memory_space<vmem>>, vector<1x128xf32>
    %51 = vector.extract_strided_slice %47 {offsets = [0, 0], sizes = [101, 256], strides = [1, 1]} : vector<110x256xbf16> to vector<101x256xbf16>
    %52 = vector.extract_strided_slice %47 {offsets = [1, 0], sizes = [101, 256], strides = [1, 1]} : vector<110x256xbf16> to vector<101x256xbf16>
    %53 = vector.extract_strided_slice %47 {offsets = [8, 0], sizes = [101, 256], strides = [1, 1]} : vector<110x256xbf16> to vector<101x256xbf16>
    %54 = vector.extract_strided_slice %47 {offsets = [9, 0], sizes = [101, 256], strides = [1, 1]} : vector<110x256xbf16> to vector<101x256xbf16>
    %55 = tpu.concatenate %51, %52, %53, %54 in 1 : vector<101x256xbf16>, vector<101x256xbf16>, vector<101x256xbf16>, vector<101x256xbf16> -> vector<101x1024xbf16>
    %cst_27 = arith.constant dense<0.000000e+00> : vector<101x128xf32>
    %56 = tpu.matmul %55, %48, %cst_27 {dimension_numbers = #tpu.dot_dimension_numbers<[1], [0], [0], [1], [0, 0, 1, 1], [], []>} : vector<101x1024xbf16>, vector<1024x128xbf16>, vector<101x128xf32> -> vector<101x128xf32>
    %57 = vector.broadcast %49 : vector<1x128xf32> to vector<101x128xf32>
    %58 = arith.mulf %56, %57 : vector<101x128xf32>
    %59 = vector.broadcast %50 : vector<1x128xf32> to vector<101x128xf32>
    %60 = arith.addf %58, %59 : vector<101x128xf32>
    %cst_28 = arith.constant 0.000000e+00 : f32
    %61 = vector.broadcast %cst_28 : f32 to vector<101x128xf32>
    %62 = arith.cmpf ogt, %60, %61 : vector<101x128xf32>
    %cst_29 = arith.constant 0.00999999977 : f32
    %63 = vector.broadcast %cst_29 : f32 to vector<101x128xf32>
    %64 = arith.mulf %63, %60 : vector<101x128xf32>
    %65 = arith.select %62, %60, %64 : vector<101x128xi1>, vector<101x128xf32>
    %66 = arith.truncf %65 : vector<101x128xf32> to vector<101x128xbf16>
    %c0_30 = arith.constant 0 : index
    %c0_31 = arith.constant 0 : index
    %67 = vector.load %arg10[%c0_30, %c0_31] : memref<512x64xbf16, #tpu.memory_space<vmem>>, vector<512x64xbf16>
    %c0_32 = arith.constant 0 : index
    %c0_33 = arith.constant 0 : index
    %68 = vector.load %arg11[%c0_32, %c0_33] : memref<1x64xf32, #tpu.memory_space<vmem>>, vector<1x64xf32>
    %c0_34 = arith.constant 0 : index
    %c0_35 = arith.constant 0 : index
    %69 = vector.load %arg12[%c0_34, %c0_35] : memref<1x64xf32, #tpu.memory_space<vmem>>, vector<1x64xf32>
    %70 = vector.extract_strided_slice %66 {offsets = [0, 0], sizes = [92, 128], strides = [1, 1]} : vector<101x128xbf16> to vector<92x128xbf16>
    %71 = vector.extract_strided_slice %66 {offsets = [1, 0], sizes = [92, 128], strides = [1, 1]} : vector<101x128xbf16> to vector<92x128xbf16>
    %72 = vector.extract_strided_slice %66 {offsets = [8, 0], sizes = [92, 128], strides = [1, 1]} : vector<101x128xbf16> to vector<92x128xbf16>
    %73 = vector.extract_strided_slice %66 {offsets = [9, 0], sizes = [92, 128], strides = [1, 1]} : vector<101x128xbf16> to vector<92x128xbf16>
    %74 = tpu.concatenate %70, %71, %72, %73 in 1 : vector<92x128xbf16>, vector<92x128xbf16>, vector<92x128xbf16>, vector<92x128xbf16> -> vector<92x512xbf16>
    %cst_36 = arith.constant dense<0.000000e+00> : vector<92x64xf32>
    %75 = tpu.matmul %74, %67, %cst_36 {dimension_numbers = #tpu.dot_dimension_numbers<[1], [0], [0], [1], [0, 0, 1, 1], [], []>} : vector<92x512xbf16>, vector<512x64xbf16>, vector<92x64xf32> -> vector<92x64xf32>
    %76 = vector.broadcast %68 : vector<1x64xf32> to vector<92x64xf32>
    %77 = arith.mulf %75, %76 : vector<92x64xf32>
    %78 = vector.broadcast %69 : vector<1x64xf32> to vector<92x64xf32>
    %79 = arith.addf %77, %78 : vector<92x64xf32>
    %cst_37 = arith.constant 0.000000e+00 : f32
    %80 = vector.broadcast %cst_37 : f32 to vector<92x64xf32>
    %81 = arith.cmpf ogt, %79, %80 : vector<92x64xf32>
    %cst_38 = arith.constant 0.00999999977 : f32
    %82 = vector.broadcast %cst_38 : f32 to vector<92x64xf32>
    %83 = arith.mulf %82, %79 : vector<92x64xf32>
    %84 = arith.select %81, %79, %83 : vector<92x64xi1>, vector<92x64xf32>
    %85 = arith.truncf %84 : vector<92x64xf32> to vector<92x64xbf16>
    %86 = arith.extf %85 : vector<92x64xbf16> to vector<92x64xf32>
    %c0_39 = arith.constant 0 : index
    %c0_40 = arith.constant 0 : index
    %87 = vector.load %arg13[%c0_39, %c0_40] : memref<4x64xf32, #tpu.memory_space<vmem>>, vector<4x64xf32>
    %88 = vector.extract_strided_slice %86 {offsets = [0, 0], sizes = [83, 64], strides = [1, 1]} : vector<92x64xf32> to vector<83x64xf32>
    %89 = vector.extract_strided_slice %87 {offsets = [0, 0], sizes = [1, 64], strides = [1, 1]} : vector<4x64xf32> to vector<1x64xf32>
    %90 = vector.broadcast %89 : vector<1x64xf32> to vector<83x64xf32>
    %91 = arith.mulf %88, %90 : vector<83x64xf32>
    %92 = vector.extract_strided_slice %86 {offsets = [1, 0], sizes = [83, 64], strides = [1, 1]} : vector<92x64xf32> to vector<83x64xf32>
    %93 = vector.extract_strided_slice %87 {offsets = [1, 0], sizes = [1, 64], strides = [1, 1]} : vector<4x64xf32> to vector<1x64xf32>
    %94 = vector.broadcast %93 : vector<1x64xf32> to vector<83x64xf32>
    %95 = arith.mulf %92, %94 : vector<83x64xf32>
    %96 = arith.addf %91, %95 : vector<83x64xf32>
    %97 = vector.extract_strided_slice %86 {offsets = [8, 0], sizes = [83, 64], strides = [1, 1]} : vector<92x64xf32> to vector<83x64xf32>
    %98 = vector.extract_strided_slice %87 {offsets = [2, 0], sizes = [1, 64], strides = [1, 1]} : vector<4x64xf32> to vector<1x64xf32>
    %99 = vector.broadcast %98 : vector<1x64xf32> to vector<83x64xf32>
    %100 = arith.mulf %97, %99 : vector<83x64xf32>
    %101 = arith.addf %96, %100 : vector<83x64xf32>
    %102 = vector.extract_strided_slice %86 {offsets = [9, 0], sizes = [83, 64], strides = [1, 1]} : vector<92x64xf32> to vector<83x64xf32>
    %103 = vector.extract_strided_slice %87 {offsets = [3, 0], sizes = [1, 64], strides = [1, 1]} : vector<4x64xf32> to vector<1x64xf32>
    %104 = vector.broadcast %103 : vector<1x64xf32> to vector<83x64xf32>
    %105 = arith.mulf %102, %104 : vector<83x64xf32>
    %106 = arith.addf %101, %105 : vector<83x64xf32>
    %cst_41 = arith.constant dense<0.000000e+00> : vector<83xf32>
    %107 = vector.multi_reduction <add>, %106, %cst_41 [1] : vector<83x64xf32> to vector<83xf32>
    %108 = vector.shape_cast %107 : vector<83xf32> to vector<83x1xf32>
    %c0_42 = arith.constant 0 : index
    %c0_43 = arith.constant 0 : index
    %109 = vector.load %arg14[%c0_42, %c0_43] : memref<1x1xf32, #tpu.memory_space<vmem>>, vector<1x1xf32>
    %110 = vector.broadcast %109 : vector<1x1xf32> to vector<83x1xf32>
    %111 = arith.addf %108, %110 : vector<83x1xf32>
    %cst_44 = arith.constant 0.000000e+00 : f32
    %112 = vector.broadcast %cst_44 : f32 to vector<83x1xf32>
    %113 = arith.subf %112, %111 : vector<83x1xf32>
    %114 = math.exp %113 : vector<83x1xf32>
    %cst_45 = arith.constant 1.000000e+00 : f32
    %115 = vector.broadcast %cst_45 : f32 to vector<83x1xf32>
    %116 = arith.addf %115, %114 : vector<83x1xf32>
    %cst_46 = arith.constant 1.000000e+00 : f32
    %117 = vector.broadcast %cst_46 : f32 to vector<83x1xf32>
    %118 = arith.divf %117, %116 : vector<83x1xf32>
    %119 = vector.extract_strided_slice %118 {offsets = [0, 0], sizes = [3, 1], strides = [1, 1]} : vector<83x1xf32> to vector<3x1xf32>
    %c0_47 = arith.constant 0 : index
    %c0_48 = arith.constant 0 : index
    %120 = vector.load %arg15[%c0_47, %c0_48] : memref<18x1xf32, #tpu.memory_space<vmem>>, vector<3x1xf32>
    tpu.vector_store %arg15[%c0_47, %c0_48], %119 {strides = array<i32>} : memref<18x1xf32, #tpu.memory_space<vmem>>, vector<3x1xf32>,
    %121 = vector.extract_strided_slice %118 {offsets = [8, 0], sizes = [3, 1], strides = [1, 1]} : vector<83x1xf32> to vector<3x1xf32>
    %c3 = arith.constant 3 : index
    %c0_49 = arith.constant 0 : index
    %122 = vector.load %arg15[%c3, %c0_49] : memref<18x1xf32, #tpu.memory_space<vmem>>, vector<3x1xf32>
    tpu.vector_store %arg15[%c3, %c0_49], %121 {strides = array<i32>} : memref<18x1xf32, #tpu.memory_space<vmem>>, vector<3x1xf32>,
    %123 = vector.extract_strided_slice %118 {offsets = [16, 0], sizes = [3, 1], strides = [1, 1]} : vector<83x1xf32> to vector<3x1xf32>
    %c6 = arith.constant 6 : index
    %c0_50 = arith.constant 0 : index
    %124 = vector.load %arg15[%c6, %c0_50] : memref<18x1xf32, #tpu.memory_space<vmem>>, vector<3x1xf32>
    tpu.vector_store %arg15[%c6, %c0_50], %123 {strides = array<i32>} : memref<18x1xf32, #tpu.memory_space<vmem>>, vector<3x1xf32>,
    %125 = vector.extract_strided_slice %118 {offsets = [64, 0], sizes = [3, 1], strides = [1, 1]} : vector<83x1xf32> to vector<3x1xf32>
    %c9 = arith.constant 9 : index
    %c0_51 = arith.constant 0 : index
    %126 = vector.load %arg15[%c9, %c0_51] : memref<18x1xf32, #tpu.memory_space<vmem>>, vector<3x1xf32>
    tpu.vector_store %arg15[%c9, %c0_51], %125 {strides = array<i32>} : memref<18x1xf32, #tpu.memory_space<vmem>>, vector<3x1xf32>,
    %127 = vector.extract_strided_slice %118 {offsets = [72, 0], sizes = [3, 1], strides = [1, 1]} : vector<83x1xf32> to vector<3x1xf32>
    %c12 = arith.constant 12 : index
    %c0_52 = arith.constant 0 : index
    %128 = vector.load %arg15[%c12, %c0_52] : memref<18x1xf32, #tpu.memory_space<vmem>>, vector<3x1xf32>
    tpu.vector_store %arg15[%c12, %c0_52], %127 {strides = array<i32>} : memref<18x1xf32, #tpu.memory_space<vmem>>, vector<3x1xf32>,
    %129 = vector.extract_strided_slice %118 {offsets = [80, 0], sizes = [3, 1], strides = [1, 1]} : vector<83x1xf32> to vector<3x1xf32>
    %c15 = arith.constant 15 : index
    %c0_53 = arith.constant 0 : index
    %130 = vector.load %arg15[%c15, %c0_53] : memref<18x1xf32, #tpu.memory_space<vmem>>, vector<3x1xf32>
    tpu.vector_store %arg15[%c15, %c0_53], %129 {strides = array<i32>} : memref<18x1xf32, #tpu.memory_space<vmem>>, vector<3x1xf32>,
    return
  }
}

</mosaic_0001>

<bundles_post_ra>
// kernel: _lambda_.2
= control target key start
LH: loop header
LB: loop body
LE: loop exit
PB: predicated region body
PF: predicated region fallthrough
CT: control target
= control target key end

     0   :  { %v3254_v3 = vmov 0   ;;  %s4289_s1 = inlined_call_operand.vmem [shape: bf16[128,4096], index: 1, kind: input, shape index: {}]   ;;  %s4290_s0 = inlined_call_operand.vmem [shape: f32[2,128], index: 0, kind: input, shape index: {}]   ;;  %s4291_s2 = inlined_call_operand.vmem [shape: f32[1,4096], index: 2, kind: input, shape index: {}]   ;;  %s4292_s3 = inlined_call_operand.vmem [shape: f32[1,4096], index: 3, kind: input, shape index: {}]   ;;  %s4293_s4 = inlined_call_operand.vmem [shape: bf16[2,4096], index: 4, kind: output, shape index: {}]  }
   0x1   :  { %v20_v0 = vld [vmem:[%s4289_s1] sm:$0xff]  ;;  %v21_v2 = vld [vmem:[%s4289_s1 + $0x8] sm:$0xff]  ;;  %1588 = vmatprep.mubr.bf16.mxu0 %v3254_v3  ;;  %1629 = vmatprep.mubr.bf16.mxu1 %v3254_v3  ;;  %v22_v63 = vld [vmem:[%s4289_s1 + $0x10] sm:$0xff] }
   0x2   :  { %v36_v1 = vld [vmem:[%s4289_s1 + $0x80] sm:$0xff]  ;;  %v37_v5 = vld [vmem:[%s4289_s1 + $0x88] sm:$0xff] }
   0x3   :  { %v2981_v4 = vcombine.high %v20_v0, %v36_v1  ;;  %v2980_v6 = vcombine.low %v20_v0, %v36_v1  ;;  %v52_v7 = vld [vmem:[%s4289_s1 + $0x100] sm:$0xff]  ;;  %v2983_v9 = vcombine.high %v21_v2, %v37_v5  ;;  %v2982_v10 = vcombine.low %v21_v2, %v37_v5  ;;  %v53_v12 = vld [vmem:[%s4289_s1 + $0x108] sm:$0xff]  ;;  %v38_v0 = vld [vmem:[%s4289_s1 + $0x90] sm:$0xff] }
   0x4   :  { %v68_v8 = vld [vmem:[%s4289_s1 + $0x180] sm:$0xff]  ;;  %v69_v13 = vld [vmem:[%s4289_s1 + $0x188] sm:$0xff]  ;;  %v23_v1 = vld [vmem:[%s4289_s1 + $0x18] sm:$0xff] }
   0x5   :  { %v3013_v11 = vcombine.high %v52_v7, %v68_v8  ;;  %v84_v14 = vld [vmem:[%s4289_s1 + $0x200] sm:$0xff]  ;;  %1556 = vmatprep.subr.bf16.mxu0 %v2981_v4  ;;  %v3015_v15 = vcombine.high %v53_v12, %v69_v13  ;;  %v85_v17 = vld [vmem:[%s4289_s1 + $0x208] sm:$0xff]  ;;  %1597 = vmatprep.subr.bf16.mxu1 %v2983_v9  ;;  %v3012_v19 = vcombine.low %v52_v7, %v68_v8  ;;  %v39_v2 = vld [vmem:[%s4289_s1 + $0x98] sm:$0xff] }
   0x6   :  { %v100_v16 = vld [vmem:[%s4289_s1 + $0x280] sm:$0xff]  ;;  %v101_v18 = vld [vmem:[%s4289_s1 + $0x288] sm:$0xff]  ;;  %1557 = vmatpush1.bf16.msra.mxu0 %v2980_v6  ;;  %1598 = vmatpush1.bf16.msra.mxu1 %v2982_v10  ;;  %v3014_v20 = vcombine.low %v53_v12, %v69_v13  ;;  %v2985_v7 = vcombine.high %v22_v63, %v38_v0  ;;  %v2987_v8 = vcombine.high %v23_v1, %v39_v2  ;;  %v54_v9 = vld [vmem:[%s4289_s1 + $0x110] sm:$0xff] }
   0x7   :  { %1558 = vmatprep.subr.bf16.mxu0 %v3013_v11  ;;  %v3045_v21 = vcombine.high %v84_v14, %v100_v16  ;;  %1599 = vmatprep.subr.bf16.mxu1 %v3015_v15  ;;  %v3047_v22 = vcombine.high %v85_v17, %v101_v18  ;;  %v116_v23 = vld [vmem:[%s4289_s1 + $0x300] sm:$0xff]  ;;  %v117_v25 = vld [vmem:[%s4289_s1 + $0x308] sm:$0xff]  ;;  %v3044_v27 = vcombine.low %v84_v14, %v100_v16  ;;  %v70_v10 = vld [vmem:[%s4289_s1 + $0x190] sm:$0xff] }
   0x8   :  { %v132_v24 = vld [vmem:[%s4289_s1 + $0x380] sm:$0xff]  ;;  %v133_v26 = vld [vmem:[%s4289_s1 + $0x388] sm:$0xff]  ;;  %v3046_v28 = vcombine.low %v85_v17, %v101_v18  ;;  %v55_v12 = vld [vmem:[%s4289_s1 + $0x118] sm:$0xff]  ;;  %v2984_v14 = vcombine.low %v22_v63, %v38_v0  ;;  %v2986_v15 = vcombine.low %v23_v1, %v39_v2  ;;  %v3017_v16 = vcombine.high %v54_v9, %v70_v10 }
   0x9   :  { %v3077_v29 = vcombine.high %v116_v23, %v132_v24  ;;  %v3079_v30 = vcombine.high %v117_v25, %v133_v26  ;;  %v148_v31 = vld [vmem:[%s4289_s1 + $0x400] sm:$0xff]  ;;  %v149_v33 = vld [vmem:[%s4289_s1 + $0x408] sm:$0xff]  ;;  %v3076_v35 = vcombine.low %v116_v23, %v132_v24  ;;  %v3078_v36 = vcombine.low %v117_v25, %v133_v26  ;;  %v71_v13 = vld [vmem:[%s4289_s1 + $0x198] sm:$0xff] }
   0xa   :  { %1559 = vmatpush1.bf16.msra.mxu0 %v3012_v19  ;;  %1600 = vmatpush1.bf16.msra.mxu1 %v3014_v20  ;;  %v164_v32 = vld [vmem:[%s4289_s1 + $0x480] sm:$0xff]  ;;  %v165_v34 = vld [vmem:[%s4289_s1 + $0x488] sm:$0xff]  ;;  %v3019_v17 = vcombine.high %v55_v12, %v71_v13  ;;  %v86_v18 = vld [vmem:[%s4289_s1 + $0x210] sm:$0xff]  ;;  %v3018_v23 = vcombine.low %v55_v12, %v71_v13 }
   0xb   :  { %1560 = vmatprep.subr.bf16.mxu0 %v3045_v21  ;;  %1601 = vmatprep.subr.bf16.mxu1 %v3047_v22  ;;  %v3109_v37 = vcombine.high %v148_v31, %v164_v32  ;;  %v3111_v38 = vcombine.high %v149_v33, %v165_v34  ;;  %v180_v39 = vld [vmem:[%s4289_s1 + $0x500] sm:$0xff]  ;;  %v181_v41 = vld [vmem:[%s4289_s1 + $0x508] sm:$0xff]  ;;  %v3108_v43 = vcombine.low %v148_v31, %v164_v32  ;;  %v102_v19 = vld [vmem:[%s4289_s1 + $0x290] sm:$0xff] }
   0xc   :  { %v196_v40 = vld [vmem:[%s4289_s1 + $0x580] sm:$0xff]  ;;  %v197_v42 = vld [vmem:[%s4289_s1 + $0x588] sm:$0xff]  ;;  %v3110_v44 = vcombine.low %v149_v33, %v165_v34  ;;  %v87_v20 = vld [vmem:[%s4289_s1 + $0x218] sm:$0xff]  ;;  %v3016_v22 = vcombine.low %v54_v9, %v70_v10  ;;  %v3049_v24 = vcombine.high %v86_v18, %v102_v19 }
   0xd   :  { %v3141_v45 = vcombine.high %v180_v39, %v196_v40  ;;  %v3143_v46 = vcombine.high %v181_v41, %v197_v42  ;;  %v212_v47 = vld [vmem:[%s4289_s1 + $0x600] sm:$0xff]  ;;  %v213_v49 = vld [vmem:[%s4289_s1 + $0x608] sm:$0xff]  ;;  %v3140_v51 = vcombine.low %v180_v39, %v196_v40  ;;  %v3142_v52 = vcombine.low %v181_v41, %v197_v42  ;;  %v103_v21 = vld [vmem:[%s4289_s1 + $0x298] sm:$0xff] }
   0xe   :  { %1561 = vmatpush1.bf16.msra.mxu0 %v3044_v27  ;;  %1602 = vmatpush1.bf16.msra.mxu1 %v3046_v28  ;;  %v228_v48 = vld [vmem:[%s4289_s1 + $0x680] sm:$0xff]  ;;  %v229_v50 = vld [vmem:[%s4289_s1 + $0x688] sm:$0xff]  ;;  %v3051_v25 = vcombine.high %v87_v20, %v103_v21  ;;  %v118_v26 = vld [vmem:[%s4289_s1 + $0x310] sm:$0xff]  ;;  %v3050_v31 = vcombine.low %v87_v20, %v103_v21 }
   0xf   :  { %1562 = vmatprep.subr.bf16.mxu0 %v3077_v29  ;;  %1603 = vmatprep.subr.bf16.mxu1 %v3079_v30  ;;  %v3173_v53 = vcombine.high %v212_v47, %v228_v48  ;;  %v3175_v54 = vcombine.high %v213_v49, %v229_v50  ;;  %v244_v55 = vld [vmem:[%s4289_s1 + $0x700] sm:$0xff]  ;;  %v245_v57 = vld [vmem:[%s4289_s1 + $0x708] sm:$0xff]  ;;  %v3172_v59 = vcombine.low %v212_v47, %v228_v48  ;;  %v134_v27 = vld [vmem:[%s4289_s1 + $0x390] sm:$0xff] }
  0x10   :  { %v260_v56 = vld [vmem:[%s4289_s1 + $0x780] sm:$0xff]  ;;  %v261_v58 = vld [vmem:[%s4289_s1 + $0x788] sm:$0xff]  ;;  %v3174_v60 = vcombine.low %v213_v49, %v229_v50  ;;  %v119_v28 = vld [vmem:[%s4289_s1 + $0x318] sm:$0xff]  ;;  %v3048_v30 = vcombine.low %v86_v18, %v102_v19  ;;  %v3081_v32 = vcombine.high %v118_v26, %v134_v27 }
  0x11   :  { %v3205_v61 = vcombine.high %v244_v55, %v260_v56  ;;  %v3207_v62 = vcombine.high %v245_v57, %v261_v58  ;;  %v3204_v4 = vcombine.low %v244_v55, %v260_v56  ;;  %v18_v5 = vld [vmem:[%s4290_s0] sm:$0x3]  ;;  %v3206_v6 = vcombine.low %v245_v57, %v261_v58  ;;  %v135_v29 = vld [vmem:[%s4289_s1 + $0x398] sm:$0xff]  ;;  %v150_v34 = vld [vmem:[%s4289_s1 + $0x410] sm:$0xff] }
  0x12   :  { %1563 = vmatpush1.bf16.msra.mxu0 %v3076_v35  ;;  %1604 = vmatpush1.bf16.msra.mxu1 %v3078_v36  ;;  %v3400_v11 = vpack.c.bf16 %v18_v5, %v18_v5  ;;  %v3083_v33 = vcombine.high %v119_v28, %v135_v29  ;;  %v166_v35 = vld [vmem:[%s4289_s1 + $0x490] sm:$0xff]  ;;  %v151_v36 = vld [vmem:[%s4289_s1 + $0x418] sm:$0xff]  ;;  %v3082_v39 = vcombine.low %v119_v28, %v135_v29  ;;  %v24_v2 = vld [vmem:[%s4289_s1 + $0x20] sm:$0xff] }
  0x13   :  { %1564 = vmatprep.subr.bf16.mxu0 %v3109_v37  ;;  %1605 = vmatprep.subr.bf16.mxu1 %v3111_v38  ;;  %v167_v37 = vld [vmem:[%s4289_s1 + $0x498] sm:$0xff]  ;;  %v3080_v38 = vcombine.low %v118_v26, %v134_v27  ;;  %v3113_v40 = vcombine.high %v150_v34, %v166_v35  ;;  %v182_v42 = vld [vmem:[%s4289_s1 + $0x510] sm:$0xff]  ;;  %v25_v5 = vld [vmem:[%s4289_s1 + $0x28] sm:$0xff] }
  0x14   :  { %v3115_v41 = vcombine.high %v151_v36, %v167_v37  ;;  %v3114_v47 = vcombine.low %v151_v36, %v167_v37  ;;  %v214_v50 = vld [vmem:[%s4289_s1 + $0x610] sm:$0xff]  ;;  %v56_v12 = vld [vmem:[%s4289_s1 + $0x120] sm:$0xff] }
  0x15   :  { %v246_v58 = vld [vmem:[%s4289_s1 + $0x710] sm:$0xff]  ;;  %v72_v13 = vld [vmem:[%s4289_s1 + $0x1a0] sm:$0xff] }
  0x16   :  { %1565 = vmatpush1.bf16.msra.mxu0 %v3108_v43  ;;  %1606 = vmatpush1.bf16.msra.mxu1 %v3110_v44  ;;  %v198_v43 = vld [vmem:[%s4289_s1 + $0x590] sm:$0xff]  ;;  %v183_v44 = vld [vmem:[%s4289_s1 + $0x518] sm:$0xff]  ;;  %v3021_v18 = vcombine.high %v56_v12, %v72_v13  ;;  %v88_v20 = vld [vmem:[%s4289_s1 + $0x220] sm:$0xff] }
  0x17   :  { %1566 = vmatprep.subr.bf16.mxu0 %v3141_v45  ;;  %1607 = vmatprep.subr.bf16.mxu1 %v3143_v46  ;;  %v199_v45 = vld [vmem:[%s4289_s1 + $0x598] sm:$0xff]  ;;  %v3112_v46 = vcombine.low %v150_v34, %v166_v35  ;;  %v3145_v48 = vcombine.high %v182_v42, %v198_v43  ;;  %v104_v21 = vld [vmem:[%s4289_s1 + $0x2a0] sm:$0xff] }
  0x18   :  { %v3147_v49 = vcombine.high %v183_v44, %v199_v45  ;;  %v3146_v55 = vcombine.low %v183_v44, %v199_v45  ;;  %v3053_v26 = vcombine.high %v88_v20, %v104_v21  ;;  %v120_v28 = vld [vmem:[%s4289_s1 + $0x320] sm:$0xff] }
  0x19   :  { %v136_v29 = vld [vmem:[%s4289_s1 + $0x3a0] sm:$0xff] }
  0x1a   :  { %1567 = vmatpush1.bf16.msra.mxu0 %v3140_v51  ;;  %1608 = vmatpush1.bf16.msra.mxu1 %v3142_v52  ;;  %v230_v51 = vld [vmem:[%s4289_s1 + $0x690] sm:$0xff]  ;;  %v215_v52 = vld [vmem:[%s4289_s1 + $0x618] sm:$0xff]  ;;  %v3085_v34 = vcombine.high %v120_v28, %v136_v29  ;;  %v152_v36 = vld [vmem:[%s4289_s1 + $0x420] sm:$0xff] }
  0x1b   :  { %1568 = vmatprep.subr.bf16.mxu0 %v3173_v53  ;;  %1609 = vmatprep.subr.bf16.mxu1 %v3175_v54  ;;  %v231_v53 = vld [vmem:[%s4289_s1 + $0x698] sm:$0xff]  ;;  %v3144_v54 = vcombine.low %v182_v42, %v198_v43  ;;  %v3177_v56 = vcombine.high %v214_v50, %v230_v51  ;;  %v168_v37 = vld [vmem:[%s4289_s1 + $0x4a0] sm:$0xff] }
  0x1c   :  { %v3179_v57 = vcombine.high %v215_v52, %v231_v53  ;;  %v3178_v63 = vcombine.low %v215_v52, %v231_v53  ;;  %v3117_v42 = vcombine.high %v152_v36, %v168_v37  ;;  %v184_v44 = vld [vmem:[%s4289_s1 + $0x520] sm:$0xff] }
  0x1d   :  { %v200_v45 = vld [vmem:[%s4289_s1 + $0x5a0] sm:$0xff] }
  0x1e   :  { %1569 = vmatpush1.bf16.msra.mxu0 %v3172_v59  ;;  %1610 = vmatpush1.bf16.msra.mxu1 %v3174_v60  ;;  %v262_v59 = vld [vmem:[%s4289_s1 + $0x790] sm:$0xff]  ;;  %v247_v60 = vld [vmem:[%s4289_s1 + $0x718] sm:$0xff]  ;;  %v216_v52 = vld [vmem:[%s4289_s1 + $0x620] sm:$0xff] }
  0x1f   :  { %1570 = vmatprep.subr.bf16.mxu0 %v3205_v61  ;;  %1611 = vmatprep.subr.bf16.mxu1 %v3207_v62  ;;  %v263_v61 = vld [vmem:[%s4289_s1 + $0x798] sm:$0xff]  ;;  %v3176_v62 = vcombine.low %v214_v50, %v230_v51  ;;  %v3209_v0 = vcombine.high %v246_v58, %v262_v59  ;;  %v3149_v50 = vcombine.high %v184_v44, %v200_v45  ;;  %v232_v53 = vld [vmem:[%s4289_s1 + $0x6a0] sm:$0xff] }
  0x20   :  { %v3211_v1 = vcombine.high %v247_v60, %v263_v61 }
  0x22   :  { %1571 = vmatpush1.bf16.msra.mxu0 %v3204_v4  ;;  %1612 = vmatpush1.bf16.msra.mxu1 %v3206_v6  ;;  %v40_v4 = vld [vmem:[%s4289_s1 + $0xa0] sm:$0xff]  ;;  %v41_v6 = vld [vmem:[%s4289_s1 + $0xa8] sm:$0xff] }
  0x23   :  { %1638 = vmatprep.subr.bf16.mxu0 %v2985_v7  ;;  %1679 = vmatprep.subr.bf16.mxu1 %v2987_v8  ;;  %v3208_v7 = vcombine.low %v246_v58, %v262_v59  ;;  %v3210_v8 = vcombine.low %v247_v60, %v263_v61  ;;  %v2989_v9 = vcombine.high %v24_v2, %v40_v4  ;;  %v248_v60 = vld [vmem:[%s4289_s1 + $0x720] sm:$0xff] }
  0x24   :  { %v2991_v10 = vcombine.high %v25_v5, %v41_v6  ;;  %v3181_v58 = vcombine.high %v216_v52, %v232_v53  ;;  %v264_v61 = vld [vmem:[%s4289_s1 + $0x7a0] sm:$0xff] }
  0x25   :  { %1589 = vmatmul.mubr.bf16.vlgmr.msra.gmra.mrb[0].mxu0 %v3400_v11  ;;  %1630 = vmatmul.mubr.bf16.vlgmr.msra.gmra.mrb[0].mxu1 %v3400_v11 }
  0x26   :  { %1639 = vmatpush1.bf16.msra.mxu0 %v2984_v14  ;;  %1680 = vmatpush1.bf16.msra.mxu1 %v2986_v15  ;;  %v57_v14 = vld [vmem:[%s4289_s1 + $0x128] sm:$0xff] }
  0x27   :  { %1640 = vmatprep.subr.bf16.mxu0 %v3017_v16  ;;  %1681 = vmatprep.subr.bf16.mxu1 %v3019_v17  ;;  %v73_v15 = vld [vmem:[%s4289_s1 + $0x1a8] sm:$0xff]  ;;  %v2988_v16 = vcombine.low %v24_v2, %v40_v4  ;;  %v2990_v17 = vcombine.low %v25_v5, %v41_v6  ;;  %v3213_v2 = vcombine.high %v248_v60, %v264_v61  ;;  %v26_v5 = vld [vmem:[%s4289_s1 + $0x30] sm:$0xff] }
  0x28   :  { %1670 = vmatprep.mubr.bf16.mxu0 %v3254_v3  ;;  %1711 = vmatprep.mubr.bf16.mxu1 %v3254_v3  ;;  %v3023_v19 = vcombine.high %v57_v14, %v73_v15  ;;  %v42_v6 = vld [vmem:[%s4289_s1 + $0xb0] sm:$0xff] }
  0x2a   :  { %1641 = vmatpush1.bf16.msra.mxu0 %v3016_v22  ;;  %1682 = vmatpush1.bf16.msra.mxu1 %v3018_v23  ;;  %v89_v22 = vld [vmem:[%s4289_s1 + $0x228] sm:$0xff] }
  0x2b   :  { %1642 = vmatprep.subr.bf16.mxu0 %v3049_v24  ;;  %1683 = vmatprep.subr.bf16.mxu1 %v3051_v25  ;;  %v105_v23 = vld [vmem:[%s4289_s1 + $0x2a8] sm:$0xff]  ;;  %v3020_v24 = vcombine.low %v56_v12, %v72_v13  ;;  %v3022_v25 = vcombine.low %v57_v14, %v73_v15  ;;  %v2993_v12 = vcombine.high %v26_v5, %v42_v6  ;;  %v58_v14 = vld [vmem:[%s4289_s1 + $0x130] sm:$0xff] }
  0x2c   :  { %v3055_v27 = vcombine.high %v89_v22, %v105_v23  ;;  %v74_v15 = vld [vmem:[%s4289_s1 + $0x1b0] sm:$0xff] }
  0x2e   :  { %1643 = vmatpush1.bf16.msra.mxu0 %v3048_v30  ;;  %1684 = vmatpush1.bf16.msra.mxu1 %v3050_v31  ;;  %v121_v30 = vld [vmem:[%s4289_s1 + $0x328] sm:$0xff] }
  0x2f   :  { %1644 = vmatprep.subr.bf16.mxu0 %v3081_v32  ;;  %1685 = vmatprep.subr.bf16.mxu1 %v3083_v33  ;;  %v137_v31 = vld [vmem:[%s4289_s1 + $0x3a8] sm:$0xff]  ;;  %v3052_v32 = vcombine.low %v88_v20, %v104_v21  ;;  %v3054_v33 = vcombine.low %v89_v22, %v105_v23  ;;  %v3025_v20 = vcombine.high %v58_v14, %v74_v15  ;;  %v90_v22 = vld [vmem:[%s4289_s1 + $0x230] sm:$0xff] }
  0x30   :  { %v3087_v35 = vcombine.high %v121_v30, %v137_v31  ;;  %v106_v23 = vld [vmem:[%s4289_s1 + $0x2b0] sm:$0xff] }
  0x32   :  { %1645 = vmatpush1.bf16.msra.mxu0 %v3080_v38  ;;  %1686 = vmatpush1.bf16.msra.mxu1 %v3082_v39  ;;  %v153_v38 = vld [vmem:[%s4289_s1 + $0x428] sm:$0xff] }
  0x33   :  { %1646 = vmatprep.subr.bf16.mxu0 %v3113_v40  ;;  %1687 = vmatprep.subr.bf16.mxu1 %v3115_v41  ;;  %v169_v39 = vld [vmem:[%s4289_s1 + $0x4a8] sm:$0xff]  ;;  %v3084_v40 = vcombine.low %v120_v28, %v136_v29  ;;  %v3086_v41 = vcombine.low %v121_v30, %v137_v31  ;;  %v3057_v28 = vcombine.high %v90_v22, %v106_v23  ;;  %v122_v30 = vld [vmem:[%s4289_s1 + $0x330] sm:$0xff] }
  0x34   :  { %v3119_v43 = vcombine.high %v153_v38, %v169_v39  ;;  %v138_v31 = vld [vmem:[%s4289_s1 + $0x3b0] sm:$0xff] }
  0x36   :  { %1647 = vmatpush1.bf16.msra.mxu0 %v3112_v46  ;;  %1688 = vmatpush1.bf16.msra.mxu1 %v3114_v47  ;;  %v185_v46 = vld [vmem:[%s4289_s1 + $0x528] sm:$0xff] }
  0x37   :  { %1648 = vmatprep.subr.bf16.mxu0 %v3145_v48  ;;  %1689 = vmatprep.subr.bf16.mxu1 %v3147_v49  ;;  %v201_v47 = vld [vmem:[%s4289_s1 + $0x5a8] sm:$0xff]  ;;  %v3116_v48 = vcombine.low %v152_v36, %v168_v37  ;;  %v3118_v49 = vcombine.low %v153_v38, %v169_v39  ;;  %v3089_v36 = vcombine.high %v122_v30, %v138_v31  ;;  %v154_v38 = vld [vmem:[%s4289_s1 + $0x430] sm:$0xff] }
  0x38   :  { %v3151_v51 = vcombine.high %v185_v46, %v201_v47  ;;  %v170_v39 = vld [vmem:[%s4289_s1 + $0x4b0] sm:$0xff] }
  0x3a   :  { %1649 = vmatpush1.bf16.msra.mxu0 %v3144_v54  ;;  %1690 = vmatpush1.bf16.msra.mxu1 %v3146_v55  ;;  %v217_v54 = vld [vmem:[%s4289_s1 + $0x628] sm:$0xff] }
  0x3b   :  { %1650 = vmatprep.subr.bf16.mxu0 %v3177_v56  ;;  %1691 = vmatprep.subr.bf16.mxu1 %v3179_v57  ;;  %v233_v55 = vld [vmem:[%s4289_s1 + $0x6a8] sm:$0xff]  ;;  %v3148_v56 = vcombine.low %v184_v44, %v200_v45  ;;  %v3150_v57 = vcombine.low %v185_v46, %v201_v47  ;;  %v3121_v44 = vcombine.high %v154_v38, %v170_v39  ;;  %v186_v46 = vld [vmem:[%s4289_s1 + $0x530] sm:$0xff] }
  0x3c   :  { %v3183_v59 = vcombine.high %v217_v54, %v233_v55  ;;  %v202_v47 = vld [vmem:[%s4289_s1 + $0x5b0] sm:$0xff] }
  0x3e   :  { %1651 = vmatpush1.bf16.msra.mxu0 %v3176_v62  ;;  %1692 = vmatpush1.bf16.msra.mxu1 %v3178_v63  ;;  %v249_v62 = vld [vmem:[%s4289_s1 + $0x728] sm:$0xff] }
  0x3f   :  { %1652 = vmatprep.subr.bf16.mxu0 %v3209_v0  ;;  %1693 = vmatprep.subr.bf16.mxu1 %v3211_v1  ;;  %v265_v63 = vld [vmem:[%s4289_s1 + $0x7a8] sm:$0xff]  ;;  %v3180_v0 = vcombine.low %v216_v52, %v232_v53  ;;  %v3182_v1 = vcombine.low %v217_v54, %v233_v55  ;;  %v3153_v52 = vcombine.high %v186_v46, %v202_v47  ;;  %v218_v54 = vld [vmem:[%s4289_s1 + $0x630] sm:$0xff] }
  0x40   :  { %v3215_v4 = vcombine.high %v249_v62, %v265_v63  ;;  %v234_v55 = vld [vmem:[%s4289_s1 + $0x6b0] sm:$0xff] }
  0x42   :  { %1653 = vmatpush1.bf16.msra.mxu0 %v3208_v7  ;;  %1694 = vmatpush1.bf16.msra.mxu1 %v3210_v8  ;;  %v27_v7 = vld [vmem:[%s4289_s1 + $0x38] sm:$0xff] }
  0x43   :  { %1720 = vmatprep.subr.bf16.mxu0 %v2989_v9  ;;  %1761 = vmatprep.subr.bf16.mxu1 %v2991_v10  ;;  %v43_v8 = vld [vmem:[%s4289_s1 + $0xb8] sm:$0xff]  ;;  %v3212_v9 = vcombine.low %v248_v60, %v264_v61  ;;  %v3214_v10 = vcombine.low %v249_v62, %v265_v63  ;;  %v3185_v60 = vcombine.high %v218_v54, %v234_v55  ;;  %v250_v62 = vld [vmem:[%s4289_s1 + $0x730] sm:$0xff] }
  0x44   :  { %v2995_v13 = vcombine.high %v27_v7, %v43_v8  ;;  %v266_v63 = vld [vmem:[%s4289_s1 + $0x7b0] sm:$0xff] }
  0x45   :  { %1671 = vmatmul.mubr.bf16.vlgmr.msra.gmra.mrb[4].mxu0 %v3400_v11  ;;  %1712 = vmatmul.mubr.bf16.vlgmr.msra.gmra.mrb[4].mxu1 %v3400_v11 }
  0x46   :  { %1721 = vmatpush1.bf16.msra.mxu0 %v2988_v16  ;;  %1762 = vmatpush1.bf16.msra.mxu1 %v2990_v17  ;;  %v59_v16 = vld [vmem:[%s4289_s1 + $0x138] sm:$0xff] }
  0x47   :  { %1722 = vmatprep.subr.bf16.mxu0 %v3021_v18  ;;  %1763 = vmatprep.subr.bf16.mxu1 %v3023_v19  ;;  %v75_v17 = vld [vmem:[%s4289_s1 + $0x1b8] sm:$0xff]  ;;  %v2992_v18 = vcombine.low %v26_v5, %v42_v6  ;;  %v2994_v19 = vcombine.low %v27_v7, %v43_v8  ;;  %v3217_v5 = vcombine.high %v250_v62, %v266_v63  ;;  %v28_v7 = vld [vmem:[%s4289_s1 + $0x40] sm:$0xff] }
  0x48   :  { %1752 = vmatprep.mubr.bf16.mxu0 %v3254_v3  ;;  %1793 = vmatprep.mubr.bf16.mxu1 %v3254_v3  ;;  %v3027_v21 = vcombine.high %v59_v16, %v75_v17  ;;  %v44_v8 = vld [vmem:[%s4289_s1 + $0xc0] sm:$0xff] }
  0x4a   :  { %1723 = vmatpush1.bf16.msra.mxu0 %v3020_v24  ;;  %1764 = vmatpush1.bf16.msra.mxu1 %v3022_v25  ;;  %v91_v24 = vld [vmem:[%s4289_s1 + $0x238] sm:$0xff] }
  0x4b   :  { %1724 = vmatprep.subr.bf16.mxu0 %v3053_v26  ;;  %1765 = vmatprep.subr.bf16.mxu1 %v3055_v27  ;;  %v107_v25 = vld [vmem:[%s4289_s1 + $0x2b8] sm:$0xff]  ;;  %v3024_v26 = vcombine.low %v58_v14, %v74_v15  ;;  %v3026_v27 = vcombine.low %v59_v16, %v75_v17  ;;  %v2997_v14 = vcombine.high %v28_v7, %v44_v8  ;;  %v60_v16 = vld [vmem:[%s4289_s1 + $0x140] sm:$0xff] }
  0x4c   :  { %v3059_v29 = vcombine.high %v91_v24, %v107_v25  ;;  %v76_v17 = vld [vmem:[%s4289_s1 + $0x1c0] sm:$0xff] }
  0x4e   :  { %1725 = vmatpush1.bf16.msra.mxu0 %v3052_v32  ;;  %1766 = vmatpush1.bf16.msra.mxu1 %v3054_v33  ;;  %v123_v32 = vld [vmem:[%s4289_s1 + $0x338] sm:$0xff] }
  0x4f   :  { %1726 = vmatprep.subr.bf16.mxu0 %v3085_v34  ;;  %1767 = vmatprep.subr.bf16.mxu1 %v3087_v35  ;;  %v139_v33 = vld [vmem:[%s4289_s1 + $0x3b8] sm:$0xff]  ;;  %v3056_v34 = vcombine.low %v90_v22, %v106_v23  ;;  %v3058_v35 = vcombine.low %v91_v24, %v107_v25  ;;  %v3029_v22 = vcombine.high %v60_v16, %v76_v17  ;;  %v92_v24 = vld [vmem:[%s4289_s1 + $0x240] sm:$0xff] }
  0x50   :  { %v3091_v37 = vcombine.high %v123_v32, %v139_v33  ;;  %v108_v25 = vld [vmem:[%s4289_s1 + $0x2c0] sm:$0xff] }
  0x52   :  { %1727 = vmatpush1.bf16.msra.mxu0 %v3084_v40  ;;  %1768 = vmatpush1.bf16.msra.mxu1 %v3086_v41  ;;  %v155_v40 = vld [vmem:[%s4289_s1 + $0x438] sm:$0xff] }
  0x53   :  { %1728 = vmatprep.subr.bf16.mxu0 %v3117_v42  ;;  %1769 = vmatprep.subr.bf16.mxu1 %v3119_v43  ;;  %v171_v41 = vld [vmem:[%s4289_s1 + $0x4b8] sm:$0xff]  ;;  %v3088_v42 = vcombine.low %v122_v30, %v138_v31  ;;  %v3090_v43 = vcombine.low %v123_v32, %v139_v33  ;;  %v3061_v30 = vcombine.high %v92_v24, %v108_v25  ;;  %v124_v32 = vld [vmem:[%s4289_s1 + $0x340] sm:$0xff] }
  0x54   :  { %v3123_v45 = vcombine.high %v155_v40, %v171_v41  ;;  %v140_v33 = vld [vmem:[%s4289_s1 + $0x3c0] sm:$0xff] }
  0x56   :  { %1729 = vmatpush1.bf16.msra.mxu0 %v3116_v48  ;;  %1770 = vmatpush1.bf16.msra.mxu1 %v3118_v49  ;;  %v187_v48 = vld [vmem:[%s4289_s1 + $0x538] sm:$0xff] }
  0x57   :  { %1730 = vmatprep.subr.bf16.mxu0 %v3149_v50  ;;  %1771 = vmatprep.subr.bf16.mxu1 %v3151_v51  ;;  %v203_v49 = vld [vmem:[%s4289_s1 + $0x5b8] sm:$0xff]  ;;  %v3120_v50 = vcombine.low %v154_v38, %v170_v39  ;;  %v3122_v51 = vcombine.low %v155_v40, %v171_v41  ;;  %v3093_v38 = vcombine.high %v124_v32, %v140_v33  ;;  %v156_v40 = vld [vmem:[%s4289_s1 + $0x440] sm:$0xff] }
  0x58   :  { %v3155_v53 = vcombine.high %v187_v48, %v203_v49  ;;  %v172_v41 = vld [vmem:[%s4289_s1 + $0x4c0] sm:$0xff] }
  0x5a   :  { %1731 = vmatpush1.bf16.msra.mxu0 %v3148_v56  ;;  %1772 = vmatpush1.bf16.msra.mxu1 %v3150_v57  ;;  %v219_v56 = vld [vmem:[%s4289_s1 + $0x638] sm:$0xff] }
  0x5b   :  { %1732 = vmatprep.subr.bf16.mxu0 %v3181_v58  ;;  %1773 = vmatprep.subr.bf16.mxu1 %v3183_v59  ;;  %v235_v57 = vld [vmem:[%s4289_s1 + $0x6b8] sm:$0xff]  ;;  %v3152_v58 = vcombine.low %v186_v46, %v202_v47  ;;  %v3154_v59 = vcombine.low %v187_v48, %v203_v49  ;;  %v3125_v46 = vcombine.high %v156_v40, %v172_v41  ;;  %v188_v48 = vld [vmem:[%s4289_s1 + $0x540] sm:$0xff] }
  0x5c   :  { %v3187_v61 = vcombine.high %v219_v56, %v235_v57  ;;  %v204_v49 = vld [vmem:[%s4289_s1 + $0x5c0] sm:$0xff] }
  0x5e   :  { %1733 = vmatpush1.bf16.msra.mxu0 %v3180_v0  ;;  %1774 = vmatpush1.bf16.msra.mxu1 %v3182_v1  ;;  %v251_v0 = vld [vmem:[%s4289_s1 + $0x738] sm:$0xff] }
  0x5f   :  { %1734 = vmatprep.subr.bf16.mxu0 %v3213_v2  ;;  %1775 = vmatprep.subr.bf16.mxu1 %v3215_v4  ;;  %v267_v1 = vld [vmem:[%s4289_s1 + $0x7b8] sm:$0xff]  ;;  %v3184_v2 = vcombine.low %v218_v54, %v234_v55  ;;  %v3186_v4 = vcombine.low %v219_v56, %v235_v57  ;;  %v3157_v54 = vcombine.high %v188_v48, %v204_v49  ;;  %v220_v56 = vld [vmem:[%s4289_s1 + $0x640] sm:$0xff] }
  0x60   :  { %v3219_v6 = vcombine.high %v251_v0, %v267_v1  ;;  %v236_v57 = vld [vmem:[%s4289_s1 + $0x6c0] sm:$0xff] }
  0x62   :  { %1735 = vmatpush1.bf16.msra.mxu0 %v3212_v9  ;;  %1776 = vmatpush1.bf16.msra.mxu1 %v3214_v10  ;;  %v29_v9 = vld [vmem:[%s4289_s1 + $0x48] sm:$0xff] }
  0x63   :  { %1802 = vmatprep.subr.bf16.mxu0 %v2993_v12  ;;  %1843 = vmatprep.subr.bf16.mxu1 %v2995_v13  ;;  %v45_v10 = vld [vmem:[%s4289_s1 + $0xc8] sm:$0xff]  ;;  %v3216_v12 = vcombine.low %v250_v62, %v266_v63  ;;  %v3218_v13 = vcombine.low %v251_v0, %v267_v1  ;;  %v3189_v62 = vcombine.high %v220_v56, %v236_v57  ;;  %v252_v0 = vld [vmem:[%s4289_s1 + $0x740] sm:$0xff] }
  0x64   :  { %v2999_v15 = vcombine.high %v29_v9, %v45_v10  ;;  %v268_v1 = vld [vmem:[%s4289_s1 + $0x7c0] sm:$0xff] }
  0x65   :  { %1753 = vmatmul.mubr.bf16.vlgmr.msra.gmra.mrb[8].mxu0 %v3400_v11  ;;  %1794 = vmatmul.mubr.bf16.vlgmr.msra.gmra.mrb[8].mxu1 %v3400_v11 }
  0x66   :  { %1803 = vmatpush1.bf16.msra.mxu0 %v2992_v18  ;;  %1844 = vmatpush1.bf16.msra.mxu1 %v2994_v19  ;;  %v61_v18 = vld [vmem:[%s4289_s1 + $0x148] sm:$0xff] }
  0x67   :  { %1804 = vmatprep.subr.bf16.mxu0 %v3025_v20  ;;  %1845 = vmatprep.subr.bf16.mxu1 %v3027_v21  ;;  %v77_v19 = vld [vmem:[%s4289_s1 + $0x1c8] sm:$0xff]  ;;  %v2996_v20 = vcombine.low %v28_v7, %v44_v8  ;;  %v2998_v21 = vcombine.low %v29_v9, %v45_v10  ;;  %v3221_v7 = vcombine.high %v252_v0, %v268_v1  ;;  %v30_v9 = vld [vmem:[%s4289_s1 + $0x50] sm:$0xff] }
  0x68   :  { %1834 = vmatprep.mubr.bf16.mxu0 %v3254_v3  ;;  %1875 = vmatprep.mubr.bf16.mxu1 %v3254_v3  ;;  %v3031_v23 = vcombine.high %v61_v18, %v77_v19  ;;  %v46_v10 = vld [vmem:[%s4289_s1 + $0xd0] sm:$0xff] }
  0x6a   :  { %1805 = vmatpush1.bf16.msra.mxu0 %v3024_v26  ;;  %1846 = vmatpush1.bf16.msra.mxu1 %v3026_v27  ;;  %v93_v26 = vld [vmem:[%s4289_s1 + $0x248] sm:$0xff] }
  0x6b   :  { %1806 = vmatprep.subr.bf16.mxu0 %v3057_v28  ;;  %1847 = vmatprep.subr.bf16.mxu1 %v3059_v29  ;;  %v109_v27 = vld [vmem:[%s4289_s1 + $0x2c8] sm:$0xff]  ;;  %v3028_v28 = vcombine.low %v60_v16, %v76_v17  ;;  %v3030_v29 = vcombine.low %v61_v18, %v77_v19  ;;  %v3001_v16 = vcombine.high %v30_v9, %v46_v10  ;;  %v62_v18 = vld [vmem:[%s4289_s1 + $0x150] sm:$0xff] }
  0x6c   :  { %v3063_v31 = vcombine.high %v93_v26, %v109_v27  ;;  %v78_v19 = vld [vmem:[%s4289_s1 + $0x1d0] sm:$0xff] }
  0x6e   :  { %1807 = vmatpush1.bf16.msra.mxu0 %v3056_v34  ;;  %1848 = vmatpush1.bf16.msra.mxu1 %v3058_v35  ;;  %v125_v34 = vld [vmem:[%s4289_s1 + $0x348] sm:$0xff] }
  0x6f   :  { %1808 = vmatprep.subr.bf16.mxu0 %v3089_v36  ;;  %1849 = vmatprep.subr.bf16.mxu1 %v3091_v37  ;;  %v141_v35 = vld [vmem:[%s4289_s1 + $0x3c8] sm:$0xff]  ;;  %v3060_v36 = vcombine.low %v92_v24, %v108_v25  ;;  %v3062_v37 = vcombine.low %v93_v26, %v109_v27  ;;  %v3033_v24 = vcombine.high %v62_v18, %v78_v19  ;;  %v94_v26 = vld [vmem:[%s4289_s1 + $0x250] sm:$0xff] }
  0x70   :  { %v3095_v39 = vcombine.high %v125_v34, %v141_v35  ;;  %v110_v27 = vld [vmem:[%s4289_s1 + $0x2d0] sm:$0xff] }
  0x72   :  { %1809 = vmatpush1.bf16.msra.mxu0 %v3088_v42  ;;  %1850 = vmatpush1.bf16.msra.mxu1 %v3090_v43  ;;  %v157_v42 = vld [vmem:[%s4289_s1 + $0x448] sm:$0xff] }
  0x73   :  { %1810 = vmatprep.subr.bf16.mxu0 %v3121_v44  ;;  %1851 = vmatprep.subr.bf16.mxu1 %v3123_v45  ;;  %v173_v43 = vld [vmem:[%s4289_s1 + $0x4c8] sm:$0xff]  ;;  %v3092_v44 = vcombine.low %v124_v32, %v140_v33  ;;  %v3094_v45 = vcombine.low %v125_v34, %v141_v35  ;;  %v3065_v32 = vcombine.high %v94_v26, %v110_v27  ;;  %v126_v34 = vld [vmem:[%s4289_s1 + $0x350] sm:$0xff] }
  0x74   :  { %v3127_v47 = vcombine.high %v157_v42, %v173_v43  ;;  %v142_v35 = vld [vmem:[%s4289_s1 + $0x3d0] sm:$0xff] }
  0x76   :  { %1811 = vmatpush1.bf16.msra.mxu0 %v3120_v50  ;;  %1852 = vmatpush1.bf16.msra.mxu1 %v3122_v51  ;;  %v189_v50 = vld [vmem:[%s4289_s1 + $0x548] sm:$0xff] }
  0x77   :  { %1812 = vmatprep.subr.bf16.mxu0 %v3153_v52  ;;  %1853 = vmatprep.subr.bf16.mxu1 %v3155_v53  ;;  %v205_v51 = vld [vmem:[%s4289_s1 + $0x5c8] sm:$0xff]  ;;  %v3124_v52 = vcombine.low %v156_v40, %v172_v41  ;;  %v3126_v53 = vcombine.low %v157_v42, %v173_v43  ;;  %v3097_v40 = vcombine.high %v126_v34, %v142_v35  ;;  %v158_v42 = vld [vmem:[%s4289_s1 + $0x450] sm:$0xff] }
  0x78   :  { %v3159_v55 = vcombine.high %v189_v50, %v205_v51  ;;  %v174_v43 = vld [vmem:[%s4289_s1 + $0x4d0] sm:$0xff] }
  0x7a   :  { %1813 = vmatpush1.bf16.msra.mxu0 %v3152_v58  ;;  %1854 = vmatpush1.bf16.msra.mxu1 %v3154_v59  ;;  %v221_v58 = vld [vmem:[%s4289_s1 + $0x648] sm:$0xff] }
  0x7b   :  { %1814 = vmatprep.subr.bf16.mxu0 %v3185_v60  ;;  %1855 = vmatprep.subr.bf16.mxu1 %v3187_v61  ;;  %v237_v59 = vld [vmem:[%s4289_s1 + $0x6c8] sm:$0xff]  ;;  %v3156_v60 = vcombine.low %v188_v48, %v204_v49  ;;  %v3158_v61 = vcombine.low %v189_v50, %v205_v51  ;;  %v3129_v48 = vcombine.high %v158_v42, %v174_v43  ;;  %v190_v50 = vld [vmem:[%s4289_s1 + $0x550] sm:$0xff] }
  0x7c   :  { %v3191_v63 = vcombine.high %v221_v58, %v237_v59  ;;  %v206_v51 = vld [vmem:[%s4289_s1 + $0x5d0] sm:$0xff] }
  0x7e   :  { %1815 = vmatpush1.bf16.msra.mxu0 %v3184_v2  ;;  %1856 = vmatpush1.bf16.msra.mxu1 %v3186_v4  ;;  %v253_v2 = vld [vmem:[%s4289_s1 + $0x748] sm:$0xff] }
  0x7f   :  { %1816 = vmatprep.subr.bf16.mxu0 %v3217_v5  ;;  %1857 = vmatprep.subr.bf16.mxu1 %v3219_v6  ;;  %v269_v4 = vld [vmem:[%s4289_s1 + $0x7c8] sm:$0xff]  ;;  %v3188_v5 = vcombine.low %v220_v56, %v236_v57  ;;  %v3190_v6 = vcombine.low %v221_v58, %v237_v59  ;;  %v3161_v56 = vcombine.high %v190_v50, %v206_v51  ;;  %v222_v58 = vld [vmem:[%s4289_s1 + $0x650] sm:$0xff] }
  0x80   :  { %v3223_v8 = vcombine.high %v253_v2, %v269_v4  ;;  %v238_v59 = vld [vmem:[%s4289_s1 + $0x6d0] sm:$0xff] }
  0x82   :  { %1817 = vmatpush1.bf16.msra.mxu0 %v3216_v12  ;;  %1858 = vmatpush1.bf16.msra.mxu1 %v3218_v13  ;;  %v31_v12 = vld [vmem:[%s4289_s1 + $0x58] sm:$0xff] }
  0x83   :  { %1884 = vmatprep.subr.bf16.mxu0 %v2997_v14  ;;  %1925 = vmatprep.subr.bf16.mxu1 %v2999_v15  ;;  %v47_v13 = vld [vmem:[%s4289_s1 + $0xd8] sm:$0xff]  ;;  %v3220_v14 = vcombine.low %v252_v0, %v268_v1  ;;  %v3222_v15 = vcombine.low %v253_v2, %v269_v4  ;;  %v3193_v0 = vcombine.high %v222_v58, %v238_v59  ;;  %v254_v2 = vld [vmem:[%s4289_s1 + $0x750] sm:$0xff] }
  0x84   :  { %v3003_v17 = vcombine.high %v31_v12, %v47_v13  ;;  %v270_v4 = vld [vmem:[%s4289_s1 + $0x7d0] sm:$0xff] }
  0x85   :  { %1835 = vmatmul.mubr.bf16.vlgmr.msra.gmra.mrb[12].mxu0 %v3400_v11  ;;  %1876 = vmatmul.mubr.bf16.vlgmr.msra.gmra.mrb[12].mxu1 %v3400_v11 }
  0x86   :  { %1885 = vmatpush1.bf16.msra.mxu0 %v2996_v20  ;;  %1926 = vmatpush1.bf16.msra.mxu1 %v2998_v21  ;;  %v63_v20 = vld [vmem:[%s4289_s1 + $0x158] sm:$0xff] }
  0x87   :  { %1886 = vmatprep.subr.bf16.mxu0 %v3029_v22  ;;  %1927 = vmatprep.subr.bf16.mxu1 %v3031_v23  ;;  %v79_v21 = vld [vmem:[%s4289_s1 + $0x1d8] sm:$0xff]  ;;  %v3000_v22 = vcombine.low %v30_v9, %v46_v10  ;;  %v3002_v23 = vcombine.low %v31_v12, %v47_v13  ;;  %v3225_v9 = vcombine.high %v254_v2, %v270_v4  ;;  %v32_v12 = vld [vmem:[%s4289_s1 + $0x60] sm:$0xff] }
  0x88   :  { %1916 = vmatprep.mubr.bf16.mxu0 %v3254_v3  ;;  %1957 = vmatprep.mubr.bf16.mxu1 %v3254_v3  ;;  %v3035_v25 = vcombine.high %v63_v20, %v79_v21  ;;  %v48_v13 = vld [vmem:[%s4289_s1 + $0xe0] sm:$0xff] }
  0x8a   :  { %1887 = vmatpush1.bf16.msra.mxu0 %v3028_v28  ;;  %1928 = vmatpush1.bf16.msra.mxu1 %v3030_v29  ;;  %v95_v28 = vld [vmem:[%s4289_s1 + $0x258] sm:$0xff] }
  0x8b   :  { %1888 = vmatprep.subr.bf16.mxu0 %v3061_v30  ;;  %1929 = vmatprep.subr.bf16.mxu1 %v3063_v31  ;;  %v111_v29 = vld [vmem:[%s4289_s1 + $0x2d8] sm:$0xff]  ;;  %v3032_v30 = vcombine.low %v62_v18, %v78_v19  ;;  %v3034_v31 = vcombine.low %v63_v20, %v79_v21  ;;  %v3005_v18 = vcombine.high %v32_v12, %v48_v13  ;;  %v64_v20 = vld [vmem:[%s4289_s1 + $0x160] sm:$0xff] }
  0x8c   :  { %v3067_v33 = vcombine.high %v95_v28, %v111_v29  ;;  %v80_v21 = vld [vmem:[%s4289_s1 + $0x1e0] sm:$0xff] }
  0x8e   :  { %1889 = vmatpush1.bf16.msra.mxu0 %v3060_v36  ;;  %1930 = vmatpush1.bf16.msra.mxu1 %v3062_v37  ;;  %v127_v36 = vld [vmem:[%s4289_s1 + $0x358] sm:$0xff] }
  0x8f   :  { %1890 = vmatprep.subr.bf16.mxu0 %v3093_v38  ;;  %1931 = vmatprep.subr.bf16.mxu1 %v3095_v39  ;;  %v143_v37 = vld [vmem:[%s4289_s1 + $0x3d8] sm:$0xff]  ;;  %v3064_v38 = vcombine.low %v94_v26, %v110_v27  ;;  %v3066_v39 = vcombine.low %v95_v28, %v111_v29  ;;  %v3037_v26 = vcombine.high %v64_v20, %v80_v21  ;;  %v96_v28 = vld [vmem:[%s4289_s1 + $0x260] sm:$0xff] }
  0x90   :  { %v3099_v41 = vcombine.high %v127_v36, %v143_v37  ;;  %v112_v29 = vld [vmem:[%s4289_s1 + $0x2e0] sm:$0xff] }
  0x92   :  { %1891 = vmatpush1.bf16.msra.mxu0 %v3092_v44  ;;  %1932 = vmatpush1.bf16.msra.mxu1 %v3094_v45  ;;  %v159_v44 = vld [vmem:[%s4289_s1 + $0x458] sm:$0xff] }
  0x93   :  { %1892 = vmatprep.subr.bf16.mxu0 %v3125_v46  ;;  %1933 = vmatprep.subr.bf16.mxu1 %v3127_v47  ;;  %v175_v45 = vld [vmem:[%s4289_s1 + $0x4d8] sm:$0xff]  ;;  %v3096_v46 = vcombine.low %v126_v34, %v142_v35  ;;  %v3098_v47 = vcombine.low %v127_v36, %v143_v37  ;;  %v3069_v34 = vcombine.high %v96_v28, %v112_v29  ;;  %v128_v36 = vld [vmem:[%s4289_s1 + $0x360] sm:$0xff] }
  0x94   :  { %v3131_v49 = vcombine.high %v159_v44, %v175_v45  ;;  %v144_v37 = vld [vmem:[%s4289_s1 + $0x3e0] sm:$0xff] }
  0x96   :  { %1893 = vmatpush1.bf16.msra.mxu0 %v3124_v52  ;;  %1934 = vmatpush1.bf16.msra.mxu1 %v3126_v53  ;;  %v191_v52 = vld [vmem:[%s4289_s1 + $0x558] sm:$0xff] }
  0x97   :  { %1894 = vmatprep.subr.bf16.mxu0 %v3157_v54  ;;  %1935 = vmatprep.subr.bf16.mxu1 %v3159_v55  ;;  %v207_v53 = vld [vmem:[%s4289_s1 + $0x5d8] sm:$0xff]  ;;  %v3128_v54 = vcombine.low %v158_v42, %v174_v43  ;;  %v3130_v55 = vcombine.low %v159_v44, %v175_v45  ;;  %v3101_v42 = vcombine.high %v128_v36, %v144_v37  ;;  %v160_v44 = vld [vmem:[%s4289_s1 + $0x460] sm:$0xff] }
  0x98   :  { %v3163_v57 = vcombine.high %v191_v52, %v207_v53  ;;  %v176_v45 = vld [vmem:[%s4289_s1 + $0x4e0] sm:$0xff] }
  0x9a   :  { %1895 = vmatpush1.bf16.msra.mxu0 %v3156_v60  ;;  %1936 = vmatpush1.bf16.msra.mxu1 %v3158_v61  ;;  %v223_v60 = vld [vmem:[%s4289_s1 + $0x658] sm:$0xff] }
  0x9b   :  { %1896 = vmatprep.subr.bf16.mxu0 %v3189_v62  ;;  %1937 = vmatprep.subr.bf16.mxu1 %v3191_v63  ;;  %v239_v61 = vld [vmem:[%s4289_s1 + $0x6d8] sm:$0xff]  ;;  %v3160_v62 = vcombine.low %v190_v50, %v206_v51  ;;  %v3162_v63 = vcombine.low %v191_v52, %v207_v53  ;;  %v3133_v50 = vcombine.high %v160_v44, %v176_v45  ;;  %v192_v52 = vld [vmem:[%s4289_s1 + $0x560] sm:$0xff] }
  0x9c   :  { %v3195_v1 = vcombine.high %v223_v60, %v239_v61  ;;  %v208_v53 = vld [vmem:[%s4289_s1 + $0x5e0] sm:$0xff] }
  0x9e   :  { %1897 = vmatpush1.bf16.msra.mxu0 %v3188_v5  ;;  %1938 = vmatpush1.bf16.msra.mxu1 %v3190_v6  ;;  %v255_v5 = vld [vmem:[%s4289_s1 + $0x758] sm:$0xff] }
  0x9f   :  { %1898 = vmatprep.subr.bf16.mxu0 %v3221_v7  ;;  %1939 = vmatprep.subr.bf16.mxu1 %v3223_v8  ;;  %v271_v6 = vld [vmem:[%s4289_s1 + $0x7d8] sm:$0xff]  ;;  %v3192_v7 = vcombine.low %v222_v58, %v238_v59  ;;  %v3194_v8 = vcombine.low %v223_v60, %v239_v61  ;;  %v3165_v58 = vcombine.high %v192_v52, %v208_v53  ;;  %v224_v60 = vld [vmem:[%s4289_s1 + $0x660] sm:$0xff] }
  0xa0   :  { %v3227_v10 = vcombine.high %v255_v5, %v271_v6  ;;  %v240_v61 = vld [vmem:[%s4289_s1 + $0x6e0] sm:$0xff] }
  0xa2   :  { %1899 = vmatpush1.bf16.msra.mxu0 %v3220_v14  ;;  %1940 = vmatpush1.bf16.msra.mxu1 %v3222_v15  ;;  %v33_v14 = vld [vmem:[%s4289_s1 + $0x68] sm:$0xff] }
  0xa3   :  { %1966 = vmatprep.subr.bf16.mxu0 %v3001_v16  ;;  %2007 = vmatprep.subr.bf16.mxu1 %v3003_v17  ;;  %v49_v15 = vld [vmem:[%s4289_s1 + $0xe8] sm:$0xff]  ;;  %v3224_v16 = vcombine.low %v254_v2, %v270_v4  ;;  %v3226_v17 = vcombine.low %v255_v5, %v271_v6  ;;  %v3197_v2 = vcombine.high %v224_v60, %v240_v61  ;;  %v256_v5 = vld [vmem:[%s4289_s1 + $0x760] sm:$0xff] }
  0xa4   :  { %v3007_v19 = vcombine.high %v33_v14, %v49_v15  ;;  %v272_v6 = vld [vmem:[%s4289_s1 + $0x7e0] sm:$0xff] }
  0xa5   :  { %1917 = vmatmul.mubr.bf16.vlgmr.msra.gmra.mrb[16].mxu0 %v3400_v11  ;;  %1958 = vmatmul.mubr.bf16.vlgmr.msra.gmra.mrb[16].mxu1 %v3400_v11 }
  0xa6   :  { %1967 = vmatpush1.bf16.msra.mxu0 %v3000_v22  ;;  %2008 = vmatpush1.bf16.msra.mxu1 %v3002_v23  ;;  %v65_v22 = vld [vmem:[%s4289_s1 + $0x168] sm:$0xff] }
  0xa7   :  { %1968 = vmatprep.subr.bf16.mxu0 %v3033_v24  ;;  %2009 = vmatprep.subr.bf16.mxu1 %v3035_v25  ;;  %v81_v23 = vld [vmem:[%s4289_s1 + $0x1e8] sm:$0xff]  ;;  %v3004_v24 = vcombine.low %v32_v12, %v48_v13  ;;  %v3006_v25 = vcombine.low %v33_v14, %v49_v15  ;;  %v3229_v12 = vcombine.high %v256_v5, %v272_v6  ;;  %v34_v14 = vld [vmem:[%s4289_s1 + $0x70] sm:$0xff] }
  0xa8   :  { %1998 = vmatprep.mubr.bf16.mxu0 %v3254_v3  ;;  %2039 = vmatprep.mubr.bf16.mxu1 %v3254_v3  ;;  %v3039_v27 = vcombine.high %v65_v22, %v81_v23  ;;  %v50_v15 = vld [vmem:[%s4289_s1 + $0xf0] sm:$0xff] }
  0xaa   :  { %1969 = vmatpush1.bf16.msra.mxu0 %v3032_v30  ;;  %2010 = vmatpush1.bf16.msra.mxu1 %v3034_v31  ;;  %v97_v30 = vld [vmem:[%s4289_s1 + $0x268] sm:$0xff] }
  0xab   :  { %1970 = vmatprep.subr.bf16.mxu0 %v3065_v32  ;;  %2011 = vmatprep.subr.bf16.mxu1 %v3067_v33  ;;  %v113_v31 = vld [vmem:[%s4289_s1 + $0x2e8] sm:$0xff]  ;;  %v3036_v32 = vcombine.low %v64_v20, %v80_v21  ;;  %v3038_v33 = vcombine.low %v65_v22, %v81_v23  ;;  %v3009_v20 = vcombine.high %v34_v14, %v50_v15  ;;  %v66_v22 = vld [vmem:[%s4289_s1 + $0x170] sm:$0xff] }
  0xac   :  { %v3071_v35 = vcombine.high %v97_v30, %v113_v31  ;;  %v82_v23 = vld [vmem:[%s4289_s1 + $0x1f0] sm:$0xff] }
  0xae   :  { %1971 = vmatpush1.bf16.msra.mxu0 %v3064_v38  ;;  %2012 = vmatpush1.bf16.msra.mxu1 %v3066_v39  ;;  %v129_v38 = vld [vmem:[%s4289_s1 + $0x368] sm:$0xff] }
  0xaf   :  { %1972 = vmatprep.subr.bf16.mxu0 %v3097_v40  ;;  %2013 = vmatprep.subr.bf16.mxu1 %v3099_v41  ;;  %v145_v39 = vld [vmem:[%s4289_s1 + $0x3e8] sm:$0xff]  ;;  %v3068_v40 = vcombine.low %v96_v28, %v112_v29  ;;  %v3070_v41 = vcombine.low %v97_v30, %v113_v31  ;;  %v3041_v28 = vcombine.high %v66_v22, %v82_v23  ;;  %v98_v30 = vld [vmem:[%s4289_s1 + $0x270] sm:$0xff] }
  0xb0   :  { %v3103_v43 = vcombine.high %v129_v38, %v145_v39  ;;  %v114_v31 = vld [vmem:[%s4289_s1 + $0x2f0] sm:$0xff] }
  0xb2   :  { %1973 = vmatpush1.bf16.msra.mxu0 %v3096_v46  ;;  %2014 = vmatpush1.bf16.msra.mxu1 %v3098_v47  ;;  %v161_v46 = vld [vmem:[%s4289_s1 + $0x468] sm:$0xff] }
  0xb3   :  { %1974 = vmatprep.subr.bf16.mxu0 %v3129_v48  ;;  %2015 = vmatprep.subr.bf16.mxu1 %v3131_v49  ;;  %v177_v47 = vld [vmem:[%s4289_s1 + $0x4e8] sm:$0xff]  ;;  %v3100_v48 = vcombine.low %v128_v36, %v144_v37  ;;  %v3102_v49 = vcombine.low %v129_v38, %v145_v39  ;;  %v3073_v36 = vcombine.high %v98_v30, %v114_v31  ;;  %v130_v38 = vld [vmem:[%s4289_s1 + $0x370] sm:$0xff] }
  0xb4   :  { %v3135_v51 = vcombine.high %v161_v46, %v177_v47  ;;  %v146_v39 = vld [vmem:[%s4289_s1 + $0x3f0] sm:$0xff] }
  0xb6   :  { %1975 = vmatpush1.bf16.msra.mxu0 %v3128_v54  ;;  %2016 = vmatpush1.bf16.msra.mxu1 %v3130_v55  ;;  %v193_v54 = vld [vmem:[%s4289_s1 + $0x568] sm:$0xff] }
  0xb7   :  { %1976 = vmatprep.subr.bf16.mxu0 %v3161_v56  ;;  %2017 = vmatprep.subr.bf16.mxu1 %v3163_v57  ;;  %v209_v55 = vld [vmem:[%s4289_s1 + $0x5e8] sm:$0xff]  ;;  %v3132_v56 = vcombine.low %v160_v44, %v176_v45  ;;  %v3134_v57 = vcombine.low %v161_v46, %v177_v47  ;;  %v3105_v45 = vcombine.high %v130_v38, %v146_v39  ;;  %v162_v47 = vld [vmem:[%s4289_s1 + $0x470] sm:$0xff] }
  0xb8   :  { %v3167_v59 = vcombine.high %v193_v54, %v209_v55 }
  0xba   :  { %1977 = vmatpush1.bf16.msra.mxu0 %v3160_v62  ;;  %2018 = vmatpush1.bf16.msra.mxu1 %v3162_v63  ;;  %v225_v62 = vld [vmem:[%s4289_s1 + $0x668] sm:$0xff] }
  0xbb   :  { %1978 = vmatprep.subr.bf16.mxu0 %v3193_v0  ;;  %2019 = vmatprep.subr.bf16.mxu1 %v3195_v1  ;;  %v241_v63 = vld [vmem:[%s4289_s1 + $0x6e8] sm:$0xff]  ;;  %v3164_v0 = vcombine.low %v192_v52, %v208_v53  ;;  %v3166_v1 = vcombine.low %v193_v54, %v209_v55  ;;  %v194_v55 = vld [vmem:[%s4289_s1 + $0x570] sm:$0xff] }
  0xbc   :  { %v3199_v4 = vcombine.high %v225_v62, %v241_v63 }
  0xbe   :  { %1979 = vmatpush1.bf16.msra.mxu0 %v3192_v7  ;;  %2020 = vmatpush1.bf16.msra.mxu1 %v3194_v8  ;;  %v257_v7 = vld [vmem:[%s4289_s1 + $0x768] sm:$0xff] }
  0xbf   :  { %1980 = vmatprep.subr.bf16.mxu0 %v3225_v9  ;;  %2021 = vmatprep.subr.bf16.mxu1 %v3227_v10  ;;  %v273_v8 = vld [vmem:[%s4289_s1 + $0x7e8] sm:$0xff]  ;;  %v3196_v9 = vcombine.low %v224_v60, %v240_v61  ;;  %v3198_v10 = vcombine.low %v225_v62, %v241_v63  ;;  %v4068_v61 = vld [vmem:[%s4291_s2] sm:$0xff] }
  0xc0   :  { %v3231_v13 = vcombine.high %v257_v7, %v273_v8 }
  0xc2   :  { %1981 = vmatpush1.bf16.msra.mxu0 %v3224_v16  ;;  %2022 = vmatpush1.bf16.msra.mxu1 %v3226_v17  ;;  %v35_v16 = vld [vmem:[%s4289_s1 + $0x78] sm:$0xff] }
  0xc3   :  { %2048 = vmatprep.subr.bf16.mxu0 %v3005_v18  ;;  %2089 = vmatprep.subr.bf16.mxu1 %v3007_v19  ;;  %v51_v17 = vld [vmem:[%s4289_s1 + $0xf8] sm:$0xff]  ;;  %v3228_v18 = vcombine.low %v256_v5, %v272_v6  ;;  %v3230_v19 = vcombine.low %v257_v7, %v273_v8  ;;  %v226_v6 = vld [vmem:[%s4289_s1 + $0x670] sm:$0xff] }
  0xc4   :  { %v3011_v21 = vcombine.high %v35_v16, %v51_v17  ;;  %v242_v7 = vld [vmem:[%s4289_s1 + $0x6f0] sm:$0xff] }
  0xc5   :  { %1999 = vmatmul.mubr.bf16.vlgmr.msra.gmra.mrb[20].mxu0 %v3400_v11  ;;  %2040 = vmatmul.mubr.bf16.vlgmr.msra.gmra.mrb[20].mxu1 %v3400_v11 }
  0xc6   :  { %2049 = vmatpush1.bf16.msra.mxu0 %v3004_v24  ;;  %2090 = vmatpush1.bf16.msra.mxu1 %v3006_v25  ;;  %v67_v24 = vld [vmem:[%s4289_s1 + $0x178] sm:$0xff] }
  0xc7   :  { %2050 = vmatprep.subr.bf16.mxu0 %v3037_v26  ;;  %2091 = vmatprep.subr.bf16.mxu1 %v3039_v27  ;;  %v83_v25 = vld [vmem:[%s4289_s1 + $0x1f8] sm:$0xff]  ;;  %v3008_v26 = vcombine.low %v34_v14, %v50_v15  ;;  %v3010_v27 = vcombine.low %v35_v16, %v51_v17  ;;  %v3255_v17 = vmov 1966171168  }
  0xc8   :  { %2080 = vmatprep.mubr.bf16.mxu0 %v3254_v3  ;;  %2121 = vmatprep.mubr.bf16.mxu1 %v3254_v3  ;;  %v3043_v29 = vcombine.high %v67_v24, %v83_v25 }
  0xca   :  { %2051 = vmatpush1.bf16.msra.mxu0 %v3036_v32  ;;  %2092 = vmatpush1.bf16.msra.mxu1 %v3038_v33  ;;  %v99_v32 = vld [vmem:[%s4289_s1 + $0x278] sm:$0xff] }
  0xcb   :  { %2052 = vmatprep.subr.bf16.mxu0 %v3069_v34  ;;  %2093 = vmatprep.subr.bf16.mxu1 %v3071_v35  ;;  %v115_v33 = vld [vmem:[%s4289_s1 + $0x2f8] sm:$0xff]  ;;  %v3040_v34 = vcombine.low %v66_v22, %v82_v23  ;;  %v3042_v35 = vcombine.low %v67_v24, %v83_v25  ;;  %v258_v25 = vld [vmem:[%s4289_s1 + $0x770] sm:$0xff] }
  0xcc   :  { %v3075_v37 = vcombine.high %v99_v32, %v115_v33  ;;  %v3074_v44 = vcombine.low %v99_v32, %v115_v33  ;;  %v275_v32 = vld [vmem:[%s4289_s1 + $0x7f8] sm:$0xff] }
  0xce   :  { %2053 = vmatpush1.bf16.msra.mxu0 %v3068_v40  ;;  %2094 = vmatpush1.bf16.msra.mxu1 %v3070_v41  ;;  %v131_v40 = vld [vmem:[%s4289_s1 + $0x378] sm:$0xff] }
  0xcf   :  { %2054 = vmatprep.subr.bf16.mxu0 %v3101_v42  ;;  %2095 = vmatprep.subr.bf16.mxu1 %v3103_v43  ;;  %v147_v41 = vld [vmem:[%s4289_s1 + $0x3f8] sm:$0xff]  ;;  %v2220_v42 = vlaneseq  ;;  %v3072_v43 = vcombine.low %v98_v30, %v114_v31 }
  0xd0   :  { %v3107_v46 = vcombine.high %v131_v40, %v147_v41  ;;  %v3106_v52 = vcombine.low %v131_v40, %v147_v41  ;;  %v259_v31 = vld [vmem:[%s4289_s1 + $0x778] sm:$0xff] }
  0xd2   :  { %2055 = vmatpush1.bf16.msra.mxu0 %v3100_v48  ;;  %2096 = vmatpush1.bf16.msra.mxu1 %v3102_v49  ;;  %v178_v48 = vld [vmem:[%s4289_s1 + $0x4f0] sm:$0xff]  ;;  %v179_v49 = vld [vmem:[%s4289_s1 + $0x4f8] sm:$0xff] }
  0xd3   :  { %2056 = vmatprep.subr.bf16.mxu0 %v3133_v50  ;;  %2097 = vmatprep.subr.bf16.mxu1 %v3135_v51  ;;  %v4048_v50 = vshrl.u32 %v2220_v42, 7  ;;  %v3104_v51 = vcombine.low %v130_v38, %v146_v39  ;;  %v3137_v53 = vcombine.high %v162_v47, %v178_v48  ;;  %v3136_v60 = vcombine.low %v162_v47, %v178_v48 }
  0xd5   :  { %v4071_v62 = vsub.s32 2, %v4048_v50  ;;  %v4074_v63 = vsub.s32 1, %v4048_v50 }
  0xd6   :  { %2057 = vmatpush1.bf16.msra.mxu0 %v3132_v56  ;;  %2098 = vmatpush1.bf16.msra.mxu1 %v3134_v57  ;;  %v210_v56 = vld [vmem:[%s4289_s1 + $0x5f0] sm:$0xff]  ;;  %v4057_v57 = vsub.s32 0, %v4048_v50 }
  0xd7   :  { %2058 = vmatprep.subr.bf16.mxu0 %v3165_v58  ;;  %2099 = vmatprep.subr.bf16.mxu1 %v3167_v59  ;;  %v195_v58 = vld [vmem:[%s4289_s1 + $0x578] sm:$0xff]  ;;  %v3168_v15 = vcombine.low %v194_v55, %v210_v56 }
  0xd8   :  { %v211_v59 = vld [vmem:[%s4289_s1 + $0x5f8] sm:$0xff]  ;;  %v2223_v8 = vrot.slane %v4068_v61, %v4057_v57 }
  0xd9   :  { %v3171_v5 = vcombine.high %v195_v58, %v211_v59 }
  0xda   :  { %2059 = vmatpush1.bf16.msra.mxu0 %v3164_v0  ;;  %2100 = vmatpush1.bf16.msra.mxu1 %v3166_v1  ;;  %v4077_v0 = vsub.s32 3, %v4048_v50 }
  0xdb   :  { %2060 = vmatprep.subr.bf16.mxu0 %v3197_v2  ;;  %2101 = vmatprep.subr.bf16.mxu1 %v3199_v4  ;;  %v3169_v2 = vcombine.high %v194_v55, %v210_v56  ;;  %v4082_v4 = vld [vmem:[%s4292_s3] sm:$0xff] }
  0xdc   :  { %v2235_v14 = vrot.slane %v4068_v61, %v4077_v0  ;;  %v2423_v16 = vrot.slane %v4082_v4, %v4057_v57  ;;  %v2431_v22 = vrot.slane %v4082_v4, %v4071_v62  ;;  %v2427_v23 = vrot.slane %v4082_v4, %v4074_v63 }
  0xdd   :  { %v2435_v30 = vrot.slane %v4082_v4, %v4077_v0 }
  0xde   :  { %2061 = vmatpush1.bf16.msra.mxu0 %v3196_v9  ;;  %2102 = vmatpush1.bf16.msra.mxu1 %v3198_v10  ;;  %v227_v9 = vld [vmem:[%s4289_s1 + $0x678] sm:$0xff] }
  0xdf   :  { %2062 = vmatprep.subr.bf16.mxu0 %v3229_v12  ;;  %2103 = vmatprep.subr.bf16.mxu1 %v3231_v13  ;;  %v243_v10 = vld [vmem:[%s4289_s1 + $0x6f8] sm:$0xff]  ;;  %v2231_v12 = vrot.slane %v4068_v61, %v4071_v62  ;;  %v2227_v13 = vrot.slane %v4068_v61, %v4074_v63 }
  0xe0   :  { %v3203_v24 = vcombine.high %v227_v9, %v243_v10  ;;  %v3202_v38 = vcombine.low %v227_v9, %v243_v10  ;;  %v4132_v9 = vsub.s32 4, %v4048_v50  ;;  %v4135_v10 = vsub.s32 6, %v4048_v50 }
  0xe2   :  { %2063 = vmatpush1.bf16.msra.mxu0 %v3228_v18  ;;  %2104 = vmatpush1.bf16.msra.mxu1 %v3230_v19  ;;  %v2777_v18 = vunpack.c.l.s4 %v3255_v17  ;;  %v3170_v19 = vcombine.low %v195_v58, %v211_v59 }
  0xe3   :  { %2130 = vmatprep.subr.bf16.mxu0 %v3009_v20  ;;  %2171 = vmatprep.subr.bf16.mxu1 %v3011_v21  ;;  %v3201_v20 = vcombine.high %v226_v6, %v242_v7 }
  0xe4   :  { %v2778_v40 = vunpack.c.0.s8 %v2777_v18 }
  0xe5   :  { %2081 = vmatmul.mubr.bf16.vlgmr.msra.gmra.mrb[24].mxu0 %v3400_v11  ;;  %2122 = vmatmul.mubr.bf16.vlgmr.msra.gmra.mrb[24].mxu1 %v3400_v11 }
  0xe6   :  { %2131 = vmatpush1.bf16.msra.mxu0 %v3008_v26  ;;  %2172 = vmatpush1.bf16.msra.mxu1 %v3010_v27  ;;  %v274_v26 = vld [vmem:[%s4289_s1 + $0x7f0] sm:$0xff]  ;;  %v4125_v56 = vsub.s32 %v2778_v40, %v4048_v50 }
  0xe7   :  { %2132 = vmatprep.subr.bf16.mxu0 %v3041_v28  ;;  %2173 = vmatprep.subr.bf16.mxu1 %v3043_v29  ;;  %v3232_v48 = vcombine.low %v258_v25, %v274_v26 }
  0xe8   :  { %2162 = vmatprep.mubr.bf16.mxu0 %v3254_v3  ;;  %2203 = vmatprep.mubr.bf16.mxu1 %v3254_v3  ;;  %v163_v3 = vld [vmem:[%s4289_s1 + $0x478] sm:$0xff] }
  0xe9   :  { %v3139_v54 = vcombine.high %v163_v3, %v179_v49  ;;  %v3138_v1 = vcombine.low %v163_v3, %v179_v49  ;;  %v3235_v3 = vcombine.high %v259_v31, %v275_v32 }
  0xea   :  { %2133 = vmatpush1.bf16.msra.mxu0 %v3040_v34  ;;  %2174 = vmatpush1.bf16.msra.mxu1 %v3042_v35 }
  0xeb   :  { %2134 = vmatprep.subr.bf16.mxu0 %v3073_v36  ;;  %2175 = vmatprep.subr.bf16.mxu1 %v3075_v37  ;;  %v3200_v37 = vcombine.low %v226_v6, %v242_v7 }
  0xee   :  { %2135 = vmatpush1.bf16.msra.mxu0 %v3072_v43  ;;  %2176 = vmatpush1.bf16.msra.mxu1 %v3074_v44  ;;  %v3233_v44 = vcombine.high %v258_v25, %v274_v26 }
  0xef   :  { %2136 = vmatprep.subr.bf16.mxu0 %v3105_v45  ;;  %2177 = vmatprep.subr.bf16.mxu1 %v3107_v46 }
  0xf2   :  { %2137 = vmatpush1.bf16.msra.mxu0 %v3104_v51  ;;  %2178 = vmatpush1.bf16.msra.mxu1 %v3106_v52  ;;  %v3234_v52 = vcombine.low %v259_v31, %v275_v32 }
  0xf3   :  { %2138 = vmatprep.subr.bf16.mxu0 %v3137_v53  ;;  %2179 = vmatprep.subr.bf16.mxu1 %v3139_v54 }
  0xf6   :  { %2139 = vmatpush1.bf16.msra.mxu0 %v3136_v60  ;;  %2180 = vmatpush1.bf16.msra.mxu1 %v3138_v1 }
  0xf7   :  { %2140 = vmatprep.subr.bf16.mxu0 %v3169_v2  ;;  %2181 = vmatprep.subr.bf16.mxu1 %v3171_v5 }
  0xf8   :  { %v1590_v21 = vpop.f32.mrb[0].mxu0  ;;  %v1631_v28 = vpop.f32.mrb[0].mxu1 }
  0xf9   :  { %v2380_v27 = vmul.f32 %v2223_v8, %v1590_v21  ;;  %v1592_v29 = vpop.f32.mrb[1].mxu0  ;;  %v2382_v33 = vmul.f32 %v2231_v12, %v1631_v28  ;;  %v1633_v35 = vpop.f32.mrb[1].mxu1  ;;  %v4138_v12 = vsub.s32 5, %v4048_v50 }
  0xfa   :  { %v2381_v34 = vmul.f32 %v2227_v13, %v1592_v29  ;;  %v1594_v36 = vpop.f32.mrb[2].mxu0  ;;  %2141 = vmatpush1.bf16.msra.mxu0 %v3168_v15  ;;  %v2383_v41 = vmul.f32 %v2235_v14, %v1633_v35  ;;  %v1635_v42 = vpop.f32.mrb[2].mxu1  ;;  %2182 = vmatpush1.bf16.msra.mxu1 %v3170_v19  ;;  %v4141_v13 = vsub.s32 7, %v4048_v50  ;;  %v2239_v14 = vrot.slane %v4068_v61, %v4132_v9 }
  0xfb   :  { %v2580_v39 = vadd.f32 %v2423_v16, %v2380_v27  ;;  %v1595_v43 = vpop.f32.mrb[3].mxu0  ;;  %2142 = vmatprep.subr.bf16.mxu0 %v3201_v20  ;;  %v2582_v45 = vadd.f32 %v2431_v22, %v2382_v33  ;;  %v1636_v47 = vpop.f32.mrb[3].mxu1  ;;  %2183 = vmatprep.subr.bf16.mxu1 %v3203_v24  ;;  %v2247_v15 = vrot.slane %v4068_v61, %v4135_v10 }
  0xfc   :  { %v2581_v46 = vadd.f32 %v2427_v23, %v2381_v34  ;;  %v2583_v51 = vadd.f32 %v2435_v30, %v2383_v41  ;;  %v2439_v16 = vrot.slane %v4082_v4, %v4132_v9  ;;  %v2251_v17 = vrot.slane %v4068_v61, %v4141_v13 }
  0xfd   :  { %vm2612_vm0 = vcmp.gt.f32.partialorder %v2580_v39, 0.0  ;;  %v2644_v49 = vmul.f32 0.01, %v2580_v39  ;;  %vm2614_vm1 = vcmp.gt.f32.partialorder %v2582_v45, 0.0  ;;  %v2646_v53 = vmul.f32 0.01, %v2582_v45 }
  0xfe   :  { %vm2613_vm2 = vcmp.gt.f32.partialorder %v2581_v46, 0.0  ;;  %v2645_v54 = vmul.f32 0.01, %v2581_v46  ;;  %2143 = vmatpush1.bf16.msra.mxu0 %v3200_v37  ;;  %vm2615_vm3 = vcmp.gt.f32.partialorder %v2583_v51, 0.0  ;;  %v2647_v58 = vmul.f32 0.01, %v2583_v51  ;;  %2184 = vmatpush1.bf16.msra.mxu1 %v3202_v38 }
  0xff   :  { %v2676_v55 = vsel %vm2612_vm0, %v2580_v39, %v2644_v49  ;;  %2144 = vmatprep.subr.bf16.mxu0 %v3233_v44  ;;  %v2678_v59 = vsel %vm2614_vm1, %v2582_v45, %v2646_v53  ;;  %2185 = vmatprep.subr.bf16.mxu1 %v3235_v3  ;;  %v2447_v50 = vrot.slane %v4082_v4, %v4135_v10  ;;  %v2213_v49 = vld [vmem:[%s4291_s2 + $0x8] sm:$0xff] }
 0x100   :  { %v2677_v60 = vsel %vm2613_vm2, %v2581_v46, %v2645_v54  ;;  %v2679_v2 = vsel %vm2615_vm3, %v2583_v51, %v2647_v58  ;;  %v2443_v19 = vrot.slane %v4082_v4, %v4138_v12  ;;  %v2451_v23 = vrot.slane %v4082_v4, %v4141_v13  ;;  %v4172_v51 = vld [vmem:[%s4292_s3 + $0x8] sm:$0xff] }
 0x101   :  { %v3236_v1 = vpack.c.bf16 %v2677_v60, %v2676_v55  ;;  %v3237_v5 = vpack.c.bf16 %v2679_v2, %v2678_v59  ;;  %v2263_v53 = vrot.slane %v2213_v49, %v4071_v62  ;;  %v2259_v54 = vrot.slane %v2213_v49, %v4074_v63 }
 0x102   :  { %2145 = vmatpush1.bf16.msra.mxu0 %v3232_v48  ;;  %2186 = vmatpush1.bf16.msra.mxu1 %v3234_v52  ;;  %v2255_v52 = vrot.slane %v2213_v49, %v4057_v57  ;;  %v2455_v55 = vrot.slane %v4172_v51, %v4057_v57  ;;  %v2267_v58 = vrot.slane %v2213_v49, %v4077_v0 }
 0x103   :  { %v2782_v6 = vrot.slane %v3236_v1, %v4125_v56  ;;  %v2789_v7 = vrot.slane %v3237_v5, %v4125_v56  ;;  %v2463_v60 = vrot.slane %v4172_v51, %v4071_v62  ;;  %v2459_v1 = vrot.slane %v4172_v51, %v4074_v63 }
 0x105   :  { %2163 = vmatmul.mubr.bf16.vlgmr.msra.gmra.mrb[28].mxu0 %v3400_v11  ;;  %v2804_v8 = vcombine.low %v2782_v6, %v2789_v7  ;;  %2204 = vmatmul.mubr.bf16.vlgmr.msra.gmra.mrb[28].mxu1 %v3400_v11  ;;  %v2243_v11 = vrot.slane %v4068_v61, %v4138_v12  ;;  %v2467_v7 = vrot.slane %v4172_v51, %v4077_v0 }
 0x107   :  { %v2812_v47 = vrot.slane %v2804_v8, %v4125_v56 }
 0x118   :  { %v1672_v18 = vpop.f32.mrb[4].mxu0  ;;  %v1713_v21 = vpop.f32.mrb[4].mxu1 }
 0x119   :  { %v2384_v20 = vmul.f32 %v2239_v14, %v1672_v18  ;;  %v1674_v22 = vpop.f32.mrb[5].mxu0  ;;  %v2386_v24 = vmul.f32 %v2247_v15, %v1713_v21  ;;  %v1715_v26 = vpop.f32.mrb[5].mxu1 }
 0x11a   :  { %v2385_v25 = vmul.f32 %v2243_v11, %v1674_v22  ;;  %v1676_v27 = vpop.f32.mrb[6].mxu0  ;;  %v2387_v29 = vmul.f32 %v2251_v17, %v1715_v26  ;;  %v1717_v61 = vpop.f32.mrb[6].mxu1 }
 0x11b   :  { %v2584_v28 = vadd.f32 %v2439_v16, %v2384_v20  ;;  %v1677_v30 = vpop.f32.mrb[7].mxu0  ;;  %v2586_v31 = vadd.f32 %v2447_v50, %v2386_v24  ;;  %v1718_v33 = vpop.f32.mrb[7].mxu1 }
 0x11c   :  { %v2585_v32 = vadd.f32 %v2443_v19, %v2385_v25  ;;  %v2587_v35 = vadd.f32 %v2451_v23, %v2387_v29 }
 0x11d   :  { %vm2616_vm4 = vcmp.gt.f32.partialorder %v2584_v28, 0.0  ;;  %v2648_v34 = vmul.f32 0.01, %v2584_v28  ;;  %vm2618_vm5 = vcmp.gt.f32.partialorder %v2586_v31, 0.0  ;;  %v2650_v36 = vmul.f32 0.01, %v2586_v31 }
 0x11e   :  { %vm2617_vm6 = vcmp.gt.f32.partialorder %v2585_v32, 0.0  ;;  %v2649_v37 = vmul.f32 0.01, %v2585_v32  ;;  %vm2619_vm7 = vcmp.gt.f32.partialorder %v2587_v35, 0.0  ;;  %v2651_v4 = vmul.f32 0.01, %v2587_v35 }
 0x11f   :  { %v2680_v38 = vsel %vm2616_vm4, %v2584_v28, %v2648_v34  ;;  %v2682_v39 = vsel %vm2618_vm5, %v2586_v31, %v2650_v36  ;;  %v2279_v36 = vrot.slane %v2213_v49, %v4135_v10 }
 0x120   :  { %v2681_v40 = vsel %vm2617_vm6, %v2585_v32, %v2649_v37  ;;  %v2683_v42 = vsel %vm2619_vm7, %v2587_v35, %v2651_v4  ;;  %v2271_v35 = vrot.slane %v2213_v49, %v4132_v9  ;;  %v2275_v37 = vrot.slane %v2213_v49, %v4138_v12 }
 0x121   :  { %v3238_v41 = vpack.c.bf16 %v2681_v40, %v2680_v38  ;;  %v3239_v43 = vpack.c.bf16 %v2683_v42, %v2682_v39  ;;  %v2471_v38 = vrot.slane %v4172_v51, %v4132_v9  ;;  %v2283_v4 = vrot.slane %v2213_v49, %v4141_v13 }
 0x122   :  { %v2479_v40 = vrot.slane %v4172_v51, %v4135_v10 }
 0x123   :  { %v2796_v44 = vrot.slane %v3238_v41, %v4125_v56  ;;  %v2803_v45 = vrot.slane %v3239_v43, %v4125_v56  ;;  %v2475_v41 = vrot.slane %v4172_v51, %v4138_v12 }
 0x125   :  { %v2805_v46 = vcombine.low %v2796_v44, %v2803_v45  ;;  %v2483_v45 = vrot.slane %v4172_v51, %v4141_v13 }
 0x127   :  { %v2819_v48 = vrot.slane %v2805_v46, %v4125_v56 }
 0x129   :  { %v2820_v3 = vcombine.low %v2812_v47, %v2819_v48 }
 0x12b   :  { %2972 = vst [vmem:[%s4293_s4] sm:$0xff] %v2820_v3 }
 0x138   :  { %v1754_v59 = vpop.f32.mrb[8].mxu0  ;;  %v1795_v5 = vpop.f32.mrb[8].mxu1 }
 0x139   :  { %v2388_v2 = vmul.f32 %v2255_v52, %v1754_v59  ;;  %v1756_v6 = vpop.f32.mrb[9].mxu0  ;;  %v2390_v8 = vmul.f32 %v2263_v53, %v1795_v5  ;;  %v1797_v15 = vpop.f32.mrb[9].mxu1 }
 0x13a   :  { %v2389_v14 = vmul.f32 %v2259_v54, %v1756_v6  ;;  %v1758_v11 = vpop.f32.mrb[10].mxu0  ;;  %v2391_v17 = vmul.f32 %v2267_v58, %v1797_v15  ;;  %v1799_v18 = vpop.f32.mrb[10].mxu1 }
 0x13b   :  { %v2588_v16 = vadd.f32 %v2455_v55, %v2388_v2  ;;  %v1759_v50 = vpop.f32.mrb[11].mxu0  ;;  %v2590_v19 = vadd.f32 %v2463_v60, %v2390_v8  ;;  %v1800_v21 = vpop.f32.mrb[11].mxu1 }
 0x13c   :  { %v2589_v20 = vadd.f32 %v2459_v1, %v2389_v14  ;;  %v2591_v23 = vadd.f32 %v2467_v7, %v2391_v17  ;;  %v2214_v21 = vld [vmem:[%s4291_s2 + $0x10] sm:$0xff] }
 0x13d   :  { %vm2620_vm8 = vcmp.gt.f32.partialorder %v2588_v16, 0.0  ;;  %v2652_v22 = vmul.f32 0.01, %v2588_v16  ;;  %vm2622_vm9 = vcmp.gt.f32.partialorder %v2590_v19, 0.0  ;;  %v2654_v24 = vmul.f32 0.01, %v2590_v19 }
 0x13e   :  { %vm2621_vm10 = vcmp.gt.f32.partialorder %v2589_v20, 0.0  ;;  %v2653_v25 = vmul.f32 0.01, %v2589_v20  ;;  %vm2623_vm11 = vcmp.gt.f32.partialorder %v2591_v23, 0.0  ;;  %v2655_v27 = vmul.f32 0.01, %v2591_v23 }
 0x13f   :  { %v2684_v26 = vsel %vm2620_vm8, %v2588_v16, %v2652_v22  ;;  %v2686_v28 = vsel %vm2622_vm9, %v2590_v19, %v2654_v24  ;;  %v4213_v22 = vld [vmem:[%s4292_s3 + $0x10] sm:$0xff]  ;;  %v2295_v24 = vrot.slane %v2214_v21, %v4071_v62 }
 0x140   :  { %v2685_v29 = vsel %vm2621_vm10, %v2589_v20, %v2653_v25  ;;  %v2687_v30 = vsel %vm2623_vm11, %v2591_v23, %v2655_v27  ;;  %v2287_v23 = vrot.slane %v2214_v21, %v4057_v57  ;;  %v2291_v25 = vrot.slane %v2214_v21, %v4074_v63 }
 0x141   :  { %v3240_v61 = vpack.c.bf16 %v2685_v29, %v2684_v26  ;;  %v3241_v31 = vpack.c.bf16 %v2687_v30, %v2686_v28  ;;  %v2487_v26 = vrot.slane %v4213_v22, %v4057_v57  ;;  %v2299_v27 = vrot.slane %v2214_v21, %v4077_v0 }
 0x142   :  { %v2495_v29 = vrot.slane %v4213_v22, %v4071_v62 }
 0x143   :  { %v2831_v32 = vrot.slane %v3240_v61, %v4125_v56  ;;  %v2838_v33 = vrot.slane %v3241_v31, %v4125_v56  ;;  %v2491_v61 = vrot.slane %v4213_v22, %v4074_v63 }
 0x145   :  { %v2853_v34 = vcombine.low %v2831_v32, %v2838_v33  ;;  %v2499_v33 = vrot.slane %v4213_v22, %v4077_v0 }
 0x147   :  { %v2861_v50 = vrot.slane %v2853_v34, %v4125_v56 }
 0x158   :  { %v1836_v39 = vpop.f32.mrb[12].mxu0  ;;  %v1877_v43 = vpop.f32.mrb[12].mxu1 }
 0x159   :  { %v2392_v42 = vmul.f32 %v2271_v35, %v1836_v39  ;;  %v1838_v44 = vpop.f32.mrb[13].mxu0  ;;  %v2394_v46 = vmul.f32 %v2279_v36, %v1877_v43  ;;  %v1879_v48 = vpop.f32.mrb[13].mxu1 }
 0x15a   :  { %v2393_v47 = vmul.f32 %v2275_v37, %v1838_v44  ;;  %v1840_v3 = vpop.f32.mrb[14].mxu0  ;;  %v2395_v53 = vmul.f32 %v2283_v4, %v1879_v48  ;;  %v1881_v49 = vpop.f32.mrb[14].mxu1 }
 0x15b   :  { %v2592_v52 = vadd.f32 %v2471_v38, %v2392_v42  ;;  %v1841_v54 = vpop.f32.mrb[15].mxu0  ;;  %v2594_v55 = vadd.f32 %v2479_v40, %v2394_v46  ;;  %v1882_v59 = vpop.f32.mrb[15].mxu1 }
 0x15c   :  { %v2593_v58 = vadd.f32 %v2475_v41, %v2393_v47  ;;  %v2595_v1 = vadd.f32 %v2483_v45, %v2395_v53 }
 0x15d   :  { %vm2624_vm12 = vcmp.gt.f32.partialorder %v2592_v52, 0.0  ;;  %v2656_v60 = vmul.f32 0.01, %v2592_v52  ;;  %vm2626_vm13 = vcmp.gt.f32.partialorder %v2594_v55, 0.0  ;;  %v2658_v2 = vmul.f32 0.01, %v2594_v55 }
 0x15e   :  { %vm2625_vm14 = vcmp.gt.f32.partialorder %v2593_v58, 0.0  ;;  %v2657_v5 = vmul.f32 0.01, %v2593_v58  ;;  %vm2627_vm15 = vcmp.gt.f32.partialorder %v2595_v1, 0.0  ;;  %v2659_v51 = vmul.f32 0.01, %v2595_v1 }
 0x15f   :  { %v2688_v6 = vsel %vm2624_vm12, %v2592_v52, %v2656_v60  ;;  %v2690_v7 = vsel %vm2626_vm13, %v2594_v55, %v2658_v2  ;;  %v2311_v2 = vrot.slane %v2214_v21, %v4135_v10 }
 0x160   :  { %v2689_v8 = vsel %vm2625_vm14, %v2593_v58, %v2657_v5  ;;  %v2691_v15 = vsel %vm2627_vm15, %v2595_v1, %v2659_v51  ;;  %v2303_v1 = vrot.slane %v2214_v21, %v4132_v9  ;;  %v2307_v5 = vrot.slane %v2214_v21, %v4138_v12 }
 0x161   :  { %v3242_v14 = vpack.c.bf16 %v2689_v8, %v2688_v6  ;;  %v3243_v11 = vpack.c.bf16 %v2691_v15, %v2690_v7  ;;  %v2503_v6 = vrot.slane %v4213_v22, %v4132_v9  ;;  %v2315_v51 = vrot.slane %v2214_v21, %v4141_v13 }
 0x162   :  { %v2511_v8 = vrot.slane %v4213_v22, %v4135_v10 }
 0x163   :  { %v2845_v16 = vrot.slane %v3242_v14, %v4125_v56  ;;  %v2852_v17 = vrot.slane %v3243_v11, %v4125_v56  ;;  %v2507_v14 = vrot.slane %v4213_v22, %v4138_v12 }
 0x165   :  { %v2854_v18 = vcombine.low %v2845_v16, %v2852_v17  ;;  %v2515_v17 = vrot.slane %v4213_v22, %v4141_v13 }
 0x167   :  { %v2868_v19 = vrot.slane %v2854_v18, %v4125_v56 }
 0x169   :  { %v2869_v20 = vcombine.low %v2861_v50, %v2868_v19 }
 0x16b   :  { %2973 = vst [vmem:[%s4293_s4 + $0x8] sm:$0xff] %v2869_v20 }
 0x178   :  { %v1918_v28 = vpop.f32.mrb[16].mxu0  ;;  %v1959_v31 = vpop.f32.mrb[16].mxu1 }
 0x179   :  { %v2396_v30 = vmul.f32 %v2287_v23, %v1918_v28  ;;  %v1920_v32 = vpop.f32.mrb[17].mxu0  ;;  %v2398_v34 = vmul.f32 %v2295_v24, %v1959_v31  ;;  %v1961_v36 = vpop.f32.mrb[17].mxu1 }
 0x17a   :  { %v2397_v35 = vmul.f32 %v2291_v25, %v1920_v32  ;;  %v1922_v37 = vpop.f32.mrb[18].mxu0  ;;  %v2399_v4 = vmul.f32 %v2299_v27, %v1961_v36  ;;  %v1963_v39 = vpop.f32.mrb[18].mxu1 }
 0x17b   :  { %v2596_v38 = vadd.f32 %v2487_v26, %v2396_v30  ;;  %v1923_v40 = vpop.f32.mrb[19].mxu0  ;;  %v2598_v41 = vadd.f32 %v2495_v29, %v2398_v34  ;;  %v1964_v43 = vpop.f32.mrb[19].mxu1 }
 0x17c   :  { %v2597_v42 = vadd.f32 %v2491_v61, %v2397_v35  ;;  %v2599_v45 = vadd.f32 %v2499_v33, %v2399_v4  ;;  %v2215_v43 = vld [vmem:[%s4291_s2 + $0x18] sm:$0xff] }
 0x17d   :  { %vm2628_vm0 = vcmp.gt.f32.partialorder %v2596_v38, 0.0  ;;  %v2660_v44 = vmul.f32 0.01, %v2596_v38  ;;  %vm2630_vm1 = vcmp.gt.f32.partialorder %v2598_v41, 0.0  ;;  %v2662_v46 = vmul.f32 0.01, %v2598_v41 }
 0x17e   :  { %vm2629_vm2 = vcmp.gt.f32.partialorder %v2597_v42, 0.0  ;;  %v2661_v47 = vmul.f32 0.01, %v2597_v42  ;;  %vm2631_vm3 = vcmp.gt.f32.partialorder %v2599_v45, 0.0  ;;  %v2663_v3 = vmul.f32 0.01, %v2599_v45 }
 0x17f   :  { %v2692_v48 = vsel %vm2628_vm0, %v2596_v38, %v2660_v44  ;;  %v2694_v52 = vsel %vm2630_vm1, %v2598_v41, %v2662_v46  ;;  %v4254_v44 = vld [vmem:[%s4292_s3 + $0x18] sm:$0xff]  ;;  %v2327_v46 = vrot.slane %v2215_v43, %v4071_v62 }
 0x180   :  { %v2693_v53 = vsel %vm2629_vm2, %v2597_v42, %v2661_v47  ;;  %v2695_v54 = vsel %vm2631_vm3, %v2599_v45, %v2663_v3  ;;  %v2319_v45 = vrot.slane %v2215_v43, %v4057_v57  ;;  %v2323_v47 = vrot.slane %v2215_v43, %v4074_v63 }
 0x181   :  { %v3244_v49 = vpack.c.bf16 %v2693_v53, %v2692_v48  ;;  %v3245_v55 = vpack.c.bf16 %v2695_v54, %v2694_v52  ;;  %v2519_v48 = vrot.slane %v4254_v44, %v4057_v57  ;;  %v2331_v3 = vrot.slane %v2215_v43, %v4077_v0 }
 0x182   :  { %v2527_v53 = vrot.slane %v4254_v44, %v4071_v62 }
 0x183   :  { %v2880_v58 = vrot.slane %v3244_v49, %v4125_v56  ;;  %v2887_v59 = vrot.slane %v3245_v55, %v4125_v56  ;;  %v2523_v49 = vrot.slane %v4254_v44, %v4074_v63 }
 0x185   :  { %v2902_v60 = vcombine.low %v2880_v58, %v2887_v59  ;;  %v2531_v59 = vrot.slane %v4254_v44, %v4077_v0 }
 0x187   :  { %v2910_v40 = vrot.slane %v2902_v60, %v4125_v56 }
 0x198   :  { %v2000_v7 = vpop.f32.mrb[20].mxu0  ;;  %v2041_v11 = vpop.f32.mrb[20].mxu1 }
 0x199   :  { %v2400_v15 = vmul.f32 %v2303_v1, %v2000_v7  ;;  %v2002_v16 = vpop.f32.mrb[21].mxu0  ;;  %v2402_v18 = vmul.f32 %v2311_v2, %v2041_v11  ;;  %v2043_v19 = vpop.f32.mrb[21].mxu1 }
 0x19a   :  { %v2401_v50 = vmul.f32 %v2307_v5, %v2002_v16  ;;  %v2004_v20 = vpop.f32.mrb[22].mxu0  ;;  %v2403_v24 = vmul.f32 %v2315_v51, %v2043_v19  ;;  %v2045_v21 = vpop.f32.mrb[22].mxu1 }
 0x19b   :  { %v2600_v23 = vadd.f32 %v2503_v6, %v2400_v15  ;;  %v2005_v25 = vpop.f32.mrb[23].mxu0  ;;  %v2602_v26 = vadd.f32 %v2511_v8, %v2402_v18  ;;  %v2046_v28 = vpop.f32.mrb[23].mxu1 }
 0x19c   :  { %v2601_v27 = vadd.f32 %v2507_v14, %v2401_v50  ;;  %v2603_v61 = vadd.f32 %v2515_v17, %v2403_v24  ;;  %v2339_v28 = vrot.slane %v2215_v43, %v4138_v12 }
 0x19d   :  { %vm2632_vm4 = vcmp.gt.f32.partialorder %v2600_v23, 0.0  ;;  %v2664_v29 = vmul.f32 0.01, %v2600_v23  ;;  %vm2634_vm5 = vcmp.gt.f32.partialorder %v2602_v26, 0.0  ;;  %v2666_v30 = vmul.f32 0.01, %v2602_v26 }
 0x19e   :  { %vm2633_vm6 = vcmp.gt.f32.partialorder %v2601_v27, 0.0  ;;  %v2665_v31 = vmul.f32 0.01, %v2601_v27  ;;  %vm2635_vm7 = vcmp.gt.f32.partialorder %v2603_v61, 0.0  ;;  %v2667_v22 = vmul.f32 0.01, %v2603_v61 }
 0x19f   :  { %v2696_v32 = vsel %vm2632_vm4, %v2600_v23, %v2664_v29  ;;  %v2698_v33 = vsel %vm2634_vm5, %v2602_v26, %v2666_v30  ;;  %v2335_v26 = vrot.slane %v2215_v43, %v4132_v9  ;;  %v2535_v29 = vrot.slane %v4254_v44, %v4132_v9 }
 0x1a0   :  { %v2697_v34 = vsel %vm2633_vm6, %v2601_v27, %v2665_v31  ;;  %v2699_v36 = vsel %vm2635_vm7, %v2603_v61, %v2667_v22  ;;  %v2343_v27 = vrot.slane %v2215_v43, %v4135_v10  ;;  %v2347_v61 = vrot.slane %v2215_v43, %v4141_v13 }
 0x1a1   :  { %v3246_v35 = vpack.c.bf16 %v2697_v34, %v2696_v32  ;;  %v3247_v37 = vpack.c.bf16 %v2699_v36, %v2698_v33  ;;  %v2543_v31 = vrot.slane %v4254_v44, %v4135_v10  ;;  %v2539_v32 = vrot.slane %v4254_v44, %v4138_v12 }
 0x1a3   :  { %v2894_v38 = vrot.slane %v3246_v35, %v4125_v56  ;;  %v2901_v4 = vrot.slane %v3247_v37, %v4125_v56  ;;  %v2547_v35 = vrot.slane %v4254_v44, %v4141_v13 }
 0x1a5   :  { %v2903_v39 = vcombine.low %v2894_v38, %v2901_v4 }
 0x1a7   :  { %v2917_v41 = vrot.slane %v2903_v39, %v4125_v56 }
 0x1a9   :  { %v2918_v42 = vcombine.low %v2910_v40, %v2917_v41 }
 0x1ab   :  { %2974 = vst [vmem:[%s4293_s4 + $0x10] sm:$0xff] %v2918_v42 }
 0x1b8   :  { %v2082_v52 = vpop.f32.mrb[24].mxu0  ;;  %v2123_v55 = vpop.f32.mrb[24].mxu1 }
 0x1b9   :  { %v2404_v54 = vmul.f32 %v2319_v45, %v2082_v52  ;;  %v2084_v58 = vpop.f32.mrb[25].mxu0  ;;  %v2406_v60 = vmul.f32 %v2327_v46, %v2123_v55  ;;  %v2125_v2 = vpop.f32.mrb[25].mxu1 }
 0x1ba   :  { %v2405_v1 = vmul.f32 %v2323_v47, %v2084_v58  ;;  %v2086_v5 = vpop.f32.mrb[26].mxu0  ;;  %v2407_v6 = vmul.f32 %v2331_v3, %v2125_v2  ;;  %v2127_v51 = vpop.f32.mrb[26].mxu1 }
 0x1bb   :  { %v2604_v57 = vadd.f32 %v2519_v48, %v2404_v54  ;;  %v2087_v7 = vpop.f32.mrb[27].mxu0  ;;  %v2606_v8 = vadd.f32 %v2527_v53, %v2406_v60  ;;  %v2128_v62 = vpop.f32.mrb[27].mxu1 }
 0x1bc   :  { %v2605_v14 = vadd.f32 %v2523_v49, %v2405_v1  ;;  %v2607_v63 = vadd.f32 %v2531_v59, %v2407_v6 }
 0x1bd   :  { %vm2636_vm8 = vcmp.gt.f32.partialorder %v2604_v57, 0.0  ;;  %v2668_v15 = vmul.f32 0.01, %v2604_v57  ;;  %vm2638_vm9 = vcmp.gt.f32.partialorder %v2606_v8, 0.0  ;;  %v2670_v11 = vmul.f32 0.01, %v2606_v8 }
 0x1be   :  { %vm2637_vm10 = vcmp.gt.f32.partialorder %v2605_v14, 0.0  ;;  %v2669_v16 = vmul.f32 0.01, %v2605_v14  ;;  %vm2639_vm11 = vcmp.gt.f32.partialorder %v2607_v63, 0.0  ;;  %v2671_v0 = vmul.f32 0.01, %v2607_v63 }
 0x1bf   :  { %v2700_v17 = vsel %vm2636_vm8, %v2604_v57, %v2668_v15  ;;  %v2702_v18 = vsel %vm2638_vm9, %v2606_v8, %v2670_v11 }
 0x1c0   :  { %v2701_v50 = vsel %vm2637_vm10, %v2605_v14, %v2669_v16  ;;  %v2703_v20 = vsel %vm2639_vm11, %v2607_v63, %v2671_v0 }
 0x1c1   :  { %v3248_v19 = vpack.c.bf16 %v2701_v50, %v2700_v17  ;;  %v3249_v23 = vpack.c.bf16 %v2703_v20, %v2702_v18 }
 0x1c3   :  { %v2929_v24 = vrot.slane %v3248_v19, %v4125_v56  ;;  %v2936_v21 = vrot.slane %v3249_v23, %v4125_v56 }
 0x1c5   :  { %v2951_v25 = vcombine.low %v2929_v24, %v2936_v21 }
 0x1c7   :  { %v2959_v59 = vrot.slane %v2951_v25, %v4125_v56 }
 0x1d8   :  { %v2164_v30 = vpop.f32.mrb[28].mxu0  ;;  %v2205_v33 = vpop.f32.mrb[28].mxu1 }
 0x1d9   :  { %v2408_v22 = vmul.f32 %v2335_v26, %v2164_v30  ;;  %v2166_v34 = vpop.f32.mrb[29].mxu0  ;;  %v2410_v36 = vmul.f32 %v2343_v27, %v2205_v33  ;;  %v2207_v38 = vpop.f32.mrb[29].mxu1 }
 0x1da   :  { %v2409_v37 = vmul.f32 %v2339_v28, %v2166_v34  ;;  %v2168_v4 = vpop.f32.mrb[30].mxu0  ;;  %v2411_v39 = vmul.f32 %v2347_v61, %v2207_v38  ;;  %v2209_v40 = vpop.f32.mrb[30].mxu1 }
 0x1db   :  { %v2608_v9 = vadd.f32 %v2535_v29, %v2408_v22  ;;  %v2169_v41 = vpop.f32.mrb[31].mxu0  ;;  %v2610_v42 = vadd.f32 %v2543_v31, %v2410_v36  ;;  %v2210_v10 = vpop.f32.mrb[31].mxu1 }
 0x1dc   :  { %v2609_v43 = vadd.f32 %v2539_v32, %v2409_v37  ;;  %v2611_v12 = vadd.f32 %v2547_v35, %v2411_v39 }
 0x1dd   :  { %vm2640_vm12 = vcmp.gt.f32.partialorder %v2608_v9, 0.0  ;;  %v2672_v45 = vmul.f32 0.01, %v2608_v9  ;;  %vm2642_vm13 = vcmp.gt.f32.partialorder %v2610_v42, 0.0  ;;  %v2674_v46 = vmul.f32 0.01, %v2610_v42 }
 0x1de   :  { %vm2641_vm14 = vcmp.gt.f32.partialorder %v2609_v43, 0.0  ;;  %v2673_v47 = vmul.f32 0.01, %v2609_v43  ;;  %vm2643_vm15 = vcmp.gt.f32.partialorder %v2611_v12, 0.0  ;;  %v2675_v13 = vmul.f32 0.01, %v2611_v12 }
 0x1df   :  { %v2704_v48 = vsel %vm2640_vm12, %v2608_v9, %v2672_v45  ;;  %v2706_v44 = vsel %vm2642_vm13, %v2610_v42, %v2674_v46 }
 0x1e0   :  { %v2705_v3 = vsel %vm2641_vm14, %v2609_v43, %v2673_v47  ;;  %v2707_v53 = vsel %vm2643_vm15, %v2611_v12, %v2675_v13 }
 0x1e1   :  { %v3250_v52 = vpack.c.bf16 %v2705_v3, %v2704_v48  ;;  %v3251_v49 = vpack.c.bf16 %v2707_v53, %v2706_v44 }
 0x1e3   :  { %v2943_v54 = vrot.slane %v3250_v52, %v4125_v56  ;;  %v2950_v55 = vrot.slane %v3251_v49, %v4125_v56 }
 0x1e5   :  { %v2952_v58 = vcombine.low %v2943_v54, %v2950_v55 }
 0x1e7   :  { %v2966_v60 = vrot.slane %v2952_v58, %v4125_v56 }
 0x1e9   :  { %v2967_v1 = vcombine.low %v2959_v59, %v2966_v60 }
 0x1eb   :  { %2975 = vst [vmem:[%s4293_s4 + $0x18] sm:$0xff] %v2967_v1 }

// kernel: _lambda_.3
= control target key start
LH: loop header
LB: loop body
LE: loop exit
PB: predicated region body
PF: predicated region fallthrough
CT: control target
= control target key end

     0   :  { %v9017_v1 = vmov 0   ;;  %vm173_vm0 = vsmask.f32 7424  ;;  %vm317_vm1 = vcmask 523264   ;;  %s12635_s1 = inlined_call_operand.vmem [shape: bf16[256,512], index: 1, kind: input, shape index: {}]   ;;  %s12636_s0 = inlined_call_operand.vmem [shape: bf16[128,64], index: 0, kind: input, shape index: {}]   ;;  %s12637_s4 = inlined_call_operand.vmem [shape: bf16[2048,256], index: 4, kind: input, shape index: {}]   ;;  %s12638_s2 = inlined_call_operand.vmem [shape: f32[1,512], index: 2, kind: input, shape index: {}]   ;;  %s12639_s3 = inlined_call_operand.vmem [shape: f32[1,512], index: 3, kind: input, shape index: {}]   ;;  %s12640_s7 = inlined_call_operand.vmem [shape: bf16[1024,128], index: 7, kind: input, shape index: {}]   ;;  %s12641_s5 = inlined_call_operand.vmem [shape: f32[1,256], index: 5, kind: input, shape index: {}]   ;;  %s12642_s6 = inlined_call_operand.vmem [shape: f32[1,256], index: 6, kind: input, shape index: {}]   ;;  %s12643_s10 = inlined_call_operand.vmem [shape: bf16[512,64], index: 10, kind: input, shape index: {}]   ;;  %s12644_s8 = inlined_call_operand.vmem [shape: f32[1,128], index: 8, kind: input, shape index: {}]   ;;  %s12645_s9 = inlined_call_operand.vmem [shape: f32[1,128], index: 9, kind: input, shape index: {}]   ;;  %s12646_s14 = inlined_call_operand.<no memory space> [shape: f32[1,1], index: 14, kind: input, shape index: {}]   ;;  %s12647_s11 = inlined_call_operand.vmem [shape: f32[1,64], index: 11, kind: input, shape index: {}]   ;;  %s12648_s12 = inlined_call_operand.vmem [shape: f32[1,64], index: 12, kind: input, shape index: {}]   ;;  %s12649_s13 = inlined_call_operand.vmem [shape: f32[4,64], index: 13, kind: input, shape index: {}]   ;;  %s12650_s15 = inlined_call_operand.vmem [shape: f32[18,1], index: 15, kind: output, shape index: {}]  }
   0x1   :  { %v8401_v0 = vld [vmem:[%s12635_s1 + $0x84] ss:$16 sps:$4 sm:$0xff]   ;;  %374 = vmatprep.mubr.bf16.mxu1 %v9017_v1  ;;  %692 = vmatprep.mubr.bf16.mxu0 %v9017_v1  ;;  %v8405_v3 = vld [vmem:[%s12635_s1 + $0x80] ss:$16 sps:$4 sm:$0xff]   ;;  %v9175_v18 = vld [vmem:[%s12636_s0 + $0x8] sm:$0xf] }
   0x2   :  { %v9106_v2 = vld [vmem:[%s12635_s1 + $0x4] ss:$16 sps:$4 sm:$0xff]   ;;  %342 = vmatprep.subr.bf16.mxu1 %v8401_v0  ;;  %v9114_v4 = vld [vmem:[%s12635_s1] ss:$16 sps:$4 sm:$0xff]   ;;  %v9180_v19 = vld [vmem:[%s12636_s0 + $0xc] sm:$0xf] }
   0x3   :  { %660 = vmatprep.subr.bf16.mxu0 %v9106_v2  ;;  %v8407_v5 = vld [vmem:[%s12635_s1 + $0xa4] ss:$16 sps:$4 sm:$0xff]   ;;  %343 = vmatpush1.bf16.msra.mxu1 %v8405_v3  ;;  %v8411_v7 = vld [vmem:[%s12635_s1 + $0xa0] ss:$16 sps:$4 sm:$0xff]   ;;  %v9193_v22 = vcombine.low %v9175_v18, %v9180_v19  ;;  %v8429_v23 = vld [vmem:[%s12635_s1 + $0x8c] ss:$16 sps:$4 sm:$0xff]  }
   0x4   :  { %661 = vmatpush1.bf16.msra.mxu0 %v9114_v4  ;;  %v9124_v6 = vld [vmem:[%s12635_s1 + $0x24] ss:$16 sps:$4 sm:$0xff]   ;;  %344 = vmatprep.subr.bf16.mxu1 %v8407_v5  ;;  %v9132_v8 = vld [vmem:[%s12635_s1 + $0x20] ss:$16 sps:$4 sm:$0xff]   ;;  %v8427_v32 = vld [vmem:[%s12635_s1 + $0x88] ss:$16 sps:$4 sm:$0xff]  }
   0x5   :  { %662 = vmatprep.subr.bf16.mxu0 %v9124_v6  ;;  %v8413_v9 = vld [vmem:[%s12635_s1 + $0xc4] ss:$16 sps:$4 sm:$0xff]   ;;  %v8417_v11 = vld [vmem:[%s12635_s1 + $0xc0] ss:$16 sps:$4 sm:$0xff]   ;;  %v182_v28 = vshll.u32 %v9193_v22, 16  ;;  %v186_v36 = vshrl.u32 %v9193_v22, 16 }
   0x6   :  { %v9141_v10 = vld [vmem:[%s12635_s1 + $0x44] ss:$16 sps:$4 sm:$0xff]   ;;  %v9149_v12 = vld [vmem:[%s12635_s1 + $0x40] ss:$16 sps:$4 sm:$0xff]   ;;  %v9223_v33 = vld [vmem:[%s12636_s0 + $0x18] sm:$0xf] }
   0x7   :  { %345 = vmatpush1.bf16.msra.mxu1 %v8411_v7  ;;  %v8419_v13 = vld [vmem:[%s12635_s1 + $0xe4] ss:$16 sps:$4 sm:$0xff]   ;;  %v8423_v15 = vld [vmem:[%s12635_s1 + $0xe0] ss:$16 sps:$4 sm:$0xff]   ;;  %v184_v31 = vrot.slane %v182_v28, 1 }
   0x8   :  { %663 = vmatpush1.bf16.msra.mxu0 %v9132_v8  ;;  %346 = vmatprep.subr.bf16.mxu1 %v8413_v9  ;;  %v9159_v14 = vld [vmem:[%s12635_s1 + $0x64] ss:$16 sps:$4 sm:$0xff]   ;;  %v53_v16 = vld [vmem:[%s12636_s0] sm:$0xf]  ;;  %v9202_v24 = vld [vmem:[%s12636_s0 + $0x10] sm:$0xf] }
   0x9   :  { %664 = vmatprep.subr.bf16.mxu0 %v9141_v10  ;;  %v9170_v17 = vld [vmem:[%s12636_s0 + $0x4] sm:$0xf]  ;;  %v9186_v20 = vld [vmem:[%s12635_s1 + $0x60] ss:$16 sps:$4 sm:$0xff]   ;;  %v9207_v25 = vld [vmem:[%s12636_s0 + $0x14] sm:$0xf]  ;;  %v188_v44 = vor.u32 %v186_v36, %v184_v31 }
   0xa   :  { %v9189_v21 = vcombine.low %v53_v16, %v9170_v17  ;;  %v9214_v29 = vcombine.low %v9202_v24, %v9207_v25  ;;  %v9228_v34 = vld [vmem:[%s12636_s0 + $0x1c] sm:$0xf]  ;;  %v8436_v38 = vld [vmem:[%s12635_s1 + $0x100] ss:$16 sps:$4 sm:$0xff]   ;;  %v8438_v39 = vld [vmem:[%s12635_s1 + $0x104] ss:$16 sps:$4 sm:$0xff]  }
   0xb   :  { %347 = vmatpush1.bf16.msra.mxu1 %v8417_v11  ;;  %v8434_v40 = vld [vmem:[%s12635_s1 + $0xac] ss:$16 sps:$4 sm:$0xff]   ;;  %v8441_v42 = vld [vmem:[%s12635_s1 + $0x124] ss:$16 sps:$4 sm:$0xff]   ;;  %v8439_v43 = vld [vmem:[%s12635_s1 + $0x120] ss:$16 sps:$4 sm:$0xff]   ;;  %v9258_v46 = vcombine.low %v9223_v33, %v9228_v34 }
   0xc   :  { %665 = vmatpush1.bf16.msra.mxu0 %v9149_v12  ;;  %348 = vmatprep.subr.bf16.mxu1 %v8419_v13  ;;  %v175_v26 = vshrl.u32 %v9189_v21, 16  ;;  %v177_v27 = vshll.u32 %v9189_v21, 16  ;;  %v190_v37 = vshll.u32 %v9214_v29, 16  ;;  %v8432_v47 = vld [vmem:[%s12635_s1 + $0xa8] ss:$16 sps:$4 sm:$0xff]   ;;  %v194_v50 = vshrl.u32 %v9214_v29, 16 }
   0xd   :  { %666 = vmatprep.subr.bf16.mxu0 %v9159_v14  ;;  %v8445_v48 = vld [vmem:[%s12635_s1 + $0xcc] ss:$16 sps:$4 sm:$0xff]   ;;  %v8448_v49 = vld [vmem:[%s12635_s1 + $0x144] ss:$16 sps:$4 sm:$0xff]   ;;  %v9273_v51 = vld [vmem:[%s12636_s0 + $0x20] sm:$0xf] }
   0xe   :  { %v179_v30 = vrot.slane %v177_v27, 1  ;;  %v192_v45 = vrot.slane %v190_v37, 1  ;;  %v9278_v52 = vld [vmem:[%s12636_s0 + $0x24] sm:$0xf]  ;;  %v8446_v53 = vld [vmem:[%s12635_s1 + $0x140] ss:$16 sps:$4 sm:$0xff]  }
   0xf   :  { %349 = vmatpush1.bf16.msra.mxu1 %v8423_v15  ;;  %v198_v55 = vshll.u32 %v9258_v46, 16  ;;  %v8443_v56 = vld [vmem:[%s12635_s1 + $0xc8] ss:$16 sps:$4 sm:$0xff]   ;;  %v8451_v57 = vld [vmem:[%s12635_s1 + $0x164] ss:$16 sps:$4 sm:$0xff]   ;;  %v9310_v63 = vcombine.low %v9273_v51, %v9278_v52  ;;  %v202_v5 = vshrl.u32 %v9258_v46, 16 }
  0x10   :  { %667 = vmatpush1.bf16.msra.mxu0 %v9186_v20  ;;  %453 = vmatprep.subr.bf16.mxu1 %v8429_v23  ;;  %v180_v35 = vor.u32 %v179_v30, %v175_v26  ;;  %v9284_v54 = vsel %vm173_vm0, %v188_v44, %v192_v45  ;;  %v8457_v58 = vld [vmem:[%s12635_s1 + $0xec] ss:$16 sps:$4 sm:$0xff]   ;;  %v8449_v59 = vld [vmem:[%s12635_s1 + $0x160] ss:$16 sps:$4 sm:$0xff]   ;;  %v8455_v60 = vld [vmem:[%s12635_s1 + $0xe8] ss:$16 sps:$4 sm:$0xff]   ;;  %v196_v61 = vor.u32 %v194_v50, %v192_v45 }
  0x11   :  { %996 = vmatprep.subr.bf16.mxu0 %v8438_v39  ;;  %v200_v62 = vrot.slane %v198_v55, 1  ;;  %v8466_v0 = vld [vmem:[%s12635_s1 + $0x184] ss:$16 sps:$4 sm:$0xff]   ;;  %v206_v7 = vshll.u32 %v9310_v63, 16  ;;  %v9325_v9 = vld [vmem:[%s12636_s0 + $0x28] sm:$0xf]  ;;  %v9415_v55 = vcombine.low %v9180_v19, %v9202_v24 }
  0x12   :  { %v9244_v41 = vsel %vm173_vm0, %v180_v35, %v184_v31  ;;  %v9330_v11 = vld [vmem:[%s12636_s0 + $0x2c] sm:$0xf]  ;;  %v9344_v23 = vld [vmem:[%s12636_s0 + $0x30] sm:$0xf]  ;;  %v210_v27 = vshrl.u32 %v9310_v63, 16 }
  0x13   :  { %7225 = vmatmul.mubr.msk.bf16.vlgmr.msra.gmra.mrb[0].mxu0 %vm317_vm1, %v9189_v21  ;;  %7193 = vmatmul.mubr.msk.bf16.vlgmr.msra.gmra.mrb[0].mxu1 %vm317_vm1, %v9244_v41  ;;  %v9316_v3 = vsel %vm173_vm0, %v196_v61, %v200_v62  ;;  %v204_v13 = vor.u32 %v202_v5, %v200_v62  ;;  %v208_v15 = vrot.slane %v206_v7, 1  ;;  %v9339_v16 = vcombine.low %v9325_v9, %v9330_v11  ;;  %v8464_v44 = vld [vmem:[%s12635_s1 + $0x180] ss:$16 sps:$4 sm:$0xff]   ;;  %v8469_v45 = vld [vmem:[%s12635_s1 + $0x1a4] ss:$16 sps:$4 sm:$0xff]  }
  0x14   :  { %702 = vmatprep.mubr.bf16.mxu0 %v9017_v1  ;;  %997 = vmatpush1.bf16.msra.mxu0 %v8436_v38  ;;  %v9376_v38 = vld [vmem:[%s12636_s0 + $0x38] sm:$0xf]  ;;  %v8474_v19 = vld [vmem:[%s12635_s1 + $0x1e0] ss:$16 sps:$4 sm:$0xff]   ;;  %v9450_v61 = vcombine.low %v9228_v34, %v9273_v51 }
  0x15   :  { %454 = vmatpush1.bf16.msra.mxu1 %v8427_v32  ;;  %384 = vmatprep.mubr.bf16.mxu1 %v9017_v1  ;;  %v9352_v26 = vsel %vm173_vm0, %v204_v13, %v208_v15  ;;  %v214_v28 = vshll.u32 %v9339_v16, 16  ;;  %v212_v30 = vor.u32 %v210_v27, %v208_v15  ;;  %v218_v36 = vshrl.u32 %v9339_v16, 16 }
  0x16   :  { %455 = vmatprep.subr.bf16.mxu1 %v8434_v40  ;;  %998 = vmatprep.subr.bf16.mxu0 %v8441_v42  ;;  %v9384_v42 = vcombine.low %v9376_v38, %v9376_v38  ;;  %v1298_v7 = vshll.u32 %v9450_v61, 16  ;;  %v1302_v15 = vshrl.u32 %v9450_v61, 16 }
  0x17   :  { %v216_v31 = vrot.slane %v214_v28, 1 }
  0x18   :  { %999 = vmatpush1.bf16.msra.mxu0 %v8439_v43  ;;  %v9388_v43 = vcombine.low %v9170_v17, %v9175_v18  ;;  %v8467_v17 = vld [vmem:[%s12635_s1 + $0x1a0] ss:$16 sps:$4 sm:$0xff]   ;;  %v8473_v18 = vld [vmem:[%s12635_s1 + $0x1c4] ss:$16 sps:$4 sm:$0xff]   ;;  %v234_v24 = vshrl.u32 %v9384_v42, 16 }
  0x19   :  { %456 = vmatpush1.bf16.msra.mxu1 %v8432_v47  ;;  %1000 = vmatprep.subr.bf16.mxu0 %v8448_v49  ;;  %v9367_v35 = vsel %vm173_vm0, %v212_v30, %v216_v31  ;;  %v220_v39 = vor.u32 %v218_v36, %v216_v31  ;;  %v230_v49 = vshll.u32 %v9384_v42, 16  ;;  %v8477_v31 = vld [vmem:[%s12635_s1 + $0x8] ss:$16 sps:$4 sm:$0xff]  }
  0x1a   :  { %457 = vmatprep.subr.bf16.mxu1 %v8445_v48 }
  0x1b   :  { %7226 = vmatmul.mubr.msk.bf16.gmra.mrb[4].mxu0 %vm317_vm1, %v9193_v22  ;;  %7194 = vmatmul.mubr.msk.bf16.gmra.mrb[4].mxu1 %vm317_vm1, %v9284_v54 }
  0x1c   :  { %712 = vmatprep.mubr.bf16.mxu0 %v9017_v1  ;;  %1001 = vmatpush1.bf16.msra.mxu0 %v8446_v53  ;;  %v232_v53 = vrot.slane %v230_v49, 1 }
  0x1d   :  { %394 = vmatprep.mubr.bf16.mxu1 %v9017_v1  ;;  %458 = vmatpush1.bf16.msra.mxu1 %v8443_v56  ;;  %v8471_v56 = vld [vmem:[%s12635_s1 + $0x1c0] ss:$16 sps:$4 sm:$0xff]  }
  0x1e   :  { %1002 = vmatprep.subr.bf16.mxu0 %v8451_v57  ;;  %459 = vmatprep.subr.bf16.mxu1 %v8457_v58  ;;  %v8476_v57 = vld [vmem:[%s12635_s1 + $0x1e4] ss:$16 sps:$4 sm:$0xff]  }
  0x20   :  { %1003 = vmatpush1.bf16.msra.mxu0 %v8449_v59  ;;  %v9438_v59 = vcombine.low %v9207_v25, %v9223_v33  ;;  %v9461_v25 = vcombine.low %v9278_v52, %v9325_v9  ;;  %v1284_v33 = vshll.u32 %v9415_v55, 16  ;;  %v1288_v52 = vshrl.u32 %v9415_v55, 16 }
  0x21   :  { %460 = vmatpush1.bf16.msra.mxu1 %v8455_v60  ;;  %1437 = vmatprep.subr.bf16.mxu0 %v8466_v0  ;;  %v9440_v60 = vor.u32 %v234_v24, %v232_v53  ;;  %v8516_v24 = vld [vmem:[%s12637_s4 + $0x10] ss:$8 sps:$4 sm:$0xff]  }
  0x22   :  { %8006 = vmatprep.subr.bf16.mxu1 %v9106_v2  ;;  %v9349_v2 = vld [vmem:[%s12636_s0 + $0x34] sm:$0xf]  ;;  %v1295_v5 = vshrl.u32 %v9438_v59, 16  ;;  %v1309_v28 = vshrl.u32 %v9461_v25, 16 }
  0x23   :  { %7227 = vmatmul.mubr.msk.bf16.gmra.mrb[8].mxu0 %vm317_vm1, %v9214_v29  ;;  %7195 = vmatmul.mubr.msk.bf16.gmra.mrb[8].mxu1 %vm317_vm1, %v9316_v3  ;;  %v9364_v32 = vcombine.low %v9344_v23, %v9349_v2 }
  0x24   :  { %722 = vmatprep.mubr.bf16.mxu0 %v9017_v1  ;;  %404 = vmatprep.mubr.bf16.mxu1 %v9017_v1 }
  0x25   :  { %v222_v37 = vshll.u32 %v9364_v32, 16  ;;  %v226_v48 = vshrl.u32 %v9364_v32, 16 }
  0x27   :  { %v224_v40 = vrot.slane %v222_v37, 1 }
  0x29   :  { %v9397_v47 = vsel %vm173_vm0, %v220_v39, %v224_v40  ;;  %v228_v50 = vor.u32 %v226_v48, %v224_v40  ;;  %v8485_v39 = vld [vmem:[%s12635_s1 + $0x4c] ss:$16 sps:$4 sm:$0xff]  }
  0x2a   :  { %v8488_v48 = vld [vmem:[%s12635_s1 + $0x6c] ss:$16 sps:$4 sm:$0xff]  }
  0x2b   :  { %7228 = vmatmul.mubr.msk.bf16.gmra.mrb[12].mxu0 %vm317_vm1, %v9258_v46  ;;  %7196 = vmatmul.mubr.msk.bf16.gmra.mrb[12].mxu1 %vm317_vm1, %v9352_v26  ;;  %v9424_v58 = vsel %vm173_vm0, %v228_v50, %v232_v53  ;;  %v8491_v50 = vld [vmem:[%s12635_s1 + $0x10c] ss:$16 sps:$4 sm:$0xff]   ;;  %v8513_v53 = vld [vmem:[%s12637_s4] ss:$8 sps:$4 sm:$0xff]  }
  0x2c   :  { %732 = vmatprep.mubr.bf16.mxu0 %v9017_v1  ;;  %414 = vmatprep.mubr.bf16.mxu1 %v9017_v1 }
  0x33   :  { %7229 = vmatmul.mubr.msk.bf16.gmra.mrb[16].mxu0 %vm317_vm1, %v9310_v63  ;;  %7197 = vmatmul.mubr.msk.bf16.gmra.mrb[16].mxu1 %vm317_vm1, %v9367_v35 }
  0x34   :  { %1028 = vmatprep.mubr.bf16.mxu0 %v9017_v1  ;;  %424 = vmatprep.mubr.bf16.mxu1 %v9017_v1 }
  0x3b   :  { %7265 = vmatmul.mubr.msk.bf16.vlgmr.msra.gmra.mrb[0].mxu0 %vm317_vm1, %v9388_v43  ;;  %7198 = vmatmul.mubr.msk.bf16.gmra.mrb[20].mxu1 %vm317_vm1, %v9397_v47 }
  0x3c   :  { %1038 = vmatprep.mubr.bf16.mxu0 %v9017_v1  ;;  %1438 = vmatpush1.bf16.msra.mxu0 %v8464_v44 }
  0x3d   :  { %1439 = vmatprep.subr.bf16.mxu0 %v8469_v45  ;;  %434 = vmatprep.mubr.bf16.mxu1 %v9017_v1 }
  0x40   :  { %1440 = vmatpush1.bf16.msra.mxu0 %v8467_v17 }
  0x41   :  { %1441 = vmatprep.subr.bf16.mxu0 %v8473_v18  ;;  %v8486_v18 = vld [vmem:[%s12635_s1 + $0x68] ss:$16 sps:$4 sm:$0xff]  }
  0x43   :  { %7266 = vmatmul.mubr.msk.bf16.gmra.mrb[4].mxu0 %vm317_vm1, %v9415_v55  ;;  %7199 = vmatmul.mubr.msk.bf16.gmra.mrb[24].mxu1 %vm317_vm1, %v9424_v58 }
  0x44   :  { %1048 = vmatprep.mubr.bf16.mxu0 %v9017_v1  ;;  %1442 = vmatpush1.bf16.msra.mxu0 %v8471_v56 }
  0x45   :  { %1443 = vmatprep.subr.bf16.mxu0 %v8476_v57  ;;  %444 = vmatprep.mubr.bf16.mxu1 %v9017_v1  ;;  %v8515_v57 = vld [vmem:[%s12637_s4 + $0x4] ss:$8 sps:$4 sm:$0xff]  }
  0x48   :  { %1444 = vmatpush1.bf16.msra.mxu0 %v8474_v19 }
  0x49   :  { %4173 = vmatprep.subr.bf16.mxu0 %v8515_v57 }
  0x4b   :  { %7267 = vmatmul.mubr.msk.bf16.gmra.mrb[8].mxu0 %vm317_vm1, %v9438_v59  ;;  %7200 = vmatmul.mubr.msk.bf16.gmra.mrb[28].mxu1 %vm317_vm1, %v9440_v60 }
  0x4c   :  { %1058 = vmatprep.mubr.bf16.mxu0 %v9017_v1  ;;  %485 = vmatprep.mubr.bf16.mxu1 %v9017_v1 }
  0x53   :  { %7268 = vmatmul.mubr.msk.bf16.gmra.mrb[12].mxu0 %vm317_vm1, %v9450_v61  ;;  %7201 = vmatmul.mubr.msk.bf16.vlgmr.msra.gmra.mrb[32].mxu1 %vm317_vm1, %v9244_v41  ;;  %v1286_v41 = vrot.slane %v1284_v33, 1  ;;  %v8524_v33 = vld [vmem:[%s12637_s4 + $0x34] ss:$8 sps:$4 sm:$0xff]  }
  0x54   :  { %1068 = vmatprep.mubr.bf16.mxu0 %v9017_v1  ;;  %8010 = vmatpush1.bf16.msra.mxu1 %v9114_v4  ;;  %v9475_v4 = vcombine.low %v9330_v11, %v9344_v23  ;;  %v1300_v11 = vrot.slane %v1298_v7, 1  ;;  %v1305_v23 = vshll.u32 %v9461_v25, 16  ;;  %v8497_v7 = vld [vmem:[%s12635_s1 + $0x14c] ss:$16 sps:$4 sm:$0xff]  }
  0x55   :  { %495 = vmatprep.mubr.bf16.mxu1 %v9017_v1  ;;  %8007 = vmatprep.subr.bf16.mxu1 %v9124_v6  ;;  %v8479_v6 = vld [vmem:[%s12635_s1 + $0xc] ss:$16 sps:$4 sm:$0xff]   ;;  %v1290_v62 = vor.u32 %v1288_v52, %v1286_v41 }
  0x56   :  { %v1312_v30 = vshll.u32 %v9475_v4, 16  ;;  %v1316_v44 = vshrl.u32 %v9475_v4, 16  ;;  %v8494_v52 = vld [vmem:[%s12635_s1 + $0x12c] ss:$16 sps:$4 sm:$0xff]  }
  0x58   :  { %8011 = vmatpush1.bf16.msra.mxu1 %v9132_v8  ;;  %v9490_v8 = vcombine.low %v9349_v2, %v9376_v38  ;;  %v1304_v2 = vor.u32 %v1302_v15, %v1300_v11  ;;  %v1314_v37 = vrot.slane %v1312_v30, 1  ;;  %v8480_v38 = vld [vmem:[%s12635_s1 + $0x28] ss:$16 sps:$4 sm:$0xff]   ;;  %v8503_v30 = vld [vmem:[%s12635_s1 + $0x18c] ss:$16 sps:$4 sm:$0xff]  }
  0x59   :  { %8008 = vmatprep.subr.bf16.mxu1 %v9141_v10  ;;  %v1280_v10 = vshll.u32 %v9388_v43, 16  ;;  %v8495_v15 = vld [vmem:[%s12635_s1 + $0x148] ss:$16 sps:$4 sm:$0xff]  }
  0x5a   :  { %v1319_v45 = vshll.u32 %v9490_v8, 16  ;;  %v1318_v49 = vor.u32 %v1316_v44, %v1314_v37  ;;  %v1323_v56 = vshrl.u32 %v9490_v8, 16  ;;  %v8543_v44 = vld [vmem:[%s12637_s4 + $0xa0] ss:$8 sps:$4 sm:$0xff]  }
  0x5b   :  { %7269 = vmatmul.mubr.msk.bf16.gmra.mrb[16].mxu0 %vm317_vm1, %v9461_v25  ;;  %7202 = vmatmul.mubr.msk.bf16.gmra.mrb[36].mxu1 %vm317_vm1, %v9284_v54  ;;  %v1291_v54 = vshll.u32 %v9438_v59, 16 }
  0x5c   :  { %1078 = vmatprep.mubr.bf16.mxu0 %v9017_v1  ;;  %505 = vmatprep.mubr.bf16.mxu1 %v9017_v1  ;;  %v1321_v17 = vrot.slane %v1319_v45, 1  ;;  %v8548_v45 = vld [vmem:[%s12637_s4 + $0xb4] ss:$8 sps:$4 sm:$0xff]  }
  0x5d   :  { %8012 = vmatpush1.bf16.msra.mxu1 %v9149_v12  ;;  %v9502_v12 = vld [vmem:[%s12636_s0 + $0x3c] ss:$0 sps:$4 sm:$0xff]   ;;  %v1293_v0 = vrot.slane %v1291_v54, 1  ;;  %v8522_v54 = vld [vmem:[%s12637_s4 + $0x30] ss:$8 sps:$4 sm:$0xff]  }
  0x5e   :  { %8009 = vmatprep.subr.bf16.mxu1 %v9159_v14  ;;  %v1278_v14 = vshrl.u32 %v9388_v43, 16  ;;  %v1326_v19 = vshll.u32 %v9502_v12, 16 }
  0x5f   :  { %v1297_v9 = vor.u32 %v1295_v5, %v1293_v0  ;;  %v8527_v5 = vld [vmem:[%s12637_s4 + $0x44] ss:$8 sps:$4 sm:$0xff]  }
  0x61   :  { %8013 = vmatpush1.bf16.msra.mxu1 %v9186_v20  ;;  %v1282_v20 = vrot.slane %v1280_v10, 1  ;;  %v9535_v13 = vsel %vm173_vm0, %v1297_v9, %v1300_v11  ;;  %v1328_v10 = vrot.slane %v1326_v19, 1  ;;  %v8525_v9 = vld [vmem:[%s12637_s4 + $0x40] ss:$8 sps:$4 sm:$0xff]   ;;  %v8530_v11 = vld [vmem:[%s12637_s4 + $0x54] ss:$8 sps:$4 sm:$0xff]  }
  0x62   :  { %771 = vmatprep.subr.bf16.mxu1 %v8479_v6  ;;  %v1325_v6 = vor.u32 %v1323_v56, %v1321_v17  ;;  %v8501_v56 = vld [vmem:[%s12635_s1 + $0x188] ss:$16 sps:$4 sm:$0xff]  }
  0x63   :  { %7270 = vmatmul.mubr.msk.bf16.gmra.mrb[20].mxu0 %vm317_vm1, %v9475_v4  ;;  %7203 = vmatmul.mubr.msk.bf16.gmra.mrb[40].mxu1 %vm317_vm1, %v9316_v3  ;;  %v1283_v34 = vor.u32 %v1282_v20, %v1278_v14  ;;  %v9524_v3 = vsel %vm173_vm0, %v1290_v62, %v1293_v0  ;;  %v8521_v14 = vld [vmem:[%s12637_s4 + $0x24] ss:$8 sps:$4 sm:$0xff]   ;;  %v8519_v20 = vld [vmem:[%s12637_s4 + $0x20] ss:$8 sps:$4 sm:$0xff]   ;;  %v1330_v62 = vshrl.u32 %v9502_v12, 16 }
  0x64   :  { %1088 = vmatprep.mubr.bf16.mxu0 %v9017_v1  ;;  %515 = vmatprep.mubr.bf16.mxu1 %v9017_v1  ;;  %v8492_v0 = vld [vmem:[%s12635_s1 + $0x128] ss:$16 sps:$4 sm:$0xff]  }
  0x65   :  { %v9513_v51 = vsel %vm173_vm0, %v1283_v34, %v1286_v41  ;;  %v8489_v34 = vld [vmem:[%s12635_s1 + $0x108] ss:$16 sps:$4 sm:$0xff]   ;;  %v9627_v41 = vsel %vm173_vm0, %v1325_v6, %v1328_v10 }
  0x6b   :  { %7271 = vmatmul.mubr.msk.bf16.gmra.mrb[24].mxu0 %vm317_vm1, %v9490_v8  ;;  %7204 = vmatmul.mubr.msk.bf16.gmra.mrb[44].mxu1 %vm317_vm1, %v9352_v26  ;;  %v1307_v26 = vrot.slane %v1305_v23, 1  ;;  %v8500_v23 = vld [vmem:[%s12635_s1 + $0x16c] ss:$16 sps:$4 sm:$0xff]  }
  0x6c   :  { %1098 = vmatprep.mubr.bf16.mxu0 %v9017_v1  ;;  %525 = vmatprep.mubr.bf16.mxu1 %v9017_v1 }
  0x6d   :  { %v9546_v27 = vsel %vm173_vm0, %v1304_v2, %v1307_v26  ;;  %v1311_v36 = vor.u32 %v1309_v28, %v1307_v26  ;;  %v8528_v2 = vld [vmem:[%s12637_s4 + $0x50] ss:$8 sps:$4 sm:$0xff]   ;;  %v8533_v28 = vld [vmem:[%s12637_s4 + $0x64] ss:$8 sps:$4 sm:$0xff]  }
  0x6e   :  { %v8498_v26 = vld [vmem:[%s12635_s1 + $0x168] ss:$16 sps:$4 sm:$0xff]  }
  0x6f   :  { %v9569_v40 = vsel %vm173_vm0, %v1311_v36, %v1314_v37  ;;  %v8539_v36 = vld [vmem:[%s12637_s4 + $0x84] ss:$8 sps:$4 sm:$0xff]   ;;  %v8537_v37 = vld [vmem:[%s12637_s4 + $0x80] ss:$8 sps:$4 sm:$0xff]  }
  0x73   :  { %7272 = vmatmul.mubr.msk.bf16.gmra.mrb[28].mxu0 %vm317_vm1, %v9502_v12  ;;  %7205 = vmatmul.mubr.msk.bf16.gmra.mrb[48].mxu1 %vm317_vm1, %v9367_v35  ;;  %v8482_v35 = vld [vmem:[%s12635_s1 + $0x2c] ss:$16 sps:$4 sm:$0xff]  }
  0x74   :  { %1469 = vmatprep.mubr.bf16.mxu0 %v9017_v1  ;;  %535 = vmatprep.mubr.bf16.mxu1 %v9017_v1 }
  0x7b   :  { %7297 = vmatmul.mubr.msk.bf16.vlgmr.msra.gmra.mrb[0].mxu0 %vm317_vm1, %v9513_v51  ;;  %7206 = vmatmul.mubr.msk.bf16.gmra.mrb[52].mxu1 %vm317_vm1, %v9397_v47  ;;  %v8483_v47 = vld [vmem:[%s12635_s1 + $0x48] ss:$16 sps:$4 sm:$0xff]  }
  0x7c   :  { %1479 = vmatprep.mubr.bf16.mxu0 %v9017_v1  ;;  %545 = vmatprep.mubr.bf16.mxu1 %v9017_v1 }
  0x7d   :  { %4174 = vmatpush1.bf16.msra.mxu0 %v8513_v53 }
  0x83   :  { %7298 = vmatmul.mubr.msk.bf16.gmra.mrb[4].mxu0 %vm317_vm1, %v9524_v3  ;;  %7207 = vmatmul.mubr.msk.bf16.gmra.mrb[56].mxu1 %vm317_vm1, %v9424_v58  ;;  %v9599_v58 = vsel %vm173_vm0, %v1318_v49, %v1321_v17  ;;  %v8554_v49 = vld [vmem:[%s12637_s4 + $0xd4] ss:$8 sps:$4 sm:$0xff]   ;;  %v8557_v17 = vld [vmem:[%s12637_s4 + $0xe4] ss:$8 sps:$4 sm:$0xff]  }
  0x84   :  { %1489 = vmatprep.mubr.bf16.mxu0 %v9017_v1  ;;  %555 = vmatprep.mubr.bf16.mxu1 %v9017_v1 }
  0x8b   :  { %7299 = vmatmul.mubr.msk.bf16.gmra.mrb[8].mxu0 %vm317_vm1, %v9535_v13  ;;  %7208 = vmatmul.mubr.msk.bf16.gmra.mrb[60].mxu1 %vm317_vm1, %v9440_v60  ;;  %v8518_v60 = vld [vmem:[%s12637_s4 + $0x14] ss:$8 sps:$4 sm:$0xff]  }
  0x8c   :  { %1499 = vmatprep.mubr.bf16.mxu0 %v9017_v1  ;;  %742 = vmatprep.mubr.bf16.mxu1 %v9017_v1 }
  0x8d   :  { %4175 = vmatprep.subr.bf16.mxu0 %v8518_v60  ;;  %v8509_v60 = vld [vmem:[%s12635_s1 + $0x1cc] ss:$16 sps:$4 sm:$0xff]  }
  0x8e   :  { %4176 = vmatpush1.bf16.msra.mxu0 %v8516_v24 }
  0x8f   :  { %4177 = vmatprep.subr.bf16.mxu0 %v8521_v14 }
  0x92   :  { %4178 = vmatpush1.bf16.msra.mxu0 %v8519_v20 }
  0x93   :  { %7300 = vmatmul.mubr.msk.bf16.gmra.mrb[12].mxu0 %vm317_vm1, %v9546_v27  ;;  %7230 = vmatmul.mubr.msk.bf16.vlgmr.msra.gmra.mrb[20].mxu1 %vm317_vm1, %v9339_v16 }
  0x94   :  { %1509 = vmatprep.mubr.bf16.mxu0 %v9017_v1  ;;  %772 = vmatpush1.bf16.msra.mxu1 %v8477_v31  ;;  %v8536_v31 = vld [vmem:[%s12637_s4 + $0x74] ss:$8 sps:$4 sm:$0xff]  }
  0x95   :  { %752 = vmatprep.mubr.bf16.mxu1 %v9017_v1  ;;  %773 = vmatprep.subr.bf16.mxu1 %v8482_v35  ;;  %v8534_v35 = vld [vmem:[%s12637_s4 + $0x70] ss:$8 sps:$4 sm:$0xff]  }
  0x96   :  { %4179 = vmatprep.subr.bf16.mxu0 %v8524_v33 }
  0x97   :  { %4180 = vmatpush1.bf16.msra.mxu0 %v8522_v54 }
  0x98   :  { %774 = vmatpush1.bf16.msra.mxu1 %v8480_v38  ;;  %4181 = vmatprep.subr.bf16.mxu0 %v8527_v5  ;;  %v8542_v38 = vld [vmem:[%s12637_s4 + $0x94] ss:$8 sps:$4 sm:$0xff]  }
  0x99   :  { %775 = vmatprep.subr.bf16.mxu1 %v8485_v39  ;;  %v8545_v39 = vld [vmem:[%s12637_s4 + $0xa4] ss:$8 sps:$4 sm:$0xff]  }
  0x9b   :  { %7301 = vmatmul.mubr.msk.bf16.gmra.mrb[16].mxu0 %vm317_vm1, %v9569_v40  ;;  %7231 = vmatmul.mubr.msk.bf16.gmra.mrb[24].mxu1 %vm317_vm1, %v9364_v32 }
  0x9c   :  { %1519 = vmatprep.mubr.bf16.mxu0 %v9017_v1  ;;  %776 = vmatpush1.bf16.msra.mxu1 %v8483_v47  ;;  %v8551_v47 = vld [vmem:[%s12637_s4 + $0xc4] ss:$8 sps:$4 sm:$0xff]  }
  0x9d   :  { %762 = vmatprep.mubr.bf16.mxu1 %v9017_v1  ;;  %777 = vmatprep.subr.bf16.mxu1 %v8488_v48  ;;  %v8549_v48 = vld [vmem:[%s12637_s4 + $0xc0] ss:$8 sps:$4 sm:$0xff]  }
  0x9e   :  { %4182 = vmatpush1.bf16.msra.mxu0 %v8525_v9 }
  0x9f   :  { %4183 = vmatprep.subr.bf16.mxu0 %v8530_v11 }
  0xa0   :  { %778 = vmatpush1.bf16.msra.mxu1 %v8486_v18  ;;  %v8555_v18 = vld [vmem:[%s12637_s4 + $0xe0] ss:$8 sps:$4 sm:$0xff]  }
  0xa1   :  { %1107 = vmatprep.subr.bf16.mxu1 %v8491_v50  ;;  %v8560_v50 = vld [vmem:[%s12637_s4 + $0xf4] ss:$8 sps:$4 sm:$0xff]  }
  0xa2   :  { %4184 = vmatpush1.bf16.msra.mxu0 %v8528_v2  ;;  %v8563_v2 = vld [vmem:[%s12637_s4 + $0x104] ss:$8 sps:$4 sm:$0xff]  }
  0xa3   :  { %7302 = vmatmul.mubr.msk.bf16.gmra.mrb[20].mxu0 %vm317_vm1, %v9599_v58  ;;  %7232 = vmatmul.mubr.msk.bf16.gmra.mrb[28].mxu1 %vm317_vm1, %v9384_v42 }
  0xa4   :  { %1529 = vmatprep.mubr.bf16.mxu0 %v9017_v1  ;;  %803 = vmatprep.mubr.bf16.mxu1 %v9017_v1 }
  0xa5   :  { %4185 = vmatprep.subr.bf16.mxu0 %v8533_v28 }
  0xab   :  { %7303 = vmatmul.mubr.msk.bf16.gmra.mrb[24].mxu0 %vm317_vm1, %v9627_v41  ;;  %7233 = vmatmul.mubr.msk.bf16.vlgmr.msra.gmra.mrb[32].mxu1 %vm317_vm1, %v9189_v21  ;;  %v9654_v21 = vor.u32 %v1330_v62, %v1328_v10  ;;  %v8507_v10 = vld [vmem:[%s12635_s1 + $0x1c8] ss:$16 sps:$4 sm:$0xff]  }
  0xac   :  { %1539 = vmatprep.mubr.bf16.mxu0 %v9017_v1  ;;  %1108 = vmatpush1.bf16.msra.mxu1 %v8489_v34  ;;  %v8510_v34 = vld [vmem:[%s12635_s1 + $0x1e8] ss:$16 sps:$4 sm:$0xff]  }
  0xad   :  { %813 = vmatprep.mubr.bf16.mxu1 %v9017_v1  ;;  %1109 = vmatprep.subr.bf16.mxu1 %v8494_v52 }
  0xb0   :  { %1110 = vmatpush1.bf16.msra.mxu1 %v8492_v0 }
  0xb1   :  { %1111 = vmatprep.subr.bf16.mxu1 %v8497_v7 }
  0xb3   :  { %7304 = vmatmul.mubr.msk.bf16.gmra.mrb[28].mxu0 %vm317_vm1, %v9654_v21  ;;  %7234 = vmatmul.mubr.msk.bf16.gmra.mrb[36].mxu1 %vm317_vm1, %v9193_v22  ;;  %v8531_v22 = vld [vmem:[%s12637_s4 + $0x60] ss:$8 sps:$4 sm:$0xff]  }
  0xb4   :  { %823 = vmatprep.mubr.bf16.mxu1 %v9017_v1  ;;  %1112 = vmatpush1.bf16.msra.mxu1 %v8495_v15 }
  0xb5   :  { %1113 = vmatprep.subr.bf16.mxu1 %v8500_v23  ;;  %4186 = vmatpush1.bf16.msra.mxu0 %v8531_v22 }
  0xb6   :  { %4187 = vmatprep.subr.bf16.mxu0 %v8536_v31 }
  0xb8   :  { %1114 = vmatpush1.bf16.msra.mxu1 %v8498_v26 }
  0xb9   :  { %1548 = vmatprep.subr.bf16.mxu1 %v8503_v30  ;;  %4188 = vmatpush1.bf16.msra.mxu0 %v8534_v35 }
  0xba   :  { %4189 = vmatprep.subr.bf16.mxu0 %v8539_v36 }
  0xbb   :  { %7235 = vmatmul.mubr.msk.bf16.gmra.mrb[40].mxu1 %vm317_vm1, %v9214_v29  ;;  %v8540_v29 = vld [vmem:[%s12637_s4 + $0x90] ss:$8 sps:$4 sm:$0xff]  }
  0xbc   :  { %833 = vmatprep.mubr.bf16.mxu1 %v9017_v1 }
  0xbd   :  { %4190 = vmatpush1.bf16.msra.mxu0 %v8537_v37 }
  0xbe   :  { %4191 = vmatprep.subr.bf16.mxu0 %v8542_v38 }
  0xc1   :  { %4192 = vmatpush1.bf16.msra.mxu0 %v8540_v29 }
  0xc2   :  { %4193 = vmatprep.subr.bf16.mxu0 %v8545_v39 }
  0xc3   :  { %7236 = vmatmul.mubr.msk.bf16.gmra.mrb[44].mxu1 %vm317_vm1, %v9258_v46  ;;  %v8546_v46 = vld [vmem:[%s12637_s4 + $0xb0] ss:$8 sps:$4 sm:$0xff]  }
  0xc4   :  { %843 = vmatprep.mubr.bf16.mxu1 %v9017_v1 }
  0xc5   :  { %4194 = vmatpush1.bf16.msra.mxu0 %v8543_v44 }
  0xc6   :  { %4195 = vmatprep.subr.bf16.mxu0 %v8548_v45 }
  0xc9   :  { %4196 = vmatpush1.bf16.msra.mxu0 %v8546_v46 }
  0xca   :  { %4197 = vmatprep.subr.bf16.mxu0 %v8551_v47 }
  0xcb   :  { %7237 = vmatmul.mubr.msk.bf16.gmra.mrb[48].mxu1 %vm317_vm1, %v9310_v63  ;;  %v8552_v63 = vld [vmem:[%s12637_s4 + $0xd0] ss:$8 sps:$4 sm:$0xff]  }
  0xcc   :  { %853 = vmatprep.mubr.bf16.mxu1 %v9017_v1 }
  0xcd   :  { %4198 = vmatpush1.bf16.msra.mxu0 %v8549_v48 }
  0xce   :  { %4199 = vmatprep.subr.bf16.mxu0 %v8554_v49 }
  0xd1   :  { %4200 = vmatpush1.bf16.msra.mxu0 %v8552_v63 }
  0xd2   :  { %4201 = vmatprep.subr.bf16.mxu0 %v8557_v17 }
  0xd3   :  { %7238 = vmatmul.mubr.msk.bf16.gmra.mrb[52].mxu1 %vm317_vm1, %v9339_v16  ;;  %v8558_v16 = vld [vmem:[%s12637_s4 + $0xf0] ss:$8 sps:$4 sm:$0xff]  }
  0xd4   :  { %863 = vmatprep.mubr.bf16.mxu1 %v9017_v1 }
  0xd5   :  { %4202 = vmatpush1.bf16.msra.mxu0 %v8555_v18 }
  0xd6   :  { %4203 = vmatprep.subr.bf16.mxu0 %v8560_v50 }
  0xd9   :  { %4204 = vmatpush1.bf16.msra.mxu0 %v8558_v16 }
  0xda   :  { %4276 = vmatprep.subr.bf16.mxu0 %v8563_v2 }
  0xdb   :  { %7239 = vmatmul.mubr.msk.bf16.gmra.mrb[56].mxu1 %vm317_vm1, %v9364_v32  ;;  %v8506_v32 = vld [vmem:[%s12635_s1 + $0x1ac] ss:$16 sps:$4 sm:$0xff]  }
  0xdc   :  { %873 = vmatprep.mubr.bf16.mxu1 %v9017_v1 }
  0xe3   :  { %7240 = vmatmul.mubr.msk.bf16.gmra.mrb[60].mxu1 %vm317_vm1, %v9384_v42  ;;  %v8504_v42 = vld [vmem:[%s12635_s1 + $0x1a8] ss:$16 sps:$4 sm:$0xff]  }
  0xe4   :  { %1139 = vmatprep.mubr.bf16.mxu1 %v9017_v1 }
  0xe6   :  { %v9757_v53 = vpop.f32.mrb[0].mxu1 }
  0xe7   :  { %v9762_v57 = vpop.f32.mrb[1].mxu1 }
  0xe8   :  { %v9767_v19 = vpop.f32.mrb[2].mxu1 }
  0xe9   :  { %v9769_v24 = vpop.f32.mrb[3].mxu1 }
  0xeb   :  { %7273 = vmatmul.mubr.msk.bf16.vlgmr.msra.gmra.mrb[32].mxu1 %vm317_vm1, %v9388_v43  ;;  %v8512_v43 = vld [vmem:[%s12635_s1 + $0x1ec] ss:$16 sps:$4 sm:$0xff]  }
  0xec   :  { %1549 = vmatpush1.bf16.msra.mxu1 %v8501_v56  ;;  %1149 = vmatprep.mubr.bf16.mxu1 %v9017_v1 }
  0xed   :  { %1550 = vmatprep.subr.bf16.mxu1 %v8506_v32 }
  0xee   :  { %v9780_v6 = vpop.f32.mrb[4].mxu1 }
  0xef   :  { %v9785_v14 = vpop.f32.mrb[5].mxu1 }
  0xf0   :  { %v9790_v20 = vpop.f32.mrb[6].mxu1  ;;  %1551 = vmatpush1.bf16.msra.mxu1 %v8504_v42 }
  0xf1   :  { %v9792_v33 = vpop.f32.mrb[7].mxu1  ;;  %1552 = vmatprep.subr.bf16.mxu1 %v8509_v60 }
  0xf3   :  { %7274 = vmatmul.mubr.msk.bf16.gmra.mrb[36].mxu1 %vm317_vm1, %v9415_v55 }
  0xf4   :  { %1159 = vmatprep.mubr.bf16.mxu1 %v9017_v1  ;;  %1553 = vmatpush1.bf16.msra.mxu1 %v8507_v10 }
  0xf5   :  { %1554 = vmatprep.subr.bf16.mxu1 %v8512_v43 }
  0xf6   :  { %v9800_v52 = vpop.f32.mrb[8].mxu1 }
  0xf7   :  { %v9802_v54 = vpop.f32.mrb[9].mxu1 }
  0xf8   :  { %v9804_v62 = vpop.f32.mrb[10].mxu1  ;;  %1555 = vmatpush1.bf16.msra.mxu1 %v8510_v34 }
  0xf9   :  { %v9806_v0 = vpop.f32.mrb[11].mxu1 }
  0xfb   :  { %7275 = vmatmul.mubr.msk.bf16.gmra.mrb[40].mxu1 %vm317_vm1, %v9438_v59 }
  0xfc   :  { %1169 = vmatprep.mubr.bf16.mxu1 %v9017_v1 }
  0xfe   :  { %v9811_v5 = vpop.f32.mrb[12].mxu1 }
  0xff   :  { %v9813_v55 = vpop.f32.mrb[13].mxu1 }
 0x100   :  { %v9815_v7 = vpop.f32.mrb[14].mxu1 }
 0x101   :  { %v9817_v9 = vpop.f32.mrb[15].mxu1 }
 0x103   :  { %7276 = vmatmul.mubr.msk.bf16.gmra.mrb[44].mxu1 %vm317_vm1, %v9450_v61  ;;  %v1720_v61 = vlaneseq }
 0x104   :  { %1179 = vmatprep.mubr.bf16.mxu1 %v9017_v1 }
 0x106   :  { %v9822_v11 = vpop.f32.mrb[16].mxu1 }
 0x107   :  { %v9824_v15 = vpop.f32.mrb[17].mxu1 }
 0x108   :  { %v9826_v59 = vpop.f32.mrb[18].mxu1 }
 0x109   :  { %v9828_v23 = vpop.f32.mrb[19].mxu1 }
 0x10b   :  { %7277 = vmatmul.mubr.msk.bf16.gmra.mrb[48].mxu1 %vm317_vm1, %v9461_v25  ;;  %v9856_v25 = vshrl.u32 %v1720_v61, 7 }
 0x10c   :  { %1189 = vmatprep.mubr.bf16.mxu1 %v9017_v1 }
 0x113   :  { %7278 = vmatmul.mubr.msk.bf16.gmra.mrb[52].mxu1 %vm317_vm1, %v9475_v4  ;;  %v9860_v4 = vsub.s32 0, %v9856_v25 }
 0x114   :  { %1199 = vmatprep.mubr.bf16.mxu1 %v9017_v1 }
 0x115   :  { %12722 = vst [vmem:[#allocation3_spill] sm:$0xff] %v9860_v4 }
 0x11b   :  { %7279 = vmatmul.mubr.msk.bf16.gmra.mrb[56].mxu1 %vm317_vm1, %v9490_v8  ;;  %v9865_v8 = vld [vmem:[%s12638_s2] sm:$0xf] }
 0x11c   :  { %1209 = vmatprep.mubr.bf16.mxu1 %v9017_v1 }
 0x123   :  { %7280 = vmatmul.mubr.msk.bf16.gmra.mrb[60].mxu1 %vm317_vm1, %v9502_v12  ;;  %v9868_v12 = vsub.s32 1, %v9856_v25 }
 0x124   :  { %1580 = vmatprep.mubr.bf16.mxu1 %v9017_v1 }
 0x125   :  { %12723 = vst [vmem:[#allocation4_spill] sm:$0xff] %v9868_v12 }
 0x12b   :  { %7305 = vmatmul.mubr.msk.bf16.vlgmr.msra.gmra.mrb[32].mxu1 %vm317_vm1, %v9513_v51  ;;  %v9873_v51 = vld [vmem:[%s12639_s3] sm:$0xf] }
 0x12c   :  { %1590 = vmatprep.mubr.bf16.mxu1 %v9017_v1  ;;  %v9889_v28 = vrot.slane %v9873_v51, %v9860_v4  ;;  %v9894_v22 = vrot.slane %v9873_v51, %v9868_v12 }
 0x133   :  { %7306 = vmatmul.mubr.msk.bf16.gmra.mrb[36].mxu1 %vm317_vm1, %v9524_v3  ;;  %v9879_v3 = vrot.slane %v9865_v8, %v9860_v4 }
 0x134   :  { %1600 = vmatprep.mubr.bf16.mxu1 %v9017_v1 }
 0x13b   :  { %7307 = vmatmul.mubr.msk.bf16.gmra.mrb[40].mxu1 %vm317_vm1, %v9535_v13 }
 0x13c   :  { %1610 = vmatprep.mubr.bf16.mxu1 %v9017_v1 }
 0x143   :  { %7308 = vmatmul.mubr.msk.bf16.gmra.mrb[44].mxu1 %vm317_vm1, %v9546_v27  ;;  %v9883_v27 = vrot.slane %v9865_v8, %v9868_v12 }
 0x144   :  { %1620 = vmatprep.mubr.bf16.mxu1 %v9017_v1 }
 0x14b   :  { %7309 = vmatmul.mubr.msk.bf16.gmra.mrb[48].mxu1 %vm317_vm1, %v9569_v40 }
 0x14c   :  { %1630 = vmatprep.mubr.bf16.mxu1 %v9017_v1 }
 0x14e   :  { %v1471_v13 = vpop.f32.mrb[0].mxu0 }
 0x14f   :  { %v8014_v26 = vadd.f32 %v1471_v13, %v9757_v53  ;;  %v1473_v30 = vpop.f32.mrb[1].mxu0 }
 0x150   :  { %v8015_v40 = vadd.f32 %v1473_v30, %v9762_v57  ;;  %v1475_v31 = vpop.f32.mrb[2].mxu0  ;;  %v8566_v30 = vld [vmem:[%s12637_s4 + $0x114] ss:$8 sps:$4 sm:$0xff]  }
 0x151   :  { %v1740_v35 = vmul.f32 %v8014_v26, %v9879_v3  ;;  %v8016_v36 = vadd.f32 %v1475_v31, %v9767_v19  ;;  %v1477_v37 = vpop.f32.mrb[3].mxu0 }
 0x152   :  { %v1741_v38 = vmul.f32 %v8015_v40, %v9883_v27  ;;  %v8017_v29 = vadd.f32 %v1477_v37, %v9769_v24 }
 0x153   :  { %v1821_v39 = vadd.f32 %v9889_v28, %v1740_v35  ;;  %v1744_v44 = vmul.f32 %v8016_v36, %v9879_v3  ;;  %7310 = vmatmul.mubr.msk.bf16.gmra.mrb[52].mxu1 %vm317_vm1, %v9599_v58 }
 0x154   :  { %v1822_v45 = vadd.f32 %v9894_v22, %v1741_v38  ;;  %v1745_v46 = vmul.f32 %v8017_v29, %v9883_v27  ;;  %1640 = vmatprep.mubr.bf16.mxu1 %v9017_v1 }
 0x155   :  { %vm1881_vm2 = vcmp.gt.f32.partialorder %v1821_v39, 0.0  ;;  %v1941_v47 = vmul.f32 0.01, %v1821_v39  ;;  %v1825_v48 = vadd.f32 %v9889_v28, %v1744_v44 }
 0x156   :  { %vm1882_vm3 = vcmp.gt.f32.partialorder %v1822_v45, 0.0  ;;  %v1942_v49 = vmul.f32 0.01, %v1822_v45  ;;  %v1826_v63 = vadd.f32 %v9894_v22, %v1745_v46  ;;  %v1481_v17 = vpop.f32.mrb[4].mxu0 }
 0x157   :  { %vm1885_vm4 = vcmp.gt.f32.partialorder %v1825_v48, 0.0  ;;  %v1945_v18 = vmul.f32 0.01, %v1825_v48  ;;  %v8018_v50 = vadd.f32 %v1481_v17, %v9780_v6  ;;  %v1483_v16 = vpop.f32.mrb[5].mxu0  ;;  %v2001_v53 = vsel %vm1881_vm2, %v1821_v39, %v1941_v47  ;;  %v8564_v47 = vld [vmem:[%s12637_s4 + $0x110] ss:$8 sps:$4 sm:$0xff]  }
 0x158   :  { %vm1886_vm5 = vcmp.gt.f32.partialorder %v1826_v63, 0.0  ;;  %v1946_v56 = vmul.f32 0.01, %v1826_v63  ;;  %v8019_v57 = vadd.f32 %v1483_v16, %v9785_v14  ;;  %v1485_v32 = vpop.f32.mrb[6].mxu0  ;;  %v2002_v60 = vsel %vm1882_vm3, %v1822_v45, %v1942_v49 }
 0x159   :  { %v2005_v19 = vsel %vm1885_vm4, %v1825_v48, %v1945_v18  ;;  %v1748_v58 = vmul.f32 %v8018_v50, %v9879_v3  ;;  %v8020_v24 = vadd.f32 %v1485_v32, %v9790_v20  ;;  %v1487_v42 = vpop.f32.mrb[7].mxu0  ;;  %v8561_v20 = vld [vmem:[%s12637_s4 + $0x100] ss:$8 sps:$4 sm:$0xff]  }
 0x15a   :  { %v9914_v10 = vpack.c.bf16 %v2005_v19, %v2001_v53  ;;  %v1749_v43 = vmul.f32 %v8019_v57, %v9883_v27  ;;  %v8021_v6 = vadd.f32 %v1487_v42, %v9792_v33  ;;  %v2006_v34 = vsel %vm1886_vm5, %v1826_v63, %v1946_v56 }
 0x15b   :  { %v1829_v2 = vadd.f32 %v9889_v28, %v1748_v58  ;;  %v1752_v14 = vmul.f32 %v8020_v24, %v9879_v3  ;;  %v9920_v61 = vpack.c.bf16 %v2006_v34, %v2002_v60  ;;  %7311 = vmatmul.mubr.msk.bf16.gmra.mrb[56].mxu1 %vm317_vm1, %v9627_v41 }
 0x15c   :  { %v1830_v13 = vadd.f32 %v9894_v22, %v1749_v43  ;;  %v1753_v26 = vmul.f32 %v8021_v6, %v9883_v27  ;;  %v12673_v33 = vshrl.u32 %v9914_v10, 16  ;;  %v12672_v40 = vshll.u32 %v9914_v10, 16  ;;  %1650 = vmatprep.mubr.bf16.mxu1 %v9017_v1  ;;  %v8572_v43 = vld [vmem:[%s12637_s4 + $0x134] ss:$8 sps:$4 sm:$0xff]  }
 0x15d   :  { %vm1889_vm6 = vcmp.gt.f32.partialorder %v1829_v2, 0.0  ;;  %v1949_v31 = vmul.f32 0.01, %v1829_v2  ;;  %v1833_v35 = vadd.f32 %v9889_v28, %v1752_v14  ;;  %4205 = vmatprep.mubr.bf16.mxu0 %v9920_v61  ;;  %v2364_v36 = vshrl.u32 %v9920_v61, 16 }
 0x15e   :  { %vm1890_vm7 = vcmp.gt.f32.partialorder %v1830_v13, 0.0  ;;  %v1950_v37 = vmul.f32 0.01, %v1830_v13  ;;  %v1834_v38 = vadd.f32 %v9894_v22, %v1753_v26  ;;  %v1491_v29 = vpop.f32.mrb[8].mxu0  ;;  %4206 = vmatmul.mubr.bf16.vlgmr.msra.gmra.mrb[32].mxu0 %v9914_v10  ;;  %v2366_v39 = vshll.u32 %v9920_v61, 16 }
 0x15f   :  { %vm1893_vm8 = vcmp.gt.f32.partialorder %v1833_v35, 0.0  ;;  %v1953_v44 = vmul.f32 0.01, %v1833_v35  ;;  %v8022_v45 = vadd.f32 %v1491_v29, %v9800_v52  ;;  %v1493_v41 = vpop.f32.mrb[9].mxu0  ;;  %v2009_v46 = vsel %vm1889_vm6, %v1829_v2, %v1949_v31  ;;  %4277 = vmatpush1.bf16.msra.mxu0 %v8561_v20  ;;  %v8569_v52 = vld [vmem:[%s12637_s4 + $0x124] ss:$8 sps:$4 sm:$0xff]  }
 0x160   :  { %vm1894_vm9 = vcmp.gt.f32.partialorder %v1834_v38, 0.0  ;;  %v1954_v48 = vmul.f32 0.01, %v1834_v38  ;;  %v8023_v49 = vadd.f32 %v1493_v41, %v9802_v54  ;;  %v1495_v63 = vpop.f32.mrb[10].mxu0  ;;  %v2010_v1 = vsel %vm1890_vm7, %v1830_v13, %v1950_v37  ;;  %4278 = vmatprep.subr.bf16.mxu0 %v8566_v30  ;;  %v8570_v31 = vld [vmem:[%s12637_s4 + $0x130] ss:$8 sps:$4 sm:$0xff]  }
 0x161   :  { %v1756_v17 = vmul.f32 %v8022_v45, %v9879_v3  ;;  %v8024_v18 = vadd.f32 %v1495_v63, %v9804_v62  ;;  %v1497_v50 = vpop.f32.mrb[11].mxu0  ;;  %v2013_v16 = vsel %vm1893_vm8, %v1833_v35, %v1953_v44  ;;  %v2368_v53 = vrot.slane %v2366_v39, 1  ;;  %v8567_v62 = vld [vmem:[%s12637_s4 + $0x120] ss:$8 sps:$4 sm:$0xff]   ;;  %v8575_v44 = vld [vmem:[%s12637_s4 + $0x144] ss:$8 sps:$4 sm:$0xff]  }
 0x162   :  { %v1757_v54 = vmul.f32 %v8023_v49, %v9883_v27  ;;  %v8025_v56 = vadd.f32 %v1497_v50, %v9806_v0  ;;  %v2014_v57 = vsel %vm1894_vm9, %v1834_v38, %v1954_v48  ;;  %v9958_v32 = vpack.c.bf16 %v2013_v16, %v2009_v46 }
 0x163   :  { %v1837_v19 = vadd.f32 %v9889_v28, %v1756_v17  ;;  %v1760_v58 = vmul.f32 %v8024_v18, %v9879_v3  ;;  %v9962_v24 = vpack.c.bf16 %v2014_v57, %v2010_v1  ;;  %4279 = vmatpush1.bf16.msra.mxu0 %v8564_v47  ;;  %v2369_v42 = vor.u32 %v2368_v53, %v2364_v36 }
 0x164   :  { %v1838_v60 = vadd.f32 %v9894_v22, %v1757_v54  ;;  %v1761_v0 = vmul.f32 %v8025_v56, %v9883_v27  ;;  %4280 = vmatprep.subr.bf16.mxu0 %v8569_v52  ;;  %v2356_v6 = vrot.slane %v12672_v40, 1  ;;  %v12671_v34 = vshll.u32 %v9958_v32, 16  ;;  %7312 = vmatmul.mubr.msk.bf16.gmra.mrb[60].mxu1 %vm317_vm1, %v9654_v21 }
 0x165   :  { %vm1897_vm10 = vcmp.gt.f32.partialorder %v1837_v19, 0.0  ;;  %v1957_v2 = vmul.f32 0.01, %v1837_v19  ;;  %v1841_v14 = vadd.f32 %v9889_v28, %v1760_v58  ;;  %4215 = vmatprep.mubr.bf16.mxu0 %v9962_v24  ;;  %v12674_v20 = vshll.u32 %v9962_v24, 16 }
 0x166   :  { %vm1898_vm11 = vcmp.gt.f32.partialorder %v1838_v60, 0.0  ;;  %v1958_v13 = vmul.f32 0.01, %v1838_v60  ;;  %v1842_v26 = vadd.f32 %v9894_v22, %v1761_v0  ;;  %v1501_v30 = vpop.f32.mrb[12].mxu0  ;;  %4216 = vmatmul.mubr.bf16.gmra.mrb[36].mxu0 %v9958_v32  ;;  %v2357_v35 = vor.u32 %v2356_v6, %v12673_v33  ;;  %v9994_v41 = vpop.f32.mrb[20].mxu1 }
 0x167   :  { %vm1901_vm12 = vcmp.gt.f32.partialorder %v1841_v14, 0.0  ;;  %v1961_v21 = vmul.f32 0.01, %v1841_v14  ;;  %v8026_v37 = vadd.f32 %v1501_v30, %v9811_v5  ;;  %v1503_v38 = vpop.f32.mrb[13].mxu0  ;;  %v2017_v29 = vsel %vm1897_vm10, %v1837_v19, %v1957_v2  ;;  %4281 = vmatpush1.bf16.msra.mxu0 %v8567_v62  ;;  %v9999_v49 = vpop.f32.mrb[21].mxu1 }
 0x168   :  { %vm1902_vm13 = vcmp.gt.f32.partialorder %v1842_v26, 0.0  ;;  %v1962_v45 = vmul.f32 0.01, %v1842_v26  ;;  %v8027_v46 = vadd.f32 %v1503_v38, %v9813_v55  ;;  %v1505_v47 = vpop.f32.mrb[14].mxu0  ;;  %v2018_v48 = vsel %vm1898_vm11, %v1838_v60, %v1958_v13  ;;  %4282 = vmatprep.subr.bf16.mxu0 %v8572_v43  ;;  %v10006_v50 = vpop.f32.mrb[22].mxu1 }
 0x169   :  { %v1764_v5 = vmul.f32 %v8026_v37, %v9879_v3  ;;  %v8028_v63 = vadd.f32 %v1505_v47, %v9815_v7  ;;  %v1507_v1 = vpop.f32.mrb[15].mxu0  ;;  %v2021_v52 = vsel %vm1901_vm12, %v1841_v14, %v1961_v21  ;;  %v2373_v17 = vrot.slane %v12674_v20, 1  ;;  %v10014_v56 = vpop.f32.mrb[23].mxu1  ;;  %v8573_v19 = vld [vmem:[%s12637_s4 + $0x140] ss:$8 sps:$4 sm:$0xff]  }
 0x16a   :  { %v1765_v18 = vmul.f32 %v8027_v46, %v9883_v27  ;;  %v8029_v55 = vadd.f32 %v1507_v1, %v9817_v9  ;;  %v2022_v16 = vsel %vm1902_vm13, %v1842_v26, %v1962_v45  ;;  %v10010_v53 = vpack.c.bf16 %v2021_v52, %v2017_v29  ;;  %v8578_v60 = vld [vmem:[%s12637_s4 + $0x154] ss:$8 sps:$4 sm:$0xff]   ;;  %v8576_v30 = vld [vmem:[%s12637_s4 + $0x150] ss:$8 sps:$4 sm:$0xff]  }
 0x16b   :  { %v1845_v54 = vadd.f32 %v9889_v28, %v1764_v5  ;;  %v1768_v7 = vmul.f32 %v8028_v63, %v9879_v3  ;;  %v10016_v57 = vpack.c.bf16 %v2022_v16, %v2018_v48  ;;  %4283 = vmatpush1.bf16.msra.mxu0 %v8570_v31  ;;  %v10022_v58 = vsel %vm173_vm0, %v2369_v42, %v2373_v17 }
 0x16c   :  { %v1846_v9 = vadd.f32 %v9894_v22, %v1765_v18  ;;  %v1769_v62 = vmul.f32 %v8029_v55, %v9883_v27  ;;  %4284 = vmatprep.subr.bf16.mxu0 %v8575_v44  ;;  %v10031_v0 = vrot.slane %v12671_v34, 1  ;;  %v2407_v43 = vshrl.u32 %v9962_v24, 16  ;;  %v8581_v44 = vld [vmem:[%s12637_s4 + $0x164] ss:$8 sps:$4 sm:$0xff]  }
 0x16d   :  { %vm1905_vm14 = vcmp.gt.f32.partialorder %v1845_v54, 0.0  ;;  %v1965_v6 = vmul.f32 0.01, %v1845_v54  ;;  %v1849_v42 = vadd.f32 %v9889_v28, %v1768_v7  ;;  %4225 = vmatprep.mubr.bf16.mxu0 %v10016_v57  ;;  %v12669_v2 = vshll.u32 %v10016_v57, 16 }
 0x16e   :  { %vm1906_vm15 = vcmp.gt.f32.partialorder %v1846_v9, 0.0  ;;  %v1966_v14 = vmul.f32 0.01, %v1846_v9  ;;  %v1850_v13 = vadd.f32 %v9894_v22, %v1769_v62  ;;  %v1511_v26 = vpop.f32.mrb[16].mxu0  ;;  %4226 = vmatmul.mubr.bf16.gmra.mrb[40].mxu0 %v10010_v53  ;;  %v10044_v31 = vsel %vm173_vm0, %v2357_v35, %v10031_v0  ;;  %v10051_v46 = vpop.f32.mrb[24].mxu1 }
 0x16f   :  { %vm1909_vm2 = vcmp.gt.f32.partialorder %v1849_v42, 0.0  ;;  %v1969_v21 = vmul.f32 0.01, %v1849_v42  ;;  %v8030_v37 = vadd.f32 %v1511_v26, %v9822_v11  ;;  %v1513_v38 = vpop.f32.mrb[17].mxu0  ;;  %v2025_v29 = vsel %vm1905_vm14, %v1845_v54, %v1965_v6  ;;  %4285 = vmatpush1.bf16.msra.mxu0 %v8573_v19  ;;  %v10056_v5 = vpop.f32.mrb[25].mxu1 }
 0x170   :  { %vm1910_vm3 = vcmp.gt.f32.partialorder %v1850_v13, 0.0  ;;  %v1970_v45 = vmul.f32 0.01, %v1850_v13  ;;  %v8031_v47 = vadd.f32 %v1513_v38, %v9824_v15  ;;  %v1515_v35 = vpop.f32.mrb[18].mxu0  ;;  %v2026_v48 = vsel %vm1906_vm15, %v1846_v9, %v1966_v14  ;;  %4286 = vmatprep.subr.bf16.mxu0 %v8578_v60  ;;  %v10063_v16 = vpop.f32.mrb[26].mxu1 }
 0x171   :  { %v1772_v11 = vmul.f32 %v8030_v37, %v9879_v3  ;;  %v8032_v63 = vadd.f32 %v1515_v35, %v9826_v59  ;;  %v1517_v1 = vpop.f32.mrb[19].mxu0  ;;  %v2029_v52 = vsel %vm1909_vm2, %v1849_v42, %v1969_v21  ;;  %v2409_v18 = vor.u32 %v2407_v43, %v2373_v17  ;;  %v10071_v9 = vpop.f32.mrb[27].mxu1  ;;  %v8579_v17 = vld [vmem:[%s12637_s4 + $0x160] ss:$8 sps:$4 sm:$0xff]   ;;  %v8584_v42 = vld [vmem:[%s12637_s4 + $0x174] ss:$8 sps:$4 sm:$0xff]  }
 0x172   :  { %v1773_v55 = vmul.f32 %v8031_v47, %v9883_v27  ;;  %v8033_v15 = vadd.f32 %v1517_v1, %v9828_v23  ;;  %v2030_v54 = vsel %vm1910_vm3, %v1850_v13, %v1970_v45  ;;  %v10067_v7 = vpack.c.bf16 %v2029_v52, %v2025_v29 }
 0x173   :  { %v1853_v19 = vadd.f32 %v9889_v28, %v1772_v11  ;;  %v1776_v59 = vmul.f32 %v8032_v63, %v9879_v3  ;;  %v10073_v62 = vpack.c.bf16 %v2030_v54, %v2026_v48  ;;  %4287 = vmatpush1.bf16.msra.mxu0 %v8576_v30  ;;  %v10080_v23 = vrot.slane %v12669_v2, 1  ;;  %v8587_v63 = vld [vmem:[%s12637_s4 + $0x184] ss:$8 sps:$4 sm:$0xff]  }
 0x174   :  { %v1854_v60 = vadd.f32 %v9894_v22, %v1773_v55  ;;  %v1777_v6 = vmul.f32 %v8033_v15, %v9883_v27  ;;  %4288 = vmatprep.subr.bf16.mxu0 %v8581_v44  ;;  %v2399_v14 = vshrl.u32 %v9958_v32, 16  ;;  %v12667_v13 = vshll.u32 %v10010_v53, 16  ;;  %v8582_v44 = vld [vmem:[%s12637_s4 + $0x170] ss:$8 sps:$4 sm:$0xff]  }
 0x175   :  { %vm1913_vm4 = vcmp.gt.f32.partialorder %v1853_v19, 0.0  ;;  %v1973_v26 = vmul.f32 0.01, %v1853_v19  ;;  %v1857_v30 = vadd.f32 %v9889_v28, %v1776_v59  ;;  %4235 = vmatprep.mubr.bf16.mxu0 %v10073_v62  ;;  %v10093_v21 = vsel %vm173_vm0, %v2409_v18, %v10080_v23 }
 0x176   :  { %vm1914_vm5 = vcmp.gt.f32.partialorder %v1854_v60, 0.0  ;;  %v1974_v37 = vmul.f32 0.01, %v1854_v60  ;;  %v1858_v38 = vadd.f32 %v9894_v22, %v1777_v6  ;;  %v1521_v29 = vpop.f32.mrb[20].mxu0  ;;  %4236 = vmatmul.mubr.bf16.gmra.mrb[44].mxu0 %v10067_v7  ;;  %v2401_v45 = vor.u32 %v2399_v14, %v10031_v0  ;;  %v10108_v52 = vpop.f32.mrb[28].mxu1 }
 0x177   :  { %vm1917_vm6 = vcmp.gt.f32.partialorder %v1857_v30, 0.0  ;;  %v1977_v47 = vmul.f32 0.01, %v1857_v30  ;;  %v8034_v35 = vadd.f32 %v1521_v29, %v9994_v41  ;;  %v1523_v48 = vpop.f32.mrb[21].mxu0  ;;  %v2033_v11 = vsel %vm1913_vm4, %v1853_v19, %v1973_v26  ;;  %4289 = vmatpush1.bf16.msra.mxu0 %v8579_v17  ;;  %v10113_v15 = vpop.f32.mrb[29].mxu1 }
 0x178   :  { %vm1918_vm7 = vcmp.gt.f32.partialorder %v1858_v38, 0.0  ;;  %v1978_v1 = vmul.f32 0.01, %v1858_v38  ;;  %v8035_v18 = vadd.f32 %v1523_v48, %v9999_v49  ;;  %v1525_v55 = vpop.f32.mrb[22].mxu0  ;;  %v2034_v0 = vsel %vm1914_vm5, %v1854_v60, %v1974_v37  ;;  %4290 = vmatprep.subr.bf16.mxu0 %v8584_v42  ;;  %v768_v49 = vpop.f32.mrb[30].mxu1 }
 0x179   :  { %v1780_v41 = vmul.f32 %v8034_v35, %v9879_v3  ;;  %v8036_v54 = vadd.f32 %v1525_v55, %v10006_v50  ;;  %v1527_v19 = vpop.f32.mrb[23].mxu0  ;;  %v2037_v59 = vsel %vm1917_vm6, %v1857_v30, %v1977_v47  ;;  %v10119_v17 = vrot.slane %v12667_v13, 1  ;;  %v769_v29 = vpop.f32.mrb[31].mxu1  ;;  %v8585_v30 = vld [vmem:[%s12637_s4 + $0x180] ss:$8 sps:$4 sm:$0xff]  }
 0x17a   :  { %v1781_v6 = vmul.f32 %v8035_v18, %v9883_v27  ;;  %v8037_v26 = vadd.f32 %v1527_v19, %v10014_v56  ;;  %v2038_v60 = vsel %vm1918_vm7, %v1858_v38, %v1978_v1  ;;  %v10124_v42 = vpack.c.bf16 %v2037_v59, %v2033_v11  ;;  %v8590_v48 = vld [vmem:[%s12637_s4 + $0x194] ss:$8 sps:$4 sm:$0xff]   ;;  %v8593_v49 = vld [vmem:[%s12637_s4 + $0x1a4] ss:$8 sps:$4 sm:$0xff]  }
 0x17b   :  { %v1861_v37 = vadd.f32 %v9889_v28, %v1780_v41  ;;  %v1784_v50 = vmul.f32 %v8036_v54, %v9879_v3  ;;  %v10128_v35 = vpack.c.bf16 %v2038_v60, %v2034_v0  ;;  %4291 = vmatpush1.bf16.msra.mxu0 %v8582_v44  ;;  %v10135_v47 = vsel %vm173_vm0, %v2401_v45, %v10119_v17  ;;  %v8588_v41 = vld [vmem:[%s12637_s4 + $0x190] ss:$8 sps:$4 sm:$0xff]  }
 0x17c   :  { %v1862_v56 = vadd.f32 %v9894_v22, %v1781_v6  ;;  %v1785_v38 = vmul.f32 %v8037_v26, %v9883_v27  ;;  %4292 = vmatprep.subr.bf16.mxu0 %v8587_v63  ;;  %vm2631_vm4 = vcmask 1043456   ;;  %vm2720_vm5 = vsmask.f32 3328 }
 0x17d   :  { %vm1921_vm8 = vcmp.gt.f32.partialorder %v1861_v37, 0.0  ;;  %v1981_v11 = vmul.f32 0.01, %v1861_v37  ;;  %v1865_v44 = vadd.f32 %v9889_v28, %v1784_v50  ;;  %4245 = vmatprep.mubr.bf16.mxu0 %v10128_v35 }
 0x17e   :  { %vm1922_vm9 = vcmp.gt.f32.partialorder %v1862_v56, 0.0  ;;  %v1982_v1 = vmul.f32 0.01, %v1862_v56  ;;  %v1866_v45 = vadd.f32 %v9894_v22, %v1785_v38  ;;  %v1531_v18 = vpop.f32.mrb[24].mxu0  ;;  %4246 = vmatmul.mubr.bf16.gmra.mrb[48].mxu0 %v10124_v42 }
 0x17f   :  { %vm1925_vm10 = vcmp.gt.f32.partialorder %v1865_v44, 0.0  ;;  %v1985_v55 = vmul.f32 0.01, %v1865_v44  ;;  %v8038_v63 = vadd.f32 %v1531_v18, %v10051_v46  ;;  %v1533_v0 = vpop.f32.mrb[25].mxu0  ;;  %4293 = vmatpush1.bf16.msra.mxu0 %v8585_v30  ;;  %v2041_v6 = vsel %vm1921_vm8, %v1861_v37, %v1981_v11 }
 0x180   :  { %vm1926_vm11 = vcmp.gt.f32.partialorder %v1866_v45, 0.0  ;;  %v1986_v54 = vmul.f32 0.01, %v1866_v45  ;;  %v8039_v19 = vadd.f32 %v1533_v0, %v10056_v5  ;;  %v1535_v59 = vpop.f32.mrb[26].mxu0  ;;  %4294 = vmatprep.subr.bf16.mxu0 %v8590_v48  ;;  %v2042_v50 = vsel %vm1922_vm9, %v1862_v56, %v1982_v1  ;;  %v8596_v1 = vld [vmem:[%s12637_s4 + $0x1b4] ss:$8 sps:$4 sm:$0xff]  }
 0x181   :  { %v1788_v46 = vmul.f32 %v8038_v63, %v9879_v3  ;;  %v8040_v26 = vadd.f32 %v1535_v59, %v10063_v16  ;;  %v1537_v60 = vpop.f32.mrb[27].mxu0  ;;  %v2045_v29 = vsel %vm1925_vm10, %v1865_v44, %v1985_v55  ;;  %v8591_v16 = vld [vmem:[%s12637_s4 + $0x1a0] ss:$8 sps:$4 sm:$0xff]   ;;  %v12670_v56 = vshrl.u32 %v10016_v57, 16 }
 0x182   :  { %v1789_v30 = vmul.f32 %v8039_v19, %v9883_v27  ;;  %v8041_v5 = vadd.f32 %v1537_v60, %v10071_v9  ;;  %v2046_v38 = vsel %vm1926_vm11, %v1866_v45, %v1986_v54  ;;  %v10161_v37 = vpack.c.bf16 %v2045_v29, %v2041_v6 }
 0x183   :  { %v1869_v48 = vadd.f32 %v9889_v28, %v1788_v46  ;;  %v1792_v11 = vmul.f32 %v8040_v26, %v9879_v3  ;;  %v10165_v18 = vpack.c.bf16 %v2046_v38, %v2042_v50  ;;  %4295 = vmatpush1.bf16.msra.mxu0 %v8588_v41  ;;  %v2441_v63 = vor.u32 %v12670_v56, %v10080_v23  ;;  %v8594_v23 = vld [vmem:[%s12637_s4 + $0x1b0] ss:$8 sps:$4 sm:$0xff]  }
 0x184   :  { %v1870_v44 = vadd.f32 %v9894_v22, %v1789_v30  ;;  %v1793_v9 = vmul.f32 %v8041_v5, %v9883_v27  ;;  %4296 = vmatprep.subr.bf16.mxu0 %v8593_v49  ;;  %v12665_v19 = vshll.u32 %v10073_v62, 16  ;;  %v8599_v30 = vld [vmem:[%s12637_s4 + $0x1c4] ss:$8 sps:$4 sm:$0xff]  }
 0x185   :  { %vm1929_vm12 = vcmp.gt.f32.partialorder %v1869_v48, 0.0  ;;  %v1989_v45 = vmul.f32 0.01, %v1869_v48  ;;  %v1873_v55 = vadd.f32 %v9889_v28, %v1792_v11  ;;  %4255 = vmatprep.mubr.bf16.mxu0 %v10165_v18  ;;  %v12668_v11 = vshrl.u32 %v10010_v53, 16 }
 0x186   :  { %vm1930_vm13 = vcmp.gt.f32.partialorder %v1870_v44, 0.0  ;;  %v1990_v0 = vmul.f32 0.01, %v1870_v44  ;;  %v1874_v41 = vadd.f32 %v9894_v22, %v1793_v9  ;;  %v1541_v54 = vpop.f32.mrb[28].mxu0  ;;  %4256 = vmatmul.mubr.bf16.gmra.mrb[52].mxu0 %v10161_v37 }
 0x187   :  { %vm1933_vm14 = vcmp.gt.f32.partialorder %v1873_v55, 0.0  ;;  %v1993_v59 = vmul.f32 0.01, %v1873_v55  ;;  %v8042_v6 = vadd.f32 %v1541_v54, %v10108_v52  ;;  %v1543_v49 = vpop.f32.mrb[29].mxu0  ;;  %v2049_v46 = vsel %vm1929_vm12, %v1869_v48, %v1989_v45  ;;  %4297 = vmatpush1.bf16.msra.mxu0 %v8591_v16 }
 0x188   :  { %vm1934_vm15 = vcmp.gt.f32.partialorder %v1874_v41, 0.0  ;;  %v1994_v26 = vmul.f32 0.01, %v1874_v41  ;;  %v8043_v60 = vadd.f32 %v1543_v49, %v10113_v15  ;;  %v2050_v50 = vsel %vm1930_vm13, %v1870_v44, %v1990_v0  ;;  %v1545_v29 = vpop.f32.mrb[30].mxu0  ;;  %4298 = vmatprep.subr.bf16.mxu0 %v8596_v1 }
 0x189   :  { %v1796_v52 = vmul.f32 %v8042_v6, %v9879_v3  ;;  %v2053_v5 = vsel %vm1933_vm14, %v1873_v55, %v1993_v59  ;;  %v1546_v38 = vpop.f32.mrb[31].mxu0  ;;  %v2445_v48 = vrot.slane %v12665_v19, 1  ;;  %v12663_v44 = vshll.u32 %v10067_v7, 16  ;;  %v8597_v3 = vld [vmem:[%s12637_s4 + $0x1c0] ss:$8 sps:$4 sm:$0xff]  }
 0x18a   :  { %v1797_v16 = vmul.f32 %v8043_v60, %v9883_v27  ;;  %v2054_v15 = vsel %vm1934_vm15, %v1874_v41, %v1994_v26  ;;  %v10198_v9 = vpack.c.bf16 %v2053_v5, %v2049_v46  ;;  %v2433_v27 = vor.u32 %v12668_v11, %v10119_v17  ;;  %v8600_v26 = vld [vmem:[%s12637_s4 + $0x1d0] ss:$8 sps:$4 sm:$0xff]  }
 0x18b   :  { %v1877_v1 = vadd.f32 %v9889_v28, %v1796_v52  ;;  %v10202_v45 = vpack.c.bf16 %v2054_v15, %v2050_v50  ;;  %4299 = vmatpush1.bf16.msra.mxu0 %v8594_v23  ;;  %v10208_v55 = vsel %vm173_vm0, %v2441_v63, %v2445_v48  ;;  %v8602_v28 = vld [vmem:[%s12637_s4 + $0x1d4] ss:$8 sps:$4 sm:$0xff]   ;;  %v2437_v41 = vrot.slane %v12663_v44, 1 }
 0x18c   :  { %v1878_v0 = vadd.f32 %v9894_v22, %v1797_v16  ;;  %4300 = vmatprep.subr.bf16.mxu0 %v8599_v30  ;;  %v12666_v54 = vshrl.u32 %v10073_v62, 16  ;;  %v12655_v59 = vshll.u32 %v10128_v35, 16  ;;  %v12664_v17 = vshrl.u32 %v10067_v7, 16  ;;  %v8605_v30 = vld [vmem:[%s12637_s4 + $0x1e4] ss:$8 sps:$4 sm:$0xff]  }
 0x18d   :  { %vm1937_vm2 = vcmp.gt.f32.partialorder %v1877_v1, 0.0  ;;  %v1997_v63 = vmul.f32 0.01, %v1877_v1  ;;  %4265 = vmatprep.mubr.bf16.mxu0 %v10202_v45  ;;  %v12652_v22 = vshll.u32 %v10124_v42, 16  ;;  %v10226_v49 = vsel %vm173_vm0, %v2433_v27, %v2437_v41 }
 0x18e   :  { %vm1938_vm3 = vcmp.gt.f32.partialorder %v1878_v0, 0.0  ;;  %v1998_v6 = vmul.f32 0.01, %v1878_v0  ;;  %4266 = vmatmul.mubr.bf16.gmra.mrb[56].mxu0 %v10198_v9  ;;  %v2473_v46 = vor.u32 %v12666_v54, %v2445_v48  ;;  %v2477_v60 = vrot.slane %v12655_v59, 1 }
 0x18f   :  { %v2057_v23 = vsel %vm1937_vm2, %v1877_v1, %v1997_v63  ;;  %4301 = vmatpush1.bf16.msra.mxu0 %v8597_v3  ;;  %v2465_v50 = vor.u32 %v12664_v17, %v2437_v41  ;;  %v2469_v29 = vrot.slane %v12652_v22, 1  ;;  %v10244_v52 = vrot.slane %v2399_v14, 4  ;;  %v8603_v41 = vld [vmem:[%s12637_s4 + $0x1e0] ss:$8 sps:$4 sm:$0xff]  }
 0x190   :  { %4302 = vmatprep.subr.bf16.mxu0 %v8602_v28  ;;  %v12661_v5 = vshrl.u32 %v10128_v35, 16  ;;  %v12651_v38 = vshll.u32 %v10165_v18, 16  ;;  %v10248_v48 = vpack.c.bf16 %v2057_v23, %v2057_v23  ;;  %v10251_v16 = vsel %vm173_vm0, %v2473_v46, %v2477_v60  ;;  %v8608_v23 = vld [vmem:[%s12637_s4 + $0x1f4] ss:$8 sps:$4 sm:$0xff]  }
 0x191   :  { %v10254_v15 = vsel %vm173_vm0, %v2465_v50, %v2469_v29  ;;  %v12653_v1 = vshrl.u32 %v10124_v42, 16  ;;  %v2058_v3 = vsel %vm1938_vm3, %v1878_v0, %v1998_v6  ;;  %v12654_v28 = vshll.u32 %v10161_v37, 16 }
 0x192   :  { %v2505_v14 = vor.u32 %v12661_v5, %v2477_v60  ;;  %v2509_v27 = vrot.slane %v12651_v38, 1  ;;  %v12656_v46 = vshrl.u32 %v10165_v18, 16  ;;  %v12658_v0 = vshll.u32 %v10202_v45, 16 }
 0x193   :  { %4303 = vmatpush1.bf16.msra.mxu0 %v8600_v26  ;;  %v2497_v63 = vor.u32 %v12653_v1, %v2469_v29  ;;  %v12657_v6 = vshll.u32 %v10198_v9, 16  ;;  %v2501_v60 = vrot.slane %v12654_v28, 1  ;;  %v12659_v50 = vshrl.u32 %v10161_v37, 16 }
 0x194   :  { %4304 = vmatprep.subr.bf16.mxu0 %v8605_v30  ;;  %v10275_v26 = vsel %vm173_vm0, %v2505_v14, %v2509_v27  ;;  %v12660_v29 = vshrl.u32 %v10202_v45, 16  ;;  %v2537_v38 = vor.u32 %v12656_v46, %v2509_v27  ;;  %v10285_v30 = vrot.slane %v12658_v0, 1 }
 0x195   :  { %v10289_v22 = vrot.slane %v12657_v6, 1  ;;  %v12662_v14 = vshrl.u32 %v10198_v9, 16  ;;  %v10293_v1 = vsel %vm173_vm0, %v2497_v63, %v2501_v60  ;;  %v2529_v28 = vor.u32 %v12659_v50, %v2501_v60  ;;  %v8606_v6 = vld [vmem:[%s12637_s4 + $0x1f0] ss:$8 sps:$4 sm:$0xff]  }
 0x196   :  { %v2635_v59 = vrot.slane %v9920_v61, 4  ;;  %v2636_v27 = vrot.slane %v9962_v24, 4  ;;  %v10299_v46 = vpack.c.bf16 %v2058_v3, %v2058_v3  ;;  %v10306_v0 = vsel %vm173_vm0, %v2537_v38, %v10285_v30  ;;  %v8611_v3 = vld [vmem:[%s12637_s4 + $0x204] ss:$8 sps:$4 sm:$0xff]  }
 0x197   :  { %4305 = vmatpush1.bf16.msra.mxu0 %v8603_v41  ;;  %v10310_v63 = vrot.slane %v12660_v29, 4  ;;  %v10314_v60 = vrot.slane %v12662_v14, 4  ;;  %v10321_v41 = vsel %vm173_vm0, %v2529_v28, %v10289_v22  ;;  %v2632_v50 = vrot.slane %v9914_v10, 4 }
 0x198   :  { %4306 = vmatprep.subr.bf16.mxu0 %v8608_v23  ;;  %v10324_v38 = vsel %vm2631_vm4, %v2635_v59, %v2636_v27  ;;  %v2633_v29 = vrot.slane %v9958_v32, 4  ;;  %v2646_v5 = vrot.slane %v10016_v57, 4  ;;  %v2644_v14 = vrot.slane %v10010_v53, 4 }
 0x199   :  { %12724 = vst [vmem:[#allocation5_spill] sm:$0xff] %v10324_v38  ;;  %v2654_v23 = vrot.slane %v10073_v62, 4  ;;  %v2652_v44 = vrot.slane %v10067_v7, 4  ;;  %v2662_v28 = vrot.slane %v10128_v35, 4  ;;  %v2660_v59 = vrot.slane %v10124_v42, 4 }
 0x19a   :  { %v10333_v17 = vsel %vm2631_vm4, %v2632_v50, %v2633_v29  ;;  %v2670_v19 = vrot.slane %v10165_v18, 4  ;;  %v10339_v54 = vsel %vm2631_vm4, %v2636_v27, %v2646_v5  ;;  %v10342_v13 = vsel %vm2631_vm4, %v2633_v29, %v2644_v14 }
 0x19b   :  { %12725 = vst [vmem:[#allocation6_spill] sm:$0xff] %v10333_v17  ;;  %4307 = vmatpush1.bf16.msra.mxu0 %v8606_v6  ;;  %12726 = vst [vmem:[#allocation7_spill] sm:$0xff] %v10339_v54  ;;  %v10345_v11 = vsel %vm2631_vm4, %v2646_v5, %v2654_v23  ;;  %v10348_v2 = vsel %vm2631_vm4, %v2644_v14, %v2652_v44  ;;  %v10351_v50 = vsel %vm2631_vm4, %v2654_v23, %v2662_v28 }
 0x19c   :  { %12727 = vst [vmem:[#allocation8_spill] sm:$0xff] %v10342_v13  ;;  %12728 = vst [vmem:[#allocation9_spill] sm:$0xff] %v10345_v11  ;;  %4379 = vmatprep.subr.bf16.mxu0 %v8611_v3  ;;  %v10354_v56 = vsel %vm2631_vm4, %v2652_v44, %v2660_v59  ;;  %v10357_v6 = vsel %vm2631_vm4, %v2662_v28, %v2670_v19  ;;  %v2668_v27 = vrot.slane %v10161_v37, 4  ;;  %v2678_v29 = vrot.slane %v10202_v45, 4 }
 0x19d   :  { %12729 = vst [vmem:[#allocation10_spill] sm:$0xff] %v10348_v2  ;;  %12730 = vst [vmem:[#allocation11_spill] sm:$0xff] %v10351_v50  ;;  %v2676_v5 = vrot.slane %v10198_v9, 4  ;;  %v2686_v34 = vrot.slane %v10299_v46, 4  ;;  %v2684_v14 = vrot.slane %v10248_v48, 4  ;;  %v2728_v44 = vrot.slane %v2364_v36, 4 }
 0x19e   :  { %12731 = vst [vmem:[#allocation12_spill] sm:$0xff] %v10354_v56  ;;  %12732 = vst [vmem:[#allocation13_spill] sm:$0xff] %v10357_v6  ;;  %v10365_v3 = vsel %vm2631_vm4, %v2660_v59, %v2668_v27  ;;  %v2729_v23 = vrot.slane %v2366_v39, 5  ;;  %v2731_v28 = vrot.slane %v2407_v43, 4  ;;  %v10374_v40 = vsel %vm2631_vm4, %v2670_v19, %v2678_v29 }
 0x19f   :  { %12733 = vst [vmem:[#allocation14_spill] sm:$0xff] %v10365_v3  ;;  %12734 = vst [vmem:[#allocation15_spill] sm:$0xff] %v10374_v40  ;;  %v10377_v33 = vsel %vm2631_vm4, %v2668_v27, %v2676_v5  ;;  %v10380_v20 = vsel %vm2631_vm4, %v2678_v29, %v2686_v34  ;;  %v10383_v59 = vsel %vm2631_vm4, %v2676_v5, %v2684_v14  ;;  %v12738_v36 = vshll.u32 %v9962_v24, 16 }
 0x1a0   :  { %12735 = vst [vmem:[#allocation16_spill] sm:$0xff] %v10377_v33  ;;  %12736 = vst [vmem:[#allocation17_spill] sm:$0xff] %v10380_v20  ;;  %v2730_v12 = vor.u32 %v2729_v23, %v2728_v44  ;;  %v12739_v39 = vshrl.u32 %v9914_v10, 16  ;;  %v12740_v43 = vshll.u32 %v9914_v10, 16  ;;  %v12741_v40 = vshll.u32 %v9958_v32, 16 }
 0x1a1   :  { %12737 = vst [vmem:[#allocation18_spill] sm:$0xff] %v10383_v59  ;;  %v2732_v61 = vrot.slane %v12738_v36, 5  ;;  %v12742_v33 = vshrl.u32 %v10016_v57, 16  ;;  %v12743_v29 = vshll.u32 %v10016_v57, 16  ;;  %v12744_v14 = vshrl.u32 %v10010_v53, 16 }
 0x1a2   :  { %v2721_v4 = vrot.slane %v12739_v39, 4  ;;  %v2722_v19 = vrot.slane %v12740_v43, 5  ;;  %v2725_v27 = vrot.slane %v12741_v40, 5  ;;  %v12745_v36 = vshll.u32 %v10010_v53, 16 }
 0x1a3   :  { %v2753_v34 = vrot.slane %v12742_v33, 4  ;;  %v2754_v5 = vrot.slane %v12743_v29, 5  ;;  %v2749_v44 = vrot.slane %v12744_v14, 4  ;;  %v2733_v24 = vor.u32 %v2732_v61, %v2731_v28 }
 0x1a4   :  { %v2723_v23 = vor.u32 %v2722_v19, %v2721_v4  ;;  %v2750_v39 = vrot.slane %v12745_v36, 5  ;;  %v12746_v10 = vshrl.u32 %v10073_v62, 16  ;;  %v2726_v32 = vor.u32 %v2725_v27, %v10244_v52 }
 0x1a5   :  { %v2755_v40 = vor.u32 %v2754_v5, %v2753_v34  ;;  %v12747_v59 = vshll.u32 %v10073_v62, 16  ;;  %v12748_v57 = vshrl.u32 %v10067_v7, 16  ;;  %v10409_v20 = vsel %vm2720_vm5, %v2730_v12, %v2733_v24 }
 0x1a6   :  { %v2769_v43 = vrot.slane %v12746_v10, 4  ;;  %12749 = vst [vmem:[#allocation19_spill] sm:$0xff] %v10409_v20  ;;  %v2751_v28 = vor.u32 %v2750_v39, %v2749_v44  ;;  %v12750_v4 = vshll.u32 %v10067_v7, 16  ;;  %v12751_v61 = vshrl.u32 %v10128_v35, 16 }
 0x1a7   :  { %v2770_v33 = vrot.slane %v12747_v59, 5  ;;  %v2765_v29 = vrot.slane %v12748_v57, 4  ;;  %v10416_v14 = vsel %vm2720_vm5, %v2723_v23, %v2726_v32  ;;  %v10419_v52 = vsel %vm2720_vm5, %v2733_v24, %v2755_v40 }
 0x1a8   :  { %v2766_v53 = vrot.slane %v12750_v4, 5  ;;  %v2785_v19 = vrot.slane %v12751_v61, 4  ;;  %12752 = vst [vmem:[#allocation20_spill] sm:$0xff] %v10416_v14  ;;  %12753 = vst [vmem:[#allocation21_spill] sm:$0xff] %v10419_v52  ;;  %v12754_v59 = vshll.u32 %v10128_v35, 16  ;;  %v10424_v12 = vsel %vm2720_vm5, %v2726_v32, %v2751_v28 }
 0x1a9   :  { %v2771_v62 = vor.u32 %v2770_v33, %v2769_v43  ;;  %12755 = vst [vmem:[#allocation22_spill] sm:$0xff] %v10424_v12  ;;  %v12756_v7 = vshrl.u32 %v10124_v42, 16  ;;  %v12757_v44 = vshll.u32 %v10124_v42, 16  ;;  %v12759_v24 = vshrl.u32 %v10165_v18, 16 }
 0x1aa   :  { %v2786_v27 = vrot.slane %v12754_v59, 5  ;;  %v2767_v34 = vor.u32 %v2766_v53, %v2765_v29  ;;  %v12760_v35 = vshll.u32 %v10165_v18, 16  ;;  %v12762_v57 = vshrl.u32 %v10161_v37, 16 }
 0x1ab   :  { %v2781_v5 = vrot.slane %v12756_v7, 4  ;;  %v2782_v36 = vrot.slane %v12757_v44, 5  ;;  %v10431_v23 = vsel %vm2720_vm5, %v2755_v40, %v2771_v62  ;;  %v2801_v10 = vrot.slane %v12759_v24, 4 }
 0x1ac   :  { %12758 = vst [vmem:[#allocation23_spill] sm:$0xff] %v10431_v23  ;;  %v2787_v39 = vor.u32 %v2786_v27, %v2785_v19  ;;  %v2802_v43 = vrot.slane %v12760_v35, 5  ;;  %v10438_v32 = vsel %vm2720_vm5, %v2751_v28, %v2767_v34  ;;  %v2797_v29 = vrot.slane %v12762_v57, 4 }
 0x1ad   :  { %12761 = vst [vmem:[#allocation24_spill] sm:$0xff] %v10438_v32  ;;  %v2783_v33 = vor.u32 %v2782_v36, %v2781_v5  ;;  %v12763_v42 = vshll.u32 %v10161_v37, 16  ;;  %v12765_v61 = vshll.u32 %v10202_v45, 16  ;;  %v12766_v18 = vshll.u32 %v10198_v9, 16 }
 0x1ae   :  { %v10445_v40 = vsel %vm2720_vm5, %v2771_v62, %v2787_v39  ;;  %v2803_v53 = vor.u32 %v2802_v43, %v2801_v10  ;;  %v2839_v7 = vshrl.u32 %v10299_v46, 16  ;;  %v2842_v5 = vshll.u32 %v10299_v46, 16 }
 0x1af   :  { %v2798_v4 = vrot.slane %v12763_v42, 5  ;;  %12764 = vst [vmem:[#allocation25_spill] sm:$0xff] %v10445_v40  ;;  %v2818_v19 = vrot.slane %v12765_v61, 5  ;;  %v2814_v59 = vrot.slane %v12766_v18, 5  ;;  %v10452_v28 = vsel %vm2720_vm5, %v2767_v34, %v2783_v33 }
 0x1b0   :  { %12767 = vst [vmem:[#allocation26_spill] sm:$0xff] %v10452_v28  ;;  %v10457_v37 = vsel %vm2720_vm5, %v2787_v39, %v2803_v53  ;;  %v2830_v36 = vshrl.u32 %v10248_v48, 16  ;;  %v2841_v10 = vrot.slane %v2839_v7, 4  ;;  %v2844_v34 = vrot.slane %v2842_v5, 5 }
 0x1b1   :  { %v2799_v27 = vor.u32 %v2798_v4, %v2797_v29  ;;  %12768 = vst [vmem:[#allocation27_spill] sm:$0xff] %v10457_v37  ;;  %v2819_v62 = vor.u32 %v2818_v19, %v10310_v63  ;;  %v2815_v44 = vor.u32 %v2814_v59, %v10314_v60  ;;  %v2833_v35 = vshll.u32 %v10248_v48, 16 }
 0x1b2   :  { %v2832_v39 = vrot.slane %v2830_v36, 4  ;;  %v2845_v57 = vor.u32 %v2844_v34, %v2841_v10  ;;  %v10479_v42 = vsub.s32 2, %v9856_v25  ;;  %v10482_v48 = vsub.s32 3, %v9856_v25 }
 0x1b3   :  { %v10463_v24 = vsel %vm2720_vm5, %v2783_v33, %v2799_v27  ;;  %v10467_v43 = vsel %vm2720_vm5, %v2803_v53, %v2819_v62  ;;  %v10470_v46 = vsel %vm2720_vm5, %v2799_v27, %v2815_v44  ;;  %v2835_v63 = vrot.slane %v2833_v35, 5 }
 0x1b4   :  { %12769 = vst [vmem:[#allocation28_spill] sm:$0xff] %v10463_v24  ;;  %12770 = vst [vmem:[#allocation29_spill] sm:$0xff] %v10467_v43  ;;  %v10473_v60 = vsel %vm2720_vm5, %v2819_v62, %v2845_v57  ;;  %v10486_v4 = vrot.slane %v9865_v8, %v10479_v42  ;;  %v10490_v53 = vrot.slane %v9865_v8, %v10482_v48 }
 0x1b5   :  { %12771 = vst [vmem:[#allocation30_spill] sm:$0xff] %v10470_v46  ;;  %12772 = vst [vmem:[#allocation31_spill] sm:$0xff] %v10473_v60  ;;  %v2836_v29 = vor.u32 %v2835_v63, %v2832_v39  ;;  %v10494_v61 = vrot.slane %v9873_v51, %v10479_v42  ;;  %v10498_v18 = vrot.slane %v9873_v51, %v10482_v48 }
 0x1b6   :  { %12774 = vst [vmem:[#allocation33_spill] sm:$0xff] %v10479_v42  ;;  %12775 = vst [vmem:[#allocation34_spill] sm:$0xff] %v10482_v48 }
 0x1b7   :  { %v10476_v33 = vsel %vm2720_vm5, %v2815_v44, %v2836_v29 }
 0x1b8   :  { %12773 = vst [vmem:[#allocation32_spill] sm:$0xff] %v10476_v33 }
 0x1fe   :  { %v1582_v19 = vpop.f32.mrb[32].mxu1 }
 0x1ff   :  { %v1742_v25 = vmul.f32 %v10486_v4, %v1582_v19  ;;  %v1584_v59 = vpop.f32.mrb[33].mxu1 }
 0x200   :  { %v1743_v27 = vmul.f32 %v10490_v53, %v1584_v59  ;;  %v1586_v7 = vpop.f32.mrb[34].mxu1 }
 0x201   :  { %v1823_v5 = vadd.f32 %v10494_v61, %v1742_v25  ;;  %v1746_v8 = vmul.f32 %v10486_v4, %v1586_v7  ;;  %v1588_v62 = vpop.f32.mrb[35].mxu1 }
 0x202   :  { %v1824_v44 = vadd.f32 %v10498_v18, %v1743_v27  ;;  %v1747_v36 = vmul.f32 %v10490_v53, %v1588_v62 }
 0x203   :  { %v1943_v10 = vmul.f32 0.01, %v1823_v5  ;;  %v1827_v34 = vadd.f32 %v10494_v61, %v1746_v8  ;;  %vm1883_vm6 = vcmp.gt.f32.partialorder %v1823_v5, 0.0 }
 0x204   :  { %v1944_v51 = vmul.f32 0.01, %v1824_v44  ;;  %v1828_v35 = vadd.f32 %v10498_v18, %v1747_v36  ;;  %vm1884_vm7 = vcmp.gt.f32.partialorder %v1824_v44, 0.0 }
 0x205   :  { %vm1887_vm8 = vcmp.gt.f32.partialorder %v1827_v34, 0.0  ;;  %v1947_v39 = vmul.f32 0.01, %v1827_v34  ;;  %v2003_v29 = vsel %vm1883_vm6, %v1823_v5, %v1943_v10  ;;  %v8609_v5 = vld [vmem:[%s12637_s4 + $0x200] ss:$8 sps:$4 sm:$0xff]  }
 0x206   :  { %vm1888_vm9 = vcmp.gt.f32.partialorder %v1828_v35, 0.0  ;;  %v1948_v57 = vmul.f32 0.01, %v1828_v35  ;;  %v1592_v63 = vpop.f32.mrb[36].mxu1  ;;  %v2004_v27 = vsel %vm1884_vm7, %v1824_v44, %v1944_v51 }
 0x207   :  { %v2007_v19 = vsel %vm1887_vm8, %v1827_v34, %v1947_v39  ;;  %v1750_v25 = vmul.f32 %v10486_v4, %v1592_v63  ;;  %v1594_v59 = vpop.f32.mrb[37].mxu1  ;;  %v8614_v34 = vld [vmem:[%s12637_s4 + $0x214] ss:$8 sps:$4 sm:$0xff]   ;;  %v8612_v39 = vld [vmem:[%s12637_s4 + $0x210] ss:$8 sps:$4 sm:$0xff]  }
 0x208   :  { %v10509_v7 = vpack.c.bf16 %v2007_v19, %v2003_v29  ;;  %v2008_v62 = vsel %vm1888_vm9, %v1828_v35, %v1948_v57  ;;  %v1751_v8 = vmul.f32 %v10490_v53, %v1594_v59  ;;  %v1596_v42 = vpop.f32.mrb[38].mxu1 }
 0x209   :  { %v1831_v36 = vadd.f32 %v10494_v61, %v1750_v25  ;;  %v1754_v48 = vmul.f32 %v10486_v4, %v1596_v42  ;;  %v1598_v33 = vpop.f32.mrb[39].mxu1  ;;  %v10514_v60 = vpack.c.bf16 %v2008_v62, %v2004_v27 }
 0x20a   :  { %v1832_v10 = vadd.f32 %v10498_v18, %v1751_v8  ;;  %v1755_v44 = vmul.f32 %v10490_v53, %v1598_v33  ;;  %v12681_v51 = vshll.u32 %v10509_v7, 16  ;;  %v8617_v33 = vld [vmem:[%s12637_s4 + $0x224] ss:$8 sps:$4 sm:$0xff]  }
 0x20b   :  { %v1951_v35 = vmul.f32 0.01, %v1831_v36  ;;  %v1835_v42 = vadd.f32 %v10494_v61, %v1754_v48  ;;  %4308 = vmatprep.mubr.bf16.mxu0 %v10514_v60  ;;  %vm1891_vm10 = vcmp.gt.f32.partialorder %v1831_v36, 0.0  ;;  %v12776_v43 = vshll.u32 %v10514_v60, 16 }
 0x20c   :  { %v1952_v57 = vmul.f32 0.01, %v1832_v10  ;;  %v1836_v63 = vadd.f32 %v10498_v18, %v1755_v44  ;;  %4309 = vmatmul.mubr.bf16.vlgmr.msra.gmra.mrb[32].mxu0 %v10509_v7  ;;  %vm1892_vm11 = vcmp.gt.f32.partialorder %v1832_v10, 0.0  ;;  %v2380_v19 = vrot.slane %v12681_v51, 1 }
 0x20d   :  { %vm1895_vm12 = vcmp.gt.f32.partialorder %v1835_v42, 0.0  ;;  %v1955_v48 = vmul.f32 0.01, %v1835_v42  ;;  %4380 = vmatpush1.bf16.msra.mxu0 %v8609_v5  ;;  %v2011_v8 = vsel %vm1891_vm10, %v1831_v36, %v1951_v35  ;;  %v2392_v5 = vrot.slane %v12776_v43, 1  ;;  %v8615_v43 = vld [vmem:[%s12637_s4 + $0x220] ss:$8 sps:$4 sm:$0xff]  }
 0x20e   :  { %vm1896_vm13 = vcmp.gt.f32.partialorder %v1836_v63, 0.0  ;;  %v1956_v25 = vmul.f32 0.01, %v1836_v63  ;;  %v1602_v59 = vpop.f32.mrb[40].mxu1  ;;  %4381 = vmatprep.subr.bf16.mxu0 %v8614_v34  ;;  %v2012_v24 = vsel %vm1892_vm11, %v1832_v10, %v1952_v57  ;;  %v12777_v10 = vshrl.u32 %v10509_v7, 16 }
 0x20f   :  { %v2015_v44 = vsel %vm1895_vm12, %v1835_v42, %v1955_v48  ;;  %v1758_v29 = vmul.f32 %v10486_v4, %v1602_v59  ;;  %v1604_v46 = vpop.f32.mrb[41].mxu1  ;;  %v8623_v59 = vld [vmem:[%s12637_s4 + $0x244] ss:$8 sps:$4 sm:$0xff]  }
 0x210   :  { %v2016_v51 = vsel %vm1896_vm13, %v1836_v63, %v1956_v25  ;;  %v1759_v37 = vmul.f32 %v10490_v53, %v1604_v46  ;;  %v1606_v28 = vpop.f32.mrb[42].mxu1  ;;  %v10546_v34 = vpack.c.bf16 %v2015_v44, %v2011_v8  ;;  %v2381_v42 = vor.u32 %v2380_v19, %v12777_v10 }
 0x211   :  { %v1839_v27 = vadd.f32 %v10494_v61, %v1758_v29  ;;  %v1762_v62 = vmul.f32 %v10486_v4, %v1606_v28  ;;  %4382 = vmatpush1.bf16.msra.mxu0 %v8612_v39  ;;  %v1608_v36 = vpop.f32.mrb[43].mxu1  ;;  %v10550_v35 = vpack.c.bf16 %v2016_v51, %v2012_v24  ;;  %v8620_v28 = vld [vmem:[%s12637_s4 + $0x234] ss:$8 sps:$4 sm:$0xff]   ;;  %v12778_v29 = vshrl.u32 %v10514_v60, 16 }
 0x212   :  { %v1840_v46 = vadd.f32 %v10498_v18, %v1759_v37  ;;  %v1763_v57 = vmul.f32 %v10490_v53, %v1608_v36  ;;  %4383 = vmatprep.subr.bf16.mxu0 %v8617_v33  ;;  %v12682_v39 = vshll.u32 %v10546_v34, 16  ;;  %v8618_v37 = vld [vmem:[%s12637_s4 + $0x230] ss:$8 sps:$4 sm:$0xff]  }
 0x213   :  { %v1959_v51 = vmul.f32 0.01, %v1839_v27  ;;  %v1843_v63 = vadd.f32 %v10494_v61, %v1762_v62  ;;  %4318 = vmatprep.mubr.bf16.mxu0 %v10550_v35  ;;  %v2393_v33 = vor.u32 %v2392_v5, %v12778_v29  ;;  %v12683_v48 = vshll.u32 %v10550_v35, 16 }
 0x214   :  { %vm1899_vm14 = vcmp.gt.f32.partialorder %v1839_v27, 0.0  ;;  %v1960_v19 = vmul.f32 0.01, %v1840_v46  ;;  %v1844_v25 = vadd.f32 %v10498_v18, %v1763_v57  ;;  %4319 = vmatmul.mubr.bf16.gmra.mrb[36].mxu0 %v10546_v34  ;;  %v2385_v62 = vrot.slane %v12682_v39, 1 }
 0x215   :  { %vm1900_vm15 = vcmp.gt.f32.partialorder %v1840_v46, 0.0  ;;  %vm1903_vm2 = vcmp.gt.f32.partialorder %v1843_v63, 0.0  ;;  %v1963_v8 = vmul.f32 0.01, %v1843_v63  ;;  %4384 = vmatpush1.bf16.msra.mxu0 %v8615_v43  ;;  %v2397_v44 = vrot.slane %v12683_v48, 1 }
 0x216   :  { %vm1904_vm3 = vcmp.gt.f32.partialorder %v1844_v25, 0.0  ;;  %v1964_v5 = vmul.f32 0.01, %v1844_v25  ;;  %v1612_v36 = vpop.f32.mrb[44].mxu1  ;;  %4385 = vmatprep.subr.bf16.mxu0 %v8620_v28  ;;  %v10582_v10 = vsel %vm173_vm0, %v2381_v42, %v2385_v62  ;;  %v2019_v29 = vsel %vm1899_vm14, %v1839_v27, %v1959_v51 }
 0x217   :  { %v2023_v24 = vsel %vm1903_vm2, %v1843_v63, %v1963_v8  ;;  %v1766_v39 = vmul.f32 %v10486_v4, %v1612_v36  ;;  %v1614_v40 = vpop.f32.mrb[45].mxu1  ;;  %v10588_v43 = vsel %vm173_vm0, %v2393_v33, %v2397_v44  ;;  %v2020_v48 = vsel %vm1900_vm15, %v1840_v46, %v1960_v19  ;;  %v8621_v63 = vld [vmem:[%s12637_s4 + $0x240] ss:$8 sps:$4 sm:$0xff]  }
 0x218   :  { %v2024_v32 = vsel %vm1904_vm3, %v1844_v25, %v1964_v5  ;;  %v1767_v23 = vmul.f32 %v10490_v53, %v1614_v40  ;;  %v1616_v28 = vpop.f32.mrb[46].mxu1  ;;  %v10592_v12 = vpack.c.bf16 %v2023_v24, %v2019_v29  ;;  %v12685_v46 = vshrl.u32 %v10550_v35, 16  ;;  %v8624_v5 = vld [vmem:[%s12637_s4 + $0x250] ss:$8 sps:$4 sm:$0xff]  }
 0x219   :  { %v1847_v42 = vadd.f32 %v10494_v61, %v1766_v39  ;;  %v1770_v57 = vmul.f32 %v10486_v4, %v1616_v28  ;;  %4386 = vmatpush1.bf16.msra.mxu0 %v8618_v37  ;;  %v1618_v27 = vpop.f32.mrb[47].mxu1  ;;  %v10596_v51 = vpack.c.bf16 %v2024_v32, %v2020_v48  ;;  %v8626_v39 = vld [vmem:[%s12637_s4 + $0x254] ss:$8 sps:$4 sm:$0xff]   ;;  %v12779_v24 = vshrl.u32 %v10546_v34, 16 }
 0x21a   :  { %v1848_v33 = vadd.f32 %v10498_v18, %v1767_v23  ;;  %v1771_v40 = vmul.f32 %v10490_v53, %v1618_v27  ;;  %4387 = vmatprep.subr.bf16.mxu0 %v8623_v59  ;;  %v12684_v32 = vshll.u32 %v10592_v12, 16  ;;  %v2425_v36 = vor.u32 %v12685_v46, %v2397_v44 }
 0x21b   :  { %v2417_v37 = vor.u32 %v12779_v24, %v2385_v62  ;;  %vm1907_vm6 = vcmp.gt.f32.partialorder %v1847_v42, 0.0  ;;  %v1967_v48 = vmul.f32 0.01, %v1847_v42  ;;  %v1851_v19 = vadd.f32 %v10494_v61, %v1770_v57  ;;  %4328 = vmatprep.mubr.bf16.mxu0 %v10596_v51 }
 0x21c   :  { %v12686_v23 = vshll.u32 %v10596_v51, 16  ;;  %vm1908_vm7 = vcmp.gt.f32.partialorder %v1848_v33, 0.0  ;;  %v1968_v25 = vmul.f32 0.01, %v1848_v33  ;;  %v1852_v59 = vadd.f32 %v10498_v18, %v1771_v40  ;;  %4329 = vmatmul.mubr.bf16.gmra.mrb[40].mxu0 %v10592_v12 }
 0x21d   :  { %v2421_v8 = vrot.slane %v12684_v32, 1  ;;  %vm1911_vm8 = vcmp.gt.f32.partialorder %v1851_v19, 0.0  ;;  %v1971_v62 = vmul.f32 0.01, %v1851_v19  ;;  %4388 = vmatpush1.bf16.msra.mxu0 %v8621_v63  ;;  %v2027_v29 = vsel %vm1907_vm6, %v1847_v42, %v1967_v48  ;;  %v8629_v63 = vld [vmem:[%s12637_s4 + $0x264] ss:$8 sps:$4 sm:$0xff]  }
 0x21e   :  { %v2429_v57 = vrot.slane %v12686_v23, 1  ;;  %vm1912_vm9 = vcmp.gt.f32.partialorder %v1852_v59, 0.0  ;;  %v1972_v28 = vmul.f32 0.01, %v1852_v59  ;;  %v1622_v27 = vpop.f32.mrb[48].mxu1  ;;  %4389 = vmatprep.subr.bf16.mxu0 %v8626_v39  ;;  %v2028_v24 = vsel %vm1908_vm7, %v1848_v33, %v1968_v25 }
 0x21f   :  { %v10629_v40 = vsel %vm173_vm0, %v2417_v37, %v2421_v8  ;;  %v2031_v32 = vsel %vm1911_vm8, %v1851_v19, %v1971_v62  ;;  %v1774_v44 = vmul.f32 %v10486_v4, %v1622_v27  ;;  %v1624_v46 = vpop.f32.mrb[49].mxu1  ;;  %v12688_v14 = vshrl.u32 %v10592_v12, 16  ;;  %v8627_v25 = vld [vmem:[%s12637_s4 + $0x260] ss:$8 sps:$4 sm:$0xff]   ;;  %v8632_v62 = vld [vmem:[%s12637_s4 + $0x274] ss:$8 sps:$4 sm:$0xff]  }
 0x220   :  { %v10634_v23 = vsel %vm173_vm0, %v2425_v36, %v2429_v57  ;;  %v2032_v42 = vsel %vm1912_vm9, %v1852_v59, %v1972_v28  ;;  %v1775_v48 = vmul.f32 %v10490_v53, %v1624_v46  ;;  %v1626_v39 = vpop.f32.mrb[50].mxu1  ;;  %v10637_v52 = vpack.c.bf16 %v2031_v32, %v2027_v29 }
 0x221   :  { %v1855_v37 = vadd.f32 %v10494_v61, %v1774_v44  ;;  %v1778_v20 = vmul.f32 %v10486_v4, %v1626_v39  ;;  %4390 = vmatpush1.bf16.msra.mxu0 %v8624_v5  ;;  %v1628_v33 = vpop.f32.mrb[51].mxu1  ;;  %v10642_v19 = vpack.c.bf16 %v2032_v42, %v2028_v24  ;;  %v12689_v59 = vshrl.u32 %v10596_v51, 16 }
 0x222   :  { %v1856_v46 = vadd.f32 %v10498_v18, %v1775_v48  ;;  %v1779_v32 = vmul.f32 %v10490_v53, %v1628_v33  ;;  %4391 = vmatprep.subr.bf16.mxu0 %v8629_v63  ;;  %v2449_v5 = vor.u32 %v12688_v14, %v2421_v8  ;;  %v12687_v36 = vshll.u32 %v10637_v52, 16 }
 0x223   :  { %vm1915_vm10 = vcmp.gt.f32.partialorder %v1855_v37, 0.0  ;;  %v1975_v29 = vmul.f32 0.01, %v1855_v37  ;;  %v1859_v28 = vadd.f32 %v10494_v61, %v1778_v20  ;;  %4338 = vmatprep.mubr.bf16.mxu0 %v10642_v19  ;;  %v12690_v27 = vshll.u32 %v10642_v19, 16  ;;  %v8630_v20 = vld [vmem:[%s12637_s4 + $0x270] ss:$8 sps:$4 sm:$0xff]  }
 0x224   :  { %vm1916_vm11 = vcmp.gt.f32.partialorder %v1856_v46, 0.0  ;;  %v1976_v24 = vmul.f32 0.01, %v1856_v46  ;;  %v1860_v63 = vadd.f32 %v10498_v18, %v1779_v32  ;;  %4339 = vmatmul.mubr.bf16.gmra.mrb[44].mxu0 %v10637_v52  ;;  %v2453_v44 = vrot.slane %v12687_v36, 1 }
 0x225   :  { %vm1919_vm12 = vcmp.gt.f32.partialorder %v1859_v28, 0.0  ;;  %v1979_v8 = vmul.f32 0.01, %v1859_v28  ;;  %4392 = vmatpush1.bf16.msra.mxu0 %v8627_v25  ;;  %v2457_v42 = vor.u32 %v12689_v59, %v2429_v57  ;;  %v2461_v48 = vrot.slane %v12690_v27, 1  ;;  %v8635_v25 = vld [vmem:[%s12637_s4 + $0x284] ss:$8 sps:$4 sm:$0xff]  }
 0x226   :  { %v2035_v39 = vsel %vm1915_vm10, %v1855_v37, %v1975_v29  ;;  %vm1920_vm13 = vcmp.gt.f32.partialorder %v1860_v63, 0.0  ;;  %v1980_v33 = vmul.f32 0.01, %v1860_v63  ;;  %v1632_v32 = vpop.f32.mrb[52].mxu1  ;;  %4393 = vmatprep.subr.bf16.mxu0 %v8632_v62  ;;  %v10675_v36 = vsel %vm173_vm0, %v2449_v5, %v2453_v44 }
 0x227   :  { %12780 = vst [vmem:[#allocation35_spill] sm:$0xff] %v10675_v36  ;;  %v2036_v14 = vsel %vm1916_vm11, %v1856_v46, %v1976_v24  ;;  %v2039_v3 = vsel %vm1919_vm12, %v1859_v28, %v1979_v8  ;;  %v1782_v57 = vmul.f32 %v10486_v4, %v1632_v32  ;;  %v1634_v59 = vpop.f32.mrb[53].mxu1  ;;  %v10680_v27 = vsel %vm173_vm0, %v2457_v42, %v2461_v48  ;;  %v8633_v24 = vld [vmem:[%s12637_s4 + $0x280] ss:$8 sps:$4 sm:$0xff]   ;;  %v8638_v8 = vld [vmem:[%s12637_s4 + $0x294] ss:$8 sps:$4 sm:$0xff]  }
 0x228   :  { %v2040_v37 = vsel %vm1920_vm13, %v1860_v63, %v1980_v33  ;;  %v1783_v29 = vmul.f32 %v10490_v53, %v1634_v59  ;;  %v1636_v62 = vpop.f32.mrb[54].mxu1  ;;  %v10683_v6 = vpack.c.bf16 %v2039_v3, %v2035_v39  ;;  %v12692_v56 = vshrl.u32 %v10637_v52, 16 }
 0x229   :  { %v1863_v5 = vadd.f32 %v10494_v61, %v1782_v57  ;;  %v1786_v50 = vmul.f32 %v10486_v4, %v1636_v62  ;;  %4394 = vmatpush1.bf16.msra.mxu0 %v8630_v20  ;;  %v1638_v46 = vpop.f32.mrb[55].mxu1  ;;  %v10688_v28 = vpack.c.bf16 %v2040_v37, %v2036_v14  ;;  %v12693_v63 = vshrl.u32 %v10642_v19, 16 }
 0x22a   :  { %v1864_v59 = vadd.f32 %v10498_v18, %v1783_v29  ;;  %v1787_v3 = vmul.f32 %v10490_v53, %v1638_v46  ;;  %4395 = vmatprep.subr.bf16.mxu0 %v8635_v25  ;;  %v2481_v20 = vor.u32 %v12692_v56, %v2453_v44  ;;  %v12691_v14 = vshll.u32 %v10683_v6, 16 }
 0x22b   :  { %vm1923_vm14 = vcmp.gt.f32.partialorder %v1863_v5, 0.0  ;;  %v1983_v42 = vmul.f32 0.01, %v1863_v5  ;;  %v1867_v39 = vadd.f32 %v10494_v61, %v1786_v50  ;;  %4348 = vmatprep.mubr.bf16.mxu0 %v10688_v28  ;;  %v12694_v33 = vshll.u32 %v10688_v28, 16  ;;  %v8636_v50 = vld [vmem:[%s12637_s4 + $0x290] ss:$8 sps:$4 sm:$0xff]  }
 0x22c   :  { %vm1924_vm15 = vcmp.gt.f32.partialorder %v1864_v59, 0.0  ;;  %v1984_v32 = vmul.f32 0.01, %v1864_v59  ;;  %v1868_v25 = vadd.f32 %v10498_v18, %v1787_v3  ;;  %4349 = vmatmul.mubr.bf16.gmra.mrb[48].mxu0 %v10683_v6  ;;  %v2485_v57 = vrot.slane %v12691_v14, 1 }
 0x22d   :  { %vm1927_vm2 = vcmp.gt.f32.partialorder %v1867_v39, 0.0  ;;  %v1987_v44 = vmul.f32 0.01, %v1867_v39  ;;  %4396 = vmatpush1.bf16.msra.mxu0 %v8633_v24  ;;  %v2489_v37 = vor.u32 %v12693_v63, %v2461_v48  ;;  %v2493_v29 = vrot.slane %v12694_v33, 1  ;;  %v8641_v24 = vld [vmem:[%s12637_s4 + $0x2a4] ss:$8 sps:$4 sm:$0xff]  }
 0x22e   :  { %v2043_v62 = vsel %vm1923_vm14, %v1863_v5, %v1983_v42  ;;  %vm1928_vm3 = vcmp.gt.f32.partialorder %v1868_v25, 0.0  ;;  %v1988_v46 = vmul.f32 0.01, %v1868_v25  ;;  %v1642_v3 = vpop.f32.mrb[56].mxu1  ;;  %4397 = vmatprep.subr.bf16.mxu0 %v8638_v8  ;;  %v10721_v14 = vsel %vm173_vm0, %v2481_v20, %v2485_v57 }
 0x22f   :  { %12781 = vst [vmem:[#allocation36_spill] sm:$0xff] %v10721_v14  ;;  %v2044_v56 = vsel %vm1924_vm15, %v1864_v59, %v1984_v32  ;;  %v2047_v2 = vsel %vm1927_vm2, %v1867_v39, %v1987_v44  ;;  %v1790_v48 = vmul.f32 %v10486_v4, %v1642_v3  ;;  %v1644_v63 = vpop.f32.mrb[57].mxu1  ;;  %v10726_v33 = vsel %vm173_vm0, %v2489_v37, %v2493_v29  ;;  %v8639_v32 = vld [vmem:[%s12637_s4 + $0x2a0] ss:$8 sps:$4 sm:$0xff]   ;;  %v8644_v44 = vld [vmem:[%s12637_s4 + $0x2b4] ss:$8 sps:$4 sm:$0xff]  }
 0x230   :  { %12782 = vst [vmem:[#allocation37_spill] sm:$0xff] %v10726_v33  ;;  %v2048_v5 = vsel %vm1928_vm3, %v1868_v25, %v1988_v46  ;;  %v1791_v42 = vmul.f32 %v10490_v53, %v1644_v63  ;;  %v1646_v8 = vpop.f32.mrb[58].mxu1  ;;  %v10729_v11 = vpack.c.bf16 %v2047_v2, %v2043_v62  ;;  %v12696_v13 = vshrl.u32 %v10688_v28, 16  ;;  %v8642_v46 = vld [vmem:[%s12637_s4 + $0x2b0] ss:$8 sps:$4 sm:$0xff]  }
 0x231   :  { %v1871_v20 = vadd.f32 %v10494_v61, %v1790_v48  ;;  %v1794_v54 = vmul.f32 %v10486_v4, %v1646_v8  ;;  %4398 = vmatpush1.bf16.msra.mxu0 %v8636_v50  ;;  %v1648_v59 = vpop.f32.mrb[59].mxu1  ;;  %v10734_v39 = vpack.c.bf16 %v2048_v5, %v2044_v56  ;;  %v12695_v25 = vshrl.u32 %v10683_v6, 16 }
 0x232   :  { %v1872_v63 = vadd.f32 %v10498_v18, %v1791_v42  ;;  %v1795_v2 = vmul.f32 %v10490_v53, %v1648_v59  ;;  %4399 = vmatprep.subr.bf16.mxu0 %v8641_v24  ;;  %v2521_v50 = vor.u32 %v12696_v13, %v2493_v29  ;;  %v12697_v56 = vshll.u32 %v10729_v11, 16 }
 0x233   :  { %v1991_v37 = vmul.f32 0.01, %v1871_v20  ;;  %v1875_v62 = vadd.f32 %v10494_v61, %v1794_v54  ;;  %4358 = vmatprep.mubr.bf16.mxu0 %v10734_v39  ;;  %v12698_v3 = vshll.u32 %v10734_v39, 16  ;;  %v2513_v24 = vor.u32 %v12695_v25, %v2485_v57  ;;  %v8647_v54 = vld [vmem:[%s12637_s4 + $0x2c4] ss:$8 sps:$4 sm:$0xff]  }
 0x234   :  { %vm1931_vm6 = vcmp.gt.f32.partialorder %v1871_v20, 0.0  ;;  %v1992_v48 = vmul.f32 0.01, %v1872_v63  ;;  %v1876_v29 = vadd.f32 %v10498_v18, %v1795_v2  ;;  %4359 = vmatmul.mubr.bf16.gmra.mrb[52].mxu0 %v10729_v11  ;;  %v2517_v5 = vrot.slane %v12697_v56, 1 }
 0x235   :  { %vm1932_vm7 = vcmp.gt.f32.partialorder %v1872_v63, 0.0  ;;  %vm1935_vm8 = vcmp.gt.f32.partialorder %v1875_v62, 0.0  ;;  %v1995_v42 = vmul.f32 0.01, %v1875_v62  ;;  %4400 = vmatpush1.bf16.msra.mxu0 %v8639_v32  ;;  %v2525_v57 = vrot.slane %v12698_v3, 1 }
 0x236   :  { %vm1936_vm9 = vcmp.gt.f32.partialorder %v1876_v29, 0.0  ;;  %v1996_v8 = vmul.f32 0.01, %v1876_v29  ;;  %4401 = vmatprep.subr.bf16.mxu0 %v8644_v44  ;;  %v10766_v2 = vsel %vm173_vm0, %v2513_v24, %v2517_v5  ;;  %v2638_v25 = vrot.slane %v10509_v7, 4 }
 0x237   :  { %v1652_v59 = vpop.f32.mrb[60].mxu1  ;;  %12783 = vst [vmem:[#allocation38_spill] sm:$0xff] %v10766_v2  ;;  %v2051_v13 = vsel %vm1931_vm6, %v1871_v20, %v1991_v37  ;;  %v2055_v17 = vsel %vm1935_vm8, %v1875_v62, %v1995_v42  ;;  %v10772_v32 = vsel %vm173_vm0, %v2521_v50, %v2525_v57  ;;  %v2052_v3 = vsel %vm1932_vm7, %v1872_v63, %v1992_v48 }
 0x238   :  { %v1798_v56 = vmul.f32 %v10486_v4, %v1652_v59  ;;  %v1654_v38 = vpop.f32.mrb[61].mxu1  ;;  %v2056_v14 = vsel %vm1936_vm9, %v1876_v29, %v1996_v8  ;;  %v10776_v36 = vpack.c.bf16 %v2055_v17, %v2051_v13  ;;  %v8645_v4 = vld [vmem:[%s12637_s4 + $0x2c0] ss:$8 sps:$4 sm:$0xff]   ;;  %v12704_v50 = vshrl.u32 %v10734_v39, 16  ;;  %v8650_v13 = vld [vmem:[%s12637_s4 + $0x2d4] ss:$8 sps:$4 sm:$0xff]  }
 0x239   :  { %v1799_v33 = vmul.f32 %v10490_v53, %v1654_v38  ;;  %v1656_v44 = vpop.f32.mrb[62].mxu1  ;;  %4402 = vmatpush1.bf16.msra.mxu0 %v8642_v46  ;;  %v10779_v20 = vpack.c.bf16 %v2056_v14, %v2052_v3  ;;  %v2642_v63 = vrot.slane %v10550_v35, 4  ;;  %v12703_v17 = vshrl.u32 %v10729_v11, 16  ;;  %v8648_v3 = vld [vmem:[%s12637_s4 + $0x2d0] ss:$8 sps:$4 sm:$0xff]  }
 0x23a   :  { %v1879_v24 = vadd.f32 %v10494_v61, %v1798_v56  ;;  %v1657_v2 = vpop.f32.mrb[63].mxu1  ;;  %4403 = vmatprep.subr.bf16.mxu0 %v8647_v54  ;;  %v12700_v38 = vshll.u32 %v10776_v36, 16  ;;  %v12699_v53 = vshrl.u32 %v10776_v36, 16  ;;  %v2553_v14 = vor.u32 %v12704_v50, %v2525_v57 }
 0x23b   :  { %v1880_v37 = vadd.f32 %v10498_v18, %v1799_v33  ;;  %4368 = vmatprep.mubr.bf16.mxu0 %v10779_v20  ;;  %v12702_v18 = vshll.u32 %v10779_v20, 16  ;;  %v2545_v56 = vor.u32 %v12703_v17, %v2517_v5  ;;  %v12701_v29 = vshrl.u32 %v10779_v20, 16 }
 0x23c   :  { %vm1939_vm10 = vcmp.gt.f32.partialorder %v1879_v24, 0.0  ;;  %v1999_v61 = vmul.f32 0.01, %v1879_v24  ;;  %4369 = vmatmul.mubr.bf16.gmra.mrb[56].mxu0 %v10776_v36  ;;  %v10802_v62 = vrot.slane %v12700_v38, 1  ;;  %v12784_v54 = vrot.slane %v10514_v60, 4 }
 0x23d   :  { %vm1940_vm11 = vcmp.gt.f32.partialorder %v1880_v37, 0.0  ;;  %v2000_v33 = vmul.f32 0.01, %v1880_v37  ;;  %4404 = vmatpush1.bf16.msra.mxu0 %v8645_v4  ;;  %4411 = vmatprep.mubr.bf16.mxu0 %v10022_v58  ;;  %v10810_v48 = vrot.slane %v12702_v18, 1  ;;  %v8653_v58 = vld [vmem:[%s12637_s4 + $0x2e4] ss:$8 sps:$4 sm:$0xff]  }
 0x23e   :  { %v2059_v46 = vsel %vm1939_vm10, %v1879_v24, %v1999_v61  ;;  %v10816_v5 = vsel %vm2631_vm4, %v12784_v54, %v2642_v63  ;;  %4405 = vmatprep.subr.bf16.mxu0 %v8650_v13  ;;  %v12785_v57 = vshrl.u32 %v10546_v34, 16  ;;  %v10825_v59 = vsel %vm173_vm0, %v2545_v56, %v10802_v62 }
 0x23f   :  { %v2060_v42 = vsel %vm1940_vm11, %v1880_v37, %v2000_v33  ;;  %v10829_v2 = vrot.slane %v12699_v53, 4  ;;  %v10831_v44 = vpack.c.bf16 %v2059_v46, %v2059_v46  ;;  %v10837_v4 = vsel %vm173_vm0, %v2553_v14, %v10810_v48  ;;  %v8651_v46 = vld [vmem:[%s12637_s4 + $0x2e0] ss:$8 sps:$4 sm:$0xff]  }
 0x240   :  { %v2738_v8 = vrot.slane %v12785_v57, 4  ;;  %v10833_v24 = vpack.c.bf16 %v2060_v42, %v2060_v42  ;;  %v2639_v37 = vrot.slane %v10546_v34, 4  ;;  %v2650_v13 = vrot.slane %v10596_v51, 4 }
 0x241   :  { %v2648_v61 = vrot.slane %v10592_v12, 4  ;;  %v2658_v33 = vrot.slane %v10642_v19, 4  ;;  %v2656_v56 = vrot.slane %v10637_v52, 4  ;;  %4406 = vmatpush1.bf16.msra.mxu0 %v8648_v3  ;;  %v10849_v54 = vrot.slane %v12701_v29, 4  ;;  %v8656_v3 = vld [vmem:[%s12637_s4 + $0x2f4] ss:$8 sps:$4 sm:$0xff]  }
 0x242   :  { %v10852_v14 = vsel %vm2631_vm4, %v2638_v25, %v2639_v37  ;;  %v2666_v42 = vrot.slane %v10688_v28, 4  ;;  %v2664_v57 = vrot.slane %v10683_v6, 4  ;;  %4407 = vmatprep.subr.bf16.mxu0 %v8653_v58  ;;  %v10860_v53 = vsel %vm2631_vm4, %v2642_v63, %v2650_v13 }
 0x243   :  { %12786 = vst [vmem:[#allocation39_spill] sm:$0xff] %v10852_v14  ;;  %12787 = vst [vmem:[#allocation40_spill] sm:$0xff] %v10860_v53  ;;  %v10863_v38 = vsel %vm2631_vm4, %v2639_v37, %v2648_v61  ;;  %v10866_v29 = vsel %vm2631_vm4, %v2650_v13, %v2658_v33  ;;  %v10869_v25 = vsel %vm2631_vm4, %v2648_v61, %v2656_v56  ;;  %v2674_v17 = vrot.slane %v10734_v39, 4  ;;  %v8654_v61 = vld [vmem:[%s12637_s4 + $0x2f0] ss:$8 sps:$4 sm:$0xff]  }
 0x244   :  { %12788 = vst [vmem:[#allocation41_spill] sm:$0xff] %v10863_v38  ;;  %12789 = vst [vmem:[#allocation42_spill] sm:$0xff] %v10866_v29  ;;  %v10872_v18 = vsel %vm2631_vm4, %v2658_v33, %v2666_v42  ;;  %v10875_v58 = vsel %vm2631_vm4, %v2656_v56, %v2664_v57  ;;  %v2672_v63 = vrot.slane %v10729_v11, 4  ;;  %v2682_v50 = vrot.slane %v10779_v20, 4 }
 0x245   :  { %12790 = vst [vmem:[#allocation43_spill] sm:$0xff] %v10869_v25  ;;  %12791 = vst [vmem:[#allocation44_spill] sm:$0xff] %v10872_v18  ;;  %v2680_v37 = vrot.slane %v10776_v36, 4  ;;  %v2690_v13 = vrot.slane %v10833_v24, 4  ;;  %v2688_v29 = vrot.slane %v10831_v44, 4  ;;  %4408 = vmatpush1.bf16.msra.mxu0 %v8651_v46  ;;  %v10887_v33 = vsel %vm2631_vm4, %v2666_v42, %v2674_v17 }
 0x246   :  { %12792 = vst [vmem:[#allocation45_spill] sm:$0xff] %v10875_v58  ;;  %12793 = vst [vmem:[#allocation46_spill] sm:$0xff] %v10887_v33  ;;  %v10890_v56 = vsel %vm2631_vm4, %v2664_v57, %v2672_v63  ;;  %v12795_v58 = vshrl.u32 %v10514_v60, 16  ;;  %v12796_v25 = vshll.u32 %v10514_v60, 16  ;;  %4409 = vmatprep.subr.bf16.mxu0 %v8656_v3  ;;  %v8659_v46 = vld [vmem:[%s12637_s4 + $0x304] ss:$8 sps:$4 sm:$0xff]   ;;  %v10900_v53 = vsel %vm2631_vm4, %v2674_v17, %v2682_v50 }
 0x247   :  { %12794 = vst [vmem:[#allocation47_spill] sm:$0xff] %v10890_v56  ;;  %12797 = vst [vmem:[#allocation48_spill] sm:$0xff] %v10900_v53  ;;  %v10903_v42 = vsel %vm2631_vm4, %v2672_v63, %v2680_v37  ;;  %v10906_v57 = vsel %vm2631_vm4, %v2682_v50, %v2690_v13  ;;  %v10909_v56 = vsel %vm2631_vm4, %v2680_v37, %v2688_v29  ;;  %v12800_v60 = vshrl.u32 %v10550_v35, 16 }
 0x248   :  { %v2742_v18 = vrot.slane %v12795_v58, 4  ;;  %v2743_v38 = vrot.slane %v12796_v25, 5  ;;  %12798 = vst [vmem:[#allocation49_spill] sm:$0xff] %v10903_v42  ;;  %12799 = vst [vmem:[#allocation50_spill] sm:$0xff] %v10909_v56  ;;  %v12801_v25 = vshll.u32 %v10550_v35, 16  ;;  %v12802_v14 = vshrl.u32 %v10509_v7, 16 }
 0x249   :  { %v2745_v3 = vrot.slane %v12800_v60, 4  ;;  %v12803_v53 = vshll.u32 %v10509_v7, 16  ;;  %v12804_v42 = vshll.u32 %v10546_v34, 16  ;;  %v12805_v13 = vshrl.u32 %v10596_v51, 16  ;;  %4410 = vmatpush1.bf16.msra.mxu0 %v8654_v61  ;;  %v8657_v35 = vld [vmem:[%s12637_s4 + $0x300] ss:$8 sps:$4 sm:$0xff]  }
 0x24a   :  { %v2744_v58 = vor.u32 %v2743_v38, %v2742_v18  ;;  %v2746_v33 = vrot.slane %v12801_v25, 5  ;;  %v2735_v17 = vrot.slane %v12802_v14, 4  ;;  %v12806_v38 = vshll.u32 %v10596_v51, 16  ;;  %4482 = vmatprep.subr.bf16.mxu0 %v8659_v46  ;;  %v8662_v51 = vld [vmem:[%s12637_s4 + $0x314] ss:$8 sps:$4 sm:$0xff]  }
 0x24b   :  { %v2736_v63 = vrot.slane %v12803_v53, 5  ;;  %v2739_v50 = vrot.slane %v12804_v42, 5  ;;  %v2761_v29 = vrot.slane %v12805_v13, 4  ;;  %v12807_v14 = vshrl.u32 %v10592_v12, 16 }
 0x24c   :  { %v2762_v18 = vrot.slane %v12806_v38, 5  ;;  %v2747_v37 = vor.u32 %v2746_v33, %v2745_v3  ;;  %v12808_v7 = vshll.u32 %v10592_v12, 16  ;;  %v12809_v34 = vshrl.u32 %v10642_v19, 16  ;;  %4412 = vmatmul.mubr.bf16.vlgmr.msra.gmra.mrb[32].mxu0 %v10044_v31 }
 0x24d   :  { %v2757_v60 = vrot.slane %v12807_v14, 4  ;;  %v2737_v61 = vor.u32 %v2736_v63, %v2735_v17  ;;  %v2740_v25 = vor.u32 %v2739_v50, %v2738_v8  ;;  %v12810_v38 = vshll.u32 %v10642_v19, 16  ;;  %4421 = vmatprep.mubr.bf16.mxu0 %v10093_v21  ;;  %4483 = vmatpush1.bf16.msra.mxu0 %v8657_v35  ;;  %v8665_v21 = vld [vmem:[%s12637_s4 + $0x324] ss:$8 sps:$4 sm:$0xff]  }
 0x24e   :  { %v2758_v53 = vrot.slane %v12808_v7, 5  ;;  %v2777_v42 = vrot.slane %v12809_v34, 4  ;;  %v2763_v13 = vor.u32 %v2762_v18, %v2761_v29  ;;  %v10940_v3 = vsel %vm2720_vm5, %v2744_v58, %v2747_v37  ;;  %4484 = vmatprep.subr.bf16.mxu0 %v8662_v51 }
 0x24f   :  { %v2778_v33 = vrot.slane %v12810_v38, 5  ;;  %v12811_v12 = vshrl.u32 %v10637_v52, 16  ;;  %v12812_v34 = vshll.u32 %v10637_v52, 16  ;;  %v10948_v56 = vsel %vm2720_vm5, %v2737_v61, %v2740_v25  ;;  %v8660_v52 = vld [vmem:[%s12637_s4 + $0x310] ss:$8 sps:$4 sm:$0xff]  }
 0x250   :  { %v2759_v14 = vor.u32 %v2758_v53, %v2757_v60  ;;  %v10951_v8 = vsel %vm2720_vm5, %v2747_v37, %v2763_v13  ;;  %v12813_v17 = vshrl.u32 %v10688_v28, 16  ;;  %v12814_v50 = vshll.u32 %v10688_v28, 16 }
 0x251   :  { %v2773_v7 = vrot.slane %v12811_v12, 4  ;;  %v2774_v46 = vrot.slane %v12812_v34, 5  ;;  %v2779_v19 = vor.u32 %v2778_v33, %v2777_v42  ;;  %v12815_v18 = vshrl.u32 %v10683_v6, 16  ;;  %4485 = vmatpush1.bf16.msra.mxu0 %v8660_v52 }
 0x252   :  { %v2793_v58 = vrot.slane %v12813_v17, 4  ;;  %v10960_v63 = vsel %vm2720_vm5, %v2740_v25, %v2759_v14  ;;  %v2794_v29 = vrot.slane %v12814_v50, 5  ;;  %v12816_v60 = vshll.u32 %v10683_v6, 16  ;;  %4486 = vmatprep.subr.bf16.mxu0 %v8665_v21 }
 0x253   :  { %v2775_v31 = vor.u32 %v2774_v46, %v2773_v7  ;;  %v2789_v37 = vrot.slane %v12815_v18, 4  ;;  %v10970_v35 = vsel %vm2720_vm5, %v2763_v13, %v2779_v19  ;;  %v12817_v42 = vshrl.u32 %v10734_v39, 16 }
 0x254   :  { %v2790_v53 = vrot.slane %v12816_v60, 5  ;;  %v12818_v28 = vshll.u32 %v10734_v39, 16  ;;  %v2795_v51 = vor.u32 %v2794_v29, %v2793_v58  ;;  %v12819_v33 = vshrl.u32 %v10729_v11, 16  ;;  %v8663_v39 = vld [vmem:[%s12637_s4 + $0x320] ss:$8 sps:$4 sm:$0xff]   ;;  %4422 = vmatmul.mubr.bf16.gmra.mrb[36].mxu0 %v10135_v47 }
 0x255   :  { %v2809_v61 = vrot.slane %v12817_v42, 4  ;;  %v10979_v38 = vsel %vm2720_vm5, %v2759_v14, %v2775_v31  ;;  %v12820_v7 = vshll.u32 %v10729_v11, 16  ;;  %v12821_v6 = vshll.u32 %v10779_v20, 16  ;;  %4431 = vmatprep.mubr.bf16.mxu0 %v10208_v55  ;;  %4487 = vmatpush1.bf16.msra.mxu0 %v8663_v39  ;;  %v8671_v47 = vld [vmem:[%s12637_s4 + $0x344] ss:$8 sps:$4 sm:$0xff]  }
 0x256   :  { %v2810_v25 = vrot.slane %v12818_v28, 5  ;;  %v2805_v12 = vrot.slane %v12819_v33, 4  ;;  %v2791_v34 = vor.u32 %v2790_v53, %v2789_v37  ;;  %v12822_v50 = vshll.u32 %v10776_v36, 16  ;;  %v8668_v37 = vld [vmem:[%s12637_s4 + $0x334] ss:$8 sps:$4 sm:$0xff]  }
 0x257   :  { %v2806_v13 = vrot.slane %v12820_v7, 5  ;;  %v2826_v17 = vrot.slane %v12821_v6, 5  ;;  %v10993_v14 = vsel %vm2720_vm5, %v2779_v19, %v2795_v51  ;;  %v2857_v11 = vshrl.u32 %v10833_v24, 16  ;;  %4488 = vmatprep.subr.bf16.mxu0 %v8668_v37  ;;  %v8669_v55 = vld [vmem:[%s12637_s4 + $0x340] ss:$8 sps:$4 sm:$0xff]  }
 0x258   :  { %v2811_v46 = vor.u32 %v2810_v25, %v2809_v61  ;;  %v2822_v18 = vrot.slane %v12822_v50, 5  ;;  %v2860_v29 = vshll.u32 %v10833_v24, 16  ;;  %v11001_v60 = vsel %vm2720_vm5, %v2775_v31, %v2791_v34  ;;  %v8675_v6 = vld [vmem:[%s12637_s4 + $0x360] ss:$8 sps:$4 sm:$0xff]  }
 0x259   :  { %v2807_v58 = vor.u32 %v2806_v13, %v2805_v12  ;;  %v2827_v53 = vor.u32 %v2826_v17, %v10849_v54  ;;  %v2859_v61 = vrot.slane %v2857_v11, 4  ;;  %v2848_v21 = vshrl.u32 %v10831_v44, 16  ;;  %v8683_v17 = vld [vmem:[%s12637_s4 + $0x384] ss:$8 sps:$4 sm:$0xff]   ;;  %v8681_v50 = vld [vmem:[%s12637_s4 + $0x380] ss:$8 sps:$4 sm:$0xff]  }
 0x25a   :  { %v11004_v52 = vsel %vm2720_vm5, %v2795_v51, %v2811_v46  ;;  %v2823_v19 = vor.u32 %v2822_v18, %v10829_v2  ;;  %v2862_v24 = vrot.slane %v2860_v29, 5  ;;  %v2851_v25 = vshll.u32 %v10831_v44, 16  ;;  %v8666_v2 = vld [vmem:[%s12637_s4 + $0x330] ss:$8 sps:$4 sm:$0xff]   ;;  %v8674_v44 = vld [vmem:[%s12637_s4 + $0x354] ss:$8 sps:$4 sm:$0xff]  }
 0x25b   :  { %v11009_v42 = vsel %vm2720_vm5, %v2791_v34, %v2807_v58  ;;  %v11014_v28 = vsel %vm2720_vm5, %v2811_v46, %v2827_v53  ;;  %v2850_v51 = vrot.slane %v2848_v21, 4  ;;  %4489 = vmatpush1.bf16.msra.mxu0 %v8666_v2  ;;  %v8672_v34 = vld [vmem:[%s12637_s4 + $0x350] ss:$8 sps:$4 sm:$0xff]   ;;  %v8677_v46 = vld [vmem:[%s12637_s4 + $0x364] ss:$8 sps:$4 sm:$0xff]  }
 0x25c   :  { %v11017_v31 = vsel %vm2720_vm5, %v2807_v58, %v2823_v19  ;;  %v2863_v54 = vor.u32 %v2862_v24, %v2859_v61  ;;  %v2853_v33 = vrot.slane %v2851_v25, 5  ;;  %4490 = vmatprep.subr.bf16.mxu0 %v8671_v47  ;;  %4432 = vmatmul.mubr.bf16.gmra.mrb[40].mxu0 %v10226_v49  ;;  %v8680_v49 = vld [vmem:[%s12637_s4 + $0x374] ss:$8 sps:$4 sm:$0xff]   ;;  %v8689_v18 = vld [vmem:[%s12637_s4 + $0x3a4] ss:$8 sps:$4 sm:$0xff]  }
 0x25d   :  { %4441 = vmatprep.mubr.bf16.mxu0 %v10251_v16  ;;  %v8678_v16 = vld [vmem:[%s12637_s4 + $0x370] ss:$8 sps:$4 sm:$0xff]   ;;  %v8687_v39 = vld [vmem:[%s12637_s4 + $0x3a0] ss:$8 sps:$4 sm:$0xff]   ;;  %v8695_v29 = vld [vmem:[%s12637_s4 + $0x3c4] ss:$8 sps:$4 sm:$0xff]  }
 0x25e   :  { %v11028_v12 = vsel %vm2720_vm5, %v2827_v53, %v2863_v54  ;;  %v2854_v7 = vor.u32 %v2853_v33, %v2850_v51  ;;  %v8690_v11 = vld [vmem:[%s12637_s4 + $0x3b0] ss:$8 sps:$4 sm:$0xff]   ;;  %v8693_v37 = vld [vmem:[%s12637_s4 + $0x3c0] ss:$8 sps:$4 sm:$0xff]   ;;  %v8707_v61 = vld [vmem:[%s12637_s4 + $0x404] ss:$8 sps:$4 sm:$0xff]  }
 0x25f   :  { %4491 = vmatpush1.bf16.msra.mxu0 %v8669_v55  ;;  %v8696_v53 = vld [vmem:[%s12637_s4 + $0x3d0] ss:$8 sps:$4 sm:$0xff]   ;;  %v8705_v24 = vld [vmem:[%s12637_s4 + $0x400] ss:$8 sps:$4 sm:$0xff]   ;;  %v8710_v21 = vld [vmem:[%s12637_s4 + $0x414] ss:$8 sps:$4 sm:$0xff]  }
 0x260   :  { %v11037_v13 = vsel %vm2720_vm5, %v2823_v19, %v2854_v7  ;;  %4492 = vmatprep.subr.bf16.mxu0 %v8674_v44  ;;  %v8701_v19 = vld [vmem:[%s12637_s4 + $0x3e4] ss:$8 sps:$4 sm:$0xff]   ;;  %v8708_v25 = vld [vmem:[%s12637_s4 + $0x410] ss:$8 sps:$4 sm:$0xff]   ;;  %v8711_v54 = vld [vmem:[%s12637_s4 + $0x420] ss:$8 sps:$4 sm:$0xff]  }
 0x261   :  { %v8713_v2 = vld [vmem:[%s12637_s4 + $0x424] ss:$8 sps:$4 sm:$0xff]   ;;  %v8717_v47 = vld [vmem:[%s12637_s4 + $0x440] ss:$8 sps:$4 sm:$0xff]   ;;  %v12826_v33 = vld [vmem:[#allocation37_spill] sm:$0xff] }
 0x262   :  { %v8719_v51 = vld [vmem:[%s12637_s4 + $0x444] ss:$8 sps:$4 sm:$0xff]   ;;  %v8720_v7 = vld [vmem:[%s12637_s4 + $0x450] ss:$8 sps:$4 sm:$0xff]   ;;  %v8723_v44 = vld [vmem:[%s12637_s4 + $0x460] ss:$8 sps:$4 sm:$0xff]  }
 0x263   :  { %4493 = vmatpush1.bf16.msra.mxu0 %v8672_v34  ;;  %v8725_v55 = vld [vmem:[%s12637_s4 + $0x464] ss:$8 sps:$4 sm:$0xff]   ;;  %v8728_v34 = vld [vmem:[%s12637_s4 + $0x474] ss:$8 sps:$4 sm:$0xff]  }
 0x264   :  { %4494 = vmatprep.subr.bf16.mxu0 %v8677_v46  ;;  %4442 = vmatmul.mubr.bf16.gmra.mrb[44].mxu0 %v10254_v15  ;;  %v8686_v15 = vld [vmem:[%s12637_s4 + $0x394] ss:$8 sps:$4 sm:$0xff]   ;;  %v12827_v46 = vld [vmem:[#allocation36_spill] sm:$0xff] }
 0x265   :  { %4451 = vmatprep.mubr.bf16.mxu0 %v10275_v26  ;;  %v8684_v26 = vld [vmem:[%s12637_s4 + $0x390] ss:$8 sps:$4 sm:$0xff]  }
 0x267   :  { %4495 = vmatpush1.bf16.msra.mxu0 %v8675_v6  ;;  %v8726_v6 = vld [vmem:[%s12637_s4 + $0x470] ss:$8 sps:$4 sm:$0xff]  }
 0x268   :  { %4496 = vmatprep.subr.bf16.mxu0 %v8680_v49  ;;  %v8731_v49 = vld [vmem:[%s12637_s4 + $0x484] ss:$8 sps:$4 sm:$0xff]  }
 0x26b   :  { %4497 = vmatpush1.bf16.msra.mxu0 %v8678_v16  ;;  %v8729_v16 = vld [vmem:[%s12637_s4 + $0x480] ss:$8 sps:$4 sm:$0xff]  }
 0x26c   :  { %4498 = vmatprep.subr.bf16.mxu0 %v8683_v17  ;;  %4452 = vmatmul.mubr.bf16.gmra.mrb[48].mxu0 %v10293_v1  ;;  %v8692_v1 = vld [vmem:[%s12637_s4 + $0x3b4] ss:$8 sps:$4 sm:$0xff]  }
 0x26d   :  { %4461 = vmatprep.mubr.bf16.mxu0 %v10306_v0  ;;  %v12823_v0 = vshrl.u32 %v10202_v45, 16  ;;  %v12824_v45 = vshrl.u32 %v10198_v9, 16  ;;  %v8699_v9 = vld [vmem:[%s12637_s4 + $0x3e0] ss:$8 sps:$4 sm:$0xff]  }
 0x26e   :  { %v12828_v17 = vld [vmem:[#allocation38_spill] sm:$0xff] }
 0x26f   :  { %4499 = vmatpush1.bf16.msra.mxu0 %v8681_v50  ;;  %v2564_v58 = vor.u32 %v12823_v0, %v10285_v30  ;;  %v2561_v30 = vor.u32 %v12824_v45, %v10289_v22  ;;  %v8704_v22 = vld [vmem:[%s12637_s4 + $0x3f4] ss:$8 sps:$4 sm:$0xff]   ;;  %v8732_v50 = vld [vmem:[%s12637_s4 + $0x490] ss:$8 sps:$4 sm:$0xff]   ;;  %v8743_v0 = vld [vmem:[%s12637_s4 + $0x4c4] ss:$8 sps:$4 sm:$0xff]  }
 0x270   :  { %4500 = vmatprep.subr.bf16.mxu0 %v8686_v15  ;;  %v8737_v15 = vld [vmem:[%s12637_s4 + $0x4a4] ss:$8 sps:$4 sm:$0xff]   ;;  %v8750_v45 = vld [vmem:[%s12637_s4 + $0x4f0] ss:$8 sps:$4 sm:$0xff]  }
 0x273   :  { %4501 = vmatpush1.bf16.msra.mxu0 %v8684_v26  ;;  %v8735_v26 = vld [vmem:[%s12637_s4 + $0x4a0] ss:$8 sps:$4 sm:$0xff]  }
 0x274   :  { %4502 = vmatprep.subr.bf16.mxu0 %v8689_v18  ;;  %4462 = vmatmul.mubr.bf16.gmra.mrb[52].mxu0 %v10321_v41  ;;  %v8698_v41 = vld [vmem:[%s12637_s4 + $0x3d4] ss:$8 sps:$4 sm:$0xff]   ;;  %v12829_v18 = vshrl.u32 %v10779_v20, 16  ;;  %v12830_v20 = vshrl.u32 %v10776_v36, 16  ;;  %v8747_v36 = vld [vmem:[%s12637_s4 + $0x4e0] ss:$8 sps:$4 sm:$0xff]  }
 0x275   :  { %4471 = vmatprep.mubr.bf16.mxu0 %v2564_v58  ;;  %v8741_v58 = vld [vmem:[%s12637_s4 + $0x4c0] ss:$8 sps:$4 sm:$0xff]  }
 0x277   :  { %4503 = vmatpush1.bf16.msra.mxu0 %v8687_v39  ;;  %v2570_v39 = vor.u32 %v12829_v18, %v10810_v48  ;;  %v2567_v48 = vor.u32 %v12830_v20, %v10802_v62  ;;  %v8752_v62 = vld [vmem:[%s12637_s4 + $0x4f4] ss:$8 sps:$4 sm:$0xff]  }
 0x278   :  { %4504 = vmatprep.subr.bf16.mxu0 %v8692_v1  ;;  %v8738_v1 = vld [vmem:[%s12637_s4 + $0x4b0] ss:$8 sps:$4 sm:$0xff]  }
 0x279   :  { %v12843_v18 = vld [vmem:[#allocation17_spill] sm:$0xff]  ;;  %v12844_v20 = vld [vmem:[#allocation18_spill] sm:$0xff] }
 0x27b   :  { %4505 = vmatpush1.bf16.msra.mxu0 %v8690_v11  ;;  %v12831_v11 = vld [vmem:[#allocation5_spill] sm:$0xff] }
 0x27c   :  { %4506 = vmatprep.subr.bf16.mxu0 %v8695_v29  ;;  %4472 = vmatmul.mubr.bf16.gmra.mrb[56].mxu0 %v2561_v30  ;;  %v8744_v29 = vld [vmem:[%s12637_s4 + $0x4d0] ss:$8 sps:$4 sm:$0xff]   ;;  %v8755_v30 = vld [vmem:[%s12637_s4 + $0x504] ss:$8 sps:$4 sm:$0xff]  }
 0x27d   :  { %4514 = vmatprep.mubr.bf16.mxu0 %v10588_v43  ;;  %v8702_v43 = vld [vmem:[%s12637_s4 + $0x3f0] ss:$8 sps:$4 sm:$0xff]  }
 0x27f   :  { %4507 = vmatpush1.bf16.msra.mxu0 %v8693_v37  ;;  %v8749_v37 = vld [vmem:[%s12637_s4 + $0x4e4] ss:$8 sps:$4 sm:$0xff]  }
 0x280   :  { %4508 = vmatprep.subr.bf16.mxu0 %v8698_v41  ;;  %v8753_v41 = vld [vmem:[%s12637_s4 + $0x500] ss:$8 sps:$4 sm:$0xff]  }
 0x283   :  { %4509 = vmatpush1.bf16.msra.mxu0 %v8696_v53  ;;  %v8758_v53 = vld [vmem:[%s12637_s4 + $0x514] ss:$8 sps:$4 sm:$0xff]  }
 0x284   :  { %4510 = vmatprep.subr.bf16.mxu0 %v8701_v19  ;;  %v12832_v19 = vld [vmem:[#allocation6_spill] sm:$0xff] }
 0x287   :  { %4511 = vmatpush1.bf16.msra.mxu0 %v8699_v9  ;;  %v12833_v9 = vld [vmem:[#allocation7_spill] sm:$0xff] }
 0x288   :  { %4512 = vmatprep.subr.bf16.mxu0 %v8704_v22  ;;  %v8756_v22 = vld [vmem:[%s12637_s4 + $0x510] ss:$8 sps:$4 sm:$0xff]  }
 0x28b   :  { %4513 = vmatpush1.bf16.msra.mxu0 %v8702_v43  ;;  %v8761_v43 = vld [vmem:[%s12637_s4 + $0x524] ss:$8 sps:$4 sm:$0xff]  }
 0x28c   :  { %4585 = vmatprep.subr.bf16.mxu0 %v8707_v61  ;;  %v8759_v61 = vld [vmem:[%s12637_s4 + $0x520] ss:$8 sps:$4 sm:$0xff]  }
 0x28e   :  { %4515 = vmatmul.mubr.bf16.vlgmr.msra.gmra.mrb[32].mxu0 %v10582_v10  ;;  %v8716_v10 = vld [vmem:[%s12637_s4 + $0x434] ss:$8 sps:$4 sm:$0xff]  }
 0x28f   :  { %4524 = vmatprep.mubr.bf16.mxu0 %v10634_v23  ;;  %4586 = vmatpush1.bf16.msra.mxu0 %v8705_v24  ;;  %v8714_v23 = vld [vmem:[%s12637_s4 + $0x430] ss:$8 sps:$4 sm:$0xff]   ;;  %v8764_v24 = vld [vmem:[%s12637_s4 + $0x534] ss:$8 sps:$4 sm:$0xff]  }
 0x290   :  { %4587 = vmatprep.subr.bf16.mxu0 %v8710_v21  ;;  %v12834_v21 = vld [vmem:[#allocation8_spill] sm:$0xff] }
 0x293   :  { %4588 = vmatpush1.bf16.msra.mxu0 %v8708_v25  ;;  %v12835_v25 = vld [vmem:[#allocation9_spill] sm:$0xff] }
 0x294   :  { %4589 = vmatprep.subr.bf16.mxu0 %v8713_v2  ;;  %v8762_v2 = vld [vmem:[%s12637_s4 + $0x530] ss:$8 sps:$4 sm:$0xff]  }
 0x296   :  { %4525 = vmatmul.mubr.bf16.gmra.mrb[36].mxu0 %v10629_v40  ;;  %v8722_v40 = vld [vmem:[%s12637_s4 + $0x454] ss:$8 sps:$4 sm:$0xff]  }
 0x297   :  { %4534 = vmatprep.mubr.bf16.mxu0 %v10680_v27  ;;  %4590 = vmatpush1.bf16.msra.mxu0 %v8711_v54  ;;  %v12825_v27 = vld [vmem:[#allocation35_spill] sm:$0xff] }
 0x298   :  { %4591 = vmatprep.subr.bf16.mxu0 %v8716_v10  ;;  %v8767_v54 = vld [vmem:[%s12637_s4 + $0x544] ss:$8 sps:$4 sm:$0xff]   ;;  %v8765_v10 = vld [vmem:[%s12637_s4 + $0x540] ss:$8 sps:$4 sm:$0xff]  }
 0x29b   :  { %4592 = vmatpush1.bf16.msra.mxu0 %v8714_v23  ;;  %v8770_v23 = vld [vmem:[%s12637_s4 + $0x554] ss:$8 sps:$4 sm:$0xff]  }
 0x29c   :  { %4593 = vmatprep.subr.bf16.mxu0 %v8719_v51  ;;  %v12836_v51 = vld [vmem:[#allocation10_spill] sm:$0xff] }
 0x29e   :  { %4535 = vmatmul.mubr.bf16.gmra.mrb[40].mxu0 %v12825_v27  ;;  %v8773_v27 = vld [vmem:[%s12637_s4 + $0x564] ss:$8 sps:$4 sm:$0xff]  }
 0x29f   :  { %4544 = vmatprep.mubr.bf16.mxu0 %v12826_v33  ;;  %4594 = vmatpush1.bf16.msra.mxu0 %v8717_v47  ;;  %v12837_v47 = vld [vmem:[#allocation11_spill] sm:$0xff] }
 0x2a0   :  { %4595 = vmatprep.subr.bf16.mxu0 %v8722_v40  ;;  %v8768_v40 = vld [vmem:[%s12637_s4 + $0x550] ss:$8 sps:$4 sm:$0xff]   ;;  %v8771_v33 = vld [vmem:[%s12637_s4 + $0x560] ss:$8 sps:$4 sm:$0xff]  }
 0x2a3   :  { %4596 = vmatpush1.bf16.msra.mxu0 %v8720_v7  ;;  %v8776_v7 = vld [vmem:[%s12637_s4 + $0x574] ss:$8 sps:$4 sm:$0xff]  }
 0x2a4   :  { %4597 = vmatprep.subr.bf16.mxu0 %v8725_v55  ;;  %v12838_v55 = vld [vmem:[#allocation12_spill] sm:$0xff] }
 0x2a6   :  { %4545 = vmatmul.mubr.bf16.gmra.mrb[44].mxu0 %v12827_v46  ;;  %v8779_v46 = vld [vmem:[%s12637_s4 + $0x584] ss:$8 sps:$4 sm:$0xff]  }
 0x2a7   :  { %4554 = vmatprep.mubr.bf16.mxu0 %v10772_v32  ;;  %4598 = vmatpush1.bf16.msra.mxu0 %v8723_v44  ;;  %v8734_v32 = vld [vmem:[%s12637_s4 + $0x494] ss:$8 sps:$4 sm:$0xff]  }
 0x2a8   :  { %4599 = vmatprep.subr.bf16.mxu0 %v8728_v34  ;;  %v12839_v44 = vld [vmem:[#allocation13_spill] sm:$0xff] }
 0x2a9   :  { %v8774_v34 = vld [vmem:[%s12637_s4 + $0x570] ss:$8 sps:$4 sm:$0xff]  }
 0x2ab   :  { %4600 = vmatpush1.bf16.msra.mxu0 %v8726_v6  ;;  %v8777_v6 = vld [vmem:[%s12637_s4 + $0x580] ss:$8 sps:$4 sm:$0xff]  }
 0x2ac   :  { %4601 = vmatprep.subr.bf16.mxu0 %v8731_v49  ;;  %v8782_v49 = vld [vmem:[%s12637_s4 + $0x594] ss:$8 sps:$4 sm:$0xff]  }
 0x2ae   :  { %4555 = vmatmul.mubr.bf16.gmra.mrb[48].mxu0 %v12828_v17  ;;  %v8780_v17 = vld [vmem:[%s12637_s4 + $0x590] ss:$8 sps:$4 sm:$0xff]  }
 0x2af   :  { %4564 = vmatprep.mubr.bf16.mxu0 %v10837_v4  ;;  %4602 = vmatpush1.bf16.msra.mxu0 %v8729_v16  ;;  %v8740_v4 = vld [vmem:[%s12637_s4 + $0x4b4] ss:$8 sps:$4 sm:$0xff]  }
 0x2b0   :  { %4603 = vmatprep.subr.bf16.mxu0 %v8734_v32  ;;  %v12840_v16 = vld [vmem:[#allocation14_spill] sm:$0xff]  ;;  %v12841_v32 = vld [vmem:[#allocation15_spill] sm:$0xff] }
 0x2b3   :  { %4604 = vmatpush1.bf16.msra.mxu0 %v8732_v50  ;;  %v8785_v50 = vld [vmem:[%s12637_s4 + $0x5a4] ss:$8 sps:$4 sm:$0xff]  }
 0x2b4   :  { %4605 = vmatprep.subr.bf16.mxu0 %v8737_v15  ;;  %v8783_v15 = vld [vmem:[%s12637_s4 + $0x5a0] ss:$8 sps:$4 sm:$0xff]  }
 0x2b6   :  { %4565 = vmatmul.mubr.bf16.gmra.mrb[52].mxu0 %v10825_v59  ;;  %v8746_v59 = vld [vmem:[%s12637_s4 + $0x4d4] ss:$8 sps:$4 sm:$0xff]  }
 0x2b7   :  { %4574 = vmatprep.mubr.bf16.mxu0 %v2570_v39  ;;  %4606 = vmatpush1.bf16.msra.mxu0 %v8735_v26  ;;  %v8788_v26 = vld [vmem:[%s12637_s4 + $0x5b4] ss:$8 sps:$4 sm:$0xff]   ;;  %v8786_v39 = vld [vmem:[%s12637_s4 + $0x5b0] ss:$8 sps:$4 sm:$0xff]  }
 0x2b8   :  { %4607 = vmatprep.subr.bf16.mxu0 %v8740_v4  ;;  %v12842_v4 = vld [vmem:[#allocation16_spill] sm:$0xff] }
 0x2bb   :  { %4608 = vmatpush1.bf16.msra.mxu0 %v8738_v1  ;;  %v8791_v1 = vld [vmem:[%s12637_s4 + $0x5c4] ss:$8 sps:$4 sm:$0xff]  }
 0x2bc   :  { %4609 = vmatprep.subr.bf16.mxu0 %v8743_v0  ;;  %v8789_v0 = vld [vmem:[%s12637_s4 + $0x5c0] ss:$8 sps:$4 sm:$0xff]  }
 0x2be   :  { %4575 = vmatmul.mubr.bf16.gmra.mrb[56].mxu0 %v2567_v48  ;;  %v8792_v48 = vld [vmem:[%s12637_s4 + $0x5d0] ss:$8 sps:$4 sm:$0xff]  }
 0x2bf   :  { %4610 = vmatpush1.bf16.msra.mxu0 %v8741_v58  ;;  %4617 = vmatprep.mubr.bf16.mxu0 %v12831_v11  ;;  %v8794_v58 = vld [vmem:[%s12637_s4 + $0x5d4] ss:$8 sps:$4 sm:$0xff]   ;;  %v8795_v11 = vld [vmem:[%s12637_s4 + $0x5e0] ss:$8 sps:$4 sm:$0xff]  }
 0x2c0   :  { %4611 = vmatprep.subr.bf16.mxu0 %v8746_v59  ;;  %v8797_v59 = vld [vmem:[%s12637_s4 + $0x5e4] ss:$8 sps:$4 sm:$0xff]  }
 0x2c3   :  { %4612 = vmatpush1.bf16.msra.mxu0 %v8744_v29  ;;  %v8800_v29 = vld [vmem:[%s12637_s4 + $0x5f4] ss:$8 sps:$4 sm:$0xff]  }
 0x2c4   :  { %4613 = vmatprep.subr.bf16.mxu0 %v8749_v37  ;;  %v8803_v37 = vld [vmem:[%s12637_s4 + $0x604] ss:$8 sps:$4 sm:$0xff]  }
 0x2c7   :  { %4614 = vmatpush1.bf16.msra.mxu0 %v8747_v36  ;;  %v8801_v36 = vld [vmem:[%s12637_s4 + $0x600] ss:$8 sps:$4 sm:$0xff]  }
 0x2c8   :  { %4615 = vmatprep.subr.bf16.mxu0 %v8752_v62  ;;  %v8806_v62 = vld [vmem:[%s12637_s4 + $0x614] ss:$8 sps:$4 sm:$0xff]  }
 0x2cb   :  { %4616 = vmatpush1.bf16.msra.mxu0 %v8750_v45  ;;  %v12845_v45 = vld [vmem:[#allocation39_spill] sm:$0xff] }
 0x2cc   :  { %4688 = vmatprep.subr.bf16.mxu0 %v8755_v30  ;;  %v12846_v30 = vld [vmem:[#allocation40_spill] sm:$0xff] }
 0x2ce   :  { %4618 = vmatmul.mubr.bf16.vlgmr.msra.gmra.mrb[32].mxu0 %v12832_v19  ;;  %v8807_v19 = vld [vmem:[%s12637_s4 + $0x620] ss:$8 sps:$4 sm:$0xff]  }
 0x2cf   :  { %4627 = vmatprep.mubr.bf16.mxu0 %v12833_v9  ;;  %4689 = vmatpush1.bf16.msra.mxu0 %v8753_v41  ;;  %v8804_v41 = vld [vmem:[%s12637_s4 + $0x610] ss:$8 sps:$4 sm:$0xff]   ;;  %v8812_v9 = vld [vmem:[%s12637_s4 + $0x634] ss:$8 sps:$4 sm:$0xff]  }
 0x2d0   :  { %4690 = vmatprep.subr.bf16.mxu0 %v8758_v53  ;;  %v8809_v53 = vld [vmem:[%s12637_s4 + $0x624] ss:$8 sps:$4 sm:$0xff]  }
 0x2d3   :  { %4691 = vmatpush1.bf16.msra.mxu0 %v8756_v22  ;;  %v12847_v22 = vld [vmem:[#allocation41_spill] sm:$0xff] }
 0x2d4   :  { %4692 = vmatprep.subr.bf16.mxu0 %v8761_v43  ;;  %v12848_v43 = vld [vmem:[#allocation42_spill] sm:$0xff] }
 0x2d6   :  { %4628 = vmatmul.mubr.bf16.gmra.mrb[36].mxu0 %v12834_v21  ;;  %v8813_v21 = vld [vmem:[%s12637_s4 + $0x640] ss:$8 sps:$4 sm:$0xff]  }
 0x2d7   :  { %4637 = vmatprep.mubr.bf16.mxu0 %v12835_v25  ;;  %4693 = vmatpush1.bf16.msra.mxu0 %v8759_v61  ;;  %v8810_v61 = vld [vmem:[%s12637_s4 + $0x630] ss:$8 sps:$4 sm:$0xff]   ;;  %v8818_v25 = vld [vmem:[%s12637_s4 + $0x654] ss:$8 sps:$4 sm:$0xff]  }
 0x2d8   :  { %4694 = vmatprep.subr.bf16.mxu0 %v8764_v24  ;;  %v8815_v24 = vld [vmem:[%s12637_s4 + $0x644] ss:$8 sps:$4 sm:$0xff]  }
 0x2db   :  { %4695 = vmatpush1.bf16.msra.mxu0 %v8762_v2  ;;  %v12849_v2 = vld [vmem:[#allocation43_spill] sm:$0xff] }
 0x2dc   :  { %4696 = vmatprep.subr.bf16.mxu0 %v8767_v54  ;;  %v12850_v54 = vld [vmem:[#allocation44_spill] sm:$0xff] }
 0x2de   :  { %4638 = vmatmul.mubr.bf16.gmra.mrb[40].mxu0 %v12836_v51  ;;  %v8819_v51 = vld [vmem:[%s12637_s4 + $0x660] ss:$8 sps:$4 sm:$0xff]  }
 0x2df   :  { %4647 = vmatprep.mubr.bf16.mxu0 %v12837_v47  ;;  %4697 = vmatpush1.bf16.msra.mxu0 %v8765_v10  ;;  %v8816_v10 = vld [vmem:[%s12637_s4 + $0x650] ss:$8 sps:$4 sm:$0xff]   ;;  %v8824_v47 = vld [vmem:[%s12637_s4 + $0x674] ss:$8 sps:$4 sm:$0xff]  }
 0x2e0   :  { %4698 = vmatprep.subr.bf16.mxu0 %v8770_v23  ;;  %v8821_v23 = vld [vmem:[%s12637_s4 + $0x664] ss:$8 sps:$4 sm:$0xff]  }
 0x2e3   :  { %4699 = vmatpush1.bf16.msra.mxu0 %v8768_v40  ;;  %v12851_v40 = vld [vmem:[#allocation45_spill] sm:$0xff] }
 0x2e4   :  { %4700 = vmatprep.subr.bf16.mxu0 %v8773_v27  ;;  %v12852_v27 = vld [vmem:[#allocation46_spill] sm:$0xff] }
 0x2e6   :  { %4648 = vmatmul.mubr.bf16.gmra.mrb[44].mxu0 %v12838_v55  ;;  %v8825_v55 = vld [vmem:[%s12637_s4 + $0x680] ss:$8 sps:$4 sm:$0xff]  }
 0x2e7   :  { %4657 = vmatprep.mubr.bf16.mxu0 %v12839_v44  ;;  %4701 = vmatpush1.bf16.msra.mxu0 %v8771_v33  ;;  %v8822_v33 = vld [vmem:[%s12637_s4 + $0x670] ss:$8 sps:$4 sm:$0xff]   ;;  %v8830_v44 = vld [vmem:[%s12637_s4 + $0x694] ss:$8 sps:$4 sm:$0xff]  }
 0x2e8   :  { %4702 = vmatprep.subr.bf16.mxu0 %v8776_v7  ;;  %v8827_v7 = vld [vmem:[%s12637_s4 + $0x684] ss:$8 sps:$4 sm:$0xff]  }
 0x2eb   :  { %4703 = vmatpush1.bf16.msra.mxu0 %v8774_v34  ;;  %v12853_v34 = vld [vmem:[#allocation47_spill] sm:$0xff] }
 0x2ec   :  { %4704 = vmatprep.subr.bf16.mxu0 %v8779_v46  ;;  %v12854_v46 = vld [vmem:[#allocation48_spill] sm:$0xff] }
 0x2ee   :  { %4658 = vmatmul.mubr.bf16.gmra.mrb[48].mxu0 %v12840_v16  ;;  %v8831_v16 = vld [vmem:[%s12637_s4 + $0x6a0] ss:$8 sps:$4 sm:$0xff]  }
 0x2ef   :  { %4667 = vmatprep.mubr.bf16.mxu0 %v12841_v32  ;;  %4705 = vmatpush1.bf16.msra.mxu0 %v8777_v6  ;;  %v8828_v6 = vld [vmem:[%s12637_s4 + $0x690] ss:$8 sps:$4 sm:$0xff]   ;;  %v8836_v32 = vld [vmem:[%s12637_s4 + $0x6b4] ss:$8 sps:$4 sm:$0xff]  }
 0x2f0   :  { %4706 = vmatprep.subr.bf16.mxu0 %v8782_v49  ;;  %v8833_v49 = vld [vmem:[%s12637_s4 + $0x6a4] ss:$8 sps:$4 sm:$0xff]  }
 0x2f3   :  { %4707 = vmatpush1.bf16.msra.mxu0 %v8780_v17  ;;  %v12855_v17 = vld [vmem:[#allocation49_spill] sm:$0xff] }
 0x2f4   :  { %4708 = vmatprep.subr.bf16.mxu0 %v8785_v50  ;;  %v8834_v50 = vld [vmem:[%s12637_s4 + $0x6b0] ss:$8 sps:$4 sm:$0xff]  }
 0x2f6   :  { %4668 = vmatmul.mubr.bf16.gmra.mrb[52].mxu0 %v12842_v4  ;;  %v12856_v4 = vld [vmem:[#allocation50_spill] sm:$0xff] }
 0x2f7   :  { %4677 = vmatprep.mubr.bf16.mxu0 %v12843_v18  ;;  %4709 = vmatpush1.bf16.msra.mxu0 %v8783_v15  ;;  %v8839_v15 = vld [vmem:[%s12637_s4 + $0x6c4] ss:$8 sps:$4 sm:$0xff]   ;;  %v8840_v18 = vld [vmem:[%s12637_s4 + $0x6d0] ss:$8 sps:$4 sm:$0xff]  }
 0x2f8   :  { %4710 = vmatprep.subr.bf16.mxu0 %v8788_v26  ;;  %v8837_v26 = vld [vmem:[%s12637_s4 + $0x6c0] ss:$8 sps:$4 sm:$0xff]  }
 0x2fb   :  { %4711 = vmatpush1.bf16.msra.mxu0 %v8786_v39  ;;  %v8845_v39 = vld [vmem:[%s12637_s4 + $0x6e4] ss:$8 sps:$4 sm:$0xff]  }
 0x2fc   :  { %4712 = vmatprep.subr.bf16.mxu0 %v8791_v1  ;;  %v12857_v1 = vld [vmem:[#allocation19_spill] sm:$0xff] }
 0x2fe   :  { %4678 = vmatmul.mubr.bf16.gmra.mrb[56].mxu0 %v12844_v20  ;;  %v8843_v20 = vld [vmem:[%s12637_s4 + $0x6e0] ss:$8 sps:$4 sm:$0xff]  }
 0x2ff   :  { %4713 = vmatpush1.bf16.msra.mxu0 %v8789_v0  ;;  %4720 = vmatprep.mubr.bf16.mxu0 %v10816_v5  ;;  %v8798_v5 = vld [vmem:[%s12637_s4 + $0x5f0] ss:$8 sps:$4 sm:$0xff]   ;;  %v8897_v0 = vld [vmem:[%s12640_s7 + $0x40] sm:$0xff]  }
 0x300   :  { %4714 = vmatprep.subr.bf16.mxu0 %v8794_v58  ;;  %v8898_v58 = vld [vmem:[%s12640_s7] sm:$0xff]   ;;  %7670 = vmatprep.subr.bf16.mxu1 %v8897_v0 }
 0x301   :  { %7671 = vmatpush3.bf16.msra.mxu1 %v8898_v58  ;;  %v12868_v0 = vld [vmem:[#allocation30_spill] sm:$0xff]  ;;  %v12869_v58 = vld [vmem:[#allocation31_spill] sm:$0xff] }
 0x303   :  { %4715 = vmatpush1.bf16.msra.mxu0 %v8792_v48  ;;  %v8899_v48 = vld [vmem:[%s12640_s7 + $0x48] sm:$0xff]  }
 0x304   :  { %4716 = vmatprep.subr.bf16.mxu0 %v8797_v59  ;;  %v8900_v59 = vld [vmem:[%s12640_s7 + $0x8] sm:$0xff]   ;;  %7672 = vmatprep.subr.bf16.mxu1 %v8899_v48 }
 0x305   :  { %7673 = vmatpush3.bf16.msra.mxu1 %v8900_v59  ;;  %v8887_v48 = vld [vmem:[%s12637_s4 + $0x7c4] ss:$8 sps:$4 sm:$0xff]   ;;  %v8885_v59 = vld [vmem:[%s12637_s4 + $0x7c0] ss:$8 sps:$4 sm:$0xff]  }
 0x307   :  { %4717 = vmatpush1.bf16.msra.mxu0 %v8795_v11  ;;  %v8901_v11 = vld [vmem:[%s12640_s7 + $0x50] sm:$0xff]  }
 0x308   :  { %4718 = vmatprep.subr.bf16.mxu0 %v8800_v29  ;;  %v8848_v29 = vld [vmem:[%s12637_s4 + $0x6f4] ss:$8 sps:$4 sm:$0xff]   ;;  %7674 = vmatprep.subr.bf16.mxu1 %v8901_v11 }
 0x309   :  { %v8890_v11 = vld [vmem:[%s12637_s4 + $0x7d4] ss:$8 sps:$4 sm:$0xff]  }
 0x30b   :  { %4719 = vmatpush1.bf16.msra.mxu0 %v8798_v5  ;;  %v8846_v5 = vld [vmem:[%s12637_s4 + $0x6f0] ss:$8 sps:$4 sm:$0xff]  }
 0x30c   :  { %4791 = vmatprep.subr.bf16.mxu0 %v8803_v37  ;;  %v8902_v37 = vld [vmem:[%s12640_s7 + $0x10] sm:$0xff]  }
 0x30d   :  { %7675 = vmatpush3.bf16.msra.mxu1 %v8902_v37  ;;  %v8893_v37 = vld [vmem:[%s12637_s4 + $0x7e4] ss:$8 sps:$4 sm:$0xff]  }
 0x30e   :  { %4721 = vmatmul.mubr.bf16.vlgmr.msra.gmra.mrb[32].mxu0 %v12845_v45  ;;  %v8849_v45 = vld [vmem:[%s12637_s4 + $0x700] ss:$8 sps:$4 sm:$0xff]  }
 0x30f   :  { %4730 = vmatprep.mubr.bf16.mxu0 %v12846_v30  ;;  %4792 = vmatpush1.bf16.msra.mxu0 %v8801_v36  ;;  %v8903_v36 = vld [vmem:[%s12640_s7 + $0x58] sm:$0xff]  }
 0x310   :  { %4793 = vmatprep.subr.bf16.mxu0 %v8806_v62  ;;  %v8851_v62 = vld [vmem:[%s12637_s4 + $0x704] ss:$8 sps:$4 sm:$0xff]   ;;  %v8904_v30 = vld [vmem:[%s12640_s7 + $0x18] sm:$0xff]   ;;  %7676 = vmatprep.subr.bf16.mxu1 %v8903_v36  ;;  %v8891_v36 = vld [vmem:[%s12637_s4 + $0x7e0] ss:$8 sps:$4 sm:$0xff]  }
 0x311   :  { %7677 = vmatpush3.bf16.msra.mxu1 %v8904_v30 }
 0x313   :  { %4794 = vmatpush1.bf16.msra.mxu0 %v8804_v41  ;;  %v8854_v41 = vld [vmem:[%s12637_s4 + $0x714] ss:$8 sps:$4 sm:$0xff]  }
 0x314   :  { %4795 = vmatprep.subr.bf16.mxu0 %v8809_v53  ;;  %v8905_v53 = vld [vmem:[%s12640_s7 + $0x60] sm:$0xff]  }
 0x315   :  { %7678 = vmatprep.subr.bf16.mxu1 %v8905_v53 }
 0x316   :  { %4731 = vmatmul.mubr.bf16.gmra.mrb[36].mxu0 %v12847_v22  ;;  %v8907_v22 = vld [vmem:[%s12640_s7 + $0x68] sm:$0xff]  }
 0x317   :  { %4740 = vmatprep.mubr.bf16.mxu0 %v12848_v43  ;;  %4796 = vmatpush1.bf16.msra.mxu0 %v8807_v19  ;;  %v8852_v19 = vld [vmem:[%s12637_s4 + $0x710] ss:$8 sps:$4 sm:$0xff]  }
 0x318   :  { %4797 = vmatprep.subr.bf16.mxu0 %v8812_v9  ;;  %v8906_v9 = vld [vmem:[%s12640_s7 + $0x20] sm:$0xff]   ;;  %v12858_v43 = vld [vmem:[#allocation20_spill] sm:$0xff] }
 0x319   :  { %7679 = vmatpush3.bf16.msra.mxu1 %v8906_v9 }
 0x31a   :  { %7680 = vmatprep.subr.bf16.mxu1 %v8907_v22 }
 0x31b   :  { %4798 = vmatpush1.bf16.msra.mxu0 %v8810_v61  ;;  %v8857_v61 = vld [vmem:[%s12637_s4 + $0x724] ss:$8 sps:$4 sm:$0xff]  }
 0x31c   :  { %4799 = vmatprep.subr.bf16.mxu0 %v8815_v24  ;;  %v12859_v24 = vld [vmem:[#allocation21_spill] sm:$0xff] }
 0x31e   :  { %4741 = vmatmul.mubr.bf16.gmra.mrb[40].mxu0 %v12849_v2  ;;  %v8860_v2 = vld [vmem:[%s12637_s4 + $0x734] ss:$8 sps:$4 sm:$0xff]  }
 0x31f   :  { %4750 = vmatprep.mubr.bf16.mxu0 %v12850_v54  ;;  %4800 = vmatpush1.bf16.msra.mxu0 %v8813_v21  ;;  %v8908_v21 = vld [vmem:[%s12640_s7 + $0x28] sm:$0xff]   ;;  %v8909_v54 = vld [vmem:[%s12640_s7 + $0x70] sm:$0xff]  }
 0x320   :  { %4801 = vmatprep.subr.bf16.mxu0 %v8818_v25  ;;  %v8855_v25 = vld [vmem:[%s12637_s4 + $0x720] ss:$8 sps:$4 sm:$0xff]   ;;  %7681 = vmatpush3.bf16.msra.mxu1 %v8908_v21 }
 0x321   :  { %7682 = vmatprep.subr.bf16.mxu1 %v8909_v54 }
 0x323   :  { %4802 = vmatpush1.bf16.msra.mxu0 %v8816_v10  ;;  %v8910_v10 = vld [vmem:[%s12640_s7 + $0x30] sm:$0xff]  }
 0x324   :  { %4803 = vmatprep.subr.bf16.mxu0 %v8821_v23  ;;  %v8858_v23 = vld [vmem:[%s12637_s4 + $0x730] ss:$8 sps:$4 sm:$0xff]   ;;  %7683 = vmatpush3.bf16.msra.mxu1 %v8910_v10 }
 0x326   :  { %4751 = vmatmul.mubr.bf16.gmra.mrb[44].mxu0 %v12851_v40  ;;  %v12861_v40 = vld [vmem:[#allocation23_spill] sm:$0xff] }
 0x327   :  { %4760 = vmatprep.mubr.bf16.mxu0 %v12852_v27  ;;  %4804 = vmatpush1.bf16.msra.mxu0 %v8819_v51  ;;  %v12860_v51 = vld [vmem:[#allocation22_spill] sm:$0xff] }
 0x328   :  { %4805 = vmatprep.subr.bf16.mxu0 %v8824_v47  ;;  %v8863_v47 = vld [vmem:[%s12637_s4 + $0x744] ss:$8 sps:$4 sm:$0xff]   ;;  %v8861_v27 = vld [vmem:[%s12637_s4 + $0x740] ss:$8 sps:$4 sm:$0xff]  }
 0x32b   :  { %4806 = vmatpush1.bf16.msra.mxu0 %v8822_v33  ;;  %v8866_v33 = vld [vmem:[%s12637_s4 + $0x754] ss:$8 sps:$4 sm:$0xff]  }
 0x32c   :  { %4807 = vmatprep.subr.bf16.mxu0 %v8827_v7  ;;  %v8864_v7 = vld [vmem:[%s12637_s4 + $0x750] ss:$8 sps:$4 sm:$0xff]  }
 0x32e   :  { %4761 = vmatmul.mubr.bf16.gmra.mrb[48].mxu0 %v12853_v34  ;;  %v12863_v34 = vld [vmem:[#allocation25_spill] sm:$0xff] }
 0x32f   :  { %4770 = vmatprep.mubr.bf16.mxu0 %v12854_v46  ;;  %4808 = vmatpush1.bf16.msra.mxu0 %v8825_v55  ;;  %v12862_v55 = vld [vmem:[#allocation24_spill] sm:$0xff] }
 0x330   :  { %4809 = vmatprep.subr.bf16.mxu0 %v8830_v44  ;;  %v8869_v44 = vld [vmem:[%s12637_s4 + $0x764] ss:$8 sps:$4 sm:$0xff]   ;;  %v8867_v46 = vld [vmem:[%s12637_s4 + $0x760] ss:$8 sps:$4 sm:$0xff]  }
 0x333   :  { %4810 = vmatpush1.bf16.msra.mxu0 %v8828_v6  ;;  %v8872_v6 = vld [vmem:[%s12637_s4 + $0x774] ss:$8 sps:$4 sm:$0xff]  }
 0x334   :  { %4811 = vmatprep.subr.bf16.mxu0 %v8833_v49  ;;  %v8870_v49 = vld [vmem:[%s12637_s4 + $0x770] ss:$8 sps:$4 sm:$0xff]  }
 0x336   :  { %4771 = vmatmul.mubr.bf16.gmra.mrb[52].mxu0 %v12855_v17  ;;  %v12865_v17 = vld [vmem:[#allocation27_spill] sm:$0xff] }
 0x337   :  { %4780 = vmatprep.mubr.bf16.mxu0 %v10906_v57  ;;  %4812 = vmatpush1.bf16.msra.mxu0 %v8831_v16  ;;  %v8842_v57 = vld [vmem:[%s12637_s4 + $0x6d4] ss:$8 sps:$4 sm:$0xff]  }
 0x338   :  { %4813 = vmatprep.subr.bf16.mxu0 %v8836_v32  ;;  %v12864_v16 = vld [vmem:[#allocation26_spill] sm:$0xff]  ;;  %v8875_v32 = vld [vmem:[%s12637_s4 + $0x784] ss:$8 sps:$4 sm:$0xff]  }
 0x33b   :  { %4814 = vmatpush1.bf16.msra.mxu0 %v8834_v50  ;;  %v8873_v50 = vld [vmem:[%s12637_s4 + $0x780] ss:$8 sps:$4 sm:$0xff]  }
 0x33c   :  { %4815 = vmatprep.subr.bf16.mxu0 %v8839_v15  ;;  %v8878_v15 = vld [vmem:[%s12637_s4 + $0x794] ss:$8 sps:$4 sm:$0xff]  }
 0x33e   :  { %4781 = vmatmul.mubr.bf16.gmra.mrb[56].mxu0 %v12856_v4  ;;  %v8876_v4 = vld [vmem:[%s12637_s4 + $0x790] ss:$8 sps:$4 sm:$0xff]  }
 0x33f   :  { %4816 = vmatpush1.bf16.msra.mxu0 %v8837_v26  ;;  %4823 = vmatprep.mubr.bf16.mxu0 %v12857_v1  ;;  %v12866_v26 = vld [vmem:[#allocation28_spill] sm:$0xff]  ;;  %v8884_v1 = vld [vmem:[%s12637_s4 + $0x7b4] ss:$8 sps:$4 sm:$0xff]  }
 0x340   :  { %4817 = vmatprep.subr.bf16.mxu0 %v8842_v57  ;;  %v12867_v57 = vld [vmem:[#allocation29_spill] sm:$0xff] }
 0x343   :  { %4818 = vmatpush1.bf16.msra.mxu0 %v8840_v18  ;;  %v8881_v18 = vld [vmem:[%s12637_s4 + $0x7a4] ss:$8 sps:$4 sm:$0xff]  }
 0x344   :  { %4819 = vmatprep.subr.bf16.mxu0 %v8845_v39  ;;  %v8879_v39 = vld [vmem:[%s12637_s4 + $0x7a0] ss:$8 sps:$4 sm:$0xff]  }
 0x347   :  { %4820 = vmatpush1.bf16.msra.mxu0 %v8843_v20  ;;  %v8882_v20 = vld [vmem:[%s12637_s4 + $0x7b0] ss:$8 sps:$4 sm:$0xff]  }
 0x348   :  { %4821 = vmatprep.subr.bf16.mxu0 %v8848_v29  ;;  %v12870_v29 = vld [vmem:[#allocation32_spill] sm:$0xff] }
 0x34b   :  { %4822 = vmatpush1.bf16.msra.mxu0 %v8846_v5  ;;  %v8888_v5 = vld [vmem:[%s12637_s4 + $0x7d0] ss:$8 sps:$4 sm:$0xff]  }
 0x34c   :  { %4894 = vmatprep.subr.bf16.mxu0 %v8851_v62  ;;  %v8896_v62 = vld [vmem:[%s12637_s4 + $0x7f4] ss:$8 sps:$4 sm:$0xff]  }
 0x34e   :  { %4824 = vmatmul.mubr.bf16.vlgmr.msra.gmra.mrb[32].mxu0 %v12858_v43 }
 0x34f   :  { %4833 = vmatprep.mubr.bf16.mxu0 %v12859_v24  ;;  %4895 = vmatpush1.bf16.msra.mxu0 %v8849_v45 }
 0x350   :  { %4896 = vmatprep.subr.bf16.mxu0 %v8854_v41 }
 0x353   :  { %4897 = vmatpush1.bf16.msra.mxu0 %v8852_v19 }
 0x354   :  { %4898 = vmatprep.subr.bf16.mxu0 %v8857_v61 }
 0x356   :  { %4834 = vmatmul.mubr.bf16.gmra.mrb[36].mxu0 %v12860_v51 }
 0x357   :  { %4843 = vmatprep.mubr.bf16.mxu0 %v12861_v40  ;;  %4899 = vmatpush1.bf16.msra.mxu0 %v8855_v25 }
 0x358   :  { %4900 = vmatprep.subr.bf16.mxu0 %v8860_v2 }
 0x35b   :  { %4901 = vmatpush1.bf16.msra.mxu0 %v8858_v23 }
 0x35c   :  { %4902 = vmatprep.subr.bf16.mxu0 %v8863_v47 }
 0x35e   :  { %4844 = vmatmul.mubr.bf16.gmra.mrb[40].mxu0 %v12862_v55 }
 0x35f   :  { %4853 = vmatprep.mubr.bf16.mxu0 %v12863_v34  ;;  %4903 = vmatpush1.bf16.msra.mxu0 %v8861_v27 }
 0x360   :  { %4904 = vmatprep.subr.bf16.mxu0 %v8866_v33 }
 0x363   :  { %4905 = vmatpush1.bf16.msra.mxu0 %v8864_v7 }
 0x364   :  { %4906 = vmatprep.subr.bf16.mxu0 %v8869_v44 }
 0x366   :  { %4854 = vmatmul.mubr.bf16.gmra.mrb[44].mxu0 %v12864_v16  ;;  %v8914_v16 = vld [vmem:[%s12640_s7 + $0x80] sm:$0xff]  }
 0x367   :  { %4863 = vmatprep.mubr.bf16.mxu0 %v12865_v17  ;;  %4907 = vmatpush1.bf16.msra.mxu0 %v8867_v46 }
 0x368   :  { %4908 = vmatprep.subr.bf16.mxu0 %v8872_v6 }
 0x36b   :  { %4909 = vmatpush1.bf16.msra.mxu0 %v8870_v49 }
 0x36c   :  { %4910 = vmatprep.subr.bf16.mxu0 %v8875_v32 }
 0x36e   :  { %4864 = vmatmul.mubr.bf16.gmra.mrb[48].mxu0 %v12866_v26 }
 0x36f   :  { %4873 = vmatprep.mubr.bf16.mxu0 %v12867_v57  ;;  %4911 = vmatpush1.bf16.msra.mxu0 %v8873_v50  ;;  %v8915_v50 = vld [vmem:[%s12640_s7 + $0xc8] sm:$0xff]  }
 0x370   :  { %4912 = vmatprep.subr.bf16.mxu0 %v8878_v15 }
 0x373   :  { %4913 = vmatpush1.bf16.msra.mxu0 %v8876_v4 }
 0x374   :  { %4914 = vmatprep.subr.bf16.mxu0 %v8881_v18 }
 0x376   :  { %4874 = vmatmul.mubr.bf16.gmra.mrb[52].mxu0 %v12868_v0 }
 0x377   :  { %4883 = vmatprep.mubr.bf16.mxu0 %v12869_v58  ;;  %4915 = vmatpush1.bf16.msra.mxu0 %v8879_v39  ;;  %v8916_v39 = vld [vmem:[%s12640_s7 + $0x88] sm:$0xff]   ;;  %v8917_v58 = vld [vmem:[%s12640_s7 + $0xd0] sm:$0xff]  }
 0x378   :  { %4916 = vmatprep.subr.bf16.mxu0 %v8884_v1 }
 0x37b   :  { %4917 = vmatpush1.bf16.msra.mxu0 %v8882_v20 }
 0x37c   :  { %4918 = vmatprep.subr.bf16.mxu0 %v8887_v48 }
 0x37e   :  { %4884 = vmatmul.mubr.bf16.gmra.mrb[56].mxu0 %v12870_v29 }
 0x37f   :  { %4919 = vmatpush1.bf16.msra.mxu0 %v8885_v59  ;;  %4926 = vmatprep.mubr.bf16.mxu0 %v10940_v3  ;;  %v8894_v3 = vld [vmem:[%s12637_s4 + $0x7f0] ss:$8 sps:$4 sm:$0xff]  }
 0x380   :  { %4920 = vmatprep.subr.bf16.mxu0 %v8890_v11 }
 0x383   :  { %4921 = vmatpush1.bf16.msra.mxu0 %v8888_v5 }
 0x384   :  { %4922 = vmatprep.subr.bf16.mxu0 %v8893_v37 }
 0x387   :  { %4923 = vmatpush1.bf16.msra.mxu0 %v8891_v36 }
 0x388   :  { %4924 = vmatprep.subr.bf16.mxu0 %v8896_v62 }
 0x38b   :  { %4925 = vmatpush1.bf16.msra.mxu0 %v8894_v3 }
 0x38e   :  { %4927 = vmatmul.mubr.bf16.vlgmr.msra.gmra.mrb[32].mxu0 %v10948_v56  ;;  %v8911_v56 = vld [vmem:[%s12640_s7 + $0x78] sm:$0xff]  }
 0x38f   :  { %4936 = vmatprep.mubr.bf16.mxu0 %v10951_v8  ;;  %v8912_v8 = vld [vmem:[%s12640_s7 + $0x38] sm:$0xff]   ;;  %7684 = vmatprep.subr.bf16.mxu1 %v8911_v56 }
 0x390   :  { %7685 = vmatpush3.bf16.msra.mxu1 %v8912_v8 }
 0x396   :  { %4937 = vmatmul.mubr.bf16.gmra.mrb[36].mxu0 %v10960_v63  ;;  %v8913_v63 = vld [vmem:[%s12640_s7 + $0xc0] sm:$0xff]  }
 0x397   :  { %4946 = vmatprep.mubr.bf16.mxu0 %v10970_v35  ;;  %7728 = vmatprep.subr.bf16.mxu1 %v8913_v63  ;;  %v2349_v35 = vld [vmem:[%s12641_s5] sm:$0x3] }
 0x39e   :  { %4947 = vmatmul.mubr.bf16.gmra.mrb[40].mxu0 %v10979_v38  ;;  %v2350_v38 = vld [vmem:[%s12642_s6] sm:$0x3] }
 0x39f   :  { %4956 = vmatprep.mubr.bf16.mxu0 %v10993_v14  ;;  %v12871_v14 = vld [vmem:[#allocation3_spill] sm:$0xff] }
 0x3a6   :  { %4957 = vmatmul.mubr.bf16.gmra.mrb[44].mxu0 %v11001_v60  ;;  %v11631_v60 = vrot.slane %v2349_v35, %v12871_v14 }
 0x3a7   :  { %4966 = vmatprep.mubr.bf16.mxu0 %v11004_v52  ;;  %v12872_v52 = vld [vmem:[#allocation4_spill] sm:$0xff] }
 0x3ae   :  { %4967 = vmatmul.mubr.bf16.gmra.mrb[48].mxu0 %v11009_v42  ;;  %v11634_v42 = vrot.slane %v2349_v35, %v12872_v52 }
 0x3af   :  { %4976 = vmatprep.mubr.bf16.mxu0 %v11014_v28  ;;  %v11637_v28 = vrot.slane %v2350_v38, %v12871_v14 }
 0x3b6   :  { %4977 = vmatmul.mubr.bf16.gmra.mrb[52].mxu0 %v11017_v31 }
 0x3b7   :  { %4986 = vmatprep.mubr.bf16.mxu0 %v11028_v12  ;;  %v11640_v12 = vrot.slane %v2350_v38, %v12872_v52 }
 0x3be   :  { %4987 = vmatmul.mubr.bf16.gmra.mrb[56].mxu0 %v11037_v13 }
 0x461   :  { %v4928_v31 = vpop.f32.mrb[32].mxu0 }
 0x462   :  { %v5008_v13 = vmul.f32 %v11631_v60, %v4928_v31  ;;  %v4930_v45 = vpop.f32.mrb[33].mxu0 }
 0x463   :  { %v5009_v30 = vmul.f32 %v11634_v42, %v4930_v45  ;;  %v4932_v41 = vpop.f32.mrb[34].mxu0 }
 0x464   :  { %v5047_v53 = vadd.f32 %v11637_v28, %v5008_v13  ;;  %v5010_v19 = vmul.f32 %v11631_v60, %v4932_v41  ;;  %v4934_v9 = vpop.f32.mrb[35].mxu0 }
 0x465   :  { %v5048_v22 = vadd.f32 %v11640_v12, %v5009_v30  ;;  %v5011_v43 = vmul.f32 %v11634_v42, %v4934_v9 }
 0x466   :  { %v5103_v61 = vmul.f32 0.01, %v5047_v53  ;;  %v5049_v24 = vadd.f32 %v11637_v28, %v5010_v19  ;;  %vm5075_vm12 = vcmp.gt.f32.partialorder %v5047_v53, 0.0 }
 0x467   :  { %v5104_v21 = vmul.f32 0.01, %v5048_v22  ;;  %v5050_v25 = vadd.f32 %v11640_v12, %v5011_v43  ;;  %vm5076_vm13 = vcmp.gt.f32.partialorder %v5048_v22, 0.0  ;;  %v8919_v43 = vld [vmem:[%s12640_s7 + $0xd8] sm:$0xff]  }
 0x468   :  { %vm5077_vm14 = vcmp.gt.f32.partialorder %v5049_v24, 0.0  ;;  %v5105_v2 = vmul.f32 0.01, %v5049_v24  ;;  %v5131_v23 = vsel %vm5075_vm12, %v5047_v53, %v5103_v61  ;;  %v8918_v53 = vld [vmem:[%s12640_s7 + $0x90] sm:$0xff]  }
 0x469   :  { %vm5078_vm15 = vcmp.gt.f32.partialorder %v5050_v25, 0.0  ;;  %v5106_v54 = vmul.f32 0.01, %v5050_v25  ;;  %v4938_v10 = vpop.f32.mrb[36].mxu0  ;;  %v5132_v27 = vsel %vm5076_vm13, %v5048_v22, %v5104_v21 }
 0x46a   :  { %v5133_v51 = vsel %vm5077_vm14, %v5049_v24, %v5105_v2  ;;  %v5012_v47 = vmul.f32 %v11631_v60, %v4938_v10  ;;  %v4940_v40 = vpop.f32.mrb[37].mxu0 }
 0x46b   :  { %v11651_v33 = vpack.c.bf16 %v5133_v51, %v5131_v23  ;;  %v5134_v7 = vsel %vm5078_vm15, %v5050_v25, %v5106_v54  ;;  %v5013_v55 = vmul.f32 %v11634_v42, %v4940_v40  ;;  %v4942_v44 = vpop.f32.mrb[38].mxu0  ;;  %v8920_v40 = vld [vmem:[%s12640_s7 + $0x98] sm:$0xff]  }
 0x46c   :  { %v5051_v34 = vadd.f32 %v11637_v28, %v5012_v47  ;;  %v5014_v46 = vmul.f32 %v11631_v60, %v4942_v44  ;;  %v4944_v6 = vpop.f32.mrb[39].mxu0  ;;  %v11656_v49 = vpack.c.bf16 %v5134_v7, %v5132_v27  ;;  %v8921_v44 = vld [vmem:[%s12640_s7 + $0xe0] sm:$0xff]  }
 0x46d   :  { %v5052_v32 = vadd.f32 %v11640_v12, %v5013_v55  ;;  %v5015_v17 = vmul.f32 %v11634_v42, %v4944_v6  ;;  %v5306_v15 = vshll.u32 %v11651_v33, 16  ;;  %v5304_v20 = vshrl.u32 %v11651_v33, 16 }
 0x46e   :  { %vm5079_vm2 = vcmp.gt.f32.partialorder %v5051_v34, 0.0  ;;  %v5107_v26 = vmul.f32 0.01, %v5051_v34  ;;  %v5053_v57 = vadd.f32 %v11637_v28, %v5014_v46  ;;  %5965 = vmatprep.mubr.bf16.mxu1 %v11656_v49  ;;  %v5318_v1 = vshll.u32 %v11656_v49, 16 }
 0x46f   :  { %vm5080_vm3 = vcmp.gt.f32.partialorder %v5052_v32, 0.0  ;;  %v5108_v4 = vmul.f32 0.01, %v5052_v32  ;;  %v5054_v18 = vadd.f32 %v11640_v12, %v5015_v17  ;;  %5966 = vmatmul.mubr.bf16.vlgmr.msra.gmra.mrb[64].mxu1 %v11651_v33  ;;  %v5308_v48 = vrot.slane %v5306_v15, 1 }
 0x470   :  { %vm5081_vm6 = vcmp.gt.f32.partialorder %v5053_v57, 0.0  ;;  %v5109_v0 = vmul.f32 0.01, %v5053_v57  ;;  %7729 = vmatpush3.bf16.msra.mxu1 %v8914_v16  ;;  %v5316_v29 = vshrl.u32 %v11656_v49, 16  ;;  %v5320_v5 = vrot.slane %v5318_v1, 1 }
 0x471   :  { %vm5082_vm7 = vcmp.gt.f32.partialorder %v5054_v18, 0.0  ;;  %v5110_v59 = vmul.f32 0.01, %v5054_v18  ;;  %v4948_v11 = vpop.f32.mrb[40].mxu0  ;;  %7730 = vmatprep.subr.bf16.mxu1 %v8915_v50  ;;  %v5135_v37 = vsel %vm5079_vm2, %v5051_v34, %v5107_v26  ;;  %v5136_v36 = vsel %vm5080_vm3, %v5052_v32, %v5108_v4 }
 0x472   :  { %v5137_v62 = vsel %vm5081_vm6, %v5053_v57, %v5109_v0  ;;  %v5016_v3 = vmul.f32 %v11631_v60, %v4948_v11  ;;  %v4950_v56 = vpop.f32.mrb[41].mxu0  ;;  %v5309_v31 = vor.u32 %v5308_v48, %v5304_v20  ;;  %v5444_v19 = vrot.slane %v11656_v49, 4  ;;  %v8922_v11 = vld [vmem:[%s12640_s7 + $0xa0] sm:$0xff]  }
 0x473   :  { %v5138_v8 = vsel %vm5082_vm7, %v5054_v18, %v5110_v59  ;;  %v5017_v63 = vmul.f32 %v11634_v42, %v4950_v56  ;;  %v4952_v35 = vpop.f32.mrb[42].mxu0  ;;  %v11688_v38 = vpack.c.bf16 %v5137_v62, %v5135_v37  ;;  %v5321_v61 = vor.u32 %v5320_v5, %v5316_v29  ;;  %v8923_v62 = vld [vmem:[%s12640_s7 + $0xe8] sm:$0xff]  }
 0x474   :  { %v5055_v13 = vadd.f32 %v11637_v28, %v5016_v3  ;;  %v5018_v45 = vmul.f32 %v11631_v60, %v4952_v35  ;;  %v4954_v30 = vpop.f32.mrb[43].mxu0  ;;  %v11694_v41 = vpack.c.bf16 %v5138_v8, %v5136_v36  ;;  %7731 = vmatpush3.bf16.msra.mxu1 %v8916_v39  ;;  %v5441_v54 = vrot.slane %v11651_v33, 4  ;;  %v8932_v33 = vld [vmem:[%s12640_s7 + $0x108] sm:$0xff]  }
 0x475   :  { %v5056_v9 = vadd.f32 %v11640_v12, %v5017_v63  ;;  %v5019_v22 = vmul.f32 %v11634_v42, %v4954_v30  ;;  %7732 = vmatprep.subr.bf16.mxu1 %v8917_v58  ;;  %v5311_v24 = vshll.u32 %v11688_v38, 16  ;;  %v5327_v46 = vshrl.u32 %v11688_v38, 16 }
 0x476   :  { %v5111_v21 = vmul.f32 0.01, %v5055_v13  ;;  %v5057_v25 = vadd.f32 %v11637_v28, %v5018_v45  ;;  %5973 = vmatprep.mubr.bf16.mxu1 %v11694_v41  ;;  %v5323_v2 = vshll.u32 %v11694_v41, 16  ;;  %vm5083_vm8 = vcmp.gt.f32.partialorder %v5055_v13, 0.0 }
 0x477   :  { %v5112_v10 = vmul.f32 0.01, %v5056_v9  ;;  %v5058_v23 = vadd.f32 %v11640_v12, %v5019_v22  ;;  %5974 = vmatmul.mubr.bf16.gmra.mrb[68].mxu1 %v11688_v38  ;;  %v5313_v51 = vrot.slane %v5311_v24, 1  ;;  %vm5084_vm9 = vcmp.gt.f32.partialorder %v5056_v9, 0.0 }
 0x478   :  { %vm5085_vm10 = vcmp.gt.f32.partialorder %v5057_v25, 0.0  ;;  %v5113_v47 = vmul.f32 0.01, %v5057_v25  ;;  %7733 = vmatpush3.bf16.msra.mxu1 %v8918_v53  ;;  %v5325_v27 = vrot.slane %v5323_v2, 1  ;;  %v5139_v6 = vsel %vm5083_vm8, %v5055_v13, %v5111_v21  ;;  %v8924_v53 = vld [vmem:[%s12640_s7 + $0xa8] sm:$0xff]  }
 0x479   :  { %vm5086_vm11 = vcmp.gt.f32.partialorder %v5058_v23, 0.0  ;;  %v5114_v7 = vmul.f32 0.01, %v5058_v23  ;;  %v4958_v55 = vpop.f32.mrb[44].mxu0  ;;  %7734 = vmatprep.subr.bf16.mxu1 %v8919_v43  ;;  %v11725_v34 = vsel %vm173_vm0, %v5309_v31, %v5313_v51  ;;  %v5140_v26 = vsel %vm5084_vm9, %v5056_v9, %v5112_v10 }
 0x47a   :  { %v5141_v16 = vsel %vm5085_vm10, %v5057_v25, %v5113_v47  ;;  %v5020_v32 = vmul.f32 %v11631_v60, %v4958_v55  ;;  %v4960_v17 = vpop.f32.mrb[45].mxu0  ;;  %v11731_v50 = vsel %vm173_vm0, %v5321_v61, %v5325_v27  ;;  %v5335_v5 = vshrl.u32 %v11694_v41, 16  ;;  %v8925_v25 = vld [vmem:[%s12640_s7 + $0xf0] sm:$0xff]  }
 0x47b   :  { %v5142_v57 = vsel %vm5086_vm11, %v5058_v23, %v5114_v7  ;;  %v5021_v4 = vmul.f32 %v11634_v42, %v4960_v17  ;;  %v4962_v18 = vpop.f32.mrb[46].mxu0  ;;  %v11735_v39 = vpack.c.bf16 %v5141_v16, %v5139_v6  ;;  %v5329_v3 = vor.u32 %v5327_v46, %v5313_v51 }
 0x47c   :  { %v5059_v0 = vadd.f32 %v11637_v28, %v5020_v32  ;;  %v5022_v58 = vmul.f32 %v11631_v60, %v4962_v18  ;;  %v4964_v48 = vpop.f32.mrb[47].mxu0  ;;  %v11739_v59 = vpack.c.bf16 %v5142_v57, %v5140_v26  ;;  %7735 = vmatpush3.bf16.msra.mxu1 %v8920_v40  ;;  %v5337_v9 = vor.u32 %v5335_v5, %v5325_v27 }
 0x47d   :  { %v5060_v37 = vadd.f32 %v11640_v12, %v5021_v4  ;;  %v5023_v36 = vmul.f32 %v11634_v42, %v4964_v48  ;;  %7736 = vmatprep.subr.bf16.mxu1 %v8921_v44  ;;  %v12721_v56 = vshll.u32 %v11735_v39, 16  ;;  %v5343_v16 = vshrl.u32 %v11735_v39, 16  ;;  %v8926_v4 = vld [vmem:[%s12640_s7 + $0xb0] sm:$0xff]   ;;  %v8927_v48 = vld [vmem:[%s12640_s7 + $0xf8] sm:$0xff]  }
 0x47e   :  { %vm5087_vm12 = vcmp.gt.f32.partialorder %v5059_v0, 0.0  ;;  %v5115_v8 = vmul.f32 0.01, %v5059_v0  ;;  %v5061_v63 = vadd.f32 %v11637_v28, %v5022_v58  ;;  %5981 = vmatprep.mubr.bf16.mxu1 %v11739_v59  ;;  %v5339_v35 = vshll.u32 %v11739_v59, 16 }
 0x47f   :  { %vm5088_vm13 = vcmp.gt.f32.partialorder %v5060_v37, 0.0  ;;  %v5116_v31 = vmul.f32 0.01, %v5060_v37  ;;  %v5062_v13 = vadd.f32 %v11640_v12, %v5023_v36  ;;  %5982 = vmatmul.mubr.bf16.gmra.mrb[72].mxu1 %v11735_v39  ;;  %v5333_v45 = vrot.slane %v12721_v56, 1 }
 0x480   :  { %vm5089_vm14 = vcmp.gt.f32.partialorder %v5061_v63, 0.0  ;;  %v5117_v30 = vmul.f32 0.01, %v5061_v63  ;;  %7737 = vmatpush3.bf16.msra.mxu1 %v8922_v11  ;;  %v5341_v22 = vrot.slane %v5339_v35, 1  ;;  %v5143_v43 = vsel %vm5087_vm12, %v5059_v0, %v5115_v8 }
 0x481   :  { %vm5090_vm15 = vcmp.gt.f32.partialorder %v5062_v13, 0.0  ;;  %v5118_v61 = vmul.f32 0.01, %v5062_v13  ;;  %v4968_v21 = vpop.f32.mrb[48].mxu0  ;;  %7738 = vmatprep.subr.bf16.mxu1 %v8923_v62  ;;  %v11772_v10 = vsel %vm173_vm0, %v5329_v3, %v5333_v45  ;;  %v5144_v23 = vsel %vm5088_vm13, %v5060_v37, %v5116_v31 }
 0x482   :  { %v5145_v51 = vsel %vm5089_vm14, %v5061_v63, %v5117_v30  ;;  %v5024_v47 = vmul.f32 %v11631_v60, %v4968_v21  ;;  %v4970_v40 = vpop.f32.mrb[49].mxu0  ;;  %v11777_v27 = vsel %vm173_vm0, %v5337_v9, %v5341_v22  ;;  %v5351_v18 = vshrl.u32 %v11739_v59, 16  ;;  %v8929_v21 = vld [vmem:[%s12640_s7 + $0x140] sm:$0xff]  }
 0x483   :  { %v5146_v7 = vsel %vm5090_vm15, %v5062_v13, %v5118_v61  ;;  %v5025_v55 = vmul.f32 %v11634_v42, %v4970_v40  ;;  %v4972_v44 = vpop.f32.mrb[50].mxu0  ;;  %v11780_v6 = vpack.c.bf16 %v5145_v51, %v5143_v43  ;;  %v5345_v11 = vor.u32 %v5343_v16, %v5333_v45  ;;  %v8928_v45 = vld [vmem:[%s12640_s7 + $0xb8] sm:$0xff]  }
 0x484   :  { %v5063_v32 = vadd.f32 %v11637_v28, %v5024_v47  ;;  %v5026_v17 = vmul.f32 %v11631_v60, %v4972_v44  ;;  %v4974_v26 = vpop.f32.mrb[51].mxu0  ;;  %v11785_v57 = vpack.c.bf16 %v5146_v7, %v5144_v23  ;;  %7739 = vmatpush3.bf16.msra.mxu1 %v8924_v53  ;;  %v5353_v30 = vor.u32 %v5351_v18, %v5341_v22 }
 0x485   :  { %v5064_v0 = vadd.f32 %v11640_v12, %v5025_v55  ;;  %v5027_v58 = vmul.f32 %v11634_v42, %v4974_v26  ;;  %7740 = vmatprep.subr.bf16.mxu1 %v8925_v25  ;;  %v12717_v37 = vshll.u32 %v11780_v6, 16 }
 0x486   :  { %vm5091_vm2 = vcmp.gt.f32.partialorder %v5063_v32, 0.0  ;;  %v5119_v36 = vmul.f32 0.01, %v5063_v32  ;;  %v5065_v62 = vadd.f32 %v11637_v28, %v5026_v17  ;;  %5989 = vmatprep.mubr.bf16.mxu1 %v11785_v57  ;;  %v12719_v3 = vshll.u32 %v11785_v57, 16 }
 0x487   :  { %vm5092_vm3 = vcmp.gt.f32.partialorder %v5064_v0, 0.0  ;;  %v5120_v8 = vmul.f32 0.01, %v5064_v0  ;;  %v5066_v63 = vadd.f32 %v11640_v12, %v5027_v58  ;;  %5990 = vmatmul.mubr.bf16.gmra.mrb[76].mxu1 %v11780_v6  ;;  %v5349_v31 = vrot.slane %v12717_v37, 1 }
 0x488   :  { %vm5093_vm6 = vcmp.gt.f32.partialorder %v5065_v62, 0.0  ;;  %v5121_v13 = vmul.f32 0.01, %v5065_v62  ;;  %7741 = vmatpush3.bf16.msra.mxu1 %v8926_v4  ;;  %v5357_v53 = vrot.slane %v12719_v3, 1  ;;  %v5147_v9 = vsel %vm5091_vm2, %v5063_v32, %v5119_v36  ;;  %v8931_v3 = vld [vmem:[%s12640_s7 + $0x148] sm:$0xff]  }
 0x489   :  { %vm5094_vm7 = vcmp.gt.f32.partialorder %v5066_v63, 0.0  ;;  %v5122_v43 = vmul.f32 0.01, %v5066_v63  ;;  %v4978_v61 = vpop.f32.mrb[52].mxu0  ;;  %7742 = vmatprep.subr.bf16.mxu1 %v8927_v48  ;;  %v11818_v25 = vsel %vm173_vm0, %v5345_v11, %v5349_v31  ;;  %v5148_v23 = vsel %vm5092_vm3, %v5064_v0, %v5120_v8 }
 0x48a   :  { %v5149_v51 = vsel %vm5093_vm6, %v5065_v62, %v5121_v13  ;;  %v5028_v22 = vmul.f32 %v11631_v60, %v4978_v61  ;;  %v4980_v47 = vpop.f32.mrb[53].mxu0  ;;  %v11823_v40 = vsel %vm173_vm0, %v5353_v30, %v5357_v53  ;;  %v12718_v17 = vshrl.u32 %v11780_v6, 16 }
 0x48b   :  { %v5150_v7 = vsel %vm5094_vm7, %v5066_v63, %v5122_v43  ;;  %v5029_v55 = vmul.f32 %v11634_v42, %v4980_v47  ;;  %v4982_v44 = vpop.f32.mrb[54].mxu0  ;;  %v11826_v32 = vpack.c.bf16 %v5149_v51, %v5147_v9  ;;  %v12720_v48 = vshrl.u32 %v11785_v57, 16 }
 0x48c   :  { %v5067_v26 = vadd.f32 %v11637_v28, %v5028_v22  ;;  %v5030_v4 = vmul.f32 %v11631_v60, %v4982_v44  ;;  %v4984_v0 = vpop.f32.mrb[55].mxu0  ;;  %v11831_v58 = vpack.c.bf16 %v5150_v7, %v5148_v23  ;;  %7743 = vmatpush3.bf16.msra.mxu1 %v8928_v45  ;;  %v5361_v62 = vor.u32 %v12718_v17, %v5349_v31 }
 0x48d   :  { %v5068_v11 = vadd.f32 %v11640_v12, %v5029_v55  ;;  %v5031_v36 = vmul.f32 %v11634_v42, %v4984_v0  ;;  %7786 = vmatprep.subr.bf16.mxu1 %v8929_v21  ;;  %v12705_v8 = vshll.u32 %v11826_v32, 16  ;;  %v5369_v61 = vor.u32 %v12720_v48, %v5357_v53 }
 0x48e   :  { %vm5095_vm8 = vcmp.gt.f32.partialorder %v5067_v26, 0.0  ;;  %v5123_v63 = vmul.f32 0.01, %v5067_v26  ;;  %v5069_v13 = vadd.f32 %v11637_v28, %v5030_v4  ;;  %5997 = vmatprep.mubr.bf16.mxu1 %v11831_v58  ;;  %v12706_v45 = vshll.u32 %v11831_v58, 16 }
 0x48f   :  { %vm5096_vm9 = vcmp.gt.f32.partialorder %v5068_v11, 0.0  ;;  %v5124_v30 = vmul.f32 0.01, %v5068_v11  ;;  %v5070_v9 = vadd.f32 %v11640_v12, %v5031_v36  ;;  %5998 = vmatmul.mubr.bf16.gmra.mrb[80].mxu1 %v11826_v32  ;;  %v5365_v43 = vrot.slane %v12705_v8, 1 }
 0x490   :  { %vm5097_vm10 = vcmp.gt.f32.partialorder %v5069_v13, 0.0  ;;  %v5125_v31 = vmul.f32 0.01, %v5069_v13  ;;  %v5373_v21 = vrot.slane %v12706_v45, 1  ;;  %v5151_v23 = vsel %vm5095_vm8, %v5067_v26, %v5123_v63 }
 0x491   :  { %vm5098_vm11 = vcmp.gt.f32.partialorder %v5070_v9, 0.0  ;;  %v5126_v51 = vmul.f32 0.01, %v5070_v9  ;;  %v4988_v22 = vpop.f32.mrb[56].mxu0  ;;  %v11851_v47 = vsel %vm173_vm0, %v5361_v62, %v5365_v43  ;;  %v5152_v7 = vsel %vm5096_vm9, %v5068_v11, %v5124_v30 }
 0x492   :  { %v5153_v55 = vsel %vm5097_vm10, %v5069_v13, %v5125_v31  ;;  %v5032_v44 = vmul.f32 %v11631_v60, %v4988_v22  ;;  %v4990_v4 = vpop.f32.mrb[57].mxu0  ;;  %v11855_v0 = vsel %vm173_vm0, %v5369_v61, %v5373_v21  ;;  %v12709_v26 = vshrl.u32 %v11826_v32, 16 }
 0x493   :  { %v5154_v36 = vsel %vm5098_vm11, %v5070_v9, %v5126_v51  ;;  %v5033_v53 = vmul.f32 %v11634_v42, %v4990_v4  ;;  %v4992_v8 = vpop.f32.mrb[58].mxu0  ;;  %v11858_v45 = vpack.c.bf16 %v5153_v55, %v5151_v23  ;;  %v12715_v30 = vshrl.u32 %v11831_v58, 16 }
 0x494   :  { %v5071_v63 = vadd.f32 %v11637_v28, %v5032_v44  ;;  %v5034_v62 = vmul.f32 %v11631_v60, %v4992_v8  ;;  %v4994_v11 = vpop.f32.mrb[59].mxu0  ;;  %v11863_v13 = vpack.c.bf16 %v5154_v36, %v5152_v7  ;;  %v5377_v61 = vor.u32 %v12709_v26, %v5365_v43 }
 0x495   :  { %v5072_v31 = vadd.f32 %v11640_v12, %v5033_v53  ;;  %v5035_v9 = vmul.f32 %v11634_v42, %v4994_v11  ;;  %v12707_v23 = vshll.u32 %v11858_v45, 16  ;;  %v5385_v55 = vor.u32 %v12715_v30, %v5373_v21 }
 0x496   :  { %vm5099_vm12 = vcmp.gt.f32.partialorder %v5071_v63, 0.0  ;;  %v5127_v51 = vmul.f32 0.01, %v5071_v63  ;;  %v5073_v22 = vadd.f32 %v11637_v28, %v5034_v62  ;;  %6005 = vmatprep.mubr.bf16.mxu1 %v11863_v13  ;;  %v12708_v60 = vshll.u32 %v11863_v13, 16 }
 0x497   :  { %vm5100_vm13 = vcmp.gt.f32.partialorder %v5072_v31, 0.0  ;;  %v5128_v8 = vmul.f32 0.01, %v5072_v31  ;;  %v5074_v7 = vadd.f32 %v11640_v12, %v5035_v9  ;;  %6006 = vmatmul.mubr.bf16.gmra.mrb[84].mxu1 %v11858_v45  ;;  %v5381_v42 = vrot.slane %v12707_v23, 1 }
 0x498   :  { %vm5101_vm14 = vcmp.gt.f32.partialorder %v5073_v22, 0.0  ;;  %v5129_v43 = vmul.f32 0.01, %v5073_v22  ;;  %v5389_v28 = vrot.slane %v12708_v60, 1  ;;  %v11884_v4 = vrot.slane %v5327_v46, 4 }
 0x499   :  { %vm5102_vm15 = vcmp.gt.f32.partialorder %v5074_v7, 0.0  ;;  %v5130_v44 = vmul.f32 0.01, %v5074_v7  ;;  %v11887_v12 = vsel %vm173_vm0, %v5377_v61, %v5381_v42  ;;  %v5155_v36 = vsel %vm5099_vm12, %v5071_v63, %v5127_v51 }
 0x49a   :  { %v5156_v53 = vsel %vm5100_vm13, %v5072_v31, %v5128_v8  ;;  %v5157_v62 = vsel %vm5101_vm14, %v5073_v22, %v5129_v43  ;;  %v11891_v11 = vsel %vm173_vm0, %v5385_v55, %v5389_v28  ;;  %v5445_v23 = vrot.slane %v11694_v41, 4 }
 0x49b   :  { %v5158_v21 = vsel %vm5102_vm15, %v5074_v7, %v5130_v44  ;;  %v11893_v9 = vpack.c.bf16 %v5157_v62, %v5155_v36  ;;  %v5442_v60 = vrot.slane %v11688_v38, 4  ;;  %v12714_v46 = vshrl.u32 %v11863_v13, 16 }
 0x49c   :  { %v11897_v26 = vpack.c.bf16 %v5158_v21, %v5156_v53  ;;  %v12711_v61 = vshrl.u32 %v11858_v45, 16  ;;  %v5449_v63 = vrot.slane %v11739_v59, 4  ;;  %v11907_v22 = vsel %vm2631_vm4, %v5444_v19, %v5445_v23  ;;  %v8933_v59 = vld [vmem:[%s12640_s7 + $0x150] sm:$0xff]  }
 0x49d   :  { %v12710_v31 = vshll.u32 %v11893_v9, 16  ;;  %v12713_v51 = vshrl.u32 %v11893_v9, 16  ;;  %v11912_v8 = vsel %vm2631_vm4, %v5441_v54, %v5442_v60  ;;  %v5447_v44 = vrot.slane %v11735_v39, 4 }
 0x49e   :  { %6013 = vmatprep.mubr.bf16.mxu1 %v11897_v26  ;;  %v12712_v7 = vshll.u32 %v11897_v26, 16  ;;  %v12716_v43 = vshrl.u32 %v11897_v26, 16  ;;  %v11918_v55 = vsel %vm2631_vm4, %v5445_v23, %v5449_v63  ;;  %v5393_v19 = vor.u32 %v12711_v61, %v5381_v42 }
 0x49f   :  { %6014 = vmatmul.mubr.bf16.gmra.mrb[88].mxu1 %v11893_v9  ;;  %v11926_v54 = vrot.slane %v12710_v31, 1  ;;  %v5453_v36 = vrot.slane %v11785_v57, 4  ;;  %v5451_v53 = vrot.slane %v11780_v6, 4  ;;  %v5401_v23 = vor.u32 %v12714_v46, %v5389_v28 }
 0x4a0   :  { %6053 = vmatprep.mubr.bf16.mxu1 %v11731_v50  ;;  %v11935_v62 = vrot.slane %v12712_v7, 1  ;;  %v11938_v21 = vsel %vm2631_vm4, %v5442_v60, %v5447_v44  ;;  %v5457_v42 = vrot.slane %v11831_v58, 4  ;;  %v11947_v61 = vrot.slane %v12713_v51, 4 }
 0x4a1   :  { %v11943_v31 = vsel %vm173_vm0, %v5393_v19, %v11926_v54  ;;  %v11950_v50 = vsel %vm2631_vm4, %v5449_v63, %v5453_v36  ;;  %v11953_v28 = vsel %vm2631_vm4, %v5447_v44, %v5451_v53  ;;  %v11961_v7 = vrot.slane %v12716_v43, 4 }
 0x4a2   :  { %v11957_v60 = vsel %vm173_vm0, %v5401_v23, %v11935_v62  ;;  %v11964_v19 = vsel %vm2631_vm4, %v5453_v36, %v5457_v42  ;;  %v5455_v51 = vrot.slane %v11826_v32, 4  ;;  %v5461_v46 = vrot.slane %v11863_v13, 4  ;;  %v8930_v23 = vld [vmem:[%s12640_s7 + $0x100] sm:$0xff]  }
 0x4a3   :  { %v5459_v63 = vrot.slane %v11858_v45, 4  ;;  %v5465_v44 = vrot.slane %v11897_v26, 4  ;;  %v5463_v30 = vrot.slane %v11893_v9, 4  ;;  %v5488_v36 = vrot.slane %v5316_v29, 4 }
 0x4a4   :  { %v11975_v43 = vsel %vm2631_vm4, %v5451_v53, %v5455_v51  ;;  %v5489_v37 = vrot.slane %v5318_v1, 5  ;;  %v5491_v17 = vrot.slane %v5335_v5, 4  ;;  %v11987_v48 = vsel %vm2631_vm4, %v5457_v42, %v5461_v46 }
 0x4a5   :  { %v11990_v56 = vsel %vm2631_vm4, %v5455_v51, %v5459_v63  ;;  %v11995_v29 = vsel %vm2631_vm4, %v5461_v46, %v5465_v44  ;;  %v12000_v49 = vsel %vm2631_vm4, %v5459_v63, %v5463_v30  ;;  %v5492_v5 = vrot.slane %v5323_v2, 5 }
 0x4a6   :  { %v5490_v1 = vor.u32 %v5489_v37, %v5488_v36  ;;  %v5481_v53 = vrot.slane %v5304_v20, 4  ;;  %v5482_v51 = vrot.slane %v5306_v15, 5  ;;  %v5485_v46 = vrot.slane %v5311_v24, 5 }
 0x4a7   :  { %6054 = vmatmul.mubr.bf16.vlgmr.msra.gmra.mrb[92].mxu1 %v11725_v34  ;;  %v5499_v42 = vrot.slane %v5351_v18, 4  ;;  %v5500_v37 = vrot.slane %v5339_v35, 5  ;;  %v5495_v41 = vrot.slane %v5343_v16, 4  ;;  %v5493_v15 = vor.u32 %v5492_v5, %v5491_v17 }
 0x4a8   :  { %6061 = vmatprep.mubr.bf16.mxu1 %v11777_v27  ;;  %7787 = vmatpush3.bf16.msra.mxu1 %v8930_v23  ;;  %v5483_v20 = vor.u32 %v5482_v51, %v5481_v53  ;;  %v12873_v38 = vshll.u32 %v11735_v39, 16  ;;  %v12874_v2 = vshrl.u32 %v11785_v57, 16  ;;  %v5486_v35 = vor.u32 %v5485_v46, %v11884_v4 }
 0x4a9   :  { %7788 = vmatprep.subr.bf16.mxu1 %v8931_v3  ;;  %v5501_v27 = vor.u32 %v5500_v37, %v5499_v42  ;;  %v12875_v16 = vshll.u32 %v11785_v57, 16  ;;  %v12876_v17 = vshrl.u32 %v11780_v6, 16  ;;  %v12034_v39 = vsel %vm2720_vm5, %v5490_v1, %v5493_v15  ;;  %v8934_v1 = vld [vmem:[%s12640_s7 + $0x110] sm:$0xff]  }
 0x4aa   :  { %v5496_v24 = vrot.slane %v12873_v38, 5  ;;  %v5507_v34 = vrot.slane %v12874_v2, 4  ;;  %v12877_v36 = vshll.u32 %v11780_v6, 16  ;;  %v12878_v5 = vshrl.u32 %v11831_v58, 16 }
 0x4ab   :  { %v5508_v18 = vrot.slane %v12875_v16, 5  ;;  %v5503_v63 = vrot.slane %v12876_v17, 4  ;;  %v12041_v51 = vsel %vm2720_vm5, %v5483_v20, %v5486_v35  ;;  %v12044_v4 = vsel %vm2720_vm5, %v5493_v15, %v5501_v27 }
 0x4ac   :  { %v5497_v23 = vor.u32 %v5496_v24, %v5495_v41  ;;  %v5504_v3 = vrot.slane %v12877_v36, 5  ;;  %v5515_v53 = vrot.slane %v12878_v5, 4  ;;  %v12879_v46 = vshll.u32 %v11831_v58, 16  ;;  %7789 = vmatpush3.bf16.msra.mxu1 %v8932_v33  ;;  %v8935_v58 = vld [vmem:[%s12640_s7 + $0x158] sm:$0xff]  }
 0x4ad   :  { %v5509_v57 = vor.u32 %v5508_v18, %v5507_v34  ;;  %v12880_v41 = vshrl.u32 %v11826_v32, 16  ;;  %v12881_v38 = vshll.u32 %v11826_v32, 16  ;;  %7790 = vmatprep.subr.bf16.mxu1 %v8933_v59  ;;  %v12882_v2 = vshrl.u32 %v11863_v13, 16 }
 0x4ae   :  { %v5516_v42 = vrot.slane %v12879_v46, 5  ;;  %v12052_v6 = vsel %vm2720_vm5, %v5486_v35, %v5497_v23  ;;  %v5505_v37 = vor.u32 %v5504_v3, %v5503_v63  ;;  %v12883_v35 = vshll.u32 %v11863_v13, 16 }
 0x4af   :  { %v5511_v20 = vrot.slane %v12880_v41, 4  ;;  %v5512_v15 = vrot.slane %v12881_v38, 5  ;;  %v12062_v33 = vsel %vm2720_vm5, %v5501_v27, %v5509_v57  ;;  %v5523_v34 = vrot.slane %v12882_v2, 4  ;;  %6062 = vmatmul.mubr.bf16.gmra.mrb[96].mxu1 %v11772_v10  ;;  %v8940_v38 = vld [vmem:[%s12640_s7 + $0x128] sm:$0xff]  }
 0x4b0   :  { %v5517_v24 = vor.u32 %v5516_v42, %v5515_v53  ;;  %v5524_v16 = vrot.slane %v12883_v35, 5  ;;  %v12069_v18 = vsel %vm2720_vm5, %v5497_v23, %v5505_v37  ;;  %v12884_v59 = vshrl.u32 %v11858_v45, 16  ;;  %6069 = vmatprep.mubr.bf16.mxu1 %v11823_v40  ;;  %7791 = vmatpush3.bf16.msra.mxu1 %v8934_v1  ;;  %v8954_v35 = vld [vmem:[%s12640_s7 + $0x1a0] sm:$0xff]  }
 0x4b1   :  { %v5513_v32 = vor.u32 %v5512_v15, %v5511_v20  ;;  %v12885_v63 = vshll.u32 %v11858_v45, 16  ;;  %v12886_v5 = vshll.u32 %v11897_v26, 16  ;;  %v12887_v53 = vshll.u32 %v11893_v9, 16  ;;  %v8936_v45 = vld [vmem:[%s12640_s7 + $0x118] sm:$0xff]   ;;  %7792 = vmatprep.subr.bf16.mxu1 %v8935_v58  ;;  %v8941_v15 = vld [vmem:[%s12640_s7 + $0x170] sm:$0xff]  }
 0x4b2   :  { %v5519_v17 = vrot.slane %v12884_v59, 4  ;;  %v12077_v27 = vsel %vm2720_vm5, %v5509_v57, %v5517_v24  ;;  %v5525_v3 = vor.u32 %v5524_v16, %v5523_v34  ;;  %v8937_v57 = vld [vmem:[%s12640_s7 + $0x160] sm:$0xff]   ;;  %v8942_v58 = vld [vmem:[%s12640_s7 + $0x130] sm:$0xff]   ;;  %v12889_v2 = vshrl.u32 %v11893_v9, 16 }
 0x4b3   :  { %v5520_v36 = vrot.slane %v12885_v63, 5  ;;  %v5532_v13 = vrot.slane %v12886_v5, 5  ;;  %v5528_v23 = vrot.slane %v12887_v53, 5  ;;  %v12088_v46 = vsel %vm2720_vm5, %v5505_v37, %v5513_v32  ;;  %v8957_v16 = vld [vmem:[%s12640_s7 + $0x1f0] sm:$0xff]   ;;  %v8964_v5 = vld [vmem:[%s12643_s10 + $0x8] sm:$0xff]  }
 0x4b4   :  { %v12094_v42 = vsel %vm2720_vm5, %v5517_v24, %v5525_v3  ;;  %7793 = vmatpush3.bf16.msra.mxu1 %v8936_v45  ;;  %v8945_v24 = vld [vmem:[%s12640_s7 + $0x1c0] sm:$0xff]   ;;  %v5409_v34 = vor.u32 %v12889_v2, %v11926_v54  ;;  %v8950_v54 = vld [vmem:[%s12640_s7 + $0x190] sm:$0xff]  }
 0x4b5   :  { %v5521_v10 = vor.u32 %v5520_v36, %v5519_v17  ;;  %v12097_v41 = vor.u32 %v5532_v13, %v11961_v7  ;;  %v12100_v40 = vor.u32 %v5528_v23, %v11947_v61  ;;  %v8938_v7 = vld [vmem:[%s12640_s7 + $0x120] sm:$0xff]   ;;  %7794 = vmatprep.subr.bf16.mxu1 %v8937_v57  ;;  %v8939_v61 = vld [vmem:[%s12640_s7 + $0x168] sm:$0xff]   ;;  %v8965_v57 = vld [vmem:[%s12643_s10 + $0x50] sm:$0xff]  }
 0x4b7   :  { %v12103_v1 = vsel %vm2720_vm5, %v5513_v32, %v5521_v10  ;;  %v12107_v37 = vsel %vm2720_vm5, %v5525_v3, %v12097_v41  ;;  %v12111_v20 = vsel %vm2720_vm5, %v5521_v10, %v12100_v40  ;;  %6070 = vmatmul.mubr.bf16.gmra.mrb[100].mxu1 %v11818_v25  ;;  %v8943_v25 = vld [vmem:[%s12640_s7 + $0x178] sm:$0xff]   ;;  %v8958_v32 = vld [vmem:[%s12640_s7 + $0x1b0] sm:$0xff]   ;;  %v8963_v3 = vld [vmem:[%s12643_s10 + $0x48] sm:$0xff]  }
 0x4b8   :  { %6077 = vmatprep.mubr.bf16.mxu1 %v11855_v0  ;;  %7795 = vmatpush3.bf16.msra.mxu1 %v8938_v7  ;;  %v8944_v0 = vld [vmem:[%s12640_s7 + $0x138] sm:$0xff]  }
 0x4b9   :  { %7796 = vmatprep.subr.bf16.mxu1 %v8939_v61  ;;  %v8967_v61 = vld [vmem:[%s12643_s10 + $0x58] sm:$0xff]  }
 0x4bc   :  { %7797 = vmatpush3.bf16.msra.mxu1 %v8940_v38  ;;  %v8968_v38 = vld [vmem:[%s12643_s10 + $0x18] sm:$0xff]  }
 0x4bd   :  { %7798 = vmatprep.subr.bf16.mxu1 %v8941_v15 }
 0x4bf   :  { %6078 = vmatmul.mubr.bf16.gmra.mrb[104].mxu1 %v11851_v47  ;;  %v12888_v47 = vshrl.u32 %v11897_v26, 16 }
 0x4c0   :  { %6085 = vmatprep.mubr.bf16.mxu1 %v11891_v11  ;;  %7799 = vmatpush3.bf16.msra.mxu1 %v8942_v58 }
 0x4c1   :  { %7800 = vmatprep.subr.bf16.mxu1 %v8943_v25  ;;  %v5412_v11 = vor.u32 %v12888_v47, %v11935_v62  ;;  %v8953_v62 = vld [vmem:[%s12640_s7 + $0x1e0] sm:$0xff]  }
 0x4c4   :  { %7801 = vmatpush3.bf16.msra.mxu1 %v8944_v0 }
 0x4c5   :  { %7844 = vmatprep.subr.bf16.mxu1 %v8945_v24 }
 0x4c7   :  { %6086 = vmatmul.mubr.bf16.gmra.mrb[108].mxu1 %v11887_v12  ;;  %v8946_v12 = vld [vmem:[%s12640_s7 + $0x180] sm:$0xff]  }
 0x4c8   :  { %6093 = vmatprep.mubr.bf16.mxu1 %v11957_v60  ;;  %v8947_v60 = vld [vmem:[%s12640_s7 + $0x1c8] sm:$0xff]  }
 0x4cf   :  { %6094 = vmatmul.mubr.bf16.gmra.mrb[112].mxu1 %v11943_v31  ;;  %v8948_v31 = vld [vmem:[%s12640_s7 + $0x188] sm:$0xff]  }
 0x4d0   :  { %6101 = vmatprep.mubr.bf16.mxu1 %v5412_v11 }
 0x4d7   :  { %6102 = vmatmul.mubr.bf16.gmra.mrb[116].mxu1 %v5409_v34 }
 0x4d8   :  { %6141 = vmatprep.mubr.bf16.mxu1 %v11907_v22  ;;  %v8949_v22 = vld [vmem:[%s12640_s7 + $0x1d0] sm:$0xff]  }
 0x4df   :  { %6142 = vmatmul.mubr.bf16.vlgmr.msra.gmra.mrb[120].mxu1 %v11912_v8  ;;  %v8951_v8 = vld [vmem:[%s12640_s7 + $0x1d8] sm:$0xff]  }
 0x4e0   :  { %6149 = vmatprep.mubr.bf16.mxu1 %v11918_v55  ;;  %7845 = vmatpush3.bf16.msra.mxu1 %v8946_v12  ;;  %v8952_v55 = vld [vmem:[%s12640_s7 + $0x198] sm:$0xff]  }
 0x4e1   :  { %7846 = vmatprep.subr.bf16.mxu1 %v8947_v60 }
 0x4e4   :  { %7847 = vmatpush3.bf16.msra.mxu1 %v8948_v31  ;;  %v8969_v31 = vld [vmem:[%s12643_s10 + $0x60] sm:$0xff]  }
 0x4e5   :  { %7848 = vmatprep.subr.bf16.mxu1 %v8949_v22  ;;  %v8970_v22 = vld [vmem:[%s12643_s10 + $0x20] sm:$0xff]  }
 0x4e7   :  { %6150 = vmatmul.mubr.bf16.gmra.mrb[124].mxu1 %v11938_v21  ;;  %v8955_v21 = vld [vmem:[%s12640_s7 + $0x1e8] sm:$0xff]  }
 0x4e8   :  { %6157 = vmatprep.mubr.bf16.mxu1 %v11950_v50  ;;  %7849 = vmatpush3.bf16.msra.mxu1 %v8950_v54  ;;  %v8956_v50 = vld [vmem:[%s12640_s7 + $0x1a8] sm:$0xff]  }
 0x4e9   :  { %7850 = vmatprep.subr.bf16.mxu1 %v8951_v8 }
 0x4ec   :  { %7851 = vmatpush3.bf16.msra.mxu1 %v8952_v55 }
 0x4ed   :  { %7852 = vmatprep.subr.bf16.mxu1 %v8953_v62 }
 0x4ef   :  { %6158 = vmatmul.mubr.bf16.gmra.mrb[128].mxu1 %v11953_v28  ;;  %v8959_v28 = vld [vmem:[%s12640_s7 + $0x1f8] sm:$0xff]  }
 0x4f0   :  { %6165 = vmatprep.mubr.bf16.mxu1 %v11964_v19  ;;  %7853 = vmatpush3.bf16.msra.mxu1 %v8954_v35  ;;  %v8960_v19 = vld [vmem:[%s12640_s7 + $0x1b8] sm:$0xff]  }
 0x4f1   :  { %7854 = vmatprep.subr.bf16.mxu1 %v8955_v21 }
 0x4f4   :  { %7855 = vmatpush3.bf16.msra.mxu1 %v8956_v50 }
 0x4f5   :  { %7856 = vmatprep.subr.bf16.mxu1 %v8957_v16  ;;  %v8971_v16 = vld [vmem:[%s12643_s10 + $0x68] sm:$0xff]  }
 0x4f7   :  { %6166 = vmatmul.mubr.bf16.gmra.mrb[132].mxu1 %v11975_v43 }
 0x4f8   :  { %6173 = vmatprep.mubr.bf16.mxu1 %v11987_v48  ;;  %7857 = vmatpush3.bf16.msra.mxu1 %v8958_v32 }
 0x4f9   :  { %7858 = vmatprep.subr.bf16.mxu1 %v8959_v28 }
 0x4fc   :  { %7859 = vmatpush3.bf16.msra.mxu1 %v8960_v19  ;;  %v8972_v19 = vld [vmem:[%s12643_s10 + $0x28] sm:$0xff]  }
 0x4ff   :  { %6174 = vmatmul.mubr.bf16.gmra.mrb[136].mxu1 %v11990_v56 }
 0x500   :  { %6181 = vmatprep.mubr.bf16.mxu1 %v11995_v29 }
 0x507   :  { %6182 = vmatmul.mubr.bf16.gmra.mrb[140].mxu1 %v12000_v49 }
 0x508   :  { %6189 = vmatprep.mubr.bf16.mxu1 %v5465_v44 }
 0x50f   :  { %6190 = vmatmul.mubr.bf16.gmra.mrb[144].mxu1 %v5463_v30 }
 0x510   :  { %6229 = vmatprep.mubr.bf16.mxu1 %v12034_v39 }
 0x517   :  { %6230 = vmatmul.mubr.bf16.vlgmr.msra.gmra.mrb[148].mxu1 %v12041_v51 }
 0x518   :  { %6237 = vmatprep.mubr.bf16.mxu1 %v12044_v4 }
 0x51f   :  { %6238 = vmatmul.mubr.bf16.gmra.mrb[152].mxu1 %v12052_v6  ;;  %v8961_v6 = vld [vmem:[%s12643_s10 + $0x40] sm:$0xff]  }
 0x520   :  { %6245 = vmatprep.mubr.bf16.mxu1 %v12062_v33  ;;  %7902 = vmatprep.subr.bf16.mxu1 %v8961_v6 }
 0x527   :  { %6246 = vmatmul.mubr.bf16.gmra.mrb[156].mxu1 %v12069_v18  ;;  %v8962_v18 = vld [vmem:[%s12643_s10] sm:$0xff]  }
 0x528   :  { %6253 = vmatprep.mubr.bf16.mxu1 %v12077_v27  ;;  %7903 = vmatpush3.bf16.msra.mxu1 %v8962_v18 }
 0x529   :  { %7904 = vmatprep.subr.bf16.mxu1 %v8963_v3  ;;  %v8976_v3 = vld [vmem:[%s12643_s10 + $0x38] sm:$0xff]  }
 0x52c   :  { %7905 = vmatpush3.bf16.msra.mxu1 %v8964_v5 }
 0x52d   :  { %7906 = vmatprep.subr.bf16.mxu1 %v8965_v57 }
 0x52f   :  { %6254 = vmatmul.mubr.bf16.gmra.mrb[160].mxu1 %v12088_v46 }
 0x530   :  { %6261 = vmatprep.mubr.bf16.mxu1 %v12094_v42  ;;  %v8966_v42 = vld [vmem:[%s12643_s10 + $0x10] sm:$0xff]  }
 0x531   :  { %7907 = vmatpush3.bf16.msra.mxu1 %v8966_v42 }
 0x532   :  { %7908 = vmatprep.subr.bf16.mxu1 %v8967_v61 }
 0x535   :  { %7909 = vmatpush3.bf16.msra.mxu1 %v8968_v38 }
 0x536   :  { %7910 = vmatprep.subr.bf16.mxu1 %v8969_v31 }
 0x537   :  { %6262 = vmatmul.mubr.bf16.gmra.mrb[164].mxu1 %v12103_v1 }
 0x538   :  { %6269 = vmatprep.mubr.bf16.mxu1 %v12107_v37 }
 0x539   :  { %7911 = vmatpush3.bf16.msra.mxu1 %v8970_v22 }
 0x53a   :  { %7912 = vmatprep.subr.bf16.mxu1 %v8971_v16 }
 0x53d   :  { %7913 = vmatpush3.bf16.msra.mxu1 %v8972_v19 }
 0x53f   :  { %6270 = vmatmul.mubr.bf16.gmra.mrb[168].mxu1 %v12111_v20 }
 0x540   :  { %6277 = vmatprep.mubr.bf16.mxu1 %v12097_v41 }
 0x542   :  { %v7686_v56 = vpop.f32.mrb[64].mxu1 }
 0x543   :  { %v7687_v48 = vpop.f32.mrb[65].mxu1 }
 0x544   :  { %v12224_v26 = vadd.f32 %v7687_v48, %v7686_v56  ;;  %v7689_v30 = vpop.f32.mrb[66].mxu1 }
 0x545   :  { %v7690_v9 = vpop.f32.mrb[67].mxu1 }
 0x546   :  { %v12226_v43 = vadd.f32 %v7690_v9, %v7689_v30 }
 0x547   :  { %6278 = vmatmul.mubr.bf16.gmra.mrb[172].mxu1 %v12100_v40 }
 0x54a   :  { %v7692_v44 = vpop.f32.mrb[68].mxu1 }
 0x54b   :  { %v7693_v29 = vpop.f32.mrb[69].mxu1 }
 0x54c   :  { %v12229_v49 = vadd.f32 %v7693_v29, %v7692_v44  ;;  %v7695_v39 = vpop.f32.mrb[70].mxu1  ;;  %v8974_v29 = vld [vmem:[%s12643_s10 + $0x30] sm:$0xff]  }
 0x54d   :  { %v7696_v51 = vpop.f32.mrb[71].mxu1 }
 0x54e   :  { %v12231_v4 = vadd.f32 %v7696_v51, %v7695_v39  ;;  %v8975_v51 = vld [vmem:[%s12643_s10 + $0x78] sm:$0xff]  }
 0x552   :  { %v7698_v33 = vpop.f32.mrb[72].mxu1 }
 0x553   :  { %v7699_v59 = vpop.f32.mrb[73].mxu1 }
 0x554   :  { %v12239_v17 = vadd.f32 %v7699_v59, %v7698_v33  ;;  %v7701_v63 = vpop.f32.mrb[74].mxu1 }
 0x555   :  { %v7702_v36 = vpop.f32.mrb[75].mxu1 }
 0x556   :  { %v12241_v27 = vadd.f32 %v7702_v36, %v7701_v63 }
 0x55a   :  { %v7704_v13 = vpop.f32.mrb[76].mxu1 }
 0x55b   :  { %v7705_v53 = vpop.f32.mrb[77].mxu1 }
 0x55c   :  { %v12249_v23 = vadd.f32 %v7705_v53, %v7704_v13  ;;  %v7707_v45 = vpop.f32.mrb[78].mxu1  ;;  %v8977_v13 = vld [vmem:[%s12643_s10 + $0xc0] sm:$0xff]  }
 0x55d   :  { %v7708_v46 = vpop.f32.mrb[79].mxu1 }
 0x55e   :  { %v12251_v10 = vadd.f32 %v7708_v46, %v7707_v45 }
 0x562   :  { %v7710_v41 = vpop.f32.mrb[80].mxu1 }
 0x563   :  { %v7711_v40 = vpop.f32.mrb[81].mxu1 }
 0x564   :  { %v12259_v1 = vadd.f32 %v7711_v40, %v7710_v41  ;;  %v7713_v37 = vpop.f32.mrb[82].mxu1 }
 0x565   :  { %v7714_v20 = vpop.f32.mrb[83].mxu1 }
 0x566   :  { %v12261_v7 = vadd.f32 %v7714_v20, %v7713_v37 }
 0x56a   :  { %v7716_v15 = vpop.f32.mrb[84].mxu1 }
 0x56b   :  { %v7717_v58 = vpop.f32.mrb[85].mxu1 }
 0x56c   :  { %v12269_v25 = vadd.f32 %v7717_v58, %v7716_v15  ;;  %v7719_v0 = vpop.f32.mrb[86].mxu1 }
 0x56d   :  { %v7720_v24 = vpop.f32.mrb[87].mxu1 }
 0x56e   :  { %v12271_v47 = vadd.f32 %v7720_v24, %v7719_v0 }
 0x572   :  { %v7722_v11 = vpop.f32.mrb[88].mxu1 }
 0x573   :  { %v7723_v2 = vpop.f32.mrb[89].mxu1 }
 0x574   :  { %v12273_v34 = vadd.f32 %v7723_v2, %v7722_v11  ;;  %v7725_v12 = vpop.f32.mrb[90].mxu1 }
 0x575   :  { %v7726_v60 = vpop.f32.mrb[91].mxu1 }
 0x57a   :  { %v7744_v54 = vpop.f32.mrb[92].mxu1 }
 0x57b   :  { %v7745_v8 = vpop.f32.mrb[93].mxu1 }
 0x57c   :  { %v7746_v55 = vadd.f32 %v7745_v8, %v7744_v54  ;;  %v7747_v62 = vpop.f32.mrb[94].mxu1 }
 0x57d   :  { %v7748_v35 = vpop.f32.mrb[95].mxu1 }
 0x57e   :  { %v12282_v21 = vadd.f32 %v7746_v55, %v12224_v26  ;;  %v7749_v50 = vadd.f32 %v7748_v35, %v7747_v62 }
 0x580   :  { %v12288_v32 = vadd.f32 %v7749_v50, %v12226_v43  ;;  %v8973_v43 = vld [vmem:[%s12643_s10 + $0x70] sm:$0xff]  }
 0x581   :  { %7914 = vmatprep.subr.bf16.mxu1 %v8973_v43 }
 0x582   :  { %v7750_v28 = vpop.f32.mrb[96].mxu1  ;;  %7915 = vmatpush3.bf16.msra.mxu1 %v8974_v29 }
 0x583   :  { %v7751_v56 = vpop.f32.mrb[97].mxu1  ;;  %7916 = vmatprep.subr.bf16.mxu1 %v8975_v51 }
 0x584   :  { %v7752_v48 = vadd.f32 %v7751_v56, %v7750_v28  ;;  %v7753_v30 = vpop.f32.mrb[98].mxu1 }
 0x585   :  { %v7754_v26 = vpop.f32.mrb[99].mxu1 }
 0x586   :  { %v12294_v9 = vadd.f32 %v7752_v48, %v12229_v49  ;;  %v7755_v44 = vadd.f32 %v7754_v26, %v7753_v30  ;;  %7917 = vmatpush3.bf16.msra.mxu1 %v8976_v3 }
 0x587   :  { %7954 = vmatprep.subr.bf16.mxu1 %v8977_v13 }
 0x588   :  { %v6067_v39 = vadd.f32 %v7755_v44, %v12231_v4 }
 0x58a   :  { %v7756_v6 = vpop.f32.mrb[100].mxu1 }
 0x58b   :  { %v7757_v49 = vpop.f32.mrb[101].mxu1 }
 0x58c   :  { %v7758_v33 = vadd.f32 %v7757_v49, %v7756_v6  ;;  %v7759_v18 = vpop.f32.mrb[102].mxu1 }
 0x58d   :  { %v7760_v59 = vpop.f32.mrb[103].mxu1 }
 0x58e   :  { %v6072_v63 = vadd.f32 %v7758_v33, %v12239_v17  ;;  %v7761_v36 = vadd.f32 %v7760_v59, %v7759_v18 }
 0x590   :  { %v6075_v4 = vadd.f32 %v7761_v36, %v12241_v27 }
 0x592   :  { %v7762_v5 = vpop.f32.mrb[104].mxu1 }
 0x593   :  { %v7763_v53 = vpop.f32.mrb[105].mxu1 }
 0x594   :  { %v7764_v45 = vadd.f32 %v7763_v53, %v7762_v5  ;;  %v7765_v46 = vpop.f32.mrb[106].mxu1 }
 0x595   :  { %v7766_v57 = vpop.f32.mrb[107].mxu1 }
 0x596   :  { %v6080_v17 = vadd.f32 %v7764_v45, %v12249_v23  ;;  %v7767_v42 = vadd.f32 %v7766_v57, %v7765_v46 }
 0x598   :  { %v6083_v41 = vadd.f32 %v7767_v42, %v12251_v10 }
 0x59a   :  { %v7768_v40 = vpop.f32.mrb[108].mxu1 }
 0x59b   :  { %v7769_v37 = vpop.f32.mrb[109].mxu1 }
 0x59c   :  { %v7770_v20 = vadd.f32 %v7769_v37, %v7768_v40  ;;  %v7771_v27 = vpop.f32.mrb[110].mxu1 }
 0x59d   :  { %v7772_v61 = vpop.f32.mrb[111].mxu1 }
 0x59e   :  { %v6088_v38 = vadd.f32 %v7770_v20, %v12259_v1  ;;  %v7773_v15 = vadd.f32 %v7772_v61, %v7771_v27 }
 0x5a0   :  { %v6091_v58 = vadd.f32 %v7773_v15, %v12261_v7 }
 0x5a2   :  { %v7774_v0 = vpop.f32.mrb[112].mxu1 }
 0x5a3   :  { %v7775_v24 = vpop.f32.mrb[113].mxu1 }
 0x5a4   :  { %v7776_v11 = vadd.f32 %v7775_v24, %v7774_v0  ;;  %v7777_v2 = vpop.f32.mrb[114].mxu1 }
 0x5a5   :  { %v7778_v12 = vpop.f32.mrb[115].mxu1 }
 0x5a6   :  { %v6096_v23 = vadd.f32 %v7776_v11, %v12269_v25  ;;  %v7779_v60 = vadd.f32 %v7778_v12, %v7777_v2 }
 0x5a8   :  { %v6099_v10 = vadd.f32 %v7779_v60, %v12271_v47 }
 0x5aa   :  { %v7780_v31 = vpop.f32.mrb[116].mxu1 }
 0x5ab   :  { %v7781_v22 = vpop.f32.mrb[117].mxu1 }
 0x5ac   :  { %v7782_v54 = vadd.f32 %v7781_v22, %v7780_v31  ;;  %v7783_v8 = vpop.f32.mrb[118].mxu1 }
 0x5ad   :  { %v7784_v55 = vpop.f32.mrb[119].mxu1 }
 0x5ae   :  { %v6104_v1 = vadd.f32 %v7782_v54, %v12273_v34  ;;  %v12349_v55 = vld [vmem:[%s12644_s8] ss:$0 sm:$0xff] }
 0x5b2   :  { %v7802_v62 = vpop.f32.mrb[120].mxu1 }
 0x5b3   :  { %v7803_v35 = vpop.f32.mrb[121].mxu1 }
 0x5b4   :  { %v7804_v7 = vadd.f32 %v7803_v35, %v7802_v62  ;;  %v7805_v50 = vpop.f32.mrb[122].mxu1  ;;  %v12354_v35 = vld [vmem:[%s12645_s9] ss:$0 sm:$0xff] }
 0x5b5   :  { %v7806_v16 = vpop.f32.mrb[123].mxu1 }
 0x5b6   :  { %v6144_v28 = vadd.f32 %v7804_v7, %v12282_v21  ;;  %v7807_v19 = vadd.f32 %v7806_v16, %v7805_v50 }
 0x5b8   :  { %v6147_v25 = vadd.f32 %v7807_v19, %v12288_v32 }
 0x5ba   :  { %v7808_v56 = vpop.f32.mrb[124].mxu1 }
 0x5bb   :  { %v7809_v48 = vpop.f32.mrb[125].mxu1 }
 0x5bc   :  { %v7810_v47 = vadd.f32 %v7809_v48, %v7808_v56  ;;  %v7811_v30 = vpop.f32.mrb[126].mxu1 }
 0x5bd   :  { %v7812_v26 = vpop.f32.mrb[127].mxu1 }
 0x5be   :  { %v12324_v44 = vadd.f32 %v7810_v47, %v12294_v9  ;;  %v7813_v43 = vadd.f32 %v7812_v26, %v7811_v30 }
 0x5c0   :  { %v12326_v34 = vadd.f32 %v7813_v43, %v6067_v39 }
 0x5c2   :  { %v7814_v29 = vpop.f32.mrb[128].mxu1 }
 0x5c3   :  { %v7815_v51 = vpop.f32.mrb[129].mxu1 }
 0x5c4   :  { %v7816_v6 = vadd.f32 %v7815_v51, %v7814_v29  ;;  %v7817_v49 = vpop.f32.mrb[130].mxu1 }
 0x5c5   :  { %v7818_v33 = vpop.f32.mrb[131].mxu1 }
 0x5c6   :  { %v12328_v21 = vadd.f32 %v7816_v6, %v6072_v63  ;;  %v7819_v18 = vadd.f32 %v7818_v33, %v7817_v49 }
 0x5c8   :  { %v12330_v32 = vadd.f32 %v7819_v18, %v6075_v4 }
 0x5ca   :  { %v7820_v59 = vpop.f32.mrb[132].mxu1 }
 0x5cb   :  { %v7821_v36 = vpop.f32.mrb[133].mxu1 }
 0x5cc   :  { %v7822_v3 = vadd.f32 %v7821_v36, %v7820_v59  ;;  %v7823_v5 = vpop.f32.mrb[134].mxu1 }
 0x5cd   :  { %v7824_v13 = vpop.f32.mrb[135].mxu1 }
 0x5ce   :  { %v12332_v9 = vadd.f32 %v7822_v3, %v6080_v17  ;;  %v7825_v53 = vadd.f32 %v7824_v13, %v7823_v5 }
 0x5d0   :  { %v12334_v39 = vadd.f32 %v7825_v53, %v6083_v41 }
 0x5d2   :  { %v7826_v45 = vpop.f32.mrb[136].mxu1 }
 0x5d3   :  { %v7827_v46 = vpop.f32.mrb[137].mxu1 }
 0x5d4   :  { %v7828_v57 = vadd.f32 %v7827_v46, %v7826_v45  ;;  %v7829_v42 = vpop.f32.mrb[138].mxu1 }
 0x5d5   :  { %v7830_v40 = vpop.f32.mrb[139].mxu1 }
 0x5d6   :  { %v12336_v63 = vadd.f32 %v7828_v57, %v6088_v38  ;;  %v7831_v37 = vadd.f32 %v7830_v40, %v7829_v42 }
 0x5d8   :  { %v12338_v4 = vadd.f32 %v7831_v37, %v6091_v58 }
 0x5da   :  { %v7832_v20 = vpop.f32.mrb[140].mxu1 }
 0x5db   :  { %v7833_v27 = vpop.f32.mrb[141].mxu1 }
 0x5dc   :  { %v7834_v61 = vadd.f32 %v7833_v27, %v7832_v20  ;;  %v7835_v15 = vpop.f32.mrb[142].mxu1 }
 0x5dd   :  { %v7836_v0 = vpop.f32.mrb[143].mxu1 }
 0x5de   :  { %v12340_v17 = vadd.f32 %v7834_v61, %v6096_v23  ;;  %v7837_v24 = vadd.f32 %v7836_v0, %v7835_v15 }
 0x5e0   :  { %v12342_v41 = vadd.f32 %v7837_v24, %v6099_v10 }
 0x5e2   :  { %v7838_v11 = vpop.f32.mrb[144].mxu1 }
 0x5e3   :  { %v7839_v2 = vpop.f32.mrb[145].mxu1 }
 0x5e4   :  { %v7840_v12 = vadd.f32 %v7839_v2, %v7838_v11  ;;  %v7841_v60 = vpop.f32.mrb[146].mxu1 }
 0x5e5   :  { %v7842_v31 = vpop.f32.mrb[147].mxu1 }
 0x5e6   :  { %v12344_v38 = vadd.f32 %v7840_v12, %v6104_v1 }
 0x5ea   :  { %v7860_v22 = vpop.f32.mrb[148].mxu1 }
 0x5eb   :  { %v7861_v58 = vpop.f32.mrb[149].mxu1 }
 0x5ec   :  { %v7862_v54 = vadd.f32 %v7861_v58, %v7860_v22  ;;  %v7863_v8 = vpop.f32.mrb[150].mxu1 }
 0x5ed   :  { %v7864_v23 = vpop.f32.mrb[151].mxu1 }
 0x5ee   :  { %v6232_v62 = vadd.f32 %v7862_v54, %v6144_v28  ;;  %v7865_v10 = vadd.f32 %v7864_v23, %v7863_v8 }
 0x5f0   :  { %v6291_v1 = vmul.f32 %v12349_v55, %v6232_v62  ;;  %v6235_v7 = vadd.f32 %v7865_v10, %v6147_v25 }
 0x5f2   :  { %v6310_v50 = vadd.f32 %v12354_v35, %v6291_v1  ;;  %v6292_v16 = vmul.f32 %v12349_v55, %v6235_v7  ;;  %v7866_v19 = vpop.f32.mrb[152].mxu1 }
 0x5f3   :  { %v7867_v56 = vpop.f32.mrb[153].mxu1 }
 0x5f4   :  { %v6336_v48 = vmul.f32 0.01, %v6310_v50  ;;  %v6311_v47 = vadd.f32 %v12354_v35, %v6292_v16  ;;  %v7868_v30 = vadd.f32 %v7867_v56, %v7866_v19  ;;  %v7869_v28 = vpop.f32.mrb[154].mxu1  ;;  %vm6323_vm2 = vcmp.gt.f32.partialorder %v6310_v50, 0.0 }
 0x5f5   :  { %v7870_v26 = vpop.f32.mrb[155].mxu1 }
 0x5f6   :  { %vm6324_vm3 = vcmp.gt.f32.partialorder %v6311_v47, 0.0  ;;  %v6337_v43 = vmul.f32 0.01, %v6311_v47  ;;  %v6240_v29 = vadd.f32 %v7868_v30, %v12324_v44  ;;  %v7871_v51 = vadd.f32 %v7870_v26, %v7869_v28 }
 0x5f7   :  { %v6349_v6 = vsel %vm6323_vm2, %v6310_v50, %v6336_v48 }
 0x5f8   :  { %v6350_v25 = vsel %vm6324_vm3, %v6311_v47, %v6337_v43  ;;  %v6293_v49 = vmul.f32 %v12349_v55, %v6240_v29  ;;  %v6243_v18 = vadd.f32 %v7871_v51, %v12326_v34  ;;  %v8978_v43 = vld [vmem:[%s12643_s10 + $0x80] sm:$0xff]  }
 0x5f9   :  { %v12362_v33 = vpack.c.bf16 %v6350_v25, %v6349_v6  ;;  %v8979_v25 = vld [vmem:[%s12643_s10 + $0xc8] sm:$0xff]  }
 0x5fa   :  { %v6312_v59 = vadd.f32 %v12354_v35, %v6293_v49  ;;  %v7872_v36 = vpop.f32.mrb[156].mxu1  ;;  %v6294_v3 = vmul.f32 %v12349_v55, %v6243_v18 }
 0x5fb   :  { %v7873_v5 = vpop.f32.mrb[157].mxu1  ;;  %v6438_v40 = vshll.u32 %v12362_v33, 16  ;;  %v6436_v37 = vshrl.u32 %v12362_v33, 16  ;;  %v6495_v31 = vrot.slane %v12362_v33, 4 }
 0x5fc   :  { %v7874_v13 = vadd.f32 %v7873_v5, %v7872_v36  ;;  %v7875_v53 = vpop.f32.mrb[158].mxu1  ;;  %v6338_v45 = vmul.f32 0.01, %v6312_v59  ;;  %v6313_v44 = vadd.f32 %v12354_v35, %v6294_v3  ;;  %vm6325_vm6 = vcmp.gt.f32.partialorder %v6312_v59, 0.0 }
 0x5fd   :  { %v7876_v46 = vpop.f32.mrb[159].mxu1  ;;  %v6440_v2 = vrot.slane %v6438_v40, 1  ;;  %v6514_v60 = vrot.slane %v6436_v37, 4 }
 0x5fe   :  { %v6248_v57 = vadd.f32 %v7874_v13, %v12328_v21  ;;  %v7877_v42 = vadd.f32 %v7876_v46, %v7875_v53  ;;  %vm6326_vm7 = vcmp.gt.f32.partialorder %v6313_v44, 0.0  ;;  %v6339_v34 = vmul.f32 0.01, %v6313_v44 }
 0x5ff   :  { %v6351_v61 = vsel %vm6325_vm6, %v6312_v59, %v6338_v45  ;;  %v6441_v16 = vor.u32 %v6440_v2, %v6436_v37 }
 0x600   :  { %v6295_v20 = vmul.f32 %v12349_v55, %v6248_v57  ;;  %v6251_v27 = vadd.f32 %v7877_v42, %v12330_v32  ;;  %v6352_v15 = vsel %vm6326_vm7, %v6313_v44, %v6339_v34  ;;  %v6515_v32 = vrot.slane %v6438_v40, 5  ;;  %v8980_v42 = vld [vmem:[%s12643_s10 + $0x88] sm:$0xff]  }
 0x601   :  { %v12373_v0 = vpack.c.bf16 %v6352_v15, %v6351_v61 }
 0x602   :  { %v6314_v24 = vadd.f32 %v12354_v35, %v6295_v20  ;;  %v6296_v11 = vmul.f32 %v12349_v55, %v6251_v27  ;;  %v7878_v21 = vpop.f32.mrb[160].mxu1  ;;  %v6516_v59 = vor.u32 %v6515_v32, %v6514_v60  ;;  %v8981_v20 = vld [vmem:[%s12643_s10 + $0xd0] sm:$0xff]  }
 0x603   :  { %v7879_v12 = vpop.f32.mrb[161].mxu1  ;;  %v6443_v62 = vshll.u32 %v12373_v0, 16  ;;  %v6447_v10 = vshrl.u32 %v12373_v0, 16  ;;  %v6496_v1 = vrot.slane %v12373_v0, 4 }
 0x604   :  { %v6340_v22 = vmul.f32 0.01, %v6314_v24  ;;  %v6315_v58 = vadd.f32 %v12354_v35, %v6296_v11  ;;  %v7880_v54 = vadd.f32 %v7879_v12, %v7878_v21  ;;  %v7881_v8 = vpop.f32.mrb[162].mxu1  ;;  %vm6327_vm8 = vcmp.gt.f32.partialorder %v6314_v24, 0.0 }
 0x605   :  { %v7882_v23 = vpop.f32.mrb[163].mxu1  ;;  %v6445_v56 = vrot.slane %v6443_v62, 1  ;;  %v6517_v48 = vrot.slane %v6447_v10, 4  ;;  %v6518_v47 = vrot.slane %v6443_v62, 5  ;;  %v12388_v29 = vsel %vm2631_vm4, %v6495_v31, %v6496_v1 }
 0x606   :  { %vm6328_vm9 = vcmp.gt.f32.partialorder %v6315_v58, 0.0  ;;  %v6341_v7 = vmul.f32 0.01, %v6315_v58  ;;  %v6256_v50 = vadd.f32 %v7880_v54, %v12332_v9  ;;  %v7883_v19 = vadd.f32 %v7882_v23, %v7881_v8  ;;  %v8983_v54 = vld [vmem:[%s12643_s10 + $0xd8] sm:$0xff]  }
 0x607   :  { %v6353_v30 = vsel %vm6327_vm8, %v6314_v24, %v6340_v22  ;;  %v6446_v6 = vsel %vm173_vm0, %v6441_v16, %v6445_v56  ;;  %v6519_v36 = vor.u32 %v6518_v47, %v6517_v48  ;;  %v6449_v57 = vor.u32 %v6447_v10, %v6445_v56 }
 0x608   :  { %v6354_v28 = vsel %vm6328_vm9, %v6315_v58, %v6341_v7  ;;  %v6297_v26 = vmul.f32 %v12349_v55, %v6256_v50  ;;  %v6259_v9 = vadd.f32 %v7883_v19, %v12334_v39  ;;  %6776 = vmatprep.mubr.bf16.mxu1 %v6446_v6  ;;  %v8984_v19 = vld [vmem:[%s12643_s10 + $0x98] sm:$0xff]  }
 0x609   :  { %v12390_v51 = vpack.c.bf16 %v6354_v28, %v6353_v30  ;;  %6777 = vmatmul.mubr.bf16.vlgmr.msra.gmra.mrb[176].mxu1 %v12362_v33  ;;  %v12407_v40 = vsel %vm2720_vm5, %v6516_v59, %v6519_v36 }
 0x60a   :  { %v6316_v49 = vadd.f32 %v12354_v35, %v6297_v26  ;;  %v7884_v18 = vpop.f32.mrb[164].mxu1  ;;  %v6298_v3 = vmul.f32 %v12349_v55, %v6259_v9  ;;  %7955 = vmatpush3.bf16.msra.mxu1 %v8978_v43 }
 0x60b   :  { %v7885_v5 = vpop.f32.mrb[165].mxu1  ;;  %v6451_v13 = vshll.u32 %v12390_v51, 16  ;;  %v6455_v39 = vshrl.u32 %v12390_v51, 16  ;;  %v6498_v53 = vrot.slane %v12390_v51, 4  ;;  %7956 = vmatprep.subr.bf16.mxu1 %v8979_v25 }
 0x60c   :  { %v6342_v45 = vmul.f32 0.01, %v6316_v49  ;;  %v7886_v44 = vadd.f32 %v7885_v5, %v7884_v18  ;;  %v7887_v46 = vpop.f32.mrb[166].mxu1  ;;  %v6317_v33 = vadd.f32 %v12354_v35, %v6298_v3  ;;  %vm6329_vm10 = vcmp.gt.f32.partialorder %v6316_v49, 0.0  ;;  %v8986_v3 = vld [vmem:[%s12643_s10 + $0xa0] sm:$0xff]  }
 0x60d   :  { %v7888_v34 = vpop.f32.mrb[167].mxu1  ;;  %v6453_v37 = vrot.slane %v6451_v13, 1  ;;  %v6521_v27 = vrot.slane %v6455_v39, 4  ;;  %v6522_v61 = vrot.slane %v6451_v13, 5  ;;  %v12417_v11 = vsel %vm2631_vm4, %v6496_v1, %v6498_v53 }
 0x60e   :  { %v6264_v15 = vadd.f32 %v7886_v44, %v12336_v63  ;;  %v7889_v24 = vadd.f32 %v7888_v34, %v7887_v46  ;;  %vm6330_vm11 = vcmp.gt.f32.partialorder %v6317_v33, 0.0  ;;  %v6343_v21 = vmul.f32 0.01, %v6317_v33  ;;  %7957 = vmatpush3.bf16.msra.mxu1 %v8980_v42  ;;  %v8982_v63 = vld [vmem:[%s12643_s10 + $0x90] sm:$0xff]  }
 0x60f   :  { %v6454_v2 = vsel %vm173_vm0, %v6449_v57, %v6453_v37  ;;  %v6523_v31 = vor.u32 %v6522_v61, %v6521_v27  ;;  %v6355_v22 = vsel %vm6329_vm10, %v6316_v49, %v6342_v45  ;;  %7958 = vmatprep.subr.bf16.mxu1 %v8981_v20  ;;  %v6457_v43 = vor.u32 %v6455_v39, %v6453_v37  ;;  %v8987_v45 = vld [vmem:[%s12643_s10 + $0xe8] sm:$0xff]  }
 0x610   :  { %v6299_v12 = vmul.f32 %v12349_v55, %v6264_v15  ;;  %v6267_v60 = vadd.f32 %v7889_v24, %v12338_v4  ;;  %6784 = vmatprep.mubr.bf16.mxu1 %v6454_v2  ;;  %v6356_v58 = vsel %vm6330_vm11, %v6317_v33, %v6343_v21  ;;  %v8988_v15 = vld [vmem:[%s12643_s10 + $0xa8] sm:$0xff]  }
 0x611   :  { %v12428_v8 = vpack.c.bf16 %v6356_v58, %v6355_v22  ;;  %v12433_v62 = vsel %vm2720_vm5, %v6519_v36, %v6523_v31  ;;  %6785 = vmatmul.mubr.bf16.gmra.mrb[180].mxu1 %v12373_v0  ;;  %v8985_v0 = vld [vmem:[%s12643_s10 + $0xe0] sm:$0xff]  }
 0x612   :  { %v6318_v32 = vadd.f32 %v12354_v35, %v6299_v12  ;;  %v6300_v4 = vmul.f32 %v12349_v55, %v6267_v60  ;;  %v7890_v23 = vpop.f32.mrb[168].mxu1  ;;  %7959 = vmatpush3.bf16.msra.mxu1 %v8982_v63  ;;  %v8989_v12 = vld [vmem:[%s12643_s10 + $0xf0] sm:$0xff]  }
 0x613   :  { %v7891_v10 = vpop.f32.mrb[169].mxu1  ;;  %v6459_v48 = vshll.u32 %v12428_v8, 16  ;;  %7960 = vmatprep.subr.bf16.mxu1 %v8983_v54  ;;  %v6463_v47 = vshrl.u32 %v12428_v8, 16  ;;  %v6500_v30 = vrot.slane %v12428_v8, 4 }
 0x614   :  { %v6344_v1 = vmul.f32 0.01, %v6318_v32  ;;  %v6319_v7 = vadd.f32 %v12354_v35, %v6300_v4  ;;  %v7892_v50 = vadd.f32 %v7891_v10, %v7890_v23  ;;  %v7893_v16 = vpop.f32.mrb[170].mxu1  ;;  %vm6331_vm12 = vcmp.gt.f32.partialorder %v6318_v32, 0.0  ;;  %v8990_v4 = vld [vmem:[%s12643_s10 + $0xb0] sm:$0xff]  }
 0x615   :  { %v7894_v56 = vpop.f32.mrb[171].mxu1  ;;  %v6461_v6 = vrot.slane %v6459_v48, 1  ;;  %v6525_v25 = vrot.slane %v6463_v47, 4  ;;  %v6526_v49 = vrot.slane %v6459_v48, 5  ;;  %v12454_v5 = vsel %vm2631_vm4, %v6498_v53, %v6500_v30  ;;  %v8992_v48 = vld [vmem:[%s12643_s10 + $0xb8] sm:$0xff]  }
 0x616   :  { %vm6332_vm13 = vcmp.gt.f32.partialorder %v6319_v7, 0.0  ;;  %v6345_v28 = vmul.f32 0.01, %v6319_v7  ;;  %v6272_v26 = vadd.f32 %v7892_v50, %v12340_v17  ;;  %v7895_v9 = vadd.f32 %v7894_v56, %v7893_v16  ;;  %7961 = vmatpush3.bf16.msra.mxu1 %v8984_v19 }
 0x617   :  { %v6357_v18 = vsel %vm6331_vm12, %v6318_v32, %v6344_v1  ;;  %v6462_v39 = vsel %vm173_vm0, %v6457_v43, %v6461_v6  ;;  %7962 = vmatprep.subr.bf16.mxu1 %v8985_v0  ;;  %v6527_v57 = vor.u32 %v6526_v49, %v6525_v25  ;;  %v6465_v61 = vor.u32 %v6463_v47, %v6461_v6 }
 0x618   :  { %v6358_v59 = vsel %vm6332_vm13, %v6319_v7, %v6345_v28  ;;  %v6301_v36 = vmul.f32 %v12349_v55, %v6272_v26  ;;  %v6275_v13 = vadd.f32 %v7895_v9, %v12342_v41  ;;  %6792 = vmatprep.mubr.bf16.mxu1 %v6462_v39  ;;  %vm7105_vm13 = vcmask 518144  }
 0x619   :  { %v12456_v17 = vpack.c.bf16 %v6358_v59, %v6357_v18  ;;  %6793 = vmatmul.mubr.bf16.gmra.mrb[184].mxu1 %v12390_v51  ;;  %v6528_v24 = vsel %vm2720_vm5, %v6523_v31, %v6527_v57 }
 0x61a   :  { %v6320_v44 = vadd.f32 %v12354_v35, %v6301_v36  ;;  %v7896_v46 = vpop.f32.mrb[172].mxu1  ;;  %v6302_v42 = vmul.f32 %v12349_v55, %v6275_v13  ;;  %7963 = vmatpush3.bf16.msra.mxu1 %v8986_v3 }
 0x61b   :  { %v7897_v53 = vpop.f32.mrb[173].mxu1  ;;  %v6467_v33 = vshll.u32 %v12456_v17, 16  ;;  %v6471_v41 = vshrl.u32 %v12456_v17, 16  ;;  %v6502_v34 = vrot.slane %v12456_v17, 4  ;;  %7964 = vmatprep.subr.bf16.mxu1 %v8987_v45 }
 0x61c   :  { %v6346_v37 = vmul.f32 0.01, %v6320_v44  ;;  %v7898_v20 = vadd.f32 %v7897_v53, %v7896_v46  ;;  %v7899_v27 = vpop.f32.mrb[174].mxu1  ;;  %v6321_v51 = vadd.f32 %v12354_v35, %v6302_v42  ;;  %vm6333_vm14 = vcmp.gt.f32.partialorder %v6320_v44, 0.0 }
 0x61d   :  { %v7900_v21 = vpop.f32.mrb[175].mxu1  ;;  %v6469_v2 = vrot.slane %v6467_v33, 1  ;;  %v6529_v60 = vrot.slane %v6471_v41, 4  ;;  %v6530_v63 = vrot.slane %v6467_v33, 5  ;;  %v6503_v58 = vsel %vm2631_vm4, %v6500_v30, %v6502_v34 }
 0x61e   :  { %v6280_v22 = vadd.f32 %v7898_v20, %v12344_v38  ;;  %vm6334_vm15 = vcmp.gt.f32.partialorder %v6321_v51, 0.0  ;;  %v6347_v54 = vmul.f32 0.01, %v6321_v51  ;;  %7965 = vmatpush3.bf16.msra.mxu1 %v8988_v15  ;;  %v6359_v10 = vsel %vm6333_vm14, %v6320_v44, %v6346_v37  ;;  %v8991_v38 = vld [vmem:[%s12643_s10 + $0xf8] sm:$0xff]  }
 0x61f   :  { %v6470_v31 = vsel %vm173_vm0, %v6465_v61, %v6469_v2  ;;  %v6531_v23 = vor.u32 %v6530_v63, %v6529_v60  ;;  %7966 = vmatprep.subr.bf16.mxu1 %v8989_v12  ;;  %v6473_v47 = vor.u32 %v6471_v41, %v6469_v2 }
 0x620   :  { %v6303_v32 = vmul.f32 %v12349_v55, %v6280_v22  ;;  %6800 = vmatprep.mubr.bf16.mxu1 %v6470_v31  ;;  %v6360_v1 = vsel %vm6334_vm15, %v6321_v51, %v6347_v54 }
 0x621   :  { %v6367_v7 = vpack.c.bf16 %v6360_v1, %v6359_v10  ;;  %v6532_v16 = vsel %vm2720_vm5, %v6527_v57, %v6531_v23  ;;  %6801 = vmatmul.mubr.bf16.gmra.mrb[188].mxu1 %v12428_v8 }
 0x622   :  { %v6322_v50 = vadd.f32 %v12354_v35, %v6303_v32  ;;  %7967 = vmatpush3.bf16.msra.mxu1 %v8990_v4 }
 0x623   :  { %v6475_v19 = vshll.u32 %v6367_v7, 16  ;;  %v6479_v56 = vshrl.u32 %v6367_v7, 16  ;;  %7968 = vmatprep.subr.bf16.mxu1 %v8991_v38  ;;  %v6504_v0 = vrot.slane %v6367_v7, 4 }
 0x624   :  { %vm6335_vm2 = vcmp.gt.f32.partialorder %v6322_v50, 0.0  ;;  %v6348_v55 = vmul.f32 0.01, %v6322_v50 }
 0x625   :  { %v6477_v28 = vrot.slane %v6475_v19, 1  ;;  %v6533_v26 = vrot.slane %v6479_v56, 4  ;;  %v6534_v35 = vrot.slane %v6475_v19, 5  ;;  %v6505_v9 = vsel %vm2631_vm4, %v6502_v34, %v6504_v0  ;;  %v12522_v19 = vld [vmem:[%s12647_s11] ss:$0 sm:$0xff] }
 0x626   :  { %v6361_v30 = vsel %vm6335_vm2, %v6322_v50, %v6348_v55  ;;  %7969 = vmatpush3.bf16.msra.mxu1 %v8992_v48 }
 0x627   :  { %v6368_v43 = vpack.c.bf16 %v6361_v30, %v6361_v30  ;;  %v6478_v8 = vsel %vm173_vm0, %v6473_v47, %v6477_v28  ;;  %v6481_v6 = vor.u32 %v6479_v56, %v6477_v28  ;;  %v6535_v25 = vor.u32 %v6534_v35, %v6533_v26 }
 0x628   :  { %6806 = vmatprep.mubr.bf16.mxu1 %v6478_v8 }
 0x629   :  { %v6538_v49 = vshrl.u32 %v6368_v43, 16  ;;  %v6541_v18 = vshll.u32 %v6368_v43, 16  ;;  %v6506_v59 = vrot.slane %v6368_v43, 4  ;;  %v6536_v36 = vsel %vm2720_vm5, %v6531_v23, %v6535_v25  ;;  %6807 = vmatmul.mubr.bf16.gmra.mrb[192].mxu1 %v12456_v17 }
 0x62a   :  { %6814 = vmatprep.mubr.bf16.mxu1 %v6481_v6  ;;  %v20_v17 = vstv %s12646_s14 }
 0x62b   :  { %v6540_v3 = vrot.slane %v6538_v49, 4  ;;  %v6543_v13 = vrot.slane %v6541_v18, 5  ;;  %v6507_v39 = vsel %vm2631_vm4, %v6504_v0, %v6506_v59  ;;  %21 = vst [vmem:[#allocation2] sm:$0x1] %v20_v17  ;;  %v12527_v0 = vld [vmem:[%s12648_s12] ss:$0 sm:$0xff] }
 0x62d   :  { %v6544_v45 = vor.u32 %v6543_v13, %v6540_v3  ;;  %v6978_v3 = vld [vmem:[%s12649_s13] sm:$0xf] }
 0x62f   :  { %v6545_v44 = vsel %vm2720_vm5, %v6535_v25, %v6544_v45  ;;  %vm7007_vm5 = vcmask 1046528  }
 0x631   :  { %6815 = vmatmul.mubr.bf16.gmra.mrb[196].mxu1 %v6367_v7 }
 0x632   :  { %6855 = vmatprep.mubr.bf16.mxu1 %v12407_v40 }
 0x639   :  { %6856 = vmatmul.mubr.bf16.vlgmr.msra.gmra.mrb[200].mxu1 %v12388_v29 }
 0x63a   :  { %6863 = vmatprep.mubr.bf16.mxu1 %v12433_v62 }
 0x641   :  { %6864 = vmatmul.mubr.bf16.gmra.mrb[204].mxu1 %v12417_v11 }
 0x642   :  { %6871 = vmatprep.mubr.bf16.mxu1 %v6528_v24 }
 0x649   :  { %6872 = vmatmul.mubr.bf16.gmra.mrb[208].mxu1 %v12454_v5 }
 0x64a   :  { %6879 = vmatprep.mubr.bf16.mxu1 %v6532_v16 }
 0x651   :  { %6880 = vmatmul.mubr.bf16.gmra.mrb[212].mxu1 %v6503_v58 }
 0x652   :  { %6885 = vmatprep.mubr.bf16.mxu1 %v6536_v36 }
 0x659   :  { %6886 = vmatmul.mubr.bf16.gmra.mrb[216].mxu1 %v6505_v9 }
 0x65a   :  { %6893 = vmatprep.mubr.bf16.mxu1 %v6545_v44 }
 0x661   :  { %6894 = vmatmul.mubr.bf16.gmra.mrb[220].mxu1 %v6507_v39 }
 0x6dc   :  { %v7918_v40 = vpop.f32.mrb[176].mxu1 }
 0x6dd   :  { %v7919_v29 = vpop.f32.mrb[177].mxu1 }
 0x6de   :  { %v7920_v46 = vadd.f32 %v7919_v29, %v7918_v40  ;;  %v7921_v62 = vpop.f32.mrb[178].mxu1  ;;  %v12538_v29 = vrot.slane %v6978_v3, %v12872_v52 }
 0x6df   :  { %v7922_v57 = vpop.f32.mrb[179].mxu1 }
 0x6e0   :  { %v7923_v11 = vadd.f32 %v7922_v57, %v7921_v62 }
 0x6e4   :  { %v7924_v42 = vpop.f32.mrb[180].mxu1 }
 0x6e5   :  { %v7925_v53 = vpop.f32.mrb[181].mxu1 }
 0x6e6   :  { %v7926_v5 = vadd.f32 %v7925_v53, %v7924_v42  ;;  %v7927_v33 = vpop.f32.mrb[182].mxu1 }
 0x6e7   :  { %v7928_v41 = vpop.f32.mrb[183].mxu1 }
 0x6e8   :  { %v7929_v34 = vadd.f32 %v7928_v41, %v7927_v33  ;;  %v12543_v41 = vrot.slane %v6978_v3, %v12871_v14 }
 0x6ec   :  { %v7930_v37 = vpop.f32.mrb[184].mxu1 }
 0x6ed   :  { %v7931_v20 = vpop.f32.mrb[185].mxu1 }
 0x6ee   :  { %v12507_v27 = vadd.f32 %v7931_v20, %v7930_v37  ;;  %v7933_v61 = vpop.f32.mrb[186].mxu1 }
 0x6ef   :  { %v7934_v15 = vpop.f32.mrb[187].mxu1 }
 0x6f0   :  { %v12509_v24 = vadd.f32 %v7934_v15, %v7933_v61 }
 0x6f4   :  { %v7936_v51 = vpop.f32.mrb[188].mxu1 }
 0x6f5   :  { %v7937_v21 = vpop.f32.mrb[189].mxu1 }
 0x6f6   :  { %v7939_v2 = vpop.f32.mrb[190].mxu1  ;;  %v12890_v21 = vld [vmem:[#allocation34_spill] sm:$0xff] }
 0x6f7   :  { %v7940_v12 = vpop.f32.mrb[191].mxu1  ;;  %v12550_v2 = vrot.slane %v6978_v3, %v12890_v21 }
 0x6fc   :  { %v7942_v60 = vpop.f32.mrb[192].mxu1 }
 0x6fd   :  { %v7943_v63 = vpop.f32.mrb[193].mxu1 }
 0x6fe   :  { %v12511_v22 = vadd.f32 %v7943_v63, %v7942_v60  ;;  %v7945_v58 = vpop.f32.mrb[194].mxu1 }
 0x6ff   :  { %v7946_v54 = vpop.f32.mrb[195].mxu1 }
 0x700   :  { %v12513_v31 = vadd.f32 %v7946_v54, %v7945_v58 }
 0x704   :  { %v7948_v32 = vpop.f32.mrb[196].mxu1 }
 0x705   :  { %v7949_v4 = vpop.f32.mrb[197].mxu1 }
 0x706   :  { %v12515_v23 = vadd.f32 %v7949_v4, %v7948_v32  ;;  %v7951_v10 = vpop.f32.mrb[198].mxu1 }
 0x707   :  { %v7952_v1 = vpop.f32.mrb[199].mxu1 }
 0x708   :  { %v12517_v38 = vadd.f32 %v7952_v1, %v7951_v10 }
 0x70c   :  { %v7970_v7 = vpop.f32.mrb[200].mxu1 }
 0x70d   :  { %v7971_v50 = vpop.f32.mrb[201].mxu1 }
 0x70e   :  { %v7972_v16 = vadd.f32 %v7971_v50, %v7970_v7  ;;  %v7973_v55 = vpop.f32.mrb[202].mxu1 }
 0x70f   :  { %v7974_v56 = vpop.f32.mrb[203].mxu1 }
 0x710   :  { %v6858_v48 = vadd.f32 %v7972_v16, %v7920_v46  ;;  %v7975_v47 = vadd.f32 %v7974_v56, %v7973_v55  ;;  %v12891_v55 = vld [vmem:[#allocation33_spill] sm:$0xff] }
 0x711   :  { %v12559_v56 = vrot.slane %v6978_v3, %v12891_v55 }
 0x712   :  { %v6908_v30 = vmul.f32 %v12522_v19, %v6858_v48  ;;  %v6861_v28 = vadd.f32 %v7975_v47, %v7923_v11 }
 0x714   :  { %v6924_v26 = vadd.f32 %v12527_v0, %v6908_v30  ;;  %v6909_v35 = vmul.f32 %v12522_v19, %v6861_v28  ;;  %v7976_v43 = vpop.f32.mrb[204].mxu1 }
 0x715   :  { %v7977_v9 = vpop.f32.mrb[205].mxu1 }
 0x716   :  { %v6944_v8 = vmul.f32 0.01, %v6924_v26  ;;  %v6925_v6 = vadd.f32 %v12527_v0, %v6909_v35  ;;  %v7978_v25 = vadd.f32 %v7977_v9, %v7976_v43  ;;  %v7979_v49 = vpop.f32.mrb[206].mxu1  ;;  %vm6934_vm0 = vcmp.gt.f32.partialorder %v6924_v26, 0.0 }
 0x717   :  { %v7980_v18 = vpop.f32.mrb[207].mxu1 }
 0x718   :  { %vm6935_vm4 = vcmp.gt.f32.partialorder %v6925_v6, 0.0  ;;  %v6945_v59 = vmul.f32 0.01, %v6925_v6  ;;  %v6866_v36 = vadd.f32 %v7978_v25, %v7926_v5  ;;  %v7981_v13 = vadd.f32 %v7980_v18, %v7979_v49 }
 0x719   :  { %v6954_v39 = vsel %vm6934_vm0, %v6924_v26, %v6944_v8 }
 0x71a   :  { %v6955_v45 = vsel %vm6935_vm4, %v6925_v6, %v6945_v59  ;;  %v6910_v44 = vmul.f32 %v12522_v19, %v6866_v36  ;;  %v6869_v17 = vadd.f32 %v7981_v13, %v7929_v34 }
 0x71b   :  { %v6964_v40 = vpack.c.bf16 %v6955_v45, %v6954_v39 }
 0x71c   :  { %v6926_v46 = vadd.f32 %v12527_v0, %v6910_v44  ;;  %v7982_v62 = vpop.f32.mrb[208].mxu1  ;;  %v6911_v57 = vmul.f32 %v12522_v19, %v6869_v17 }
 0x71d   :  { %v7983_v11 = vpop.f32.mrb[209].mxu1  ;;  %v6969_v42 = vunpack.c.l.bf16 %v6964_v40  ;;  %v6970_v53 = vunpack.c.h.bf16 %v6964_v40 }
 0x71e   :  { %v7984_v5 = vadd.f32 %v7983_v11, %v7982_v62  ;;  %v7985_v33 = vpop.f32.mrb[210].mxu1  ;;  %v6946_v37 = vmul.f32 0.01, %v6926_v46  ;;  %v6927_v34 = vadd.f32 %v12527_v0, %v6911_v57  ;;  %vm6936_vm3 = vcmp.gt.f32.partialorder %v6926_v46, 0.0 }
 0x71f   :  { %v7986_v20 = vpop.f32.mrb[211].mxu1  ;;  %v6993_v52 = vmul.f32 %v12538_v29, %v6969_v42  ;;  %v6994_v61 = vmul.f32 %v12538_v29, %v6970_v53  ;;  %v6983_v16 = vmul.f32 %v12543_v41, %v6969_v42  ;;  %v7052_v48 = vmul.f32 %v12550_v2, %v6970_v53 }
 0x720   :  { %v6874_v15 = vadd.f32 %v7984_v5, %v12507_v27  ;;  %v7987_v51 = vadd.f32 %v7986_v20, %v7985_v33  ;;  %vm6937_vm6 = vcmp.gt.f32.partialorder %v6927_v34, 0.0  ;;  %v6947_v12 = vmul.f32 0.01, %v6927_v34 }
 0x721   :  { %v7008_v14 = vrot.slane %v6993_v52, 1  ;;  %v7009_v60 = vrot.slane %v6994_v61, 1  ;;  %v6956_v54 = vsel %vm6936_vm3, %v6926_v46, %v6946_v37  ;;  %v7036_v6 = vmul.f32 %v12559_v56, %v6970_v53 }
 0x722   :  { %v6912_v63 = vmul.f32 %v12522_v19, %v6874_v15  ;;  %v6877_v58 = vadd.f32 %v7987_v51, %v12509_v24  ;;  %v6957_v32 = vsel %vm6937_vm6, %v6927_v34, %v6947_v12  ;;  %v7066_v25 = vrot.slane %v7052_v48, 1 }
 0x723   :  { %v6965_v4 = vpack.c.bf16 %v6957_v32, %v6956_v54  ;;  %v7010_v7 = vsel %vm7007_vm5, %v7008_v14, %v7009_v60  ;;  %v6984_v46 = vmul.f32 %v12543_v41, %v6970_v53 }
 0x724   :  { %v6928_v10 = vadd.f32 %v12527_v0, %v6912_v63  ;;  %v6913_v1 = vmul.f32 %v12522_v19, %v6877_v58  ;;  %v7988_v27 = vpop.f32.mrb[212].mxu1  ;;  %v7026_v35 = vadd.f32 %v7010_v7, %v6983_v16 }
 0x725   :  { %v7989_v50 = vpop.f32.mrb[213].mxu1  ;;  %v6971_v47 = vunpack.c.l.bf16 %v6965_v4  ;;  %v6972_v43 = vunpack.c.h.bf16 %v6965_v4 }
 0x726   :  { %v6948_v24 = vmul.f32 0.01, %v6928_v10  ;;  %v6929_v30 = vadd.f32 %v12527_v0, %v6913_v1  ;;  %v7991_v28 = vpop.f32.mrb[214].mxu1  ;;  %vm6938_vm7 = vcmp.gt.f32.partialorder %v6928_v10, 0.0  ;;  %v7042_v39 = vadd.f32 %v7036_v6, %v7026_v35 }
 0x727   :  { %v7992_v26 = vpop.f32.mrb[215].mxu1  ;;  %v7053_v8 = vmul.f32 %v12550_v2, %v6971_v47  ;;  %v6995_v49 = vmul.f32 %v12538_v29, %v6971_v47  ;;  %v7054_v18 = vmul.f32 %v12550_v2, %v6972_v43  ;;  %v6996_v13 = vmul.f32 %v12538_v29, %v6972_v43 }
 0x728   :  { %vm6939_vm8 = vcmp.gt.f32.partialorder %v6929_v30, 0.0  ;;  %v6949_v9 = vmul.f32 0.01, %v6929_v30  ;;  %v6958_v59 = vsel %vm6938_vm7, %v6928_v10, %v6948_v24  ;;  %v6985_v62 = vmul.f32 %v12543_v41, %v6971_v47 }
 0x729   :  { %v7067_v3 = vrot.slane %v7053_v8, 1  ;;  %v7011_v45 = vrot.slane %v6995_v49, 1  ;;  %v7013_v57 = vrot.slane %v6996_v13, 1  ;;  %v7069_v33 = vrot.slane %v7054_v18, 1 }
 0x72a   :  { %v6959_v36 = vsel %vm6939_vm8, %v6929_v30, %v6949_v9  ;;  %v7037_v61 = vmul.f32 %v12559_v56, %v6971_v47  ;;  %v7038_v58 = vmul.f32 %v12559_v56, %v6972_v43 }
 0x72b   :  { %v6966_v44 = vpack.c.bf16 %v6959_v36, %v6958_v59  ;;  %v7068_v40 = vsel %vm7007_vm5, %v7066_v25, %v7067_v3  ;;  %v7012_v5 = vsel %vm7007_vm5, %v7009_v60, %v7011_v45  ;;  %v7014_v15 = vsel %vm7007_vm5, %v7011_v45, %v7013_v57 }
 0x72c   :  { %v7994_v17 = vpop.f32.mrb[216].mxu1  ;;  %v7084_v42 = vadd.f32 %v7068_v40, %v7042_v39  ;;  %v7027_v52 = vadd.f32 %v7012_v5, %v6984_v46  ;;  %v7028_v53 = vadd.f32 %v7014_v15, %v6985_v62  ;;  %v7070_v54 = vsel %vm7007_vm5, %v7067_v3, %v7069_v33 }
 0x72d   :  { %v7995_v11 = vpop.f32.mrb[217].mxu1  ;;  %v6973_v37 = vunpack.c.l.bf16 %v6966_v44 }
 0x72e   :  { %v7996_v34 = vadd.f32 %v7995_v11, %v7994_v17  ;;  %v7997_v20 = vpop.f32.mrb[218].mxu1  ;;  %v7090_v21 = vsel %vm317_vm1, %v7084_v42, 0.0  ;;  %v7043_v60 = vadd.f32 %v7037_v61, %v7027_v52  ;;  %v7044_v27 = vadd.f32 %v7038_v58, %v7028_v53 }
 0x72f   :  { %v7998_v51 = vpop.f32.mrb[219].mxu1  ;;  %v7055_v12 = vmul.f32 %v12550_v2, %v6973_v37  ;;  %7091 = vadd.xlane.f32.xlu0 %v7090_v21 }
 0x730   :  { %v6888_v14 = vadd.f32 %v7996_v34, %v12511_v22  ;;  %v7999_v63 = vadd.f32 %v7998_v51, %v7997_v20  ;;  %v7085_v1 = vadd.f32 %v7070_v54, %v7043_v60 }
 0x731   :  { %v7071_v32 = vrot.slane %v7055_v12, 1 }
 0x732   :  { %v6914_v4 = vmul.f32 %v12522_v19, %v6888_v14  ;;  %v6891_v10 = vadd.f32 %v7999_v63, %v12513_v31  ;;  %v7093_v16 = vsel %vm317_vm1, %v7085_v1, 0.0 }
 0x733   :  { %v7072_v7 = vsel %vm7007_vm5, %v7069_v33, %v7071_v32  ;;  %7094 = vadd.xlane.f32.xlu0 %v7093_v16 }
 0x734   :  { %v6930_v50 = vadd.f32 %v12527_v0, %v6914_v4  ;;  %v6915_v22 = vmul.f32 %v12522_v19, %v6891_v10  ;;  %v8000_v55 = vpop.f32.mrb[220].mxu1  ;;  %v7086_v48 = vadd.f32 %v7072_v7, %v7044_v27 }
 0x735   :  { %v8001_v47 = vpop.f32.mrb[221].mxu1 }
 0x736   :  { %v6950_v24 = vmul.f32 0.01, %v6930_v50  ;;  %v6931_v30 = vadd.f32 %v12527_v0, %v6915_v22  ;;  %v8002_v28 = vadd.f32 %v8001_v47, %v8000_v55  ;;  %v8003_v26 = vpop.f32.mrb[222].mxu1  ;;  %vm6940_vm9 = vcmp.gt.f32.partialorder %v6930_v50, 0.0  ;;  %v7669_v55 = vld [vmem:[#allocation2] ss:$0 sm:$0xff] }
 0x737   :  { %v8004_v31 = vpop.f32.mrb[223].mxu1  ;;  %v7096_v35 = vsel %vm317_vm1, %v7086_v48, 0.0 }
 0x738   :  { %vm6941_vm10 = vcmp.gt.f32.partialorder %v6931_v30, 0.0  ;;  %v6951_v43 = vmul.f32 0.01, %v6931_v30  ;;  %v6896_v9 = vadd.f32 %v8002_v28, %v12515_v23  ;;  %7097 = vadd.xlane.f32.xlu1 %v7096_v35  ;;  %v8005_v8 = vadd.f32 %v8004_v31, %v8003_v26 }
 0x739   :  { %v6960_v6 = vsel %vm6940_vm9, %v6930_v50, %v6950_v24 }
 0x73a   :  { %v6961_v25 = vsel %vm6941_vm10, %v6931_v30, %v6951_v43  ;;  %v6916_v49 = vmul.f32 %v12522_v19, %v6896_v9  ;;  %v6899_v59 = vadd.f32 %v8005_v8, %v12517_v38 }
 0x73b   :  { %v6967_v18 = vpack.c.bf16 %v6961_v25, %v6960_v6 }
 0x73c   :  { %v6932_v36 = vadd.f32 %v12527_v0, %v6916_v49  ;;  %v6917_v13 = vmul.f32 %v12522_v19, %v6899_v59 }
 0x73d   :  { %v6975_v3 = vunpack.c.h.bf16 %v6967_v18  ;;  %v6974_v39 = vunpack.c.l.bf16 %v6967_v18 }
 0x73e   :  { %v6952_v45 = vmul.f32 0.01, %v6932_v36  ;;  %v6933_v44 = vadd.f32 %v12527_v0, %v6917_v13  ;;  %vm6942_vm11 = vcmp.gt.f32.partialorder %v6932_v36, 0.0 }
 0x73f   :  { %v6997_v23 = vmul.f32 %v12538_v29, %v6974_v39  ;;  %v6998_v17 = vmul.f32 %v12538_v29, %v6975_v3  ;;  %v6986_v19 = vmul.f32 %v12543_v41, %v6974_v39  ;;  %v7056_v33 = vmul.f32 %v12550_v2, %v6975_v3 }
 0x740   :  { %vm6943_vm12 = vcmp.gt.f32.partialorder %v6933_v44, 0.0  ;;  %v6953_v40 = vmul.f32 0.01, %v6933_v44  ;;  %v6962_v57 = vsel %vm6942_vm11, %v6932_v36, %v6952_v45  ;;  %v7039_v52 = vmul.f32 %v12559_v56, %v6975_v3 }
 0x741   :  { %v7015_v46 = vrot.slane %v6997_v23, 1  ;;  %v7016_v62 = vrot.slane %v6998_v17, 1  ;;  %v7073_v15 = vrot.slane %v7056_v33, 1  ;;  %v6987_v63 = vmul.f32 %v12543_v41, %v6975_v3 }
 0x742   :  { %v6963_v38 = vsel %vm6943_vm12, %v6933_v44, %v6953_v40 }
 0x743   :  { %v6968_v11 = vpack.c.bf16 %v6963_v38, %v6962_v57  ;;  %v7017_v42 = vsel %vm7007_vm5, %v7015_v46, %v7016_v62 }
 0x744   :  { %v7029_v37 = vadd.f32 %v7017_v42, %v6986_v19 }
 0x745   :  { %v6976_v5 = vunpack.c.l.bf16 %v6968_v11  ;;  %v6977_v0 = vunpack.c.h.bf16 %v6968_v11 }
 0x746   :  { %v7045_v12 = vadd.f32 %v7039_v52, %v7029_v37 }
 0x747   :  { %v7057_v34 = vmul.f32 %v12550_v2, %v6976_v5  ;;  %v6999_v20 = vmul.f32 %v12538_v29, %v6976_v5  ;;  %v7058_v61 = vmul.f32 %v12550_v2, %v6977_v0  ;;  %v6988_v21 = vmul.f32 %v12543_v41, %v6976_v5 }
 0x748   :  { %v7041_v14 = vmul.f32 %v12559_v56, %v6977_v0  ;;  %v7040_v2 = vmul.f32 %v12559_v56, %v6976_v5 }
 0x749   :  { %v7074_v51 = vrot.slane %v7057_v34, 1  ;;  %v7018_v53 = vrot.slane %v6999_v20, 1  ;;  %v7076_v54 = vrot.slane %v7058_v61, 1 }
 0x74b   :  { %v7075_v60 = vsel %vm7007_vm5, %v7073_v15, %v7074_v51  ;;  %v7031_v58 = vadd.f32 %v7018_v53, %v6988_v21  ;;  %v7019_v29 = vsel %vm7007_vm5, %v7016_v62, %v7018_v53  ;;  %v7077_v50 = vsel %vm7007_vm5, %v7074_v51, %v7076_v54 }
 0x74c   :  { %v7087_v32 = vadd.f32 %v7075_v60, %v7045_v12  ;;  %v7030_v4 = vadd.f32 %v7019_v29, %v6987_v63 }
 0x74d   :  { %v7047_v10 = vadd.f32 %v7041_v14, %v7031_v58 }
 0x74e   :  { %v7099_v1 = vsel %vm317_vm1, %v7087_v32, 0.0  ;;  %v7046_v27 = vadd.f32 %v7040_v2, %v7030_v4 }
 0x74f   :  { %7100 = vadd.xlane.f32.xlu1 %v7099_v1  ;;  %v7089_v7 = vadd.f32 %v7076_v54, %v7047_v10 }
 0x750   :  { %v7088_v41 = vadd.f32 %v7077_v50, %v7046_v27 }
 0x751   :  { %v7106_v22 = vsel %vm7105_vm13, %v7089_v7, 0.0 }
 0x752   :  { %v7102_v16 = vsel %vm317_vm1, %v7088_v41, 0.0  ;;  %vm7158_vm1 = vcmask 2048  }
 0x753   :  { %7107 = vadd.xlane.f32.xlu1 %v7106_v22  ;;  %7103 = vadd.xlane.f32.xlu0 %v7102_v16 }
 0x7bc   :  { %v7092_v48 = vpop.xlane.xlu0 %7091 }
 0x7bd   :  { %v7116_v47 = vadd.f32 %v7669_v55, %v7092_v48 }
 0x7bf   :  { %v7122_v24 = vsub.f32 0.0, %v7116_v47 }
 0x7c0   :  { %v7095_v30 = vpop.xlane.xlu0 %7094 }
 0x7c1   :  { %v7128_v56 = vmul.f32 1.442695, %v7122_v24  ;;  %v7117_v28 = vadd.f32 %v7669_v55, %v7095_v30 }
 0x7c3   :  { %8993 = vpow2.f32 %v7128_v56  ;;  %v7123_v26 = vsub.f32 0.0, %v7117_v28 }
 0x7c5   :  { %v7098_v31 = vpop.xlane.xlu1 %7097  ;;  %v7130_v43 = vmul.f32 1.442695, %v7123_v26 }
 0x7c6   :  { %v7118_v35 = vadd.f32 %v7669_v55, %v7098_v31 }
 0x7c7   :  { %8995 = vpow2.f32 %v7130_v43 }
 0x7c8   :  { %v7124_v9 = vsub.f32 0.0, %v7118_v35 }
 0x7ca   :  { %v7132_v8 = vmul.f32 1.442695, %v7124_v9 }
 0x7cc   :  { %8997 = vpow2.f32 %v7132_v8 }
 0x7cd   :  { %v8994_v6 = vpop.eup %8993 }
 0x7ce   :  { %v7140_v25 = vadd.f32 1.0, %v8994_v6 }
 0x7d0   :  { %8999 = vrcp.f32 %v7140_v25 }
 0x7d1   :  { %v8996_v49 = vpop.eup %8995 }
 0x7d2   :  { %v7141_v18 = vadd.f32 1.0, %v8996_v49 }
 0x7d4   :  { %9001 = vrcp.f32 %v7141_v18 }
 0x7d6   :  { %v8998_v59 = vpop.eup %8997 }
 0x7d7   :  { %v7142_v36 = vadd.f32 1.0, %v8998_v59 }
 0x7d9   :  { %9003 = vrcp.f32 %v7142_v36 }
 0x7da   :  { %v9000_v3 = vpop.eup %8999 }
 0x7db   :  { %7159 = vst.msk [vmem:[%s12650_s15] sm:$0x7] %vm7158_vm1, %v9000_v3 }
 0x7dc   :  { %v7101_v13 = vpop.xlane.xlu1 %7100 }
 0x7dd   :  { %v7119_v39 = vadd.f32 %v7669_v55, %v7101_v13 }
 0x7de   :  { %v9002_v45 = vpop.eup %9001 }
 0x7df   :  { %v7125_v44 = vsub.f32 0.0, %v7119_v39  ;;  %7160 = vst.msk [vmem:[%s12650_s15 + $0x3] sm:$0x7] %vm7158_vm1, %v9002_v45 }
 0x7e0   :  { %v7108_v23 = vpop.xlane.xlu1 %7107  ;;  %v7104_v17 = vpop.xlane.xlu0 %7103 }
 0x7e1   :  { %v7134_v40 = vmul.f32 1.442695, %v7125_v44  ;;  %v7121_v46 = vadd.f32 %v7669_v55, %v7108_v23  ;;  %v7120_v62 = vadd.f32 %v7669_v55, %v7104_v17 }
 0x7e3   :  { %v9004_v57 = vpop.eup %9003  ;;  %9005 = vpow2.f32 %v7134_v40  ;;  %v7127_v38 = vsub.f32 0.0, %v7121_v46  ;;  %v7126_v11 = vsub.f32 0.0, %v7120_v62 }
 0x7e4   :  { %7161 = vst.msk [vmem:[%s12650_s15 + $0x6] sm:$0x7] %vm7158_vm1, %v9004_v57 }
 0x7e5   :  { %v7138_v42 = vmul.f32 1.442695, %v7127_v38  ;;  %v7136_v19 = vmul.f32 1.442695, %v7126_v11 }
 0x7e7   :  { %9007 = vpow2.f32 %v7138_v42 }
 0x7e8   :  { %9009 = vpow2.f32 %v7136_v19 }
 0x7ed   :  { %v9006_v5 = vpop.eup %9005 }
 0x7ee   :  { %v7143_v33 = vadd.f32 1.0, %v9006_v5 }
 0x7f0   :  { %9011 = vrcp.f32 %v7143_v33 }
 0x7f1   :  { %v9008_v0 = vpop.eup %9007 }
 0x7f2   :  { %v9010_v37 = vpop.eup %9009  ;;  %v7145_v34 = vadd.f32 1.0, %v9008_v0 }
 0x7f3   :  { %v7144_v20 = vadd.f32 1.0, %v9010_v37 }
 0x7f4   :  { %9013 = vrcp.f32 %v7145_v34 }
 0x7f5   :  { %9015 = vrcp.f32 %v7144_v20 }
 0x7fa   :  { %v9012_v52 = vpop.eup %9011 }
 0x7fb   :  { %7162 = vst.msk [vmem:[%s12650_s15 + $0x9] sm:$0x7] %vm7158_vm1, %v9012_v52 }
 0x7fe   :  { %v9014_v61 = vpop.eup %9013 }
 0x7ff   :  { %v9016_v15 = vpop.eup %9015  ;;  %7164 = vst.msk [vmem:[%s12650_s15 + $0xf] sm:$0x7] %vm7158_vm1, %v9014_v61 }
 0x800   :  { %7163 = vst.msk [vmem:[%s12650_s15 + $0xc] sm:$0x7] %vm7158_vm1, %v9016_v15 }

</bundles_post_ra>
